<compile_context>
chip_gen: v7x
topology: tpu7x:2x2x1
jax: 0.10.0
libtpu: 0.0.40
codegen_flags: <defaults>
</compile_context>

<pallas_src>
import functools

import numpy as np

import jax
import jax.numpy as jnp
from jax.experimental import pallas as pl
from jax.experimental.pallas import tpu as pltpu


# ----------------------------------------------------------------------------
# Fused Pallas kernel: conv1..conv3 (+BN+ReLU) + mlp1 + mlp2
# ----------------------------------------------------------------------------
def _cnn_fused_kernel(x_ref,
                      sel1, rhs1, g1, gt1, gb1,
                      sel2, g2, gt2, gb2,
                      sel3, g3, gt3, gb3,
                      seln, b1, w2t, b2,
                      rhs2_hbm, rhs3_hbm, w1h_hbm,
                      out_ref,
                      rhs2_v, rhs3_v, w1h_v, sems,
                      *, counts, eps):
    # Start the HBM->VMEM DMA of the big constants that conv1 does NOT need,
    # so their transfer overlaps conv1/conv2 compute instead of delaying the
    # first matmul (grid-less calls otherwise wait for every VMEM input).
    cp_rhs2 = pltpu.make_async_copy(rhs2_hbm, rhs2_v, sems.at[0])
    cp_rhs3 = pltpu.make_async_copy(rhs3_hbm, rhs3_v, sems.at[1])
    cp_w1h = pltpu.make_async_copy(w1h_hbm, w1h_v, sems.at[2])
    cp_rhs2.start()
    cp_rhs3.start()
    cp_w1h.start()

    def conv_bn_relu(act, sel_ref, rhs_ref, g_ref, gt_ref, gb_ref, count,
                     wait=None):
        kh = rhs_ref.shape[0]
        rout_pad = sel_ref.shape[0] // kh
        cdt = rhs_ref.dtype
        # One stacked 0/1 row-selection matmul: all 4 kernel-H taps at once,
        # each tap an 8-aligned slab of rows (zero rows give the H padding).
        bands = jnp.dot(sel_ref[...], act.astype(sel_ref.dtype),
                        preferred_element_type=jnp.float32)
        if wait is not None:
            wait()                      # conv weights must be resident now
        y = None
        for di in range(kh):
            # band values are exactly representable in cdt (they are selected
            # cdt activations or 0), so this cast is exact.
            band = bands[di * rout_pad:(di + 1) * rout_pad, :].astype(cdt)
            part = jnp.dot(band, rhs_ref[di],
                           preferred_element_type=jnp.float32)
            y = part if y is None else y + part
        # Training-mode BatchNorm over (N, OH, OW) per channel; pad rows of y
        # are exactly zero and `count` excludes them, so stats are exact.
        # All elementwise math in f32.
        inv_count = 1.0 / count
        col_sum = jnp.sum(y, axis=0, keepdims=True)
        col_sq = jnp.sum(y * y, axis=0, keepdims=True)
        mean = jnp.dot(col_sum, g_ref[...],
                       preferred_element_type=jnp.float32) * inv_count
        ex2 = jnp.dot(col_sq, g_ref[...],
                      preferred_element_type=jnp.float32) * inv_count
        var = jnp.maximum(ex2 - mean * mean, 0.0)      # clamp one-pass var
        scale_c = gb_ref[0:1, :] * jax.lax.rsqrt(var + eps)   # gamma folded in
        shift_c = gb_ref[1:2, :] - mean * scale_c
        scale = jnp.dot(scale_c, gt_ref[...], preferred_element_type=jnp.float32)
        shift = jnp.dot(shift_c, gt_ref[...], preferred_element_type=jnp.float32)
        return jnp.maximum(y * scale + shift, 0.0)

    act = conv_bn_relu(x_ref[...], sel1, rhs1, g1, gt1, gb1, counts[0])
    act = conv_bn_relu(act, sel2, rhs2_v, g2, gt2, gb2, counts[1],
                       wait=cp_rhs2.wait)
    act = conv_bn_relu(act, sel3, rhs3_v, g3, gt3, gb3, counts[2],
                       wait=cp_rhs3.wait)

    # mlp1 (PyTorch NCHW flatten + Linear) as: per-output-row 0/1 row gather
    # (so only N valid rows hit the weight matmul), then the weight matmul.
    # mlp2 stays in f32 (tiny).  No activation between the two linears.
    cp_w1h.wait()
    cdt = w1h_v.dtype
    hidden = b1[...]
    for r in range(w1h_v.shape[0]):
        rows_r = jnp.dot(seln[r], act, preferred_element_type=jnp.float32)
        hidden = hidden + jnp.dot(rows_r.astype(cdt), w1h_v[r],
                                  preferred_element_type=jnp.float32)
    out_ref[...] = (jnp.dot(hidden, w2t[...],
                            preferred_element_type=jnp.float32) + b2[...])


# ----------------------------------------------------------------------------
# One-time host-side parameter re-layout (numpy; zero per-forward cost)
# ----------------------------------------------------------------------------
def _round_up(x, m):
    return ((x + m - 1) // m) * m


def _conv_layer_prep(w, gamma, beta, n, h, w_in, rin_rows, const_dtype,
                     *, stride=3, pad=1):
    """Re-layout one Conv2d(4, stride=3, pad=1) + BN layer into matmul form."""
    cout, cin, kh, kw = w.shape
    oh = (h + 2 * pad - kh) // stride + 1
    ow = (w_in + 2 * pad - kw) // stride + 1
    rout = n * oh
    rout_pad = _round_up(rout, 8)       # sublane-aligned per-tap row blocks

    # Stacked 0/1 row selection: tap di's block maps output row (n, oh) to
    # input row (n, stride*oh - pad + di); out-of-range => zero row (H pad).
    sel = np.zeros((kh * rout_pad, rin_rows), np.float32)
    for di in range(kh):
        for b in range(n):
            for r in range(oh):
                src = stride * r - pad + di
                if 0 <= src < h:
                    sel[di * rout_pad + b * oh + r, b * h + src] = 1.0

    # Conv weights as (W in columns) -> (OW out columns) per tap; taps that
    # would read the W padding simply have no row (padded values are zero).
    rhs = np.zeros((kh, w_in * cin, ow * cout), np.float32)
    for di in range(kh):
        for o in range(ow):
            for dj in range(kw):
                src_w = stride * o - pad + dj
                if 0 <= src_w < w_in:
                    rhs[di, src_w * cin:(src_w + 1) * cin,
                        o * cout:(o + 1) * cout] = w[:, :, di, dj].T

    # BN gather: (ow, c) columns -> channels, and its transpose for broadcast.
    g = np.zeros((ow * cout, cout), np.float32)
    eye = np.eye(cout, dtype=np.float32)
    for o in range(ow):
        g[o * cout:(o + 1) * cout, :] = eye
    gb = np.stack([gamma, beta], axis=0)            # (2, cout)

    arrs = {
        "sel": jnp.asarray(sel, const_dtype),       # 0/1: exact in bf16
        "rhs": jnp.asarray(rhs, const_dtype),
        "g": jnp.asarray(g),                        # f32 (used with f32 stats)
        "gt": jnp.asarray(np.ascontiguousarray(g.T)),
        "gb": jnp.asarray(gb),
    }
    return arrs, float(n * oh * ow), (oh, ow, cout, rout_pad)


def prepare_params(params, n_batch, h_in=41, w_in=68,
                   const_dtype=jnp.bfloat16):
    """Build all kernel-ready constants once (host side)."""
    layers, counts = [], []
    h, w = h_in, w_in
    rin = n_batch * h_in
    oh = ow = cout = None
    for w_key, g_key, b_key in (("c1_w", "bn1_g", "bn1_b"),
                                ("c2_w", "bn2_g", "bn2_b"),
                                ("c3_w", "bn3_g", "bn3_b")):
        arrs, count, (oh, ow, cout, rout_pad) = _conv_layer_prep(
            np.asarray(params[w_key], np.float32),
            np.asarray(params[g_key], np.float32),
            np.asarray(params[b_key], np.float32),
            n_batch, h, w, rin, const_dtype)
        layers.append(arrs)
        counts.append(count)
        h, w, rin = oh, ow, rout_pad
    # conv biases (c?_b) are intentionally unused: train-mode BN subtracts the
    # batch mean, which cancels a per-channel constant exactly.

    # mlp1: permute columns so PyTorch's NCHW flatten order (c, h, w) matches
    # the kernel's (rows=(n,oh), lanes=(ow, c)) layout; pad hidden 100 -> 128.
    m1 = np.asarray(params["m1_w"], np.float32)          # (100, cout*oh*ow)
    hid = m1.shape[0]
    hid_pad = _round_up(hid, 128)
    w1h = np.zeros((oh, ow * cout, hid_pad), np.float32)
    for r in range(oh):
        for o in range(ow):
            cols = np.arange(cout) * (oh * ow) + r * ow + o
            w1h[r, o * cout:(o + 1) * cout, :hid] = m1[:, cols].T
    seln = np.zeros((oh, n_batch, rin), np.float32)      # rin == layer-3 rout_pad
    for r in range(oh):
        for b in range(n_batch):
            seln[r, b, b * oh + r] = 1.0
    b1 = np.zeros((1, hid_pad), np.float32)
    b1[0, :hid] = np.asarray(params["m1_b"], np.float32)
    m2 = np.asarray(params["m2_w"], np.float32)          # (3, 100)
    w2t = np.zeros((hid_pad, m2.shape[0]), np.float32)
    w2t[:hid, :] = m2.T
    b2 = np.asarray(params["m2_b"], np.float32).reshape(1, -1)

    l1, l2, l3 = layers
    vmem = (l1["sel"], l1["rhs"], l1["g"], l1["gt"], l1["gb"],
            l2["sel"], l2["g"], l2["gt"], l2["gb"],
            l3["sel"], l3["g"], l3["gt"], l3["gb"],
            jnp.asarray(seln), jnp.asarray(b1), jnp.asarray(w2t),
            jnp.asarray(b2))
    # Large constants not needed by conv1: delivered via pl.ANY + manual DMA.
    hbm = (l2["rhs"], l3["rhs"], jnp.asarray(w1h, const_dtype))

    # Advisory cost estimate (helps XLA schedule the tiny relayout HLOs).
    flops = 0
    for arrs in layers:
        kh = int(arrs["rhs"].shape[0])
        rp = int(arrs["sel"].shape[0]) // kh
        flops += 2 * arrs["sel"].shape[0] * arrs["sel"].shape[1] * arrs["rhs"].shape[1]
        flops += 2 * kh * rp * arrs["rhs"].shape[1] * arrs["rhs"].shape[2]
    flops += 2 * oh * n_batch * (rin + ow * cout * hid_pad)
    flops += 2 * n_batch * hid_pad * b2.shape[1]
    bytes_accessed = sum(int(np.prod(a.shape)) * a.dtype.itemsize
                         for a in vmem + hbm)
    bytes_accessed += n_batch * 8 * h_in * w_in * 4 + n_batch * 3 * 4
    cost = pl.CostEstimate(flops=int(flops), transcendentals=128,
                           bytes_accessed=int(bytes_accessed))
    return {"vmem": vmem, "hbm": hbm, "counts": tuple(counts), "cost": cost}


# ----------------------------------------------------------------------------
# Forward wrapper: tiny input re-layout + ONE pallas_call
# ----------------------------------------------------------------------------
def cnnnet_forward(prep, x):
    """x: (N, 8, 41, 68) NCHW float32 -> logits (N, 3)."""
    n, c, h, w = x.shape
    # Only per-forward layout work: NCHW -> (N*H, W*C) NHWC rows (no padding
    # columns any more, so this is a single fused transpose+reshape).
    x2d = jnp.transpose(x, (0, 2, 3, 1)).reshape(n * h, w * c)

    kernel = functools.partial(_cnn_fused_kernel,
                               counts=prep["counts"], eps=1e-5)
    vmem, hbm = prep["vmem"], prep["hbm"]
    in_specs = ([pl.BlockSpec(memory_space=pltpu.MemorySpace.VMEM)]
                * (1 + len(vmem))
                + [pl.BlockSpec(memory_space=pl.ANY)] * len(hbm))
    scratch = ([pltpu.VMEM(a.shape, a.dtype) for a in hbm]
               + [pltpu.SemaphoreType.DMA((len(hbm),))])
    return pl.pallas_call(
        kernel,
        out_shape=jax.ShapeDtypeStruct((n, 3), jnp.float32),
        in_specs=in_specs,
        out_specs=pl.BlockSpec(memory_space=pltpu.MemorySpace.VMEM),
        scratch_shapes=scratch,
        compiler_params=pltpu.CompilerParams(
            vmem_limit_bytes=32 * 1024 * 1024),   # fits v7x's smaller budget
        cost_estimate=prep["cost"],
    )(x2d, *vmem, *hbm)


# ----------------------------------------------------------------------------
# Deterministic synthetic parameters (same structure as the PyTorch module)
# ----------------------------------------------------------------------------
def init_params(key):
    keys = jax.random.split(key, 10)

    def w(k, shape, fan_in):
        return (jax.random.normal(k, shape, jnp.float32)
                * (1.0 / jnp.sqrt(fan_in)))

    return {
        # conv1: Conv2d(8, 16, 4, stride=3, padding=1) + BN(16)
        "c1_w": w(keys[0], (16, 8, 4, 4), 8 * 4 * 4),
        "c1_b": w(keys[1], (16,), 8 * 4 * 4),     # cancelled by train-mode BN
        "bn1_g": jnp.ones((16,), jnp.float32),
        "bn1_b": jnp.zeros((16,), jnp.float32),
        # conv2: Conv2d(16, 32, 4, 3, 1) + BN(32)
        "c2_w": w(keys[2], (32, 16, 4, 4), 16 * 4 * 4),
        "c2_b": w(keys[3], (32,), 16 * 4 * 4),    # cancelled by train-mode BN
        "bn2_g": jnp.ones((32,), jnp.float32),
        "bn2_b": jnp.zeros((32,), jnp.float32),
        # conv3: Conv2d(32, 64, 4, 3, 1) + BN(64)
        "c3_w": w(keys[4], (64, 32, 4, 4), 32 * 4 * 4),
        "c3_b": w(keys[5], (64,), 32 * 4 * 4),    # cancelled by train-mode BN
        "bn3_g": jnp.ones((64,), jnp.float32),
        "bn3_b": jnp.zeros((64,), jnp.float32),
        # mlp1: Linear(64*2*3, 100), mlp2: Linear(100, 3)
        "m1_w": w(keys[6], (100, 64 * 2 * 3), 64 * 2 * 3),
        "m1_b": w(keys[7], (100,), 64 * 2 * 3),
        "m2_w": w(keys[8], (3, 100), 100),
        "m2_b": w(keys[9], (3,), 100),
    }


if __name__ == "__main__":
    key = jax.random.PRNGKey(0)
    pkey, xkey = jax.random.split(key)
    params = init_params(pkey)
    # 41x68 is the smallest spatial size consistent with the hard-coded
    # Linear(64*2*3, 100): 41x68 -> 14x23 -> 5x8 -> 2x3.
    x = jax.random.normal(xkey, (2, 8, 41, 68), jnp.float32)

    prep = prepare_params(params, n_batch=x.shape[0])       # one-time, host
    fwd = jax.jit(lambda inp: cnnnet_forward(prep, inp))
    out = jax.block_until_ready(fwd(x))
    assert out.shape == (2, 3), out.shape
    assert bool(jnp.all(jnp.isfinite(out)))
    print("KERNEL_OK")
</pallas_src>

<mosaic_0001>
module attributes {stable_mosaic.version = 11 : i64} {
  func.func @_cnn_fused_kernel(%arg0: memref<82x544xf32, #tpu.memory_space<vmem>>, %arg1: memref<128x82xbf16, #tpu.memory_space<vmem>>, %arg2: memref<4x544x368xbf16, #tpu.memory_space<vmem>>, %arg3: memref<368x16xf32, #tpu.memory_space<vmem>>, %arg4: memref<16x368xf32, #tpu.memory_space<vmem>>, %arg5: memref<2x16xf32, #tpu.memory_space<vmem>>, %arg6: memref<64x32xbf16, #tpu.memory_space<vmem>>, %arg7: memref<256x32xf32, #tpu.memory_space<vmem>>, %arg8: memref<32x256xf32, #tpu.memory_space<vmem>>, %arg9: memref<2x32xf32, #tpu.memory_space<vmem>>, %arg10: memref<32x16xbf16, #tpu.memory_space<vmem>>, %arg11: memref<192x64xf32, #tpu.memory_space<vmem>>, %arg12: memref<64x192xf32, #tpu.memory_space<vmem>>, %arg13: memref<2x64xf32, #tpu.memory_space<vmem>>, %arg14: memref<2x2x8xf32, #tpu.memory_space<vmem>>, %arg15: memref<1x128xf32, #tpu.memory_space<vmem>>, %arg16: memref<128x3xf32, #tpu.memory_space<vmem>>, %arg17: memref<1x3xf32, #tpu.memory_space<vmem>>, %arg18: memref<4x368x256xbf16, #tpu.memory_space<any>>, %arg19: memref<4x256x192xbf16, #tpu.memory_space<any>>, %arg20: memref<2x192x128xbf16, #tpu.memory_space<any>>, %arg21: memref<2x3xf32, #tpu.memory_space<vmem>>, %arg22: memref<4x368x256xbf16, #tpu.memory_space<vmem>>, %arg23: memref<4x256x192xbf16, #tpu.memory_space<vmem>>, %arg24: memref<2x192x128xbf16, #tpu.memory_space<vmem>>, %arg25: memref<3x!tpu.dma_semaphore, #tpu.memory_space<semaphore_mem>>) attributes {dimension_semantics = [], scalar_prefetch = 0 : i64, scratch_operands = 4 : i64, tpu.core_type = #tpu.core_type<tc>} {
    %c0_i32 = arith.constant 0 : i32
    %0 = tpu.memref_slice %arg25[%c0_i32] : memref<3x!tpu.dma_semaphore, #tpu.memory_space<semaphore_mem>> -> memref<1x!tpu.dma_semaphore, #tpu.memory_space<semaphore_mem>>
    %1 = tpu.memref_squeeze %0 : memref<1x!tpu.dma_semaphore, #tpu.memory_space<semaphore_mem>> -> memref<!tpu.dma_semaphore, #tpu.memory_space<semaphore_mem>>
    tpu.enqueue_dma source(%arg18 : memref<4x368x256xbf16, #tpu.memory_space<any>>) target(%arg22 : memref<4x368x256xbf16, #tpu.memory_space<vmem>>) target_semaphore(%1 : memref<!tpu.dma_semaphore, #tpu.memory_space<semaphore_mem>>)
    %c1_i32 = arith.constant 1 : i32
    %2 = tpu.memref_slice %arg25[%c1_i32] : memref<3x!tpu.dma_semaphore, #tpu.memory_space<semaphore_mem>> -> memref<1x!tpu.dma_semaphore, #tpu.memory_space<semaphore_mem>>
    %3 = tpu.memref_squeeze %2 : memref<1x!tpu.dma_semaphore, #tpu.memory_space<semaphore_mem>> -> memref<!tpu.dma_semaphore, #tpu.memory_space<semaphore_mem>>
    tpu.enqueue_dma source(%arg19 : memref<4x256x192xbf16, #tpu.memory_space<any>>) target(%arg23 : memref<4x256x192xbf16, #tpu.memory_space<vmem>>) target_semaphore(%3 : memref<!tpu.dma_semaphore, #tpu.memory_space<semaphore_mem>>)
    %c2_i32 = arith.constant 2 : i32
    %4 = tpu.memref_slice %arg25[%c2_i32] : memref<3x!tpu.dma_semaphore, #tpu.memory_space<semaphore_mem>> -> memref<1x!tpu.dma_semaphore, #tpu.memory_space<semaphore_mem>>
    %5 = tpu.memref_squeeze %4 : memref<1x!tpu.dma_semaphore, #tpu.memory_space<semaphore_mem>> -> memref<!tpu.dma_semaphore, #tpu.memory_space<semaphore_mem>>
    tpu.enqueue_dma source(%arg20 : memref<2x192x128xbf16, #tpu.memory_space<any>>) target(%arg24 : memref<2x192x128xbf16, #tpu.memory_space<vmem>>) target_semaphore(%5 : memref<!tpu.dma_semaphore, #tpu.memory_space<semaphore_mem>>)
    %c0 = arith.constant 0 : index
    %c0_0 = arith.constant 0 : index
    %6 = vector.load %arg0[%c0, %c0_0] : memref<82x544xf32, #tpu.memory_space<vmem>>, vector<82x544xf32>
    %c0_1 = arith.constant 0 : index
    %c0_2 = arith.constant 0 : index
    %7 = vector.load %arg1[%c0_1, %c0_2] : memref<128x82xbf16, #tpu.memory_space<vmem>>, vector<128x82xbf16>
    %8 = arith.truncf %6 : vector<82x544xf32> to vector<82x544xbf16>
    %cst = arith.constant dense<0.000000e+00> : vector<128x544xf32>
    %9 = tpu.matmul %7, %8, %cst {dimension_numbers = #tpu.dot_dimension_numbers<[1], [0], [0], [1], [0, 0, 1, 1], [], []>} : vector<128x82xbf16>, vector<82x544xbf16>, vector<128x544xf32> -> vector<128x544xf32>
    %10 = vector.extract_strided_slice %9 {offsets = [0, 0], sizes = [32, 544], strides = [1, 1]} : vector<128x544xf32> to vector<32x544xf32>
    %11 = arith.truncf %10 : vector<32x544xf32> to vector<32x544xbf16>
    %c0_3 = arith.constant 0 : index
    %c0_4 = arith.constant 0 : index
    %c0_5 = arith.constant 0 : index
    %12 = vector.load %arg2[%c0_3, %c0_4, %c0_5] : memref<4x544x368xbf16, #tpu.memory_space<vmem>>, vector<1x544x368xbf16>
    %13 = vector.shape_cast %12 : vector<1x544x368xbf16> to vector<544x368xbf16>
    %cst_6 = arith.constant dense<0.000000e+00> : vector<32x368xf32>
    %14 = tpu.matmul %11, %13, %cst_6 {dimension_numbers = #tpu.dot_dimension_numbers<[1], [0], [0], [1], [0, 0, 1, 1], [], []>} : vector<32x544xbf16>, vector<544x368xbf16>, vector<32x368xf32> -> vector<32x368xf32>
    %15 = vector.extract_strided_slice %9 {offsets = [32, 0], sizes = [32, 544], strides = [1, 1]} : vector<128x544xf32> to vector<32x544xf32>
    %16 = arith.truncf %15 : vector<32x544xf32> to vector<32x544xbf16>
    %c1 = arith.constant 1 : index
    %c0_7 = arith.constant 0 : index
    %c0_8 = arith.constant 0 : index
    %17 = vector.load %arg2[%c1, %c0_7, %c0_8] : memref<4x544x368xbf16, #tpu.memory_space<vmem>>, vector<1x544x368xbf16>
    %18 = vector.shape_cast %17 : vector<1x544x368xbf16> to vector<544x368xbf16>
    %cst_9 = arith.constant dense<0.000000e+00> : vector<32x368xf32>
    %19 = tpu.matmul %16, %18, %cst_9 {dimension_numbers = #tpu.dot_dimension_numbers<[1], [0], [0], [1], [0, 0, 1, 1], [], []>} : vector<32x544xbf16>, vector<544x368xbf16>, vector<32x368xf32> -> vector<32x368xf32>
    %20 = arith.addf %14, %19 : vector<32x368xf32>
    %21 = vector.extract_strided_slice %9 {offsets = [64, 0], sizes = [32, 544], strides = [1, 1]} : vector<128x544xf32> to vector<32x544xf32>
    %22 = arith.truncf %21 : vector<32x544xf32> to vector<32x544xbf16>
    %c2 = arith.constant 2 : index
    %c0_10 = arith.constant 0 : index
    %c0_11 = arith.constant 0 : index
    %23 = vector.load %arg2[%c2, %c0_10, %c0_11] : memref<4x544x368xbf16, #tpu.memory_space<vmem>>, vector<1x544x368xbf16>
    %24 = vector.shape_cast %23 : vector<1x544x368xbf16> to vector<544x368xbf16>
    %cst_12 = arith.constant dense<0.000000e+00> : vector<32x368xf32>
    %25 = tpu.matmul %22, %24, %cst_12 {dimension_numbers = #tpu.dot_dimension_numbers<[1], [0], [0], [1], [0, 0, 1, 1], [], []>} : vector<32x544xbf16>, vector<544x368xbf16>, vector<32x368xf32> -> vector<32x368xf32>
    %26 = arith.addf %20, %25 : vector<32x368xf32>
    %27 = vector.extract_strided_slice %9 {offsets = [96, 0], sizes = [32, 544], strides = [1, 1]} : vector<128x544xf32> to vector<32x544xf32>
    %28 = arith.truncf %27 : vector<32x544xf32> to vector<32x544xbf16>
    %c3 = arith.constant 3 : index
    %c0_13 = arith.constant 0 : index
    %c0_14 = arith.constant 0 : index
    %29 = vector.load %arg2[%c3, %c0_13, %c0_14] : memref<4x544x368xbf16, #tpu.memory_space<vmem>>, vector<1x544x368xbf16>
    %30 = vector.shape_cast %29 : vector<1x544x368xbf16> to vector<544x368xbf16>
    %cst_15 = arith.constant dense<0.000000e+00> : vector<32x368xf32>
    %31 = tpu.matmul %28, %30, %cst_15 {dimension_numbers = #tpu.dot_dimension_numbers<[1], [0], [0], [1], [0, 0, 1, 1], [], []>} : vector<32x544xbf16>, vector<544x368xbf16>, vector<32x368xf32> -> vector<32x368xf32>
    %32 = arith.addf %26, %31 : vector<32x368xf32>
    %cst_16 = arith.constant dense<0.000000e+00> : vector<368xf32>
    %33 = vector.multi_reduction <add>, %32, %cst_16 [0] : vector<32x368xf32> to vector<368xf32>
    %34 = vector.shape_cast %33 : vector<368xf32> to vector<1x368xf32>
    %35 = arith.mulf %32, %32 : vector<32x368xf32>
    %cst_17 = arith.constant dense<0.000000e+00> : vector<368xf32>
    %36 = vector.multi_reduction <add>, %35, %cst_17 [0] : vector<32x368xf32> to vector<368xf32>
    %37 = vector.shape_cast %36 : vector<368xf32> to vector<1x368xf32>
    %c0_18 = arith.constant 0 : index
    %c0_19 = arith.constant 0 : index
    %38 = vector.load %arg3[%c0_18, %c0_19] : memref<368x16xf32, #tpu.memory_space<vmem>>, vector<368x16xf32>
    %cst_20 = arith.constant dense<0.000000e+00> : vector<1x16xf32>
    %39 = tpu.matmul %34, %38, %cst_20 {dimension_numbers = #tpu.dot_dimension_numbers<[1], [0], [0], [1], [0, 0, 1, 1], [], []>} : vector<1x368xf32>, vector<368x16xf32>, vector<1x16xf32> -> vector<1x16xf32>
    %cst_21 = arith.constant 0.00155279506 : f32
    %40 = vector.broadcast %cst_21 : f32 to vector<1x16xf32>
    %41 = arith.mulf %39, %40 : vector<1x16xf32>
    %c0_22 = arith.constant 0 : index
    %c0_23 = arith.constant 0 : index
    %42 = vector.load %arg3[%c0_22, %c0_23] : memref<368x16xf32, #tpu.memory_space<vmem>>, vector<368x16xf32>
    %cst_24 = arith.constant dense<0.000000e+00> : vector<1x16xf32>
    %43 = tpu.matmul %37, %42, %cst_24 {dimension_numbers = #tpu.dot_dimension_numbers<[1], [0], [0], [1], [0, 0, 1, 1], [], []>} : vector<1x368xf32>, vector<368x16xf32>, vector<1x16xf32> -> vector<1x16xf32>
    %cst_25 = arith.constant 0.00155279506 : f32
    %44 = vector.broadcast %cst_25 : f32 to vector<1x16xf32>
    %45 = arith.mulf %43, %44 : vector<1x16xf32>
    %46 = arith.mulf %41, %41 : vector<1x16xf32>
    %47 = arith.subf %45, %46 : vector<1x16xf32>
    %cst_26 = arith.constant 0.000000e+00 : f32
    %48 = vector.broadcast %cst_26 : f32 to vector<1x16xf32>
    %49 = arith.maximumf %47, %48 : vector<1x16xf32>
    %c0_27 = arith.constant 0 : index
    %c0_28 = arith.constant 0 : index
    %50 = vector.load %arg5[%c0_27, %c0_28] : memref<2x16xf32, #tpu.memory_space<vmem>>, vector<1x16xf32>
    %cst_29 = arith.constant 9.99999974E-6 : f32
    %51 = vector.broadcast %cst_29 : f32 to vector<1x16xf32>
    %52 = arith.addf %49, %51 : vector<1x16xf32>
    %53 = math.rsqrt %52 : vector<1x16xf32>
    %54 = arith.mulf %50, %53 : vector<1x16xf32>
    %c1_30 = arith.constant 1 : index
    %c0_31 = arith.constant 0 : index
    %55 = vector.load %arg5[%c1_30, %c0_31] : memref<2x16xf32, #tpu.memory_space<vmem>>, vector<1x16xf32>
    %56 = arith.mulf %41, %54 : vector<1x16xf32>
    %57 = arith.subf %55, %56 : vector<1x16xf32>
    %c0_32 = arith.constant 0 : index
    %c0_33 = arith.constant 0 : index
    %58 = vector.load %arg4[%c0_32, %c0_33] : memref<16x368xf32, #tpu.memory_space<vmem>>, vector<16x368xf32>
    %cst_34 = arith.constant dense<0.000000e+00> : vector<1x368xf32>
    %59 = tpu.matmul %54, %58, %cst_34 {dimension_numbers = #tpu.dot_dimension_numbers<[1], [0], [0], [1], [0, 0, 1, 1], [], []>} : vector<1x16xf32>, vector<16x368xf32>, vector<1x368xf32> -> vector<1x368xf32>
    %c0_35 = arith.constant 0 : index
    %c0_36 = arith.constant 0 : index
    %60 = vector.load %arg4[%c0_35, %c0_36] : memref<16x368xf32, #tpu.memory_space<vmem>>, vector<16x368xf32>
    %cst_37 = arith.constant dense<0.000000e+00> : vector<1x368xf32>
    %61 = tpu.matmul %57, %60, %cst_37 {dimension_numbers = #tpu.dot_dimension_numbers<[1], [0], [0], [1], [0, 0, 1, 1], [], []>} : vector<1x16xf32>, vector<16x368xf32>, vector<1x368xf32> -> vector<1x368xf32>
    %62 = vector.broadcast %59 : vector<1x368xf32> to vector<32x368xf32>
    %63 = arith.mulf %32, %62 : vector<32x368xf32>
    %64 = vector.broadcast %61 : vector<1x368xf32> to vector<32x368xf32>
    %65 = arith.addf %63, %64 : vector<32x368xf32>
    %cst_38 = arith.constant 0.000000e+00 : f32
    %66 = vector.broadcast %cst_38 : f32 to vector<32x368xf32>
    %67 = arith.maximumf %65, %66 : vector<32x368xf32>
    %c0_39 = arith.constant 0 : index
    %c0_40 = arith.constant 0 : index
    %68 = vector.load %arg6[%c0_39, %c0_40] : memref<64x32xbf16, #tpu.memory_space<vmem>>, vector<64x32xbf16>
    %69 = arith.truncf %67 : vector<32x368xf32> to vector<32x368xbf16>
    %cst_41 = arith.constant dense<0.000000e+00> : vector<64x368xf32>
    %70 = tpu.matmul %68, %69, %cst_41 {dimension_numbers = #tpu.dot_dimension_numbers<[1], [0], [0], [1], [0, 0, 1, 1], [], []>} : vector<64x32xbf16>, vector<32x368xbf16>, vector<64x368xf32> -> vector<64x368xf32>
    %c0_i32_42 = arith.constant 0 : i32
    %71 = tpu.memref_slice %arg25[%c0_i32_42] : memref<3x!tpu.dma_semaphore, #tpu.memory_space<semaphore_mem>> -> memref<1x!tpu.dma_semaphore, #tpu.memory_space<semaphore_mem>>
    %72 = tpu.memref_squeeze %71 : memref<1x!tpu.dma_semaphore, #tpu.memory_space<semaphore_mem>> -> memref<!tpu.dma_semaphore, #tpu.memory_space<semaphore_mem>>
    tpu.wait_dma2 semaphore(%72 : memref<!tpu.dma_semaphore, #tpu.memory_space<semaphore_mem>>) src(%arg18 : memref<4x368x256xbf16, #tpu.memory_space<any>>) dst(%arg22 : memref<4x368x256xbf16, #tpu.memory_space<vmem>>)
    %73 = vector.extract_strided_slice %70 {offsets = [0, 0], sizes = [16, 368], strides = [1, 1]} : vector<64x368xf32> to vector<16x368xf32>
    %74 = arith.truncf %73 : vector<16x368xf32> to vector<16x368xbf16>
    %c0_43 = arith.constant 0 : index
    %c0_44 = arith.constant 0 : index
    %c0_45 = arith.constant 0 : index
    %75 = vector.load %arg22[%c0_43, %c0_44, %c0_45] : memref<4x368x256xbf16, #tpu.memory_space<vmem>>, vector<1x368x256xbf16>
    %76 = vector.shape_cast %75 : vector<1x368x256xbf16> to vector<368x256xbf16>
    %cst_46 = arith.constant dense<0.000000e+00> : vector<16x256xf32>
    %77 = tpu.matmul %74, %76, %cst_46 {dimension_numbers = #tpu.dot_dimension_numbers<[1], [0], [0], [1], [0, 0, 1, 1], [], []>} : vector<16x368xbf16>, vector<368x256xbf16>, vector<16x256xf32> -> vector<16x256xf32>
    %78 = vector.extract_strided_slice %70 {offsets = [16, 0], sizes = [16, 368], strides = [1, 1]} : vector<64x368xf32> to vector<16x368xf32>
    %79 = arith.truncf %78 : vector<16x368xf32> to vector<16x368xbf16>
    %c1_47 = arith.constant 1 : index
    %c0_48 = arith.constant 0 : index
    %c0_49 = arith.constant 0 : index
    %80 = vector.load %arg22[%c1_47, %c0_48, %c0_49] : memref<4x368x256xbf16, #tpu.memory_space<vmem>>, vector<1x368x256xbf16>
    %81 = vector.shape_cast %80 : vector<1x368x256xbf16> to vector<368x256xbf16>
    %cst_50 = arith.constant dense<0.000000e+00> : vector<16x256xf32>
    %82 = tpu.matmul %79, %81, %cst_50 {dimension_numbers = #tpu.dot_dimension_numbers<[1], [0], [0], [1], [0, 0, 1, 1], [], []>} : vector<16x368xbf16>, vector<368x256xbf16>, vector<16x256xf32> -> vector<16x256xf32>
    %83 = arith.addf %77, %82 : vector<16x256xf32>
    %84 = vector.extract_strided_slice %70 {offsets = [32, 0], sizes = [16, 368], strides = [1, 1]} : vector<64x368xf32> to vector<16x368xf32>
    %85 = arith.truncf %84 : vector<16x368xf32> to vector<16x368xbf16>
    %c2_51 = arith.constant 2 : index
    %c0_52 = arith.constant 0 : index
    %c0_53 = arith.constant 0 : index
    %86 = vector.load %arg22[%c2_51, %c0_52, %c0_53] : memref<4x368x256xbf16, #tpu.memory_space<vmem>>, vector<1x368x256xbf16>
    %87 = vector.shape_cast %86 : vector<1x368x256xbf16> to vector<368x256xbf16>
    %cst_54 = arith.constant dense<0.000000e+00> : vector<16x256xf32>
    %88 = tpu.matmul %85, %87, %cst_54 {dimension_numbers = #tpu.dot_dimension_numbers<[1], [0], [0], [1], [0, 0, 1, 1], [], []>} : vector<16x368xbf16>, vector<368x256xbf16>, vector<16x256xf32> -> vector<16x256xf32>
    %89 = arith.addf %83, %88 : vector<16x256xf32>
    %90 = vector.extract_strided_slice %70 {offsets = [48, 0], sizes = [16, 368], strides = [1, 1]} : vector<64x368xf32> to vector<16x368xf32>
    %91 = arith.truncf %90 : vector<16x368xf32> to vector<16x368xbf16>
    %c3_55 = arith.constant 3 : index
    %c0_56 = arith.constant 0 : index
    %c0_57 = arith.constant 0 : index
    %92 = vector.load %arg22[%c3_55, %c0_56, %c0_57] : memref<4x368x256xbf16, #tpu.memory_space<vmem>>, vector<1x368x256xbf16>
    %93 = vector.shape_cast %92 : vector<1x368x256xbf16> to vector<368x256xbf16>
    %cst_58 = arith.constant dense<0.000000e+00> : vector<16x256xf32>
    %94 = tpu.matmul %91, %93, %cst_58 {dimension_numbers = #tpu.dot_dimension_numbers<[1], [0], [0], [1], [0, 0, 1, 1], [], []>} : vector<16x368xbf16>, vector<368x256xbf16>, vector<16x256xf32> -> vector<16x256xf32>
    %95 = arith.addf %89, %94 : vector<16x256xf32>
    %cst_59 = arith.constant dense<0.000000e+00> : vector<256xf32>
    %96 = vector.multi_reduction <add>, %95, %cst_59 [0] : vector<16x256xf32> to vector<256xf32>
    %97 = vector.shape_cast %96 : vector<256xf32> to vector<1x256xf32>
    %98 = arith.mulf %95, %95 : vector<16x256xf32>
    %cst_60 = arith.constant dense<0.000000e+00> : vector<256xf32>
    %99 = vector.multi_reduction <add>, %98, %cst_60 [0] : vector<16x256xf32> to vector<256xf32>
    %100 = vector.shape_cast %99 : vector<256xf32> to vector<1x256xf32>
    %c0_61 = arith.constant 0 : index
    %c0_62 = arith.constant 0 : index
    %101 = vector.load %arg7[%c0_61, %c0_62] : memref<256x32xf32, #tpu.memory_space<vmem>>, vector<256x32xf32>
    %cst_63 = arith.constant dense<0.000000e+00> : vector<1x32xf32>
    %102 = tpu.matmul %97, %101, %cst_63 {dimension_numbers = #tpu.dot_dimension_numbers<[1], [0], [0], [1], [0, 0, 1, 1], [], []>} : vector<1x256xf32>, vector<256x32xf32>, vector<1x32xf32> -> vector<1x32xf32>
    %cst_64 = arith.constant 1.250000e-02 : f32
    %103 = vector.broadcast %cst_64 : f32 to vector<1x32xf32>
    %104 = arith.mulf %102, %103 : vector<1x32xf32>
    %c0_65 = arith.constant 0 : index
    %c0_66 = arith.constant 0 : index
    %105 = vector.load %arg7[%c0_65, %c0_66] : memref<256x32xf32, #tpu.memory_space<vmem>>, vector<256x32xf32>
    %cst_67 = arith.constant dense<0.000000e+00> : vector<1x32xf32>
    %106 = tpu.matmul %100, %105, %cst_67 {dimension_numbers = #tpu.dot_dimension_numbers<[1], [0], [0], [1], [0, 0, 1, 1], [], []>} : vector<1x256xf32>, vector<256x32xf32>, vector<1x32xf32> -> vector<1x32xf32>
    %cst_68 = arith.constant 1.250000e-02 : f32
    %107 = vector.broadcast %cst_68 : f32 to vector<1x32xf32>
    %108 = arith.mulf %106, %107 : vector<1x32xf32>
    %109 = arith.mulf %104, %104 : vector<1x32xf32>
    %110 = arith.subf %108, %109 : vector<1x32xf32>
    %cst_69 = arith.constant 0.000000e+00 : f32
    %111 = vector.broadcast %cst_69 : f32 to vector<1x32xf32>
    %112 = arith.maximumf %110, %111 : vector<1x32xf32>
    %c0_70 = arith.constant 0 : index
    %c0_71 = arith.constant 0 : index
    %113 = vector.load %arg9[%c0_70, %c0_71] : memref<2x32xf32, #tpu.memory_space<vmem>>, vector<1x32xf32>
    %cst_72 = arith.constant 9.99999974E-6 : f32
    %114 = vector.broadcast %cst_72 : f32 to vector<1x32xf32>
    %115 = arith.addf %112, %114 : vector<1x32xf32>
    %116 = math.rsqrt %115 : vector<1x32xf32>
    %117 = arith.mulf %113, %116 : vector<1x32xf32>
    %c1_73 = arith.constant 1 : index
    %c0_74 = arith.constant 0 : index
    %118 = vector.load %arg9[%c1_73, %c0_74] : memref<2x32xf32, #tpu.memory_space<vmem>>, vector<1x32xf32>
    %119 = arith.mulf %104, %117 : vector<1x32xf32>
    %120 = arith.subf %118, %119 : vector<1x32xf32>
    %c0_75 = arith.constant 0 : index
    %c0_76 = arith.constant 0 : index
    %121 = vector.load %arg8[%c0_75, %c0_76] : memref<32x256xf32, #tpu.memory_space<vmem>>, vector<32x256xf32>
    %cst_77 = arith.constant dense<0.000000e+00> : vector<1x256xf32>
    %122 = tpu.matmul %117, %121, %cst_77 {dimension_numbers = #tpu.dot_dimension_numbers<[1], [0], [0], [1], [0, 0, 1, 1], [], []>} : vector<1x32xf32>, vector<32x256xf32>, vector<1x256xf32> -> vector<1x256xf32>
    %c0_78 = arith.constant 0 : index
    %c0_79 = arith.constant 0 : index
    %123 = vector.load %arg8[%c0_78, %c0_79] : memref<32x256xf32, #tpu.memory_space<vmem>>, vector<32x256xf32>
    %cst_80 = arith.constant dense<0.000000e+00> : vector<1x256xf32>
    %124 = tpu.matmul %120, %123, %cst_80 {dimension_numbers = #tpu.dot_dimension_numbers<[1], [0], [0], [1], [0, 0, 1, 1], [], []>} : vector<1x32xf32>, vector<32x256xf32>, vector<1x256xf32> -> vector<1x256xf32>
    %125 = vector.broadcast %122 : vector<1x256xf32> to vector<16x256xf32>
    %126 = arith.mulf %95, %125 : vector<16x256xf32>
    %127 = vector.broadcast %124 : vector<1x256xf32> to vector<16x256xf32>
    %128 = arith.addf %126, %127 : vector<16x256xf32>
    %cst_81 = arith.constant 0.000000e+00 : f32
    %129 = vector.broadcast %cst_81 : f32 to vector<16x256xf32>
    %130 = arith.maximumf %128, %129 : vector<16x256xf32>
    %c0_82 = arith.constant 0 : index
    %c0_83 = arith.constant 0 : index
    %131 = vector.load %arg10[%c0_82, %c0_83] : memref<32x16xbf16, #tpu.memory_space<vmem>>, vector<32x16xbf16>
    %132 = arith.truncf %130 : vector<16x256xf32> to vector<16x256xbf16>
    %cst_84 = arith.constant dense<0.000000e+00> : vector<32x256xf32>
    %133 = tpu.matmul %131, %132, %cst_84 {dimension_numbers = #tpu.dot_dimension_numbers<[1], [0], [0], [1], [0, 0, 1, 1], [], []>} : vector<32x16xbf16>, vector<16x256xbf16>, vector<32x256xf32> -> vector<32x256xf32>
    %c1_i32_85 = arith.constant 1 : i32
    %134 = tpu.memref_slice %arg25[%c1_i32_85] : memref<3x!tpu.dma_semaphore, #tpu.memory_space<semaphore_mem>> -> memref<1x!tpu.dma_semaphore, #tpu.memory_space<semaphore_mem>>
    %135 = tpu.memref_squeeze %134 : memref<1x!tpu.dma_semaphore, #tpu.memory_space<semaphore_mem>> -> memref<!tpu.dma_semaphore, #tpu.memory_space<semaphore_mem>>
    tpu.wait_dma2 semaphore(%135 : memref<!tpu.dma_semaphore, #tpu.memory_space<semaphore_mem>>) src(%arg19 : memref<4x256x192xbf16, #tpu.memory_space<any>>) dst(%arg23 : memref<4x256x192xbf16, #tpu.memory_space<vmem>>)
    %136 = vector.extract_strided_slice %133 {offsets = [0, 0], sizes = [8, 256], strides = [1, 1]} : vector<32x256xf32> to vector<8x256xf32>
    %137 = arith.truncf %136 : vector<8x256xf32> to vector<8x256xbf16>
    %c0_86 = arith.constant 0 : index
    %c0_87 = arith.constant 0 : index
    %c0_88 = arith.constant 0 : index
    %138 = vector.load %arg23[%c0_86, %c0_87, %c0_88] : memref<4x256x192xbf16, #tpu.memory_space<vmem>>, vector<1x256x192xbf16>
    %139 = vector.shape_cast %138 : vector<1x256x192xbf16> to vector<256x192xbf16>
    %cst_89 = arith.constant dense<0.000000e+00> : vector<8x192xf32>
    %140 = tpu.matmul %137, %139, %cst_89 {dimension_numbers = #tpu.dot_dimension_numbers<[1], [0], [0], [1], [0, 0, 1, 1], [], []>} : vector<8x256xbf16>, vector<256x192xbf16>, vector<8x192xf32> -> vector<8x192xf32>
    %141 = vector.extract_strided_slice %133 {offsets = [8, 0], sizes = [8, 256], strides = [1, 1]} : vector<32x256xf32> to vector<8x256xf32>
    %142 = arith.truncf %141 : vector<8x256xf32> to vector<8x256xbf16>
    %c1_90 = arith.constant 1 : index
    %c0_91 = arith.constant 0 : index
    %c0_92 = arith.constant 0 : index
    %143 = vector.load %arg23[%c1_90, %c0_91, %c0_92] : memref<4x256x192xbf16, #tpu.memory_space<vmem>>, vector<1x256x192xbf16>
    %144 = vector.shape_cast %143 : vector<1x256x192xbf16> to vector<256x192xbf16>
    %cst_93 = arith.constant dense<0.000000e+00> : vector<8x192xf32>
    %145 = tpu.matmul %142, %144, %cst_93 {dimension_numbers = #tpu.dot_dimension_numbers<[1], [0], [0], [1], [0, 0, 1, 1], [], []>} : vector<8x256xbf16>, vector<256x192xbf16>, vector<8x192xf32> -> vector<8x192xf32>
    %146 = arith.addf %140, %145 : vector<8x192xf32>
    %147 = vector.extract_strided_slice %133 {offsets = [16, 0], sizes = [8, 256], strides = [1, 1]} : vector<32x256xf32> to vector<8x256xf32>
    %148 = arith.truncf %147 : vector<8x256xf32> to vector<8x256xbf16>
    %c2_94 = arith.constant 2 : index
    %c0_95 = arith.constant 0 : index
    %c0_96 = arith.constant 0 : index
    %149 = vector.load %arg23[%c2_94, %c0_95, %c0_96] : memref<4x256x192xbf16, #tpu.memory_space<vmem>>, vector<1x256x192xbf16>
    %150 = vector.shape_cast %149 : vector<1x256x192xbf16> to vector<256x192xbf16>
    %cst_97 = arith.constant dense<0.000000e+00> : vector<8x192xf32>
    %151 = tpu.matmul %148, %150, %cst_97 {dimension_numbers = #tpu.dot_dimension_numbers<[1], [0], [0], [1], [0, 0, 1, 1], [], []>} : vector<8x256xbf16>, vector<256x192xbf16>, vector<8x192xf32> -> vector<8x192xf32>
    %152 = arith.addf %146, %151 : vector<8x192xf32>
    %153 = vector.extract_strided_slice %133 {offsets = [24, 0], sizes = [8, 256], strides = [1, 1]} : vector<32x256xf32> to vector<8x256xf32>
    %154 = arith.truncf %153 : vector<8x256xf32> to vector<8x256xbf16>
    %c3_98 = arith.constant 3 : index
    %c0_99 = arith.constant 0 : index
    %c0_100 = arith.constant 0 : index
    %155 = vector.load %arg23[%c3_98, %c0_99, %c0_100] : memref<4x256x192xbf16, #tpu.memory_space<vmem>>, vector<1x256x192xbf16>
    %156 = vector.shape_cast %155 : vector<1x256x192xbf16> to vector<256x192xbf16>
    %cst_101 = arith.constant dense<0.000000e+00> : vector<8x192xf32>
    %157 = tpu.matmul %154, %156, %cst_101 {dimension_numbers = #tpu.dot_dimension_numbers<[1], [0], [0], [1], [0, 0, 1, 1], [], []>} : vector<8x256xbf16>, vector<256x192xbf16>, vector<8x192xf32> -> vector<8x192xf32>
    %158 = arith.addf %152, %157 : vector<8x192xf32>
    %cst_102 = arith.constant dense<0.000000e+00> : vector<192xf32>
    %159 = vector.multi_reduction <add>, %158, %cst_102 [0] : vector<8x192xf32> to vector<192xf32>
    %160 = vector.shape_cast %159 : vector<192xf32> to vector<1x192xf32>
    %161 = arith.mulf %158, %158 : vector<8x192xf32>
    %cst_103 = arith.constant dense<0.000000e+00> : vector<192xf32>
    %162 = vector.multi_reduction <add>, %161, %cst_103 [0] : vector<8x192xf32> to vector<192xf32>
    %163 = vector.shape_cast %162 : vector<192xf32> to vector<1x192xf32>
    %c0_104 = arith.constant 0 : index
    %c0_105 = arith.constant 0 : index
    %164 = vector.load %arg11[%c0_104, %c0_105] : memref<192x64xf32, #tpu.memory_space<vmem>>, vector<192x64xf32>
    %cst_106 = arith.constant dense<0.000000e+00> : vector<1x64xf32>
    %165 = tpu.matmul %160, %164, %cst_106 {dimension_numbers = #tpu.dot_dimension_numbers<[1], [0], [0], [1], [0, 0, 1, 1], [], []>} : vector<1x192xf32>, vector<192x64xf32>, vector<1x64xf32> -> vector<1x64xf32>
    %cst_107 = arith.constant 0.0833333358 : f32
    %166 = vector.broadcast %cst_107 : f32 to vector<1x64xf32>
    %167 = arith.mulf %165, %166 : vector<1x64xf32>
    %c0_108 = arith.constant 0 : index
    %c0_109 = arith.constant 0 : index
    %168 = vector.load %arg11[%c0_108, %c0_109] : memref<192x64xf32, #tpu.memory_space<vmem>>, vector<192x64xf32>
    %cst_110 = arith.constant dense<0.000000e+00> : vector<1x64xf32>
    %169 = tpu.matmul %163, %168, %cst_110 {dimension_numbers = #tpu.dot_dimension_numbers<[1], [0], [0], [1], [0, 0, 1, 1], [], []>} : vector<1x192xf32>, vector<192x64xf32>, vector<1x64xf32> -> vector<1x64xf32>
    %cst_111 = arith.constant 0.0833333358 : f32
    %170 = vector.broadcast %cst_111 : f32 to vector<1x64xf32>
    %171 = arith.mulf %169, %170 : vector<1x64xf32>
    %172 = arith.mulf %167, %167 : vector<1x64xf32>
    %173 = arith.subf %171, %172 : vector<1x64xf32>
    %cst_112 = arith.constant 0.000000e+00 : f32
    %174 = vector.broadcast %cst_112 : f32 to vector<1x64xf32>
    %175 = arith.maximumf %173, %174 : vector<1x64xf32>
    %c0_113 = arith.constant 0 : index
    %c0_114 = arith.constant 0 : index
    %176 = vector.load %arg13[%c0_113, %c0_114] : memref<2x64xf32, #tpu.memory_space<vmem>>, vector<1x64xf32>
    %cst_115 = arith.constant 9.99999974E-6 : f32
    %177 = vector.broadcast %cst_115 : f32 to vector<1x64xf32>
    %178 = arith.addf %175, %177 : vector<1x64xf32>
    %179 = math.rsqrt %178 : vector<1x64xf32>
    %180 = arith.mulf %176, %179 : vector<1x64xf32>
    %c1_116 = arith.constant 1 : index
    %c0_117 = arith.constant 0 : index
    %181 = vector.load %arg13[%c1_116, %c0_117] : memref<2x64xf32, #tpu.memory_space<vmem>>, vector<1x64xf32>
    %182 = arith.mulf %167, %180 : vector<1x64xf32>
    %183 = arith.subf %181, %182 : vector<1x64xf32>
    %c0_118 = arith.constant 0 : index
    %c0_119 = arith.constant 0 : index
    %184 = vector.load %arg12[%c0_118, %c0_119] : memref<64x192xf32, #tpu.memory_space<vmem>>, vector<64x192xf32>
    %cst_120 = arith.constant dense<0.000000e+00> : vector<1x192xf32>
    %185 = tpu.matmul %180, %184, %cst_120 {dimension_numbers = #tpu.dot_dimension_numbers<[1], [0], [0], [1], [0, 0, 1, 1], [], []>} : vector<1x64xf32>, vector<64x192xf32>, vector<1x192xf32> -> vector<1x192xf32>
    %c0_121 = arith.constant 0 : index
    %c0_122 = arith.constant 0 : index
    %186 = vector.load %arg12[%c0_121, %c0_122] : memref<64x192xf32, #tpu.memory_space<vmem>>, vector<64x192xf32>
    %cst_123 = arith.constant dense<0.000000e+00> : vector<1x192xf32>
    %187 = tpu.matmul %183, %186, %cst_123 {dimension_numbers = #tpu.dot_dimension_numbers<[1], [0], [0], [1], [0, 0, 1, 1], [], []>} : vector<1x64xf32>, vector<64x192xf32>, vector<1x192xf32> -> vector<1x192xf32>
    %188 = vector.broadcast %185 : vector<1x192xf32> to vector<8x192xf32>
    %189 = arith.mulf %158, %188 : vector<8x192xf32>
    %190 = vector.broadcast %187 : vector<1x192xf32> to vector<8x192xf32>
    %191 = arith.addf %189, %190 : vector<8x192xf32>
    %cst_124 = arith.constant 0.000000e+00 : f32
    %192 = vector.broadcast %cst_124 : f32 to vector<8x192xf32>
    %193 = arith.maximumf %191, %192 : vector<8x192xf32>
    %c2_i32_125 = arith.constant 2 : i32
    %194 = tpu.memref_slice %arg25[%c2_i32_125] : memref<3x!tpu.dma_semaphore, #tpu.memory_space<semaphore_mem>> -> memref<1x!tpu.dma_semaphore, #tpu.memory_space<semaphore_mem>>
    %195 = tpu.memref_squeeze %194 : memref<1x!tpu.dma_semaphore, #tpu.memory_space<semaphore_mem>> -> memref<!tpu.dma_semaphore, #tpu.memory_space<semaphore_mem>>
    tpu.wait_dma2 semaphore(%195 : memref<!tpu.dma_semaphore, #tpu.memory_space<semaphore_mem>>) src(%arg20 : memref<2x192x128xbf16, #tpu.memory_space<any>>) dst(%arg24 : memref<2x192x128xbf16, #tpu.memory_space<vmem>>)
    %c0_126 = arith.constant 0 : index
    %c0_127 = arith.constant 0 : index
    %196 = vector.load %arg15[%c0_126, %c0_127] : memref<1x128xf32, #tpu.memory_space<vmem>>, vector<1x128xf32>
    %c0_128 = arith.constant 0 : index
    %c0_129 = arith.constant 0 : index
    %c0_130 = arith.constant 0 : index
    %197 = vector.load %arg14[%c0_128, %c0_129, %c0_130] : memref<2x2x8xf32, #tpu.memory_space<vmem>>, vector<1x2x8xf32>
    %198 = vector.shape_cast %197 : vector<1x2x8xf32> to vector<2x8xf32>
    %cst_131 = arith.constant dense<0.000000e+00> : vector<2x192xf32>
    %199 = tpu.matmul %198, %193, %cst_131 {dimension_numbers = #tpu.dot_dimension_numbers<[1], [0], [0], [1], [0, 0, 1, 1], [], []>} : vector<2x8xf32>, vector<8x192xf32>, vector<2x192xf32> -> vector<2x192xf32>
    %200 = arith.truncf %199 : vector<2x192xf32> to vector<2x192xbf16>
    %c0_132 = arith.constant 0 : index
    %c0_133 = arith.constant 0 : index
    %c0_134 = arith.constant 0 : index
    %201 = vector.load %arg24[%c0_132, %c0_133, %c0_134] : memref<2x192x128xbf16, #tpu.memory_space<vmem>>, vector<1x192x128xbf16>
    %202 = vector.shape_cast %201 : vector<1x192x128xbf16> to vector<192x128xbf16>
    %cst_135 = arith.constant dense<0.000000e+00> : vector<2x128xf32>
    %203 = tpu.matmul %200, %202, %cst_135 {dimension_numbers = #tpu.dot_dimension_numbers<[1], [0], [0], [1], [0, 0, 1, 1], [], []>} : vector<2x192xbf16>, vector<192x128xbf16>, vector<2x128xf32> -> vector<2x128xf32>
    %204 = vector.broadcast %196 : vector<1x128xf32> to vector<2x128xf32>
    %205 = arith.addf %204, %203 : vector<2x128xf32>
    %c1_136 = arith.constant 1 : index
    %c0_137 = arith.constant 0 : index
    %c0_138 = arith.constant 0 : index
    %206 = vector.load %arg14[%c1_136, %c0_137, %c0_138] : memref<2x2x8xf32, #tpu.memory_space<vmem>>, vector<1x2x8xf32>
    %207 = vector.shape_cast %206 : vector<1x2x8xf32> to vector<2x8xf32>
    %cst_139 = arith.constant dense<0.000000e+00> : vector<2x192xf32>
    %208 = tpu.matmul %207, %193, %cst_139 {dimension_numbers = #tpu.dot_dimension_numbers<[1], [0], [0], [1], [0, 0, 1, 1], [], []>} : vector<2x8xf32>, vector<8x192xf32>, vector<2x192xf32> -> vector<2x192xf32>
    %209 = arith.truncf %208 : vector<2x192xf32> to vector<2x192xbf16>
    %c1_140 = arith.constant 1 : index
    %c0_141 = arith.constant 0 : index
    %c0_142 = arith.constant 0 : index
    %210 = vector.load %arg24[%c1_140, %c0_141, %c0_142] : memref<2x192x128xbf16, #tpu.memory_space<vmem>>, vector<1x192x128xbf16>
    %211 = vector.shape_cast %210 : vector<1x192x128xbf16> to vector<192x128xbf16>
    %cst_143 = arith.constant dense<0.000000e+00> : vector<2x128xf32>
    %212 = tpu.matmul %209, %211, %cst_143 {dimension_numbers = #tpu.dot_dimension_numbers<[1], [0], [0], [1], [0, 0, 1, 1], [], []>} : vector<2x192xbf16>, vector<192x128xbf16>, vector<2x128xf32> -> vector<2x128xf32>
    %213 = arith.addf %205, %212 : vector<2x128xf32>
    %c0_144 = arith.constant 0 : index
    %c0_145 = arith.constant 0 : index
    %214 = vector.load %arg16[%c0_144, %c0_145] : memref<128x3xf32, #tpu.memory_space<vmem>>, vector<128x3xf32>
    %cst_146 = arith.constant dense<0.000000e+00> : vector<2x3xf32>
    %215 = tpu.matmul %213, %214, %cst_146 {dimension_numbers = #tpu.dot_dimension_numbers<[1], [0], [0], [1], [0, 0, 1, 1], [], []>} : vector<2x128xf32>, vector<128x3xf32>, vector<2x3xf32> -> vector<2x3xf32>
    %c0_147 = arith.constant 0 : index
    %c0_148 = arith.constant 0 : index
    %216 = vector.load %arg17[%c0_147, %c0_148] : memref<1x3xf32, #tpu.memory_space<vmem>>, vector<1x3xf32>
    %217 = vector.broadcast %216 : vector<1x3xf32> to vector<2x3xf32>
    %218 = arith.addf %215, %217 : vector<2x3xf32>
    %c0_149 = arith.constant 0 : index
    %c0_150 = arith.constant 0 : index
    %219 = vector.load %arg21[%c0_149, %c0_150] : memref<2x3xf32, #tpu.memory_space<vmem>>, vector<2x3xf32>
    tpu.vector_store %arg21[%c0_149, %c0_150], %218 {strides = array<i32>} : memref<2x3xf32, #tpu.memory_space<vmem>>, vector<2x3xf32>,
    return
  }
}

</mosaic_0001>

<bundles_post_ra>
// kernel: _lambda_.1
= control target key start
LH: loop header
LB: loop body
LE: loop exit
PB: predicated region body
PF: predicated region fallthrough
CT: control target
= control target key end

     0   :  { %s17461_s0 = inlined_call_operand.vmem [shape: f32[82,544], index: 0, kind: input, shape index: {}]   ;;  %s17462_s1 = inlined_call_operand.vmem [shape: bf16[128,82], index: 1, kind: input, shape index: {}]   ;;  %s17463_s2 = inlined_call_operand.vmem [shape: bf16[4,544,368], index: 2, kind: input, shape index: {}]   ;;  %s17464_s3 = inlined_call_operand.vmem [shape: f32[368,16], index: 3, kind: input, shape index: {}]   ;;  %s17465_s4 = inlined_call_operand.vmem [shape: f32[16,368], index: 4, kind: input, shape index: {}]   ;;  %s17466_s5 = inlined_call_operand.vmem [shape: f32[2,16], index: 5, kind: input, shape index: {}]   ;;  %s17467_s6 = inlined_call_operand.vmem [shape: bf16[64,32], index: 6, kind: input, shape index: {}]   ;;  %s17468_s7 = inlined_call_operand.vmem [shape: f32[256,32], index: 7, kind: input, shape index: {}]   ;;  %s17469_s8 = inlined_call_operand.vmem [shape: f32[32,256], index: 8, kind: input, shape index: {}]   ;;  %s17470_s9 = inlined_call_operand.vmem [shape: f32[2,32], index: 9, kind: input, shape index: {}]   ;;  %s17471_s10 = inlined_call_operand.vmem [shape: bf16[32,16], index: 10, kind: input, shape index: {}]   ;;  %s17472_s11 = inlined_call_operand.vmem [shape: f32[192,64], index: 11, kind: input, shape index: {}]   ;;  %s17473_s12 = inlined_call_operand.vmem [shape: f32[64,192], index: 12, kind: input, shape index: {}]   ;;  %s17474_s13 = inlined_call_operand.vmem [shape: f32[2,64], index: 13, kind: input, shape index: {}]   ;;  %s17475_s14 = inlined_call_operand.vmem [shape: f32[2,2,8], index: 14, kind: input, shape index: {}]   ;;  %s17476_s15 = inlined_call_operand.vmem [shape: f32[1,128], index: 15, kind: input, shape index: {}]   ;;  %s17477_s16 = inlined_call_operand.vmem [shape: f32[128,3], index: 16, kind: input, shape index: {}]   ;;  %s17478_s17 = inlined_call_operand.vmem [shape: f32[1,3], index: 17, kind: input, shape index: {}]   ;;  %s17479_s18 = inlined_call_operand.vmem [shape: bf16[4,368,256], index: 18, kind: input, shape index: {}]   ;;  %s17480_s19 = inlined_call_operand.vmem [shape: bf16[4,256,192], index: 19, kind: input, shape index: {}]   ;;  %s17481_s20 = inlined_call_operand.vmem [shape: bf16[2,192,128], index: 20, kind: input, shape index: {}]   ;;  %s17482_s21 = inlined_call_operand.hbm [shape: f32[2,3], index: 21, kind: output, shape index: {}]  }
   0x1   :  { %17495 = sst [smem:[#allocation25_spill]] %s17461_s0 }
   0x2   :  { %17496 = sst [smem:[#allocation26_spill]] %s17462_s1 }
   0x3   :  { %17497 = sst [smem:[#allocation27_spill]] %s17463_s2 }
   0x4   :  { %17498 = sst [smem:[#allocation28_spill]] %s17464_s3 }
   0x5   :  { %17499 = sst [smem:[#allocation29_spill]] %s17465_s4 }
   0x6   :  { %17500 = sst [smem:[#allocation30_spill]] %s17466_s5 }
   0x7   :  { %26 = vsyncpa [#allocation7], 0  ;;  %v81_v0 = vld [vmem:[%s17479_s18] sm:$0xf]  ;;  %v83_v1 = vld [vmem:[%s17479_s18 + $0x8] sm:$0xf] }
   0x8   :  { %82 = vst [vmem:[#allocation2] sm:$0xf] %v81_v0  ;;  %84 = vst [vmem:[#allocation2 + $0x4] sm:$0xf] %v83_v1  ;;  %v85_v2 = vld [vmem:[%s17479_s18 + $0x4] sm:$0xf] }
   0x9   :  { %v87_v3 = vld [vmem:[%s17479_s18 + $0xc] sm:$0xff]   ;;  %v91_v4 = vld [vmem:[%s17479_s18 + $0x18] sm:$0xf]  ;;  %86 = vst [vmem:[#allocation2 + $0x8] sm:$0xf] %v85_v2  ;;  %v95_v6 = vld [vmem:[%s17479_s18 + $0x1c] sm:$0xff]  }
   0xa   :  { %88 = vst [vmem:[#allocation2 + $0xc] sm:$0xff] %v87_v3   ;;  %92 = vst [vmem:[#allocation2 + $0x14] sm:$0xf] %v91_v4  ;;  %v93_v5 = vld [vmem:[%s17479_s18 + $0x14] sm:$0xf]  ;;  %v103_v9 = vld [vmem:[%s17479_s18 + $0x2c] sm:$0xff]  }
   0xb   :  { %v99_v7 = vld [vmem:[%s17479_s18 + $0x28] sm:$0xf]  ;;  %94 = vst [vmem:[#allocation2 + $0x18] sm:$0xf] %v93_v5  ;;  %96 = vst [vmem:[#allocation2 + $0x1c] sm:$0xff] %v95_v6   ;;  %v111_v12 = vld [vmem:[%s17479_s18 + $0x3c] sm:$0xff]  }
   0xc   :  { %100 = vst [vmem:[#allocation2 + $0x24] sm:$0xf] %v99_v7  ;;  %v101_v8 = vld [vmem:[%s17479_s18 + $0x24] sm:$0xf]  ;;  %v107_v10 = vld [vmem:[%s17479_s18 + $0x38] sm:$0xf] }
   0xd   :  { %102 = vst [vmem:[#allocation2 + $0x28] sm:$0xf] %v101_v8  ;;  %104 = vst [vmem:[#allocation2 + $0x2c] sm:$0xff] %v103_v9   ;;  %v109_v11 = vld [vmem:[%s17479_s18 + $0x34] sm:$0xf]  ;;  %v119_v15 = vld [vmem:[%s17479_s18 + $0x4c] sm:$0xff]  }
   0xe   :  { %108 = vst [vmem:[#allocation2 + $0x34] sm:$0xf] %v107_v10  ;;  %v115_v13 = vld [vmem:[%s17479_s18 + $0x48] sm:$0xf]  ;;  %110 = vst [vmem:[#allocation2 + $0x38] sm:$0xf] %v109_v11 }
   0xf   :  { %112 = vst [vmem:[#allocation2 + $0x3c] sm:$0xff] %v111_v12   ;;  %116 = vst [vmem:[#allocation2 + $0x44] sm:$0xf] %v115_v13  ;;  %v117_v14 = vld [vmem:[%s17479_s18 + $0x44] sm:$0xf]  ;;  %v127_v18 = vld [vmem:[%s17479_s18 + $0x5c] sm:$0xff]  }
  0x10   :  { %v123_v16 = vld [vmem:[%s17479_s18 + $0x58] sm:$0xf]  ;;  %118 = vst [vmem:[#allocation2 + $0x48] sm:$0xf] %v117_v14  ;;  %120 = vst [vmem:[#allocation2 + $0x4c] sm:$0xff] %v119_v15   ;;  %v135_v21 = vld [vmem:[%s17479_s18 + $0x6c] sm:$0xff]  }
  0x11   :  { %124 = vst [vmem:[#allocation2 + $0x54] sm:$0xf] %v123_v16  ;;  %v125_v17 = vld [vmem:[%s17479_s18 + $0x54] sm:$0xf]  ;;  %v131_v19 = vld [vmem:[%s17479_s18 + $0x68] sm:$0xf] }
  0x12   :  { %126 = vst [vmem:[#allocation2 + $0x58] sm:$0xf] %v125_v17  ;;  %128 = vst [vmem:[#allocation2 + $0x5c] sm:$0xff] %v127_v18   ;;  %v133_v20 = vld [vmem:[%s17479_s18 + $0x64] sm:$0xf]  ;;  %v143_v24 = vld [vmem:[%s17479_s18 + $0x7c] sm:$0xff]  }
  0x13   :  { %132 = vst [vmem:[#allocation2 + $0x64] sm:$0xf] %v131_v19  ;;  %v139_v22 = vld [vmem:[%s17479_s18 + $0x78] sm:$0xf]  ;;  %134 = vst [vmem:[#allocation2 + $0x68] sm:$0xf] %v133_v20 }
  0x14   :  { %136 = vst [vmem:[#allocation2 + $0x6c] sm:$0xff] %v135_v21   ;;  %140 = vst [vmem:[#allocation2 + $0x74] sm:$0xf] %v139_v22  ;;  %v141_v23 = vld [vmem:[%s17479_s18 + $0x74] sm:$0xf]  ;;  %v151_v27 = vld [vmem:[%s17479_s18 + $0x8c] sm:$0xff]  }
  0x15   :  { %v147_v25 = vld [vmem:[%s17479_s18 + $0x88] sm:$0xf]  ;;  %142 = vst [vmem:[#allocation2 + $0x78] sm:$0xf] %v141_v23  ;;  %144 = vst [vmem:[#allocation2 + $0x7c] sm:$0xff] %v143_v24   ;;  %v159_v30 = vld [vmem:[%s17479_s18 + $0x9c] sm:$0xff]  }
  0x16   :  { %148 = vst [vmem:[#allocation2 + $0x84] sm:$0xf] %v147_v25  ;;  %v149_v26 = vld [vmem:[%s17479_s18 + $0x84] sm:$0xf]  ;;  %v155_v28 = vld [vmem:[%s17479_s18 + $0x98] sm:$0xf] }
  0x17   :  { %150 = vst [vmem:[#allocation2 + $0x88] sm:$0xf] %v149_v26  ;;  %152 = vst [vmem:[#allocation2 + $0x8c] sm:$0xff] %v151_v27   ;;  %v157_v29 = vld [vmem:[%s17479_s18 + $0x94] sm:$0xf]  ;;  %v167_v33 = vld [vmem:[%s17479_s18 + $0xac] sm:$0xff]  }
  0x18   :  { %156 = vst [vmem:[#allocation2 + $0x94] sm:$0xf] %v155_v28  ;;  %v163_v31 = vld [vmem:[%s17479_s18 + $0xa8] sm:$0xf]  ;;  %158 = vst [vmem:[#allocation2 + $0x98] sm:$0xf] %v157_v29 }
  0x19   :  { %160 = vst [vmem:[#allocation2 + $0x9c] sm:$0xff] %v159_v30   ;;  %164 = vst [vmem:[#allocation2 + $0xa4] sm:$0xf] %v163_v31  ;;  %v165_v32 = vld [vmem:[%s17479_s18 + $0xa4] sm:$0xf]  ;;  %v175_v36 = vld [vmem:[%s17479_s18 + $0xbc] sm:$0xff]  }
  0x1a   :  { %v171_v34 = vld [vmem:[%s17479_s18 + $0xb8] sm:$0xf]  ;;  %166 = vst [vmem:[#allocation2 + $0xa8] sm:$0xf] %v165_v32  ;;  %168 = vst [vmem:[#allocation2 + $0xac] sm:$0xff] %v167_v33   ;;  %v183_v39 = vld [vmem:[%s17479_s18 + $0xcc] sm:$0xff]  }
  0x1b   :  { %172 = vst [vmem:[#allocation2 + $0xb4] sm:$0xf] %v171_v34  ;;  %v173_v35 = vld [vmem:[%s17479_s18 + $0xb4] sm:$0xf]  ;;  %v179_v37 = vld [vmem:[%s17479_s18 + $0xc8] sm:$0xf] }
  0x1c   :  { %174 = vst [vmem:[#allocation2 + $0xb8] sm:$0xf] %v173_v35  ;;  %176 = vst [vmem:[#allocation2 + $0xbc] sm:$0xff] %v175_v36   ;;  %v181_v38 = vld [vmem:[%s17479_s18 + $0xc4] sm:$0xf]  ;;  %v191_v42 = vld [vmem:[%s17479_s18 + $0xdc] sm:$0xff]  }
  0x1d   :  { %180 = vst [vmem:[#allocation2 + $0xc4] sm:$0xf] %v179_v37  ;;  %v187_v40 = vld [vmem:[%s17479_s18 + $0xd8] sm:$0xf]  ;;  %182 = vst [vmem:[#allocation2 + $0xc8] sm:$0xf] %v181_v38 }
  0x1e   :  { %184 = vst [vmem:[#allocation2 + $0xcc] sm:$0xff] %v183_v39   ;;  %188 = vst [vmem:[#allocation2 + $0xd4] sm:$0xf] %v187_v40  ;;  %v189_v41 = vld [vmem:[%s17479_s18 + $0xd4] sm:$0xf]  ;;  %v199_v45 = vld [vmem:[%s17479_s18 + $0xec] sm:$0xff]  }
  0x1f   :  { %v195_v43 = vld [vmem:[%s17479_s18 + $0xe8] sm:$0xf]  ;;  %190 = vst [vmem:[#allocation2 + $0xd8] sm:$0xf] %v189_v41  ;;  %192 = vst [vmem:[#allocation2 + $0xdc] sm:$0xff] %v191_v42   ;;  %v207_v48 = vld [vmem:[%s17479_s18 + $0xfc] sm:$0xff]  }
  0x20   :  { %196 = vst [vmem:[#allocation2 + $0xe4] sm:$0xf] %v195_v43  ;;  %v197_v44 = vld [vmem:[%s17479_s18 + $0xe4] sm:$0xf]  ;;  %v203_v46 = vld [vmem:[%s17479_s18 + $0xf8] sm:$0xf] }
  0x21   :  { %198 = vst [vmem:[#allocation2 + $0xe8] sm:$0xf] %v197_v44  ;;  %200 = vst [vmem:[#allocation2 + $0xec] sm:$0xff] %v199_v45   ;;  %v205_v47 = vld [vmem:[%s17479_s18 + $0xf4] sm:$0xf]  ;;  %v215_v51 = vld [vmem:[%s17479_s18 + $0x10c] sm:$0xff]  }
  0x22   :  { %204 = vst [vmem:[#allocation2 + $0xf4] sm:$0xf] %v203_v46  ;;  %v211_v49 = vld [vmem:[%s17479_s18 + $0x108] sm:$0xf]  ;;  %206 = vst [vmem:[#allocation2 + $0xf8] sm:$0xf] %v205_v47 }
  0x23   :  { %208 = vst [vmem:[#allocation2 + $0xfc] sm:$0xff] %v207_v48   ;;  %212 = vst [vmem:[#allocation2 + $0x104] sm:$0xf] %v211_v49  ;;  %v213_v50 = vld [vmem:[%s17479_s18 + $0x104] sm:$0xf]  ;;  %v223_v54 = vld [vmem:[%s17479_s18 + $0x11c] sm:$0xff]  }
  0x24   :  { %v219_v52 = vld [vmem:[%s17479_s18 + $0x118] sm:$0xf]  ;;  %214 = vst [vmem:[#allocation2 + $0x108] sm:$0xf] %v213_v50  ;;  %216 = vst [vmem:[#allocation2 + $0x10c] sm:$0xff] %v215_v51   ;;  %v231_v57 = vld [vmem:[%s17479_s18 + $0x12c] sm:$0xff]  }
  0x25   :  { %220 = vst [vmem:[#allocation2 + $0x114] sm:$0xf] %v219_v52  ;;  %v221_v53 = vld [vmem:[%s17479_s18 + $0x114] sm:$0xf]  ;;  %v227_v55 = vld [vmem:[%s17479_s18 + $0x128] sm:$0xf] }
  0x26   :  { %222 = vst [vmem:[#allocation2 + $0x118] sm:$0xf] %v221_v53  ;;  %224 = vst [vmem:[#allocation2 + $0x11c] sm:$0xff] %v223_v54   ;;  %v229_v56 = vld [vmem:[%s17479_s18 + $0x124] sm:$0xf]  ;;  %v239_v60 = vld [vmem:[%s17479_s18 + $0x13c] sm:$0xff]  }
  0x27   :  { %228 = vst [vmem:[#allocation2 + $0x124] sm:$0xf] %v227_v55  ;;  %v235_v58 = vld [vmem:[%s17479_s18 + $0x138] sm:$0xf]  ;;  %230 = vst [vmem:[#allocation2 + $0x128] sm:$0xf] %v229_v56 }
  0x28   :  { %232 = vst [vmem:[#allocation2 + $0x12c] sm:$0xff] %v231_v57   ;;  %236 = vst [vmem:[#allocation2 + $0x134] sm:$0xf] %v235_v58  ;;  %v237_v59 = vld [vmem:[%s17479_s18 + $0x134] sm:$0xf]  ;;  %v247_v63 = vld [vmem:[%s17479_s18 + $0x14c] sm:$0xff]  }
  0x29   :  { %v243_v61 = vld [vmem:[%s17479_s18 + $0x148] sm:$0xf]  ;;  %238 = vst [vmem:[#allocation2 + $0x138] sm:$0xf] %v237_v59  ;;  %240 = vst [vmem:[#allocation2 + $0x13c] sm:$0xff] %v239_v60   ;;  %v255_v2 = vld [vmem:[%s17479_s18 + $0x15c] sm:$0xff]  }
  0x2a   :  { %244 = vst [vmem:[#allocation2 + $0x144] sm:$0xf] %v243_v61  ;;  %v245_v62 = vld [vmem:[%s17479_s18 + $0x144] sm:$0xf]  ;;  %v251_v0 = vld [vmem:[%s17479_s18 + $0x158] sm:$0xf] }
  0x2b   :  { %246 = vst [vmem:[#allocation2 + $0x148] sm:$0xf] %v245_v62  ;;  %248 = vst [vmem:[#allocation2 + $0x14c] sm:$0xff] %v247_v63   ;;  %v253_v1 = vld [vmem:[%s17479_s18 + $0x154] sm:$0xf]  ;;  %v263_v5 = vld [vmem:[%s17479_s18 + $0x16c] sm:$0xff]  }
  0x2c   :  { %252 = vst [vmem:[#allocation2 + $0x154] sm:$0xf] %v251_v0  ;;  %v259_v3 = vld [vmem:[%s17479_s18 + $0x168] sm:$0xf]  ;;  %254 = vst [vmem:[#allocation2 + $0x158] sm:$0xf] %v253_v1 }
  0x2d   :  { %256 = vst [vmem:[#allocation2 + $0x15c] sm:$0xff] %v255_v2   ;;  %260 = vst [vmem:[#allocation2 + $0x164] sm:$0xf] %v259_v3  ;;  %v261_v4 = vld [vmem:[%s17479_s18 + $0x164] sm:$0xf]  ;;  %v271_v8 = vld [vmem:[%s17479_s18 + $0x17c] sm:$0xff]  }
  0x2e   :  { %v267_v6 = vld [vmem:[%s17479_s18 + $0x178] sm:$0xf]  ;;  %262 = vst [vmem:[#allocation2 + $0x168] sm:$0xf] %v261_v4  ;;  %264 = vst [vmem:[#allocation2 + $0x16c] sm:$0xff] %v263_v5   ;;  %v279_v11 = vld [vmem:[%s17479_s18 + $0x18c] sm:$0xff]  }
  0x2f   :  { %268 = vst [vmem:[#allocation2 + $0x174] sm:$0xf] %v267_v6  ;;  %v269_v7 = vld [vmem:[%s17479_s18 + $0x174] sm:$0xf]  ;;  %v275_v9 = vld [vmem:[%s17479_s18 + $0x188] sm:$0xf] }
  0x30   :  { %270 = vst [vmem:[#allocation2 + $0x178] sm:$0xf] %v269_v7  ;;  %272 = vst [vmem:[#allocation2 + $0x17c] sm:$0xff] %v271_v8   ;;  %v277_v10 = vld [vmem:[%s17479_s18 + $0x184] sm:$0xf]  ;;  %v287_v14 = vld [vmem:[%s17479_s18 + $0x19c] sm:$0xff]  }
  0x31   :  { %276 = vst [vmem:[#allocation2 + $0x184] sm:$0xf] %v275_v9  ;;  %v283_v12 = vld [vmem:[%s17479_s18 + $0x198] sm:$0xf]  ;;  %278 = vst [vmem:[#allocation2 + $0x188] sm:$0xf] %v277_v10 }
  0x32   :  { %280 = vst [vmem:[#allocation2 + $0x18c] sm:$0xff] %v279_v11   ;;  %284 = vst [vmem:[#allocation2 + $0x194] sm:$0xf] %v283_v12  ;;  %v285_v13 = vld [vmem:[%s17479_s18 + $0x194] sm:$0xf]  ;;  %v295_v17 = vld [vmem:[%s17479_s18 + $0x1ac] sm:$0xff]  }
  0x33   :  { %v291_v15 = vld [vmem:[%s17479_s18 + $0x1a8] sm:$0xf]  ;;  %286 = vst [vmem:[#allocation2 + $0x198] sm:$0xf] %v285_v13  ;;  %288 = vst [vmem:[#allocation2 + $0x19c] sm:$0xff] %v287_v14   ;;  %v303_v20 = vld [vmem:[%s17479_s18 + $0x1bc] sm:$0xff]  }
  0x34   :  { %292 = vst [vmem:[#allocation2 + $0x1a4] sm:$0xf] %v291_v15  ;;  %v293_v16 = vld [vmem:[%s17479_s18 + $0x1a4] sm:$0xf]  ;;  %v299_v18 = vld [vmem:[%s17479_s18 + $0x1b8] sm:$0xf] }
  0x35   :  { %294 = vst [vmem:[#allocation2 + $0x1a8] sm:$0xf] %v293_v16  ;;  %296 = vst [vmem:[#allocation2 + $0x1ac] sm:$0xff] %v295_v17   ;;  %v301_v19 = vld [vmem:[%s17479_s18 + $0x1b4] sm:$0xf]  ;;  %v311_v23 = vld [vmem:[%s17479_s18 + $0x1cc] sm:$0xff]  }
  0x36   :  { %300 = vst [vmem:[#allocation2 + $0x1b4] sm:$0xf] %v299_v18  ;;  %v307_v21 = vld [vmem:[%s17479_s18 + $0x1c8] sm:$0xf]  ;;  %302 = vst [vmem:[#allocation2 + $0x1b8] sm:$0xf] %v301_v19 }
  0x37   :  { %304 = vst [vmem:[#allocation2 + $0x1bc] sm:$0xff] %v303_v20   ;;  %308 = vst [vmem:[#allocation2 + $0x1c4] sm:$0xf] %v307_v21  ;;  %v309_v22 = vld [vmem:[%s17479_s18 + $0x1c4] sm:$0xf]  ;;  %v319_v26 = vld [vmem:[%s17479_s18 + $0x1dc] sm:$0xff]  }
  0x38   :  { %v315_v24 = vld [vmem:[%s17479_s18 + $0x1d8] sm:$0xf]  ;;  %310 = vst [vmem:[#allocation2 + $0x1c8] sm:$0xf] %v309_v22  ;;  %312 = vst [vmem:[#allocation2 + $0x1cc] sm:$0xff] %v311_v23   ;;  %v327_v29 = vld [vmem:[%s17479_s18 + $0x1ec] sm:$0xff]  }
  0x39   :  { %316 = vst [vmem:[#allocation2 + $0x1d4] sm:$0xf] %v315_v24  ;;  %v317_v25 = vld [vmem:[%s17479_s18 + $0x1d4] sm:$0xf]  ;;  %v323_v27 = vld [vmem:[%s17479_s18 + $0x1e8] sm:$0xf] }
  0x3a   :  { %318 = vst [vmem:[#allocation2 + $0x1d8] sm:$0xf] %v317_v25  ;;  %320 = vst [vmem:[#allocation2 + $0x1dc] sm:$0xff] %v319_v26   ;;  %v325_v28 = vld [vmem:[%s17479_s18 + $0x1e4] sm:$0xf]  ;;  %v335_v32 = vld [vmem:[%s17479_s18 + $0x1fc] sm:$0xff]  }
  0x3b   :  { %324 = vst [vmem:[#allocation2 + $0x1e4] sm:$0xf] %v323_v27  ;;  %v331_v30 = vld [vmem:[%s17479_s18 + $0x1f8] sm:$0xf]  ;;  %326 = vst [vmem:[#allocation2 + $0x1e8] sm:$0xf] %v325_v28 }
  0x3c   :  { %328 = vst [vmem:[#allocation2 + $0x1ec] sm:$0xff] %v327_v29   ;;  %332 = vst [vmem:[#allocation2 + $0x1f4] sm:$0xf] %v331_v30  ;;  %v333_v31 = vld [vmem:[%s17479_s18 + $0x1f4] sm:$0xf]  ;;  %v343_v35 = vld [vmem:[%s17479_s18 + $0x20c] sm:$0xff]  }
  0x3d   :  { %v339_v33 = vld [vmem:[%s17479_s18 + $0x208] sm:$0xf]  ;;  %334 = vst [vmem:[#allocation2 + $0x1f8] sm:$0xf] %v333_v31  ;;  %336 = vst [vmem:[#allocation2 + $0x1fc] sm:$0xff] %v335_v32   ;;  %v351_v38 = vld [vmem:[%s17479_s18 + $0x21c] sm:$0xff]  }
  0x3e   :  { %340 = vst [vmem:[#allocation2 + $0x204] sm:$0xf] %v339_v33  ;;  %v341_v34 = vld [vmem:[%s17479_s18 + $0x204] sm:$0xf]  ;;  %v347_v36 = vld [vmem:[%s17479_s18 + $0x218] sm:$0xf] }
  0x3f   :  { %342 = vst [vmem:[#allocation2 + $0x208] sm:$0xf] %v341_v34  ;;  %344 = vst [vmem:[#allocation2 + $0x20c] sm:$0xff] %v343_v35   ;;  %v349_v37 = vld [vmem:[%s17479_s18 + $0x214] sm:$0xf]  ;;  %v359_v41 = vld [vmem:[%s17479_s18 + $0x22c] sm:$0xff]  }
  0x40   :  { %348 = vst [vmem:[#allocation2 + $0x214] sm:$0xf] %v347_v36  ;;  %v355_v39 = vld [vmem:[%s17479_s18 + $0x228] sm:$0xf]  ;;  %350 = vst [vmem:[#allocation2 + $0x218] sm:$0xf] %v349_v37 }
  0x41   :  { %352 = vst [vmem:[#allocation2 + $0x21c] sm:$0xff] %v351_v38   ;;  %356 = vst [vmem:[#allocation2 + $0x224] sm:$0xf] %v355_v39  ;;  %v357_v40 = vld [vmem:[%s17479_s18 + $0x224] sm:$0xf]  ;;  %v367_v44 = vld [vmem:[%s17479_s18 + $0x23c] sm:$0xff]  }
  0x42   :  { %v363_v42 = vld [vmem:[%s17479_s18 + $0x238] sm:$0xf]  ;;  %358 = vst [vmem:[#allocation2 + $0x228] sm:$0xf] %v357_v40  ;;  %360 = vst [vmem:[#allocation2 + $0x22c] sm:$0xff] %v359_v41   ;;  %v375_v47 = vld [vmem:[%s17479_s18 + $0x24c] sm:$0xff]  }
  0x43   :  { %364 = vst [vmem:[#allocation2 + $0x234] sm:$0xf] %v363_v42  ;;  %v365_v43 = vld [vmem:[%s17479_s18 + $0x234] sm:$0xf]  ;;  %v371_v45 = vld [vmem:[%s17479_s18 + $0x248] sm:$0xf] }
  0x44   :  { %366 = vst [vmem:[#allocation2 + $0x238] sm:$0xf] %v365_v43  ;;  %368 = vst [vmem:[#allocation2 + $0x23c] sm:$0xff] %v367_v44   ;;  %v373_v46 = vld [vmem:[%s17479_s18 + $0x244] sm:$0xf]  ;;  %v383_v50 = vld [vmem:[%s17479_s18 + $0x25c] sm:$0xff]  }
  0x45   :  { %372 = vst [vmem:[#allocation2 + $0x244] sm:$0xf] %v371_v45  ;;  %v379_v48 = vld [vmem:[%s17479_s18 + $0x258] sm:$0xf]  ;;  %374 = vst [vmem:[#allocation2 + $0x248] sm:$0xf] %v373_v46 }
  0x46   :  { %376 = vst [vmem:[#allocation2 + $0x24c] sm:$0xff] %v375_v47   ;;  %380 = vst [vmem:[#allocation2 + $0x254] sm:$0xf] %v379_v48  ;;  %v381_v49 = vld [vmem:[%s17479_s18 + $0x254] sm:$0xf]  ;;  %v391_v53 = vld [vmem:[%s17479_s18 + $0x26c] sm:$0xff]  }
  0x47   :  { %v387_v51 = vld [vmem:[%s17479_s18 + $0x268] sm:$0xf]  ;;  %382 = vst [vmem:[#allocation2 + $0x258] sm:$0xf] %v381_v49  ;;  %384 = vst [vmem:[#allocation2 + $0x25c] sm:$0xff] %v383_v50   ;;  %v399_v56 = vld [vmem:[%s17479_s18 + $0x27c] sm:$0xff]  }
  0x48   :  { %388 = vst [vmem:[#allocation2 + $0x264] sm:$0xf] %v387_v51  ;;  %v389_v52 = vld [vmem:[%s17479_s18 + $0x264] sm:$0xf]  ;;  %v395_v54 = vld [vmem:[%s17479_s18 + $0x278] sm:$0xf] }
  0x49   :  { %390 = vst [vmem:[#allocation2 + $0x268] sm:$0xf] %v389_v52  ;;  %392 = vst [vmem:[#allocation2 + $0x26c] sm:$0xff] %v391_v53   ;;  %v397_v55 = vld [vmem:[%s17479_s18 + $0x274] sm:$0xf]  ;;  %v407_v59 = vld [vmem:[%s17479_s18 + $0x28c] sm:$0xff]  }
  0x4a   :  { %396 = vst [vmem:[#allocation2 + $0x274] sm:$0xf] %v395_v54  ;;  %v403_v57 = vld [vmem:[%s17479_s18 + $0x288] sm:$0xf]  ;;  %398 = vst [vmem:[#allocation2 + $0x278] sm:$0xf] %v397_v55 }
  0x4b   :  { %400 = vst [vmem:[#allocation2 + $0x27c] sm:$0xff] %v399_v56   ;;  %404 = vst [vmem:[#allocation2 + $0x284] sm:$0xf] %v403_v57  ;;  %v405_v58 = vld [vmem:[%s17479_s18 + $0x284] sm:$0xf]  ;;  %v415_v62 = vld [vmem:[%s17479_s18 + $0x29c] sm:$0xff]  }
  0x4c   :  { %v411_v60 = vld [vmem:[%s17479_s18 + $0x298] sm:$0xf]  ;;  %406 = vst [vmem:[#allocation2 + $0x288] sm:$0xf] %v405_v58  ;;  %408 = vst [vmem:[#allocation2 + $0x28c] sm:$0xff] %v407_v59   ;;  %v423_v1 = vld [vmem:[%s17479_s18 + $0x2ac] sm:$0xff]  }
  0x4d   :  { %412 = vst [vmem:[#allocation2 + $0x294] sm:$0xf] %v411_v60  ;;  %v413_v61 = vld [vmem:[%s17479_s18 + $0x294] sm:$0xf]  ;;  %v419_v63 = vld [vmem:[%s17479_s18 + $0x2a8] sm:$0xf] }
  0x4e   :  { %414 = vst [vmem:[#allocation2 + $0x298] sm:$0xf] %v413_v61  ;;  %416 = vst [vmem:[#allocation2 + $0x29c] sm:$0xff] %v415_v62   ;;  %v421_v0 = vld [vmem:[%s17479_s18 + $0x2a4] sm:$0xf]  ;;  %v431_v4 = vld [vmem:[%s17479_s18 + $0x2bc] sm:$0xff]  }
  0x4f   :  { %420 = vst [vmem:[#allocation2 + $0x2a4] sm:$0xf] %v419_v63  ;;  %v427_v2 = vld [vmem:[%s17479_s18 + $0x2b8] sm:$0xf]  ;;  %422 = vst [vmem:[#allocation2 + $0x2a8] sm:$0xf] %v421_v0 }
  0x50   :  { %424 = vst [vmem:[#allocation2 + $0x2ac] sm:$0xff] %v423_v1   ;;  %428 = vst [vmem:[#allocation2 + $0x2b4] sm:$0xf] %v427_v2  ;;  %v429_v3 = vld [vmem:[%s17479_s18 + $0x2b4] sm:$0xf]  ;;  %v439_v7 = vld [vmem:[%s17479_s18 + $0x2cc] sm:$0xff]  }
  0x51   :  { %v435_v5 = vld [vmem:[%s17479_s18 + $0x2c8] sm:$0xf]  ;;  %430 = vst [vmem:[#allocation2 + $0x2b8] sm:$0xf] %v429_v3  ;;  %432 = vst [vmem:[#allocation2 + $0x2bc] sm:$0xff] %v431_v4   ;;  %v447_v10 = vld [vmem:[%s17479_s18 + $0x2dc] sm:$0xff]  }
  0x52   :  { %436 = vst [vmem:[#allocation2 + $0x2c4] sm:$0xf] %v435_v5  ;;  %v437_v6 = vld [vmem:[%s17479_s18 + $0x2c4] sm:$0xf]  ;;  %v443_v8 = vld [vmem:[%s17479_s18 + $0x2d8] sm:$0xf] }
  0x53   :  { %438 = vst [vmem:[#allocation2 + $0x2c8] sm:$0xf] %v437_v6  ;;  %440 = vst [vmem:[#allocation2 + $0x2cc] sm:$0xff] %v439_v7   ;;  %v445_v9 = vld [vmem:[%s17479_s18 + $0x2d4] sm:$0xf]  ;;  %v455_v13 = vld [vmem:[%s17479_s18 + $0x2ec] sm:$0xff]  }
  0x54   :  { %444 = vst [vmem:[#allocation2 + $0x2d4] sm:$0xf] %v443_v8  ;;  %v451_v11 = vld [vmem:[%s17479_s18 + $0x2e8] sm:$0xf]  ;;  %446 = vst [vmem:[#allocation2 + $0x2d8] sm:$0xf] %v445_v9 }
  0x55   :  { %448 = vst [vmem:[#allocation2 + $0x2dc] sm:$0xff] %v447_v10   ;;  %452 = vst [vmem:[#allocation2 + $0x2e4] sm:$0xf] %v451_v11  ;;  %v453_v12 = vld [vmem:[%s17479_s18 + $0x2e4] sm:$0xf]  ;;  %v463_v16 = vld [vmem:[%s17479_s18 + $0x2fc] sm:$0xff]  }
  0x56   :  { %v459_v14 = vld [vmem:[%s17479_s18 + $0x2f8] sm:$0xf]  ;;  %454 = vst [vmem:[#allocation2 + $0x2e8] sm:$0xf] %v453_v12  ;;  %456 = vst [vmem:[#allocation2 + $0x2ec] sm:$0xff] %v455_v13   ;;  %v471_v19 = vld [vmem:[%s17479_s18 + $0x30c] sm:$0xff]  }
  0x57   :  { %460 = vst [vmem:[#allocation2 + $0x2f4] sm:$0xf] %v459_v14  ;;  %v461_v15 = vld [vmem:[%s17479_s18 + $0x2f4] sm:$0xf]  ;;  %v467_v17 = vld [vmem:[%s17479_s18 + $0x308] sm:$0xf] }
  0x58   :  { %462 = vst [vmem:[#allocation2 + $0x2f8] sm:$0xf] %v461_v15  ;;  %464 = vst [vmem:[#allocation2 + $0x2fc] sm:$0xff] %v463_v16   ;;  %v469_v18 = vld [vmem:[%s17479_s18 + $0x304] sm:$0xf]  ;;  %v479_v22 = vld [vmem:[%s17479_s18 + $0x31c] sm:$0xff]  }
  0x59   :  { %468 = vst [vmem:[#allocation2 + $0x304] sm:$0xf] %v467_v17  ;;  %v475_v20 = vld [vmem:[%s17479_s18 + $0x318] sm:$0xf]  ;;  %470 = vst [vmem:[#allocation2 + $0x308] sm:$0xf] %v469_v18 }
  0x5a   :  { %472 = vst [vmem:[#allocation2 + $0x30c] sm:$0xff] %v471_v19   ;;  %476 = vst [vmem:[#allocation2 + $0x314] sm:$0xf] %v475_v20  ;;  %v477_v21 = vld [vmem:[%s17479_s18 + $0x314] sm:$0xf]  ;;  %v487_v25 = vld [vmem:[%s17479_s18 + $0x32c] sm:$0xff]  }
  0x5b   :  { %v483_v23 = vld [vmem:[%s17479_s18 + $0x328] sm:$0xf]  ;;  %478 = vst [vmem:[#allocation2 + $0x318] sm:$0xf] %v477_v21  ;;  %480 = vst [vmem:[#allocation2 + $0x31c] sm:$0xff] %v479_v22   ;;  %v495_v28 = vld [vmem:[%s17479_s18 + $0x33c] sm:$0xff]  }
  0x5c   :  { %484 = vst [vmem:[#allocation2 + $0x324] sm:$0xf] %v483_v23  ;;  %v485_v24 = vld [vmem:[%s17479_s18 + $0x324] sm:$0xf]  ;;  %v491_v26 = vld [vmem:[%s17479_s18 + $0x338] sm:$0xf] }
  0x5d   :  { %486 = vst [vmem:[#allocation2 + $0x328] sm:$0xf] %v485_v24  ;;  %488 = vst [vmem:[#allocation2 + $0x32c] sm:$0xff] %v487_v25   ;;  %v493_v27 = vld [vmem:[%s17479_s18 + $0x334] sm:$0xf]  ;;  %v503_v31 = vld [vmem:[%s17479_s18 + $0x34c] sm:$0xff]  }
  0x5e   :  { %492 = vst [vmem:[#allocation2 + $0x334] sm:$0xf] %v491_v26  ;;  %v499_v29 = vld [vmem:[%s17479_s18 + $0x348] sm:$0xf]  ;;  %494 = vst [vmem:[#allocation2 + $0x338] sm:$0xf] %v493_v27 }
  0x5f   :  { %496 = vst [vmem:[#allocation2 + $0x33c] sm:$0xff] %v495_v28   ;;  %500 = vst [vmem:[#allocation2 + $0x344] sm:$0xf] %v499_v29  ;;  %v501_v30 = vld [vmem:[%s17479_s18 + $0x344] sm:$0xf]  ;;  %v511_v34 = vld [vmem:[%s17479_s18 + $0x35c] sm:$0xff]  }
  0x60   :  { %v507_v32 = vld [vmem:[%s17479_s18 + $0x358] sm:$0xf]  ;;  %502 = vst [vmem:[#allocation2 + $0x348] sm:$0xf] %v501_v30  ;;  %504 = vst [vmem:[#allocation2 + $0x34c] sm:$0xff] %v503_v31   ;;  %v519_v37 = vld [vmem:[%s17479_s18 + $0x36c] sm:$0xff]  }
  0x61   :  { %508 = vst [vmem:[#allocation2 + $0x354] sm:$0xf] %v507_v32  ;;  %v509_v33 = vld [vmem:[%s17479_s18 + $0x354] sm:$0xf]  ;;  %v515_v35 = vld [vmem:[%s17479_s18 + $0x368] sm:$0xf] }
  0x62   :  { %510 = vst [vmem:[#allocation2 + $0x358] sm:$0xf] %v509_v33  ;;  %512 = vst [vmem:[#allocation2 + $0x35c] sm:$0xff] %v511_v34   ;;  %v517_v36 = vld [vmem:[%s17479_s18 + $0x364] sm:$0xf]  ;;  %v527_v40 = vld [vmem:[%s17479_s18 + $0x37c] sm:$0xff]  }
  0x63   :  { %516 = vst [vmem:[#allocation2 + $0x364] sm:$0xf] %v515_v35  ;;  %v523_v38 = vld [vmem:[%s17479_s18 + $0x378] sm:$0xf]  ;;  %518 = vst [vmem:[#allocation2 + $0x368] sm:$0xf] %v517_v36 }
  0x64   :  { %520 = vst [vmem:[#allocation2 + $0x36c] sm:$0xff] %v519_v37   ;;  %524 = vst [vmem:[#allocation2 + $0x374] sm:$0xf] %v523_v38  ;;  %v525_v39 = vld [vmem:[%s17479_s18 + $0x374] sm:$0xf]  ;;  %v535_v43 = vld [vmem:[%s17479_s18 + $0x38c] sm:$0xff]  }
  0x65   :  { %v531_v41 = vld [vmem:[%s17479_s18 + $0x388] sm:$0xf]  ;;  %526 = vst [vmem:[#allocation2 + $0x378] sm:$0xf] %v525_v39  ;;  %528 = vst [vmem:[#allocation2 + $0x37c] sm:$0xff] %v527_v40   ;;  %v543_v46 = vld [vmem:[%s17479_s18 + $0x39c] sm:$0xff]  }
  0x66   :  { %532 = vst [vmem:[#allocation2 + $0x384] sm:$0xf] %v531_v41  ;;  %v533_v42 = vld [vmem:[%s17479_s18 + $0x384] sm:$0xf]  ;;  %v539_v44 = vld [vmem:[%s17479_s18 + $0x398] sm:$0xf] }
  0x67   :  { %534 = vst [vmem:[#allocation2 + $0x388] sm:$0xf] %v533_v42  ;;  %536 = vst [vmem:[#allocation2 + $0x38c] sm:$0xff] %v535_v43   ;;  %v541_v45 = vld [vmem:[%s17479_s18 + $0x394] sm:$0xf]  ;;  %v551_v49 = vld [vmem:[%s17479_s18 + $0x3ac] sm:$0xff]  }
  0x68   :  { %540 = vst [vmem:[#allocation2 + $0x394] sm:$0xf] %v539_v44  ;;  %v547_v47 = vld [vmem:[%s17479_s18 + $0x3a8] sm:$0xf]  ;;  %542 = vst [vmem:[#allocation2 + $0x398] sm:$0xf] %v541_v45 }
  0x69   :  { %544 = vst [vmem:[#allocation2 + $0x39c] sm:$0xff] %v543_v46   ;;  %548 = vst [vmem:[#allocation2 + $0x3a4] sm:$0xf] %v547_v47  ;;  %v549_v48 = vld [vmem:[%s17479_s18 + $0x3a4] sm:$0xf]  ;;  %v559_v52 = vld [vmem:[%s17479_s18 + $0x3bc] sm:$0xff]  }
  0x6a   :  { %v555_v50 = vld [vmem:[%s17479_s18 + $0x3b8] sm:$0xf]  ;;  %550 = vst [vmem:[#allocation2 + $0x3a8] sm:$0xf] %v549_v48  ;;  %552 = vst [vmem:[#allocation2 + $0x3ac] sm:$0xff] %v551_v49   ;;  %v567_v55 = vld [vmem:[%s17479_s18 + $0x3cc] sm:$0xff]  }
  0x6b   :  { %556 = vst [vmem:[#allocation2 + $0x3b4] sm:$0xf] %v555_v50  ;;  %v557_v51 = vld [vmem:[%s17479_s18 + $0x3b4] sm:$0xf]  ;;  %v563_v53 = vld [vmem:[%s17479_s18 + $0x3c8] sm:$0xf] }
  0x6c   :  { %558 = vst [vmem:[#allocation2 + $0x3b8] sm:$0xf] %v557_v51  ;;  %560 = vst [vmem:[#allocation2 + $0x3bc] sm:$0xff] %v559_v52   ;;  %v565_v54 = vld [vmem:[%s17479_s18 + $0x3c4] sm:$0xf]  ;;  %v575_v58 = vld [vmem:[%s17479_s18 + $0x3dc] sm:$0xff]  }
  0x6d   :  { %564 = vst [vmem:[#allocation2 + $0x3c4] sm:$0xf] %v563_v53  ;;  %v571_v56 = vld [vmem:[%s17479_s18 + $0x3d8] sm:$0xf]  ;;  %566 = vst [vmem:[#allocation2 + $0x3c8] sm:$0xf] %v565_v54 }
  0x6e   :  { %568 = vst [vmem:[#allocation2 + $0x3cc] sm:$0xff] %v567_v55   ;;  %572 = vst [vmem:[#allocation2 + $0x3d4] sm:$0xf] %v571_v56  ;;  %v573_v57 = vld [vmem:[%s17479_s18 + $0x3d4] sm:$0xf]  ;;  %v583_v61 = vld [vmem:[%s17479_s18 + $0x3ec] sm:$0xff]  }
  0x6f   :  { %v579_v59 = vld [vmem:[%s17479_s18 + $0x3e8] sm:$0xf]  ;;  %574 = vst [vmem:[#allocation2 + $0x3d8] sm:$0xf] %v573_v57  ;;  %576 = vst [vmem:[#allocation2 + $0x3dc] sm:$0xff] %v575_v58   ;;  %v591_v0 = vld [vmem:[%s17479_s18 + $0x3fc] sm:$0xff]  }
  0x70   :  { %580 = vst [vmem:[#allocation2 + $0x3e4] sm:$0xf] %v579_v59  ;;  %v581_v60 = vld [vmem:[%s17479_s18 + $0x3e4] sm:$0xf]  ;;  %v587_v62 = vld [vmem:[%s17479_s18 + $0x3f8] sm:$0xf] }
  0x71   :  { %582 = vst [vmem:[#allocation2 + $0x3e8] sm:$0xf] %v581_v60  ;;  %584 = vst [vmem:[#allocation2 + $0x3ec] sm:$0xff] %v583_v61   ;;  %v589_v63 = vld [vmem:[%s17479_s18 + $0x3f4] sm:$0xf]  ;;  %v599_v3 = vld [vmem:[%s17479_s18 + $0x40c] sm:$0xff]  }
  0x72   :  { %588 = vst [vmem:[#allocation2 + $0x3f4] sm:$0xf] %v587_v62  ;;  %v595_v1 = vld [vmem:[%s17479_s18 + $0x408] sm:$0xf]  ;;  %590 = vst [vmem:[#allocation2 + $0x3f8] sm:$0xf] %v589_v63 }
  0x73   :  { %592 = vst [vmem:[#allocation2 + $0x3fc] sm:$0xff] %v591_v0   ;;  %596 = vst [vmem:[#allocation2 + $0x404] sm:$0xf] %v595_v1  ;;  %v597_v2 = vld [vmem:[%s17479_s18 + $0x404] sm:$0xf]  ;;  %v607_v6 = vld [vmem:[%s17479_s18 + $0x41c] sm:$0xff]  }
  0x74   :  { %v603_v4 = vld [vmem:[%s17479_s18 + $0x418] sm:$0xf]  ;;  %598 = vst [vmem:[#allocation2 + $0x408] sm:$0xf] %v597_v2  ;;  %600 = vst [vmem:[#allocation2 + $0x40c] sm:$0xff] %v599_v3   ;;  %v615_v9 = vld [vmem:[%s17479_s18 + $0x42c] sm:$0xff]  }
  0x75   :  { %604 = vst [vmem:[#allocation2 + $0x414] sm:$0xf] %v603_v4  ;;  %v605_v5 = vld [vmem:[%s17479_s18 + $0x414] sm:$0xf]  ;;  %v611_v7 = vld [vmem:[%s17479_s18 + $0x428] sm:$0xf] }
  0x76   :  { %606 = vst [vmem:[#allocation2 + $0x418] sm:$0xf] %v605_v5  ;;  %608 = vst [vmem:[#allocation2 + $0x41c] sm:$0xff] %v607_v6   ;;  %v613_v8 = vld [vmem:[%s17479_s18 + $0x424] sm:$0xf]  ;;  %v623_v12 = vld [vmem:[%s17479_s18 + $0x43c] sm:$0xff]  }
  0x77   :  { %612 = vst [vmem:[#allocation2 + $0x424] sm:$0xf] %v611_v7  ;;  %v619_v10 = vld [vmem:[%s17479_s18 + $0x438] sm:$0xf]  ;;  %614 = vst [vmem:[#allocation2 + $0x428] sm:$0xf] %v613_v8 }
  0x78   :  { %616 = vst [vmem:[#allocation2 + $0x42c] sm:$0xff] %v615_v9   ;;  %620 = vst [vmem:[#allocation2 + $0x434] sm:$0xf] %v619_v10  ;;  %v621_v11 = vld [vmem:[%s17479_s18 + $0x434] sm:$0xf]  ;;  %v631_v15 = vld [vmem:[%s17479_s18 + $0x44c] sm:$0xff]  }
  0x79   :  { %v627_v13 = vld [vmem:[%s17479_s18 + $0x448] sm:$0xf]  ;;  %622 = vst [vmem:[#allocation2 + $0x438] sm:$0xf] %v621_v11  ;;  %624 = vst [vmem:[#allocation2 + $0x43c] sm:$0xff] %v623_v12   ;;  %v639_v18 = vld [vmem:[%s17479_s18 + $0x45c] sm:$0xff]  }
  0x7a   :  { %628 = vst [vmem:[#allocation2 + $0x444] sm:$0xf] %v627_v13  ;;  %v629_v14 = vld [vmem:[%s17479_s18 + $0x444] sm:$0xf]  ;;  %v635_v16 = vld [vmem:[%s17479_s18 + $0x458] sm:$0xf] }
  0x7b   :  { %630 = vst [vmem:[#allocation2 + $0x448] sm:$0xf] %v629_v14  ;;  %632 = vst [vmem:[#allocation2 + $0x44c] sm:$0xff] %v631_v15   ;;  %v637_v17 = vld [vmem:[%s17479_s18 + $0x454] sm:$0xf]  ;;  %v647_v21 = vld [vmem:[%s17479_s18 + $0x46c] sm:$0xff]  }
  0x7c   :  { %636 = vst [vmem:[#allocation2 + $0x454] sm:$0xf] %v635_v16  ;;  %v643_v19 = vld [vmem:[%s17479_s18 + $0x468] sm:$0xf]  ;;  %638 = vst [vmem:[#allocation2 + $0x458] sm:$0xf] %v637_v17 }
  0x7d   :  { %640 = vst [vmem:[#allocation2 + $0x45c] sm:$0xff] %v639_v18   ;;  %644 = vst [vmem:[#allocation2 + $0x464] sm:$0xf] %v643_v19  ;;  %v645_v20 = vld [vmem:[%s17479_s18 + $0x464] sm:$0xf]  ;;  %v655_v24 = vld [vmem:[%s17479_s18 + $0x47c] sm:$0xff]  }
  0x7e   :  { %v651_v22 = vld [vmem:[%s17479_s18 + $0x478] sm:$0xf]  ;;  %646 = vst [vmem:[#allocation2 + $0x468] sm:$0xf] %v645_v20  ;;  %648 = vst [vmem:[#allocation2 + $0x46c] sm:$0xff] %v647_v21   ;;  %v663_v27 = vld [vmem:[%s17479_s18 + $0x48c] sm:$0xff]  }
  0x7f   :  { %652 = vst [vmem:[#allocation2 + $0x474] sm:$0xf] %v651_v22  ;;  %v653_v23 = vld [vmem:[%s17479_s18 + $0x474] sm:$0xf]  ;;  %v659_v25 = vld [vmem:[%s17479_s18 + $0x488] sm:$0xf] }
  0x80   :  { %654 = vst [vmem:[#allocation2 + $0x478] sm:$0xf] %v653_v23  ;;  %656 = vst [vmem:[#allocation2 + $0x47c] sm:$0xff] %v655_v24   ;;  %v661_v26 = vld [vmem:[%s17479_s18 + $0x484] sm:$0xf]  ;;  %v671_v30 = vld [vmem:[%s17479_s18 + $0x49c] sm:$0xff]  }
  0x81   :  { %660 = vst [vmem:[#allocation2 + $0x484] sm:$0xf] %v659_v25  ;;  %v667_v28 = vld [vmem:[%s17479_s18 + $0x498] sm:$0xf]  ;;  %662 = vst [vmem:[#allocation2 + $0x488] sm:$0xf] %v661_v26 }
  0x82   :  { %664 = vst [vmem:[#allocation2 + $0x48c] sm:$0xff] %v663_v27   ;;  %668 = vst [vmem:[#allocation2 + $0x494] sm:$0xf] %v667_v28  ;;  %v669_v29 = vld [vmem:[%s17479_s18 + $0x494] sm:$0xf]  ;;  %v679_v33 = vld [vmem:[%s17479_s18 + $0x4ac] sm:$0xff]  }
  0x83   :  { %v675_v31 = vld [vmem:[%s17479_s18 + $0x4a8] sm:$0xf]  ;;  %670 = vst [vmem:[#allocation2 + $0x498] sm:$0xf] %v669_v29  ;;  %672 = vst [vmem:[#allocation2 + $0x49c] sm:$0xff] %v671_v30   ;;  %v687_v36 = vld [vmem:[%s17479_s18 + $0x4bc] sm:$0xff]  }
  0x84   :  { %676 = vst [vmem:[#allocation2 + $0x4a4] sm:$0xf] %v675_v31  ;;  %v677_v32 = vld [vmem:[%s17479_s18 + $0x4a4] sm:$0xf]  ;;  %v683_v34 = vld [vmem:[%s17479_s18 + $0x4b8] sm:$0xf] }
  0x85   :  { %678 = vst [vmem:[#allocation2 + $0x4a8] sm:$0xf] %v677_v32  ;;  %680 = vst [vmem:[#allocation2 + $0x4ac] sm:$0xff] %v679_v33   ;;  %v685_v35 = vld [vmem:[%s17479_s18 + $0x4b4] sm:$0xf]  ;;  %v695_v39 = vld [vmem:[%s17479_s18 + $0x4cc] sm:$0xff]  }
  0x86   :  { %684 = vst [vmem:[#allocation2 + $0x4b4] sm:$0xf] %v683_v34  ;;  %v691_v37 = vld [vmem:[%s17479_s18 + $0x4c8] sm:$0xf]  ;;  %686 = vst [vmem:[#allocation2 + $0x4b8] sm:$0xf] %v685_v35 }
  0x87   :  { %688 = vst [vmem:[#allocation2 + $0x4bc] sm:$0xff] %v687_v36   ;;  %692 = vst [vmem:[#allocation2 + $0x4c4] sm:$0xf] %v691_v37  ;;  %v693_v38 = vld [vmem:[%s17479_s18 + $0x4c4] sm:$0xf]  ;;  %v703_v42 = vld [vmem:[%s17479_s18 + $0x4dc] sm:$0xff]  }
  0x88   :  { %v699_v40 = vld [vmem:[%s17479_s18 + $0x4d8] sm:$0xf]  ;;  %694 = vst [vmem:[#allocation2 + $0x4c8] sm:$0xf] %v693_v38  ;;  %696 = vst [vmem:[#allocation2 + $0x4cc] sm:$0xff] %v695_v39   ;;  %v711_v45 = vld [vmem:[%s17479_s18 + $0x4ec] sm:$0xff]  }
  0x89   :  { %700 = vst [vmem:[#allocation2 + $0x4d4] sm:$0xf] %v699_v40  ;;  %v701_v41 = vld [vmem:[%s17479_s18 + $0x4d4] sm:$0xf]  ;;  %v707_v43 = vld [vmem:[%s17479_s18 + $0x4e8] sm:$0xf] }
  0x8a   :  { %702 = vst [vmem:[#allocation2 + $0x4d8] sm:$0xf] %v701_v41  ;;  %704 = vst [vmem:[#allocation2 + $0x4dc] sm:$0xff] %v703_v42   ;;  %v709_v44 = vld [vmem:[%s17479_s18 + $0x4e4] sm:$0xf]  ;;  %v719_v48 = vld [vmem:[%s17479_s18 + $0x4fc] sm:$0xff]  }
  0x8b   :  { %708 = vst [vmem:[#allocation2 + $0x4e4] sm:$0xf] %v707_v43  ;;  %v715_v46 = vld [vmem:[%s17479_s18 + $0x4f8] sm:$0xf]  ;;  %710 = vst [vmem:[#allocation2 + $0x4e8] sm:$0xf] %v709_v44 }
  0x8c   :  { %712 = vst [vmem:[#allocation2 + $0x4ec] sm:$0xff] %v711_v45   ;;  %716 = vst [vmem:[#allocation2 + $0x4f4] sm:$0xf] %v715_v46  ;;  %v717_v47 = vld [vmem:[%s17479_s18 + $0x4f4] sm:$0xf]  ;;  %v727_v51 = vld [vmem:[%s17479_s18 + $0x50c] sm:$0xff]  }
  0x8d   :  { %v723_v49 = vld [vmem:[%s17479_s18 + $0x508] sm:$0xf]  ;;  %718 = vst [vmem:[#allocation2 + $0x4f8] sm:$0xf] %v717_v47  ;;  %720 = vst [vmem:[#allocation2 + $0x4fc] sm:$0xff] %v719_v48   ;;  %v735_v54 = vld [vmem:[%s17479_s18 + $0x51c] sm:$0xff]  }
  0x8e   :  { %724 = vst [vmem:[#allocation2 + $0x504] sm:$0xf] %v723_v49  ;;  %v725_v50 = vld [vmem:[%s17479_s18 + $0x504] sm:$0xf]  ;;  %v731_v52 = vld [vmem:[%s17479_s18 + $0x518] sm:$0xf] }
  0x8f   :  { %726 = vst [vmem:[#allocation2 + $0x508] sm:$0xf] %v725_v50  ;;  %728 = vst [vmem:[#allocation2 + $0x50c] sm:$0xff] %v727_v51   ;;  %v733_v53 = vld [vmem:[%s17479_s18 + $0x514] sm:$0xf]  ;;  %v743_v57 = vld [vmem:[%s17479_s18 + $0x52c] sm:$0xff]  }
  0x90   :  { %732 = vst [vmem:[#allocation2 + $0x514] sm:$0xf] %v731_v52  ;;  %v739_v55 = vld [vmem:[%s17479_s18 + $0x528] sm:$0xf]  ;;  %734 = vst [vmem:[#allocation2 + $0x518] sm:$0xf] %v733_v53 }
  0x91   :  { %736 = vst [vmem:[#allocation2 + $0x51c] sm:$0xff] %v735_v54   ;;  %740 = vst [vmem:[#allocation2 + $0x524] sm:$0xf] %v739_v55  ;;  %v741_v56 = vld [vmem:[%s17479_s18 + $0x524] sm:$0xf]  ;;  %v751_v60 = vld [vmem:[%s17479_s18 + $0x53c] sm:$0xff]  }
  0x92   :  { %v747_v58 = vld [vmem:[%s17479_s18 + $0x538] sm:$0xf]  ;;  %742 = vst [vmem:[#allocation2 + $0x528] sm:$0xf] %v741_v56  ;;  %744 = vst [vmem:[#allocation2 + $0x52c] sm:$0xff] %v743_v57   ;;  %v759_v63 = vld [vmem:[%s17479_s18 + $0x54c] sm:$0xff]  }
  0x93   :  { %748 = vst [vmem:[#allocation2 + $0x534] sm:$0xf] %v747_v58  ;;  %v749_v59 = vld [vmem:[%s17479_s18 + $0x534] sm:$0xf]  ;;  %v755_v61 = vld [vmem:[%s17479_s18 + $0x548] sm:$0xf] }
  0x94   :  { %750 = vst [vmem:[#allocation2 + $0x538] sm:$0xf] %v749_v59  ;;  %752 = vst [vmem:[#allocation2 + $0x53c] sm:$0xff] %v751_v60   ;;  %v757_v62 = vld [vmem:[%s17479_s18 + $0x544] sm:$0xf]  ;;  %v767_v2 = vld [vmem:[%s17479_s18 + $0x55c] sm:$0xff]  }
  0x95   :  { %756 = vst [vmem:[#allocation2 + $0x544] sm:$0xf] %v755_v61  ;;  %v763_v0 = vld [vmem:[%s17479_s18 + $0x558] sm:$0xf]  ;;  %758 = vst [vmem:[#allocation2 + $0x548] sm:$0xf] %v757_v62 }
  0x96   :  { %760 = vst [vmem:[#allocation2 + $0x54c] sm:$0xff] %v759_v63   ;;  %764 = vst [vmem:[#allocation2 + $0x554] sm:$0xf] %v763_v0  ;;  %v765_v1 = vld [vmem:[%s17479_s18 + $0x554] sm:$0xf]  ;;  %v775_v5 = vld [vmem:[%s17479_s18 + $0x56c] sm:$0xff]  }
  0x97   :  { %v771_v3 = vld [vmem:[%s17479_s18 + $0x568] sm:$0xf]  ;;  %766 = vst [vmem:[#allocation2 + $0x558] sm:$0xf] %v765_v1  ;;  %768 = vst [vmem:[#allocation2 + $0x55c] sm:$0xff] %v767_v2   ;;  %v783_v8 = vld [vmem:[%s17479_s18 + $0x57c] sm:$0xff]  }
  0x98   :  { %772 = vst [vmem:[#allocation2 + $0x564] sm:$0xf] %v771_v3  ;;  %v773_v4 = vld [vmem:[%s17479_s18 + $0x564] sm:$0xf]  ;;  %v779_v6 = vld [vmem:[%s17479_s18 + $0x578] sm:$0xf] }
  0x99   :  { %774 = vst [vmem:[#allocation2 + $0x568] sm:$0xf] %v773_v4  ;;  %776 = vst [vmem:[#allocation2 + $0x56c] sm:$0xff] %v775_v5   ;;  %v781_v7 = vld [vmem:[%s17479_s18 + $0x574] sm:$0xf]  ;;  %v791_v11 = vld [vmem:[%s17479_s18 + $0x58c] sm:$0xff]  }
  0x9a   :  { %780 = vst [vmem:[#allocation2 + $0x574] sm:$0xf] %v779_v6  ;;  %v787_v9 = vld [vmem:[%s17479_s18 + $0x588] sm:$0xf]  ;;  %782 = vst [vmem:[#allocation2 + $0x578] sm:$0xf] %v781_v7 }
  0x9b   :  { %784 = vst [vmem:[#allocation2 + $0x57c] sm:$0xff] %v783_v8   ;;  %788 = vst [vmem:[#allocation2 + $0x584] sm:$0xf] %v787_v9  ;;  %v789_v10 = vld [vmem:[%s17479_s18 + $0x584] sm:$0xf]  ;;  %v799_v14 = vld [vmem:[%s17479_s18 + $0x59c] sm:$0xff]  }
  0x9c   :  { %v795_v12 = vld [vmem:[%s17479_s18 + $0x598] sm:$0xf]  ;;  %790 = vst [vmem:[#allocation2 + $0x588] sm:$0xf] %v789_v10  ;;  %792 = vst [vmem:[#allocation2 + $0x58c] sm:$0xff] %v791_v11   ;;  %v807_v17 = vld [vmem:[%s17479_s18 + $0x5ac] sm:$0xff]  }
  0x9d   :  { %796 = vst [vmem:[#allocation2 + $0x594] sm:$0xf] %v795_v12  ;;  %v797_v13 = vld [vmem:[%s17479_s18 + $0x594] sm:$0xf]  ;;  %v803_v15 = vld [vmem:[%s17479_s18 + $0x5a8] sm:$0xf] }
  0x9e   :  { %798 = vst [vmem:[#allocation2 + $0x598] sm:$0xf] %v797_v13  ;;  %800 = vst [vmem:[#allocation2 + $0x59c] sm:$0xff] %v799_v14   ;;  %v805_v16 = vld [vmem:[%s17479_s18 + $0x5a4] sm:$0xf] }
  0x9f   :  { %804 = vst [vmem:[#allocation2 + $0x5a4] sm:$0xf] %v803_v15  ;;  %v811_v18 = vld [vmem:[%s17479_s18 + $0x5b8] sm:$0xf]  ;;  %806 = vst [vmem:[#allocation2 + $0x5a8] sm:$0xf] %v805_v16 }
  0xa0   :  { %808 = vst [vmem:[#allocation2 + $0x5ac] sm:$0xff] %v807_v17   ;;  %812 = vst [vmem:[#allocation2 + $0x5b4] sm:$0xf] %v811_v18  ;;  %v813_v19 = vld [vmem:[%s17479_s18 + $0x5b4] sm:$0xf] }
  0xa1   :  { %v815_v20 = vld [vmem:[%s17479_s18 + $0x5bc] sm:$0xf]  ;;  %814 = vst [vmem:[#allocation2 + $0x5b8] sm:$0xf] %v813_v19 }
  0xa2   :  { %816 = vst [vmem:[#allocation2 + $0x5bc] sm:$0xf] %v815_v20 }
  0xa3   :  { %1583 = vsyncadd [#allocation5], 23552  ;;  %v1602_v21 = vld [vmem:[%s17480_s19] sm:$0xf]  ;;  %v1604_v22 = vld [vmem:[%s17480_s19 + $0x8] sm:$0xf] }
  0xa4   :  { %1603 = vst [vmem:[#allocation3] sm:$0xf] %v1602_v21  ;;  %1605 = vst [vmem:[#allocation3 + $0x4] sm:$0xf] %v1604_v22  ;;  %v1606_v23 = vld [vmem:[%s17480_s19 + $0x4] sm:$0xf] }
  0xa5   :  { %v1608_v24 = vld [vmem:[%s17480_s19 + $0xc] sm:$0xff]   ;;  %v1612_v25 = vld [vmem:[%s17480_s19 + $0x18] sm:$0xf]  ;;  %1607 = vst [vmem:[#allocation3 + $0x8] sm:$0xf] %v1606_v23  ;;  %v1616_v27 = vld [vmem:[%s17480_s19 + $0x1c] sm:$0xff]  }
  0xa6   :  { %1609 = vst [vmem:[#allocation3 + $0xc] sm:$0xff] %v1608_v24   ;;  %1613 = vst [vmem:[#allocation3 + $0x14] sm:$0xf] %v1612_v25  ;;  %v1614_v26 = vld [vmem:[%s17480_s19 + $0x14] sm:$0xf]  ;;  %v1624_v30 = vld [vmem:[%s17480_s19 + $0x2c] sm:$0xff]  }
  0xa7   :  { %v1620_v28 = vld [vmem:[%s17480_s19 + $0x28] sm:$0xf]  ;;  %1615 = vst [vmem:[#allocation3 + $0x18] sm:$0xf] %v1614_v26  ;;  %1617 = vst [vmem:[#allocation3 + $0x1c] sm:$0xff] %v1616_v27   ;;  %v1632_v33 = vld [vmem:[%s17480_s19 + $0x3c] sm:$0xff]  }
  0xa8   :  { %1621 = vst [vmem:[#allocation3 + $0x24] sm:$0xf] %v1620_v28  ;;  %v1622_v29 = vld [vmem:[%s17480_s19 + $0x24] sm:$0xf]  ;;  %v1628_v31 = vld [vmem:[%s17480_s19 + $0x38] sm:$0xf] }
  0xa9   :  { %1623 = vst [vmem:[#allocation3 + $0x28] sm:$0xf] %v1622_v29  ;;  %1625 = vst [vmem:[#allocation3 + $0x2c] sm:$0xff] %v1624_v30   ;;  %v1630_v32 = vld [vmem:[%s17480_s19 + $0x34] sm:$0xf]  ;;  %v1640_v36 = vld [vmem:[%s17480_s19 + $0x4c] sm:$0xff]  }
  0xaa   :  { %1629 = vst [vmem:[#allocation3 + $0x34] sm:$0xf] %v1628_v31  ;;  %v1636_v34 = vld [vmem:[%s17480_s19 + $0x48] sm:$0xf]  ;;  %1631 = vst [vmem:[#allocation3 + $0x38] sm:$0xf] %v1630_v32 }
  0xab   :  { %1633 = vst [vmem:[#allocation3 + $0x3c] sm:$0xff] %v1632_v33   ;;  %1637 = vst [vmem:[#allocation3 + $0x44] sm:$0xf] %v1636_v34  ;;  %v1638_v35 = vld [vmem:[%s17480_s19 + $0x44] sm:$0xf]  ;;  %v1648_v39 = vld [vmem:[%s17480_s19 + $0x5c] sm:$0xff]  }
  0xac   :  { %v1644_v37 = vld [vmem:[%s17480_s19 + $0x58] sm:$0xf]  ;;  %1639 = vst [vmem:[#allocation3 + $0x48] sm:$0xf] %v1638_v35  ;;  %1641 = vst [vmem:[#allocation3 + $0x4c] sm:$0xff] %v1640_v36   ;;  %v1656_v42 = vld [vmem:[%s17480_s19 + $0x6c] sm:$0xff]  }
  0xad   :  { %1645 = vst [vmem:[#allocation3 + $0x54] sm:$0xf] %v1644_v37  ;;  %v1646_v38 = vld [vmem:[%s17480_s19 + $0x54] sm:$0xf]  ;;  %v1652_v40 = vld [vmem:[%s17480_s19 + $0x68] sm:$0xf] }
  0xae   :  { %1647 = vst [vmem:[#allocation3 + $0x58] sm:$0xf] %v1646_v38  ;;  %1649 = vst [vmem:[#allocation3 + $0x5c] sm:$0xff] %v1648_v39   ;;  %v1654_v41 = vld [vmem:[%s17480_s19 + $0x64] sm:$0xf]  ;;  %v1664_v45 = vld [vmem:[%s17480_s19 + $0x7c] sm:$0xff]  }
  0xaf   :  { %1653 = vst [vmem:[#allocation3 + $0x64] sm:$0xf] %v1652_v40  ;;  %v1660_v43 = vld [vmem:[%s17480_s19 + $0x78] sm:$0xf]  ;;  %1655 = vst [vmem:[#allocation3 + $0x68] sm:$0xf] %v1654_v41 }
  0xb0   :  { %1657 = vst [vmem:[#allocation3 + $0x6c] sm:$0xff] %v1656_v42   ;;  %1661 = vst [vmem:[#allocation3 + $0x74] sm:$0xf] %v1660_v43  ;;  %v1662_v44 = vld [vmem:[%s17480_s19 + $0x74] sm:$0xf]  ;;  %v1672_v48 = vld [vmem:[%s17480_s19 + $0x8c] sm:$0xff]  }
  0xb1   :  { %v1668_v46 = vld [vmem:[%s17480_s19 + $0x88] sm:$0xf]  ;;  %1663 = vst [vmem:[#allocation3 + $0x78] sm:$0xf] %v1662_v44  ;;  %1665 = vst [vmem:[#allocation3 + $0x7c] sm:$0xff] %v1664_v45   ;;  %v1680_v51 = vld [vmem:[%s17480_s19 + $0x9c] sm:$0xff]  }
  0xb2   :  { %1669 = vst [vmem:[#allocation3 + $0x84] sm:$0xf] %v1668_v46  ;;  %v1670_v47 = vld [vmem:[%s17480_s19 + $0x84] sm:$0xf]  ;;  %v1676_v49 = vld [vmem:[%s17480_s19 + $0x98] sm:$0xf] }
  0xb3   :  { %1671 = vst [vmem:[#allocation3 + $0x88] sm:$0xf] %v1670_v47  ;;  %1673 = vst [vmem:[#allocation3 + $0x8c] sm:$0xff] %v1672_v48   ;;  %v1678_v50 = vld [vmem:[%s17480_s19 + $0x94] sm:$0xf]  ;;  %v1688_v54 = vld [vmem:[%s17480_s19 + $0xac] sm:$0xff]  }
  0xb4   :  { %1677 = vst [vmem:[#allocation3 + $0x94] sm:$0xf] %v1676_v49  ;;  %v1684_v52 = vld [vmem:[%s17480_s19 + $0xa8] sm:$0xf]  ;;  %1679 = vst [vmem:[#allocation3 + $0x98] sm:$0xf] %v1678_v50 }
  0xb5   :  { %1681 = vst [vmem:[#allocation3 + $0x9c] sm:$0xff] %v1680_v51   ;;  %1685 = vst [vmem:[#allocation3 + $0xa4] sm:$0xf] %v1684_v52  ;;  %v1686_v53 = vld [vmem:[%s17480_s19 + $0xa4] sm:$0xf]  ;;  %v1696_v57 = vld [vmem:[%s17480_s19 + $0xbc] sm:$0xff]  }
  0xb6   :  { %v1692_v55 = vld [vmem:[%s17480_s19 + $0xb8] sm:$0xf]  ;;  %1687 = vst [vmem:[#allocation3 + $0xa8] sm:$0xf] %v1686_v53  ;;  %1689 = vst [vmem:[#allocation3 + $0xac] sm:$0xff] %v1688_v54   ;;  %v1704_v60 = vld [vmem:[%s17480_s19 + $0xcc] sm:$0xff]  }
  0xb7   :  { %1693 = vst [vmem:[#allocation3 + $0xb4] sm:$0xf] %v1692_v55  ;;  %v1694_v56 = vld [vmem:[%s17480_s19 + $0xb4] sm:$0xf]  ;;  %v1700_v58 = vld [vmem:[%s17480_s19 + $0xc8] sm:$0xf] }
  0xb8   :  { %1695 = vst [vmem:[#allocation3 + $0xb8] sm:$0xf] %v1694_v56  ;;  %1697 = vst [vmem:[#allocation3 + $0xbc] sm:$0xff] %v1696_v57   ;;  %v1702_v59 = vld [vmem:[%s17480_s19 + $0xc4] sm:$0xf]  ;;  %v1712_v63 = vld [vmem:[%s17480_s19 + $0xdc] sm:$0xff]  }
  0xb9   :  { %1701 = vst [vmem:[#allocation3 + $0xc4] sm:$0xf] %v1700_v58  ;;  %v1708_v61 = vld [vmem:[%s17480_s19 + $0xd8] sm:$0xf]  ;;  %1703 = vst [vmem:[#allocation3 + $0xc8] sm:$0xf] %v1702_v59 }
  0xba   :  { %1705 = vst [vmem:[#allocation3 + $0xcc] sm:$0xff] %v1704_v60   ;;  %1709 = vst [vmem:[#allocation3 + $0xd4] sm:$0xf] %v1708_v61  ;;  %v1710_v62 = vld [vmem:[%s17480_s19 + $0xd4] sm:$0xf]  ;;  %v1720_v2 = vld [vmem:[%s17480_s19 + $0xec] sm:$0xff]  }
  0xbb   :  { %v1716_v0 = vld [vmem:[%s17480_s19 + $0xe8] sm:$0xf]  ;;  %1711 = vst [vmem:[#allocation3 + $0xd8] sm:$0xf] %v1710_v62  ;;  %1713 = vst [vmem:[#allocation3 + $0xdc] sm:$0xff] %v1712_v63   ;;  %v1728_v5 = vld [vmem:[%s17480_s19 + $0xfc] sm:$0xff]  }
  0xbc   :  { %1717 = vst [vmem:[#allocation3 + $0xe4] sm:$0xf] %v1716_v0  ;;  %v1718_v1 = vld [vmem:[%s17480_s19 + $0xe4] sm:$0xf]  ;;  %v1724_v3 = vld [vmem:[%s17480_s19 + $0xf8] sm:$0xf] }
  0xbd   :  { %1719 = vst [vmem:[#allocation3 + $0xe8] sm:$0xf] %v1718_v1  ;;  %1721 = vst [vmem:[#allocation3 + $0xec] sm:$0xff] %v1720_v2   ;;  %v1726_v4 = vld [vmem:[%s17480_s19 + $0xf4] sm:$0xf]  ;;  %v1736_v8 = vld [vmem:[%s17480_s19 + $0x10c] sm:$0xff]  }
  0xbe   :  { %1725 = vst [vmem:[#allocation3 + $0xf4] sm:$0xf] %v1724_v3  ;;  %v1732_v6 = vld [vmem:[%s17480_s19 + $0x108] sm:$0xf]  ;;  %1727 = vst [vmem:[#allocation3 + $0xf8] sm:$0xf] %v1726_v4 }
  0xbf   :  { %1729 = vst [vmem:[#allocation3 + $0xfc] sm:$0xff] %v1728_v5   ;;  %1733 = vst [vmem:[#allocation3 + $0x104] sm:$0xf] %v1732_v6  ;;  %v1734_v7 = vld [vmem:[%s17480_s19 + $0x104] sm:$0xf]  ;;  %v1744_v11 = vld [vmem:[%s17480_s19 + $0x11c] sm:$0xff]  }
  0xc0   :  { %v1740_v9 = vld [vmem:[%s17480_s19 + $0x118] sm:$0xf]  ;;  %1735 = vst [vmem:[#allocation3 + $0x108] sm:$0xf] %v1734_v7  ;;  %1737 = vst [vmem:[#allocation3 + $0x10c] sm:$0xff] %v1736_v8   ;;  %v1752_v14 = vld [vmem:[%s17480_s19 + $0x12c] sm:$0xff]  }
  0xc1   :  { %1741 = vst [vmem:[#allocation3 + $0x114] sm:$0xf] %v1740_v9  ;;  %v1742_v10 = vld [vmem:[%s17480_s19 + $0x114] sm:$0xf]  ;;  %v1748_v12 = vld [vmem:[%s17480_s19 + $0x128] sm:$0xf] }
  0xc2   :  { %1743 = vst [vmem:[#allocation3 + $0x118] sm:$0xf] %v1742_v10  ;;  %1745 = vst [vmem:[#allocation3 + $0x11c] sm:$0xff] %v1744_v11   ;;  %v1750_v13 = vld [vmem:[%s17480_s19 + $0x124] sm:$0xf]  ;;  %v1760_v17 = vld [vmem:[%s17480_s19 + $0x13c] sm:$0xff]  }
  0xc3   :  { %1749 = vst [vmem:[#allocation3 + $0x124] sm:$0xf] %v1748_v12  ;;  %v1756_v15 = vld [vmem:[%s17480_s19 + $0x138] sm:$0xf]  ;;  %1751 = vst [vmem:[#allocation3 + $0x128] sm:$0xf] %v1750_v13 }
  0xc4   :  { %1753 = vst [vmem:[#allocation3 + $0x12c] sm:$0xff] %v1752_v14   ;;  %1757 = vst [vmem:[#allocation3 + $0x134] sm:$0xf] %v1756_v15  ;;  %v1758_v16 = vld [vmem:[%s17480_s19 + $0x134] sm:$0xf]  ;;  %v1768_v20 = vld [vmem:[%s17480_s19 + $0x14c] sm:$0xff]  }
  0xc5   :  { %v1764_v18 = vld [vmem:[%s17480_s19 + $0x148] sm:$0xf]  ;;  %1759 = vst [vmem:[#allocation3 + $0x138] sm:$0xf] %v1758_v16  ;;  %1761 = vst [vmem:[#allocation3 + $0x13c] sm:$0xff] %v1760_v17   ;;  %v1776_v23 = vld [vmem:[%s17480_s19 + $0x15c] sm:$0xff]  }
  0xc6   :  { %1765 = vst [vmem:[#allocation3 + $0x144] sm:$0xf] %v1764_v18  ;;  %v1766_v19 = vld [vmem:[%s17480_s19 + $0x144] sm:$0xf]  ;;  %v1772_v21 = vld [vmem:[%s17480_s19 + $0x158] sm:$0xf] }
  0xc7   :  { %1767 = vst [vmem:[#allocation3 + $0x148] sm:$0xf] %v1766_v19  ;;  %1769 = vst [vmem:[#allocation3 + $0x14c] sm:$0xff] %v1768_v20   ;;  %v1774_v22 = vld [vmem:[%s17480_s19 + $0x154] sm:$0xf]  ;;  %v1784_v26 = vld [vmem:[%s17480_s19 + $0x16c] sm:$0xff]  }
  0xc8   :  { %1773 = vst [vmem:[#allocation3 + $0x154] sm:$0xf] %v1772_v21  ;;  %v1780_v24 = vld [vmem:[%s17480_s19 + $0x168] sm:$0xf]  ;;  %1775 = vst [vmem:[#allocation3 + $0x158] sm:$0xf] %v1774_v22 }
  0xc9   :  { %1777 = vst [vmem:[#allocation3 + $0x15c] sm:$0xff] %v1776_v23   ;;  %1781 = vst [vmem:[#allocation3 + $0x164] sm:$0xf] %v1780_v24  ;;  %v1782_v25 = vld [vmem:[%s17480_s19 + $0x164] sm:$0xf]  ;;  %v1792_v29 = vld [vmem:[%s17480_s19 + $0x17c] sm:$0xff]  }
  0xca   :  { %v1788_v27 = vld [vmem:[%s17480_s19 + $0x178] sm:$0xf]  ;;  %1783 = vst [vmem:[#allocation3 + $0x168] sm:$0xf] %v1782_v25  ;;  %1785 = vst [vmem:[#allocation3 + $0x16c] sm:$0xff] %v1784_v26   ;;  %v1800_v32 = vld [vmem:[%s17480_s19 + $0x18c] sm:$0xff]  }
  0xcb   :  { %1789 = vst [vmem:[#allocation3 + $0x174] sm:$0xf] %v1788_v27  ;;  %v1790_v28 = vld [vmem:[%s17480_s19 + $0x174] sm:$0xf]  ;;  %v1796_v30 = vld [vmem:[%s17480_s19 + $0x188] sm:$0xf] }
  0xcc   :  { %1791 = vst [vmem:[#allocation3 + $0x178] sm:$0xf] %v1790_v28  ;;  %1793 = vst [vmem:[#allocation3 + $0x17c] sm:$0xff] %v1792_v29   ;;  %v1798_v31 = vld [vmem:[%s17480_s19 + $0x184] sm:$0xf]  ;;  %v1808_v35 = vld [vmem:[%s17480_s19 + $0x19c] sm:$0xff]  }
  0xcd   :  { %1797 = vst [vmem:[#allocation3 + $0x184] sm:$0xf] %v1796_v30  ;;  %v1804_v33 = vld [vmem:[%s17480_s19 + $0x198] sm:$0xf]  ;;  %1799 = vst [vmem:[#allocation3 + $0x188] sm:$0xf] %v1798_v31 }
  0xce   :  { %1801 = vst [vmem:[#allocation3 + $0x18c] sm:$0xff] %v1800_v32   ;;  %1805 = vst [vmem:[#allocation3 + $0x194] sm:$0xf] %v1804_v33  ;;  %v1806_v34 = vld [vmem:[%s17480_s19 + $0x194] sm:$0xf]  ;;  %v1816_v38 = vld [vmem:[%s17480_s19 + $0x1ac] sm:$0xff]  }
  0xcf   :  { %v1812_v36 = vld [vmem:[%s17480_s19 + $0x1a8] sm:$0xf]  ;;  %1807 = vst [vmem:[#allocation3 + $0x198] sm:$0xf] %v1806_v34  ;;  %1809 = vst [vmem:[#allocation3 + $0x19c] sm:$0xff] %v1808_v35   ;;  %v1824_v41 = vld [vmem:[%s17480_s19 + $0x1bc] sm:$0xff]  }
  0xd0   :  { %1813 = vst [vmem:[#allocation3 + $0x1a4] sm:$0xf] %v1812_v36  ;;  %v1814_v37 = vld [vmem:[%s17480_s19 + $0x1a4] sm:$0xf]  ;;  %v1820_v39 = vld [vmem:[%s17480_s19 + $0x1b8] sm:$0xf] }
  0xd1   :  { %1815 = vst [vmem:[#allocation3 + $0x1a8] sm:$0xf] %v1814_v37  ;;  %1817 = vst [vmem:[#allocation3 + $0x1ac] sm:$0xff] %v1816_v38   ;;  %v1822_v40 = vld [vmem:[%s17480_s19 + $0x1b4] sm:$0xf]  ;;  %v1832_v44 = vld [vmem:[%s17480_s19 + $0x1cc] sm:$0xff]  }
  0xd2   :  { %1821 = vst [vmem:[#allocation3 + $0x1b4] sm:$0xf] %v1820_v39  ;;  %v1828_v42 = vld [vmem:[%s17480_s19 + $0x1c8] sm:$0xf]  ;;  %1823 = vst [vmem:[#allocation3 + $0x1b8] sm:$0xf] %v1822_v40 }
  0xd3   :  { %1825 = vst [vmem:[#allocation3 + $0x1bc] sm:$0xff] %v1824_v41   ;;  %1829 = vst [vmem:[#allocation3 + $0x1c4] sm:$0xf] %v1828_v42  ;;  %v1830_v43 = vld [vmem:[%s17480_s19 + $0x1c4] sm:$0xf]  ;;  %v1840_v47 = vld [vmem:[%s17480_s19 + $0x1dc] sm:$0xff]  }
  0xd4   :  { %v1836_v45 = vld [vmem:[%s17480_s19 + $0x1d8] sm:$0xf]  ;;  %1831 = vst [vmem:[#allocation3 + $0x1c8] sm:$0xf] %v1830_v43  ;;  %1833 = vst [vmem:[#allocation3 + $0x1cc] sm:$0xff] %v1832_v44   ;;  %v1848_v50 = vld [vmem:[%s17480_s19 + $0x1ec] sm:$0xff]  }
  0xd5   :  { %1837 = vst [vmem:[#allocation3 + $0x1d4] sm:$0xf] %v1836_v45  ;;  %v1838_v46 = vld [vmem:[%s17480_s19 + $0x1d4] sm:$0xf]  ;;  %v1844_v48 = vld [vmem:[%s17480_s19 + $0x1e8] sm:$0xf] }
  0xd6   :  { %1839 = vst [vmem:[#allocation3 + $0x1d8] sm:$0xf] %v1838_v46  ;;  %1841 = vst [vmem:[#allocation3 + $0x1dc] sm:$0xff] %v1840_v47   ;;  %v1846_v49 = vld [vmem:[%s17480_s19 + $0x1e4] sm:$0xf]  ;;  %v1856_v53 = vld [vmem:[%s17480_s19 + $0x1fc] sm:$0xff]  }
  0xd7   :  { %1845 = vst [vmem:[#allocation3 + $0x1e4] sm:$0xf] %v1844_v48  ;;  %v1852_v51 = vld [vmem:[%s17480_s19 + $0x1f8] sm:$0xf]  ;;  %1847 = vst [vmem:[#allocation3 + $0x1e8] sm:$0xf] %v1846_v49 }
  0xd8   :  { %1849 = vst [vmem:[#allocation3 + $0x1ec] sm:$0xff] %v1848_v50   ;;  %1853 = vst [vmem:[#allocation3 + $0x1f4] sm:$0xf] %v1852_v51  ;;  %v1854_v52 = vld [vmem:[%s17480_s19 + $0x1f4] sm:$0xf]  ;;  %v1864_v56 = vld [vmem:[%s17480_s19 + $0x20c] sm:$0xff]  }
  0xd9   :  { %v1860_v54 = vld [vmem:[%s17480_s19 + $0x208] sm:$0xf]  ;;  %1855 = vst [vmem:[#allocation3 + $0x1f8] sm:$0xf] %v1854_v52  ;;  %1857 = vst [vmem:[#allocation3 + $0x1fc] sm:$0xff] %v1856_v53   ;;  %v1872_v59 = vld [vmem:[%s17480_s19 + $0x21c] sm:$0xff]  }
  0xda   :  { %1861 = vst [vmem:[#allocation3 + $0x204] sm:$0xf] %v1860_v54  ;;  %v1862_v55 = vld [vmem:[%s17480_s19 + $0x204] sm:$0xf]  ;;  %v1868_v57 = vld [vmem:[%s17480_s19 + $0x218] sm:$0xf] }
  0xdb   :  { %1863 = vst [vmem:[#allocation3 + $0x208] sm:$0xf] %v1862_v55  ;;  %1865 = vst [vmem:[#allocation3 + $0x20c] sm:$0xff] %v1864_v56   ;;  %v1870_v58 = vld [vmem:[%s17480_s19 + $0x214] sm:$0xf]  ;;  %v1880_v62 = vld [vmem:[%s17480_s19 + $0x22c] sm:$0xff]  }
  0xdc   :  { %1869 = vst [vmem:[#allocation3 + $0x214] sm:$0xf] %v1868_v57  ;;  %v1876_v60 = vld [vmem:[%s17480_s19 + $0x228] sm:$0xf]  ;;  %1871 = vst [vmem:[#allocation3 + $0x218] sm:$0xf] %v1870_v58 }
  0xdd   :  { %1873 = vst [vmem:[#allocation3 + $0x21c] sm:$0xff] %v1872_v59   ;;  %1877 = vst [vmem:[#allocation3 + $0x224] sm:$0xf] %v1876_v60  ;;  %v1878_v61 = vld [vmem:[%s17480_s19 + $0x224] sm:$0xf]  ;;  %v1888_v1 = vld [vmem:[%s17480_s19 + $0x23c] sm:$0xff]  }
  0xde   :  { %v1884_v63 = vld [vmem:[%s17480_s19 + $0x238] sm:$0xf]  ;;  %1879 = vst [vmem:[#allocation3 + $0x228] sm:$0xf] %v1878_v61  ;;  %1881 = vst [vmem:[#allocation3 + $0x22c] sm:$0xff] %v1880_v62   ;;  %v1896_v4 = vld [vmem:[%s17480_s19 + $0x24c] sm:$0xff]  }
  0xdf   :  { %1885 = vst [vmem:[#allocation3 + $0x234] sm:$0xf] %v1884_v63  ;;  %v1886_v0 = vld [vmem:[%s17480_s19 + $0x234] sm:$0xf]  ;;  %v1892_v2 = vld [vmem:[%s17480_s19 + $0x248] sm:$0xf] }
  0xe0   :  { %1887 = vst [vmem:[#allocation3 + $0x238] sm:$0xf] %v1886_v0  ;;  %1889 = vst [vmem:[#allocation3 + $0x23c] sm:$0xff] %v1888_v1   ;;  %v1894_v3 = vld [vmem:[%s17480_s19 + $0x244] sm:$0xf]  ;;  %v1904_v7 = vld [vmem:[%s17480_s19 + $0x25c] sm:$0xff]  }
  0xe1   :  { %1893 = vst [vmem:[#allocation3 + $0x244] sm:$0xf] %v1892_v2  ;;  %v1900_v5 = vld [vmem:[%s17480_s19 + $0x258] sm:$0xf]  ;;  %1895 = vst [vmem:[#allocation3 + $0x248] sm:$0xf] %v1894_v3 }
  0xe2   :  { %1897 = vst [vmem:[#allocation3 + $0x24c] sm:$0xff] %v1896_v4   ;;  %1901 = vst [vmem:[#allocation3 + $0x254] sm:$0xf] %v1900_v5  ;;  %v1902_v6 = vld [vmem:[%s17480_s19 + $0x254] sm:$0xf]  ;;  %v1912_v10 = vld [vmem:[%s17480_s19 + $0x26c] sm:$0xff]  }
  0xe3   :  { %v1908_v8 = vld [vmem:[%s17480_s19 + $0x268] sm:$0xf]  ;;  %1903 = vst [vmem:[#allocation3 + $0x258] sm:$0xf] %v1902_v6  ;;  %1905 = vst [vmem:[#allocation3 + $0x25c] sm:$0xff] %v1904_v7   ;;  %v1920_v13 = vld [vmem:[%s17480_s19 + $0x27c] sm:$0xff]  }
  0xe4   :  { %1909 = vst [vmem:[#allocation3 + $0x264] sm:$0xf] %v1908_v8  ;;  %v1910_v9 = vld [vmem:[%s17480_s19 + $0x264] sm:$0xf]  ;;  %v1916_v11 = vld [vmem:[%s17480_s19 + $0x278] sm:$0xf] }
  0xe5   :  { %1911 = vst [vmem:[#allocation3 + $0x268] sm:$0xf] %v1910_v9  ;;  %1913 = vst [vmem:[#allocation3 + $0x26c] sm:$0xff] %v1912_v10   ;;  %v1918_v12 = vld [vmem:[%s17480_s19 + $0x274] sm:$0xf]  ;;  %v1928_v16 = vld [vmem:[%s17480_s19 + $0x28c] sm:$0xff]  }
  0xe6   :  { %1917 = vst [vmem:[#allocation3 + $0x274] sm:$0xf] %v1916_v11  ;;  %v1924_v14 = vld [vmem:[%s17480_s19 + $0x288] sm:$0xf]  ;;  %1919 = vst [vmem:[#allocation3 + $0x278] sm:$0xf] %v1918_v12 }
  0xe7   :  { %1921 = vst [vmem:[#allocation3 + $0x27c] sm:$0xff] %v1920_v13   ;;  %1925 = vst [vmem:[#allocation3 + $0x284] sm:$0xf] %v1924_v14  ;;  %v1926_v15 = vld [vmem:[%s17480_s19 + $0x284] sm:$0xf]  ;;  %v1936_v19 = vld [vmem:[%s17480_s19 + $0x29c] sm:$0xff]  }
  0xe8   :  { %v1932_v17 = vld [vmem:[%s17480_s19 + $0x298] sm:$0xf]  ;;  %1927 = vst [vmem:[#allocation3 + $0x288] sm:$0xf] %v1926_v15  ;;  %1929 = vst [vmem:[#allocation3 + $0x28c] sm:$0xff] %v1928_v16   ;;  %v1944_v22 = vld [vmem:[%s17480_s19 + $0x2ac] sm:$0xff]  }
  0xe9   :  { %1933 = vst [vmem:[#allocation3 + $0x294] sm:$0xf] %v1932_v17  ;;  %v1934_v18 = vld [vmem:[%s17480_s19 + $0x294] sm:$0xf]  ;;  %v1940_v20 = vld [vmem:[%s17480_s19 + $0x2a8] sm:$0xf] }
  0xea   :  { %1935 = vst [vmem:[#allocation3 + $0x298] sm:$0xf] %v1934_v18  ;;  %1937 = vst [vmem:[#allocation3 + $0x29c] sm:$0xff] %v1936_v19   ;;  %v1942_v21 = vld [vmem:[%s17480_s19 + $0x2a4] sm:$0xf]  ;;  %v1952_v25 = vld [vmem:[%s17480_s19 + $0x2bc] sm:$0xff]  }
  0xeb   :  { %1941 = vst [vmem:[#allocation3 + $0x2a4] sm:$0xf] %v1940_v20  ;;  %v1948_v23 = vld [vmem:[%s17480_s19 + $0x2b8] sm:$0xf]  ;;  %1943 = vst [vmem:[#allocation3 + $0x2a8] sm:$0xf] %v1942_v21 }
  0xec   :  { %1945 = vst [vmem:[#allocation3 + $0x2ac] sm:$0xff] %v1944_v22   ;;  %1949 = vst [vmem:[#allocation3 + $0x2b4] sm:$0xf] %v1948_v23  ;;  %v1950_v24 = vld [vmem:[%s17480_s19 + $0x2b4] sm:$0xf]  ;;  %v1960_v28 = vld [vmem:[%s17480_s19 + $0x2cc] sm:$0xff]  }
  0xed   :  { %v1956_v26 = vld [vmem:[%s17480_s19 + $0x2c8] sm:$0xf]  ;;  %1951 = vst [vmem:[#allocation3 + $0x2b8] sm:$0xf] %v1950_v24  ;;  %1953 = vst [vmem:[#allocation3 + $0x2bc] sm:$0xff] %v1952_v25   ;;  %v1968_v31 = vld [vmem:[%s17480_s19 + $0x2dc] sm:$0xff]  }
  0xee   :  { %1957 = vst [vmem:[#allocation3 + $0x2c4] sm:$0xf] %v1956_v26  ;;  %v1958_v27 = vld [vmem:[%s17480_s19 + $0x2c4] sm:$0xf]  ;;  %v1964_v29 = vld [vmem:[%s17480_s19 + $0x2d8] sm:$0xf] }
  0xef   :  { %1959 = vst [vmem:[#allocation3 + $0x2c8] sm:$0xf] %v1958_v27  ;;  %1961 = vst [vmem:[#allocation3 + $0x2cc] sm:$0xff] %v1960_v28   ;;  %v1966_v30 = vld [vmem:[%s17480_s19 + $0x2d4] sm:$0xf]  ;;  %v1976_v34 = vld [vmem:[%s17480_s19 + $0x2ec] sm:$0xff]  }
  0xf0   :  { %1965 = vst [vmem:[#allocation3 + $0x2d4] sm:$0xf] %v1964_v29  ;;  %v1972_v32 = vld [vmem:[%s17480_s19 + $0x2e8] sm:$0xf]  ;;  %1967 = vst [vmem:[#allocation3 + $0x2d8] sm:$0xf] %v1966_v30 }
  0xf1   :  { %1969 = vst [vmem:[#allocation3 + $0x2dc] sm:$0xff] %v1968_v31   ;;  %1973 = vst [vmem:[#allocation3 + $0x2e4] sm:$0xf] %v1972_v32  ;;  %v1974_v33 = vld [vmem:[%s17480_s19 + $0x2e4] sm:$0xf]  ;;  %v1984_v37 = vld [vmem:[%s17480_s19 + $0x2fc] sm:$0xff]  }
  0xf2   :  { %v1980_v35 = vld [vmem:[%s17480_s19 + $0x2f8] sm:$0xf]  ;;  %1975 = vst [vmem:[#allocation3 + $0x2e8] sm:$0xf] %v1974_v33  ;;  %1977 = vst [vmem:[#allocation3 + $0x2ec] sm:$0xff] %v1976_v34   ;;  %v1992_v40 = vld [vmem:[%s17480_s19 + $0x30c] sm:$0xff]  }
  0xf3   :  { %1981 = vst [vmem:[#allocation3 + $0x2f4] sm:$0xf] %v1980_v35  ;;  %v1982_v36 = vld [vmem:[%s17480_s19 + $0x2f4] sm:$0xf]  ;;  %v1988_v38 = vld [vmem:[%s17480_s19 + $0x308] sm:$0xf] }
  0xf4   :  { %1983 = vst [vmem:[#allocation3 + $0x2f8] sm:$0xf] %v1982_v36  ;;  %1985 = vst [vmem:[#allocation3 + $0x2fc] sm:$0xff] %v1984_v37   ;;  %v1990_v39 = vld [vmem:[%s17480_s19 + $0x304] sm:$0xf]  ;;  %v2000_v43 = vld [vmem:[%s17480_s19 + $0x31c] sm:$0xff]  }
  0xf5   :  { %1989 = vst [vmem:[#allocation3 + $0x304] sm:$0xf] %v1988_v38  ;;  %v1996_v41 = vld [vmem:[%s17480_s19 + $0x318] sm:$0xf]  ;;  %1991 = vst [vmem:[#allocation3 + $0x308] sm:$0xf] %v1990_v39 }
  0xf6   :  { %1993 = vst [vmem:[#allocation3 + $0x30c] sm:$0xff] %v1992_v40   ;;  %1997 = vst [vmem:[#allocation3 + $0x314] sm:$0xf] %v1996_v41  ;;  %v1998_v42 = vld [vmem:[%s17480_s19 + $0x314] sm:$0xf]  ;;  %v2008_v46 = vld [vmem:[%s17480_s19 + $0x32c] sm:$0xff]  }
  0xf7   :  { %v2004_v44 = vld [vmem:[%s17480_s19 + $0x328] sm:$0xf]  ;;  %1999 = vst [vmem:[#allocation3 + $0x318] sm:$0xf] %v1998_v42  ;;  %2001 = vst [vmem:[#allocation3 + $0x31c] sm:$0xff] %v2000_v43   ;;  %v2016_v49 = vld [vmem:[%s17480_s19 + $0x33c] sm:$0xff]  }
  0xf8   :  { %2005 = vst [vmem:[#allocation3 + $0x324] sm:$0xf] %v2004_v44  ;;  %v2006_v45 = vld [vmem:[%s17480_s19 + $0x324] sm:$0xf]  ;;  %v2012_v47 = vld [vmem:[%s17480_s19 + $0x338] sm:$0xf] }
  0xf9   :  { %2007 = vst [vmem:[#allocation3 + $0x328] sm:$0xf] %v2006_v45  ;;  %2009 = vst [vmem:[#allocation3 + $0x32c] sm:$0xff] %v2008_v46   ;;  %v2014_v48 = vld [vmem:[%s17480_s19 + $0x334] sm:$0xf]  ;;  %v2024_v52 = vld [vmem:[%s17480_s19 + $0x34c] sm:$0xff]  }
  0xfa   :  { %2013 = vst [vmem:[#allocation3 + $0x334] sm:$0xf] %v2012_v47  ;;  %v2020_v50 = vld [vmem:[%s17480_s19 + $0x348] sm:$0xf]  ;;  %2015 = vst [vmem:[#allocation3 + $0x338] sm:$0xf] %v2014_v48 }
  0xfb   :  { %2017 = vst [vmem:[#allocation3 + $0x33c] sm:$0xff] %v2016_v49   ;;  %2021 = vst [vmem:[#allocation3 + $0x344] sm:$0xf] %v2020_v50  ;;  %v2022_v51 = vld [vmem:[%s17480_s19 + $0x344] sm:$0xf]  ;;  %v2032_v55 = vld [vmem:[%s17480_s19 + $0x35c] sm:$0xff]  }
  0xfc   :  { %v2028_v53 = vld [vmem:[%s17480_s19 + $0x358] sm:$0xf]  ;;  %2023 = vst [vmem:[#allocation3 + $0x348] sm:$0xf] %v2022_v51  ;;  %2025 = vst [vmem:[#allocation3 + $0x34c] sm:$0xff] %v2024_v52   ;;  %v2040_v58 = vld [vmem:[%s17480_s19 + $0x36c] sm:$0xff]  }
  0xfd   :  { %2029 = vst [vmem:[#allocation3 + $0x354] sm:$0xf] %v2028_v53  ;;  %v2030_v54 = vld [vmem:[%s17480_s19 + $0x354] sm:$0xf]  ;;  %v2036_v56 = vld [vmem:[%s17480_s19 + $0x368] sm:$0xf] }
  0xfe   :  { %2031 = vst [vmem:[#allocation3 + $0x358] sm:$0xf] %v2030_v54  ;;  %2033 = vst [vmem:[#allocation3 + $0x35c] sm:$0xff] %v2032_v55   ;;  %v2038_v57 = vld [vmem:[%s17480_s19 + $0x364] sm:$0xf]  ;;  %v2048_v61 = vld [vmem:[%s17480_s19 + $0x37c] sm:$0xff]  }
  0xff   :  { %2037 = vst [vmem:[#allocation3 + $0x364] sm:$0xf] %v2036_v56  ;;  %v2044_v59 = vld [vmem:[%s17480_s19 + $0x378] sm:$0xf]  ;;  %2039 = vst [vmem:[#allocation3 + $0x368] sm:$0xf] %v2038_v57 }
 0x100   :  { %2041 = vst [vmem:[#allocation3 + $0x36c] sm:$0xff] %v2040_v58   ;;  %2045 = vst [vmem:[#allocation3 + $0x374] sm:$0xf] %v2044_v59  ;;  %v2046_v60 = vld [vmem:[%s17480_s19 + $0x374] sm:$0xf]  ;;  %v2056_v0 = vld [vmem:[%s17480_s19 + $0x38c] sm:$0xff]  }
 0x101   :  { %v2052_v62 = vld [vmem:[%s17480_s19 + $0x388] sm:$0xf]  ;;  %2047 = vst [vmem:[#allocation3 + $0x378] sm:$0xf] %v2046_v60  ;;  %2049 = vst [vmem:[#allocation3 + $0x37c] sm:$0xff] %v2048_v61   ;;  %v2064_v3 = vld [vmem:[%s17480_s19 + $0x39c] sm:$0xff]  }
 0x102   :  { %2053 = vst [vmem:[#allocation3 + $0x384] sm:$0xf] %v2052_v62  ;;  %v2054_v63 = vld [vmem:[%s17480_s19 + $0x384] sm:$0xf]  ;;  %v2060_v1 = vld [vmem:[%s17480_s19 + $0x398] sm:$0xf] }
 0x103   :  { %2055 = vst [vmem:[#allocation3 + $0x388] sm:$0xf] %v2054_v63  ;;  %2057 = vst [vmem:[#allocation3 + $0x38c] sm:$0xff] %v2056_v0   ;;  %v2062_v2 = vld [vmem:[%s17480_s19 + $0x394] sm:$0xf]  ;;  %v2072_v6 = vld [vmem:[%s17480_s19 + $0x3ac] sm:$0xff]  }
 0x104   :  { %2061 = vst [vmem:[#allocation3 + $0x394] sm:$0xf] %v2060_v1  ;;  %v2068_v4 = vld [vmem:[%s17480_s19 + $0x3a8] sm:$0xf]  ;;  %2063 = vst [vmem:[#allocation3 + $0x398] sm:$0xf] %v2062_v2 }
 0x105   :  { %2065 = vst [vmem:[#allocation3 + $0x39c] sm:$0xff] %v2064_v3   ;;  %2069 = vst [vmem:[#allocation3 + $0x3a4] sm:$0xf] %v2068_v4  ;;  %v2070_v5 = vld [vmem:[%s17480_s19 + $0x3a4] sm:$0xf]  ;;  %v2080_v9 = vld [vmem:[%s17480_s19 + $0x3bc] sm:$0xff]  }
 0x106   :  { %v2076_v7 = vld [vmem:[%s17480_s19 + $0x3b8] sm:$0xf]  ;;  %2071 = vst [vmem:[#allocation3 + $0x3a8] sm:$0xf] %v2070_v5  ;;  %2073 = vst [vmem:[#allocation3 + $0x3ac] sm:$0xff] %v2072_v6   ;;  %v2088_v12 = vld [vmem:[%s17480_s19 + $0x3cc] sm:$0xff]  }
 0x107   :  { %2077 = vst [vmem:[#allocation3 + $0x3b4] sm:$0xf] %v2076_v7  ;;  %v2078_v8 = vld [vmem:[%s17480_s19 + $0x3b4] sm:$0xf]  ;;  %v2084_v10 = vld [vmem:[%s17480_s19 + $0x3c8] sm:$0xf] }
 0x108   :  { %2079 = vst [vmem:[#allocation3 + $0x3b8] sm:$0xf] %v2078_v8  ;;  %2081 = vst [vmem:[#allocation3 + $0x3bc] sm:$0xff] %v2080_v9   ;;  %v2086_v11 = vld [vmem:[%s17480_s19 + $0x3c4] sm:$0xf]  ;;  %v2096_v15 = vld [vmem:[%s17480_s19 + $0x3dc] sm:$0xff]  }
 0x109   :  { %2085 = vst [vmem:[#allocation3 + $0x3c4] sm:$0xf] %v2084_v10  ;;  %v2092_v13 = vld [vmem:[%s17480_s19 + $0x3d8] sm:$0xf]  ;;  %2087 = vst [vmem:[#allocation3 + $0x3c8] sm:$0xf] %v2086_v11 }
 0x10a   :  { %2089 = vst [vmem:[#allocation3 + $0x3cc] sm:$0xff] %v2088_v12   ;;  %2093 = vst [vmem:[#allocation3 + $0x3d4] sm:$0xf] %v2092_v13  ;;  %v2094_v14 = vld [vmem:[%s17480_s19 + $0x3d4] sm:$0xf]  ;;  %v2104_v18 = vld [vmem:[%s17480_s19 + $0x3ec] sm:$0xff]  }
 0x10b   :  { %v2100_v16 = vld [vmem:[%s17480_s19 + $0x3e8] sm:$0xf]  ;;  %2095 = vst [vmem:[#allocation3 + $0x3d8] sm:$0xf] %v2094_v14  ;;  %2097 = vst [vmem:[#allocation3 + $0x3dc] sm:$0xff] %v2096_v15  }
 0x10c   :  { %2101 = vst [vmem:[#allocation3 + $0x3e4] sm:$0xf] %v2100_v16  ;;  %v2102_v17 = vld [vmem:[%s17480_s19 + $0x3e4] sm:$0xf]  ;;  %v2108_v19 = vld [vmem:[%s17480_s19 + $0x3f8] sm:$0xf] }
 0x10d   :  { %2103 = vst [vmem:[#allocation3 + $0x3e8] sm:$0xf] %v2102_v17  ;;  %2105 = vst [vmem:[#allocation3 + $0x3ec] sm:$0xff] %v2104_v18   ;;  %v2110_v20 = vld [vmem:[%s17480_s19 + $0x3f4] sm:$0xf] }
 0x10e   :  { %2109 = vst [vmem:[#allocation3 + $0x3f4] sm:$0xf] %v2108_v19  ;;  %v2112_v21 = vld [vmem:[%s17480_s19 + $0x3fc] sm:$0xf]  ;;  %2111 = vst [vmem:[#allocation3 + $0x3f8] sm:$0xf] %v2110_v20 }
 0x10f   :  { %2113 = vst [vmem:[#allocation3 + $0x3fc] sm:$0xf] %v2112_v21 }
 0x110   :  { %2656 = vsyncadd [#allocation5 + $0x1], 16384  ;;  %v14607_v22 = vld [vmem:[%s17481_s20] sm:$0xff]  ;;  %v14612_v23 = vld [vmem:[%s17481_s20 + $0x8] sm:$0xff] }
 0x111   :  { %v14617_v24 = vld [vmem:[%s17481_s20 + $0x10] sm:$0xff]  ;;  %v14622_v25 = vld [vmem:[%s17481_s20 + $0x18] sm:$0xff]  ;;  %v14627_v26 = vld [vmem:[%s17481_s20 + $0x20] sm:$0xff] }
 0x112   :  { %v14632_v27 = vld [vmem:[%s17481_s20 + $0x28] sm:$0xff]  ;;  %v14637_v28 = vld [vmem:[%s17481_s20 + $0x30] sm:$0xff]  ;;  %v14642_v29 = vld [vmem:[%s17481_s20 + $0x38] sm:$0xff] }
 0x113   :  { %v14647_v30 = vld [vmem:[%s17481_s20 + $0x40] sm:$0xff]  ;;  %v14652_v31 = vld [vmem:[%s17481_s20 + $0x48] sm:$0xff]  ;;  %v14657_v32 = vld [vmem:[%s17481_s20 + $0x50] sm:$0xff] }
 0x114   :  { %v14662_v33 = vld [vmem:[%s17481_s20 + $0x58] sm:$0xff]  ;;  %v14667_v34 = vld [vmem:[%s17481_s20 + $0x60] sm:$0xff]  ;;  %v14672_v35 = vld [vmem:[%s17481_s20 + $0x68] sm:$0xff] }
 0x115   :  { %v14677_v36 = vld [vmem:[%s17481_s20 + $0x70] sm:$0xff]  ;;  %v14682_v37 = vld [vmem:[%s17481_s20 + $0x78] sm:$0xff]  ;;  %v14687_v38 = vld [vmem:[%s17481_s20 + $0x80] sm:$0xff] }
 0x116   :  { %17501 = vst [vmem:[#allocation15_spill] sm:$0xff] %v14677_v36  ;;  %17502 = vst [vmem:[#allocation16_spill] sm:$0xff] %v14682_v37  ;;  %v14692_v39 = vld [vmem:[%s17481_s20 + $0x88] sm:$0xff]  ;;  %v14697_v40 = vld [vmem:[%s17481_s20 + $0x90] sm:$0xff] }
 0x117   :  { %17503 = vst [vmem:[#allocation17_spill] sm:$0xff] %v14687_v38  ;;  %17504 = vst [vmem:[#allocation18_spill] sm:$0xff] %v14692_v39  ;;  %v14702_v41 = vld [vmem:[%s17481_s20 + $0x98] sm:$0xff]  ;;  %v14707_v42 = vld [vmem:[%s17481_s20 + $0xa0] sm:$0xff] }
 0x118   :  { %17505 = vst [vmem:[#allocation19_spill] sm:$0xff] %v14697_v40  ;;  %17506 = vst [vmem:[#allocation20_spill] sm:$0xff] %v14702_v41  ;;  %v14712_v43 = vld [vmem:[%s17481_s20 + $0xa8] sm:$0xff]  ;;  %v14717_v44 = vld [vmem:[%s17481_s20 + $0xb0] sm:$0xff] }
 0x119   :  { %17507 = vst [vmem:[#allocation21_spill] sm:$0xff] %v14707_v42  ;;  %17508 = vst [vmem:[#allocation22_spill] sm:$0xff] %v14712_v43  ;;  %v14722_v45 = vld [vmem:[%s17481_s20 + $0xb8] sm:$0xff] }
 0x11a   :  { %17509 = vst [vmem:[#allocation23_spill] sm:$0xff] %v14717_v44  ;;  %17510 = vst [vmem:[#allocation24_spill] sm:$0xff] %v14722_v45 }
 0x11b   :  { %2745 = vsyncadd [#allocation5 + $0x2], 3072  ;;  %s17511_s2 = sld [smem:[#allocation25_spill]]  ;;  %v17489_v52 = vmov 0   ;;  %vm2912_vm0 = vcmask 1040384   ;;  %s17512_s26 = sld [smem:[#allocation26_spill]] }
 0x11c   :  { %2960 = vmatprep.mubr.bf16.mxu0 %v17489_v52  ;;  %3073 = vmatprep.mubr.bf16.mxu1 %v17489_v52  ;;  %vm2887_vm1 = vcmask 670720   ;;  %s17513_s28 = sld [smem:[#allocation27_spill]]  ;;  %vm4088_vm2 = vcmask 261120   ;;  %s17515_s1 = sld [smem:[#allocation28_spill]]  ;;  %vm7305_vm3 = vcmask 916480   ;;  %vm13081_vm4 = vmmov 0  }
 0x11d   :  { %s17518_s4 = sld [smem:[#allocation29_spill]]  ;;  %s17519_s18 = sld [smem:[#allocation30_spill]]  ;;  %vm7712_vm5 = vcmask 130048  }
 0x121   :  { %v2747_v46 = vld [vmem:[%s17511_s2 + $0x8] sm:$0xff]  ;;  %v2752_v47 = vld [vmem:[%s17511_s2 + $0x30] sm:$0xff]  ;;  %v2746_v49 = vld [vmem:[%s17511_s2] sm:$0xff] }
 0x122   :  { %v2818_v48 = vpack.c.bf16 %v2752_v47, %v2747_v46  ;;  %v2751_v50 = vld [vmem:[%s17511_s2 + $0x28] sm:$0xff]  ;;  %v2757_v51 = vld [vmem:[%s17511_s2 + $0x58] sm:$0xff]  ;;  %v2762_v54 = vld [vmem:[%s17511_s2 + $0x80] sm:$0xff] }
 0x123   :  { %v2817_v53 = vpack.c.bf16 %v2751_v50, %v2746_v49  ;;  %v2756_v55 = vld [vmem:[%s17511_s2 + $0x50] sm:$0xff]  ;;  %v2761_v56 = vld [vmem:[%s17511_s2 + $0x78] sm:$0xff]  ;;  %v2823_v57 = vpack.c.bf16 %v2762_v54, %v2757_v51  ;;  %v2767_v58 = vld [vmem:[%s17511_s2 + $0xa8] sm:$0xff] }
 0x124   :  { %2928 = vmatprep.subr.bf16.mxu0 %v2818_v48  ;;  %v2772_v59 = vld [vmem:[%s17511_s2 + $0xd0] sm:$0xff]  ;;  %v2822_v60 = vpack.c.bf16 %v2761_v56, %v2756_v55  ;;  %v2766_v62 = vld [vmem:[%s17511_s2 + $0xa0] sm:$0xff]  ;;  %v2771_v63 = vld [vmem:[%s17511_s2 + $0xc8] sm:$0xff] }
 0x125   :  { %2929 = vmatpush1.bf16.msra.mxu0 %v2817_v53  ;;  %v2828_v61 = vpack.c.bf16 %v2772_v59, %v2767_v58  ;;  %v2777_v0 = vld [vmem:[%s17511_s2 + $0xf8] sm:$0xff]  ;;  %v2782_v1 = vld [vmem:[%s17511_s2 + $0x120] sm:$0xff]  ;;  %v2776_v2 = vld [vmem:[%s17511_s2 + $0xf0] sm:$0xff]  ;;  %v2827_v4 = vpack.c.bf16 %v2771_v63, %v2766_v62 }
 0x126   :  { %2930 = vmatprep.subr.bf16.mxu0 %v2823_v57  ;;  %v2781_v3 = vld [vmem:[%s17511_s2 + $0x118] sm:$0xff]  ;;  %v2787_v5 = vld [vmem:[%s17511_s2 + $0x148] sm:$0xff]  ;;  %v2833_v7 = vpack.c.bf16 %v2782_v1, %v2777_v0  ;;  %v2754_v8 = vld [vmem:[%s17511_s2 + $0x40] sm:$0xff] }
 0x127   :  { %v2749_v6 = vld [vmem:[%s17511_s2 + $0x18] sm:$0xff]  ;;  %v2792_v9 = vld [vmem:[%s17511_s2 + $0x170] sm:$0xff]  ;;  %v2786_v13 = vld [vmem:[%s17511_s2 + $0x140] sm:$0xff]  ;;  %v2832_v19 = vpack.c.bf16 %v2781_v3, %v2776_v2 }
 0x128   :  { %v2820_v10 = vpack.c.bf16 %v2754_v8, %v2749_v6  ;;  %v2748_v11 = vld [vmem:[%s17511_s2 + $0x10] sm:$0xff]  ;;  %v2753_v12 = vld [vmem:[%s17511_s2 + $0x38] sm:$0xff]  ;;  %v2791_v14 = vld [vmem:[%s17511_s2 + $0x168] sm:$0xff]  ;;  %v2838_v48 = vpack.c.bf16 %v2792_v9, %v2787_v5 }
 0x129   :  { %2931 = vmatpush1.bf16.msra.mxu0 %v2822_v60  ;;  %v2819_v15 = vpack.c.bf16 %v2753_v12, %v2748_v11  ;;  %v2759_v16 = vld [vmem:[%s17511_s2 + $0x68] sm:$0xff]  ;;  %v2764_v17 = vld [vmem:[%s17511_s2 + $0x90] sm:$0xff]  ;;  %v2758_v18 = vld [vmem:[%s17511_s2 + $0x60] sm:$0xff]  ;;  %v2837_v58 = vpack.c.bf16 %v2791_v14, %v2786_v13 }
 0x12a   :  { %2932 = vmatprep.subr.bf16.mxu0 %v2828_v61  ;;  %3041 = vmatprep.subr.bf16.mxu1 %v2820_v10  ;;  %v2825_v20 = vpack.c.bf16 %v2764_v17, %v2759_v16  ;;  %v2763_v21 = vld [vmem:[%s17511_s2 + $0x88] sm:$0xff]  ;;  %v2769_v46 = vld [vmem:[%s17511_s2 + $0xb8] sm:$0xff]  ;;  %v2774_v47 = vld [vmem:[%s17511_s2 + $0xe0] sm:$0xff] }
 0x12b   :  { %v2797_v49 = vld [vmem:[%s17511_s2 + $0x198] sm:$0x3]  ;;  %3042 = vmatpush1.bf16.msra.mxu1 %v2819_v15  ;;  %v2824_v50 = vpack.c.bf16 %v2763_v21, %v2758_v18  ;;  %v2796_v51 = vld [vmem:[%s17511_s2 + $0x190] sm:$0x3]  ;;  %v2830_v53 = vpack.c.bf16 %v2774_v47, %v2769_v46  ;;  %v2779_v56 = vld [vmem:[%s17511_s2 + $0x108] sm:$0xff] }
 0x12c   :  { %3043 = vmatprep.subr.bf16.mxu1 %v2825_v20  ;;  %v2768_v54 = vld [vmem:[%s17511_s2 + $0xb0] sm:$0xff]  ;;  %v2773_v55 = vld [vmem:[%s17511_s2 + $0xd8] sm:$0xff]  ;;  %v2843_v59 = vpack.c.bf16 %v2797_v49, %v2797_v49  ;;  %v2842_v60 = vpack.c.bf16 %v2796_v51, %v2796_v51  ;;  %v2778_v62 = vld [vmem:[%s17511_s2 + $0x100] sm:$0xff] }
 0x12d   :  { %2933 = vmatpush1.bf16.msra.mxu0 %v2827_v4  ;;  %v2784_v57 = vld [vmem:[%s17511_s2 + $0x130] sm:$0xff]  ;;  %v2829_v61 = vpack.c.bf16 %v2773_v55, %v2768_v54  ;;  %v2783_v0 = vld [vmem:[%s17511_s2 + $0x128] sm:$0xff]  ;;  %v2750_v1 = vld [vmem:[%s17511_s2 + $0x20] sm:$0xff] }
 0x12e   :  { %2934 = vmatprep.subr.bf16.mxu0 %v2833_v7  ;;  %v2835_v63 = vpack.c.bf16 %v2784_v57, %v2779_v56  ;;  %v2755_v2 = vld [vmem:[%s17511_s2 + $0x48] sm:$0xff]  ;;  %v2789_v3 = vld [vmem:[%s17511_s2 + $0x158] sm:$0xff]  ;;  %v2794_v4 = vld [vmem:[%s17511_s2 + $0x180] sm:$0xff]  ;;  %v2914_v6 = vsel %vm2912_vm0, %v2842_v60, 0  ;;  %v2834_v8 = vpack.c.bf16 %v2783_v0, %v2778_v62 }
 0x12f   :  { %3044 = vmatpush1.bf16.msra.mxu1 %v2824_v50  ;;  %v2788_v5 = vld [vmem:[%s17511_s2 + $0x150] sm:$0xff]  ;;  %v14860_v7 = vld [vmem:[%s17512_s26] sm:$0xff]   ;;  %v2793_v9 = vld [vmem:[%s17511_s2 + $0x178] sm:$0xff]  ;;  %v2821_v10 = vpack.c.bf16 %v2755_v2, %v2750_v1  ;;  %v2840_v11 = vpack.c.bf16 %v2794_v4, %v2789_v3 }
 0x130   :  { %3045 = vmatprep.subr.bf16.mxu1 %v2830_v53  ;;  %v2799_v12 = vld [vmem:[%s17511_s2 + $0x1a8] sm:$0x3]  ;;  %v2760_v13 = vld [vmem:[%s17511_s2 + $0x70] sm:$0xff]  ;;  %v2765_v14 = vld [vmem:[%s17511_s2 + $0x98] sm:$0xff]  ;;  %v2839_v16 = vpack.c.bf16 %v2793_v9, %v2788_v5 }
 0x131   :  { %2935 = vmatpush1.bf16.msra.mxu0 %v2832_v19  ;;  %v2798_v15 = vld [vmem:[%s17511_s2 + $0x1a0] sm:$0x3]  ;;  %v2826_v17 = vpack.c.bf16 %v2765_v14, %v2760_v13  ;;  %v2845_v18 = vpack.c.bf16 %v2799_v12, %v2799_v12  ;;  %v2775_v21 = vld [vmem:[%s17511_s2 + $0xe8] sm:$0xff]  ;;  %v2780_v50 = vld [vmem:[%s17511_s2 + $0x110] sm:$0xff] }
 0x132   :  { %2936 = vmatprep.subr.bf16.mxu0 %v2838_v48  ;;  %v2844_v19 = vpack.c.bf16 %v2798_v15, %v2798_v15  ;;  %v2770_v20 = vld [vmem:[%s17511_s2 + $0xc0] sm:$0xff]  ;;  %v14889_v47 = vld [vmem:[%s17512_s26 + $0x8] sm:$0xff]   ;;  %v2785_v51 = vld [vmem:[%s17511_s2 + $0x138] sm:$0xff] }
 0x133   :  { %3046 = vmatpush1.bf16.msra.mxu1 %v2829_v61  ;;  %v2831_v46 = vpack.c.bf16 %v2775_v21, %v2770_v20  ;;  %v12495_v49 = vld [vmem:[%s17513_s28 + $0x334] ss:$12 sps:$4 sm:$0xff]   ;;  %v2836_v53 = vpack.c.bf16 %v2785_v51, %v2780_v50  ;;  %v12493_v55 = vld [vmem:[%s17513_s28 + $0x330] ss:$12 sps:$4 sm:$0xff]   ;;  %v2795_v56 = vld [vmem:[%s17511_s2 + $0x188] sm:$0xff] }
 0x134   :  { %3047 = vmatprep.subr.bf16.mxu1 %v2835_v63  ;;  %v2920_v48 = vsel %vm2912_vm0, %v2844_v19, 0  ;;  %v2790_v54 = vld [vmem:[%s17511_s2 + $0x160] sm:$0xff]  ;;  %v12498_v57 = vld [vmem:[%s17513_s28 + $0x34c] ss:$12 sps:$4 sm:$0xff]   ;;  %v12496_v61 = vld [vmem:[%s17513_s28 + $0x348] ss:$12 sps:$4 sm:$0xff]  }
 0x135   :  { %2937 = vmatpush1.bf16.msra.mxu0 %v2837_v58  ;;  %v2800_v58 = vld [vmem:[%s17511_s2 + $0x1b0] sm:$0x3]  ;;  %v2841_v60 = vpack.c.bf16 %v2795_v56, %v2790_v54  ;;  %v12499_v0 = vld [vmem:[%s17513_s28 + $0x360] ss:$12 sps:$4 sm:$0xff]   ;;  %v12504_v1 = vld [vmem:[%s17513_s28 + $0x37c] ss:$12 sps:$4 sm:$0xff]  }
 0x136   :  { %10450 = vmatprep.subr.msk.bf16.mxu0 %vm2912_vm0, %v2843_v59  ;;  %v14926_v59 = vld [vmem:[%s17512_s26 + $0x10] sm:$0xff]   ;;  %v2846_v63 = vpack.c.bf16 %v2800_v58, %v2800_v58  ;;  %v14949_v3 = vld [vmem:[%s17512_s26 + $0x18] sm:$0xff]   ;;  %v12511_v13 = vld [vmem:[%s17513_s28 + $0x3c0] ss:$12 sps:$4 sm:$0xff]  }
 0x137   :  { %3048 = vmatpush1.bf16.msra.mxu1 %v2834_v8  ;;  %v12501_v62 = vld [vmem:[%s17513_s28 + $0x364] ss:$12 sps:$4 sm:$0xff]   ;;  %v12510_v9 = vld [vmem:[%s17513_s28 + $0x3ac] ss:$12 sps:$4 sm:$0xff]   ;;  %v12516_v14 = vld [vmem:[%s17513_s28 + $0x3dc] ss:$12 sps:$4 sm:$0xff]  }
 0x138   :  { %3049 = vmatprep.subr.bf16.mxu1 %v2840_v11  ;;  %v2926_v2 = vsel %vm2912_vm0, %v2846_v63, 0  ;;  %v12502_v4 = vld [vmem:[%s17513_s28 + $0x378] ss:$12 sps:$4 sm:$0xff]   ;;  %v12505_v8 = vld [vmem:[%s17513_s28 + $0x390] ss:$12 sps:$4 sm:$0xff]  }
 0x139   :  { %2939 = vmatpush1.bf16.msra.mxu0 %v2914_v6  ;;  %v12520_v5 = vld [vmem:[%s17513_s28 + $0x3f8] ss:$12 sps:$4 sm:$0xff]   ;;  %v12507_v6 = vld [vmem:[%s17513_s28 + $0x394] ss:$12 sps:$4 sm:$0xff]   ;;  %v12525_v51 = vld [vmem:[%s17513_s28 + $0x410] ss:$12 sps:$4 sm:$0xff]  }
 0x13a   :  { %11803 = vmatprep.subr.bf16.mxu0 %v2821_v10  ;;  %v12489_v11 = vld [vmem:[%s17512_s26 + $0x20] sm:$0xff]   ;;  %v12524_v19 = vld [vmem:[%s17513_s28 + $0x40c] ss:$12 sps:$4 sm:$0xff]   ;;  %v12522_v20 = vld [vmem:[%s17513_s28 + $0x408] ss:$12 sps:$4 sm:$0xff]  }
 0x13b   :  { %3050 = vmatpush1.bf16.msra.mxu1 %v2839_v16  ;;  %v12513_v12 = vld [vmem:[%s17513_s28 + $0x3c4] ss:$12 sps:$4 sm:$0xff]   ;;  %v12490_v16 = vld [vmem:[%s17512_s26 + $0x28] sm:$0xff]  }
 0x13c   :  { %10451 = vmatmul.mubr.msk.bf16.vlgmr.msra.gmra.mrb[0].mxu0 %vm2887_vm1, %v14860_v7  ;;  %10459 = vmatprep.subr.msk.bf16.mxu1 %vm2912_vm0, %v2845_v18  ;;  %v12514_v15 = vld [vmem:[%s17513_s28 + $0x3d8] ss:$12 sps:$4 sm:$0xff]   ;;  %v12517_v18 = vld [vmem:[%s17513_s28 + $0x3f0] ss:$12 sps:$4 sm:$0xff]   ;;  %v12531_v54 = vld [vmem:[%s17513_s28 + $0x368] ss:$12 sps:$4 sm:$0xff]  }
 0x13d   :  { %2970 = vmatprep.mubr.bf16.mxu0 %v17489_v52  ;;  %11804 = vmatpush3.bf16.msra.mxu0 %v2821_v10  ;;  %v12508_v10 = vld [vmem:[%s17513_s28 + $0x3a8] ss:$12 sps:$4 sm:$0xff]   ;;  %v12521_v50 = vld [vmem:[%s17513_s28 + $0x338] ss:$12 sps:$4 sm:$0xff]   ;;  %v12537_v58 = vld [vmem:[%s17513_s28 + $0x450] ss:$12 sps:$4 sm:$0xff]  }
 0x13e   :  { %11805 = vmatprep.subr.bf16.mxu0 %v2826_v17  ;;  %v12491_v21 = vld [vmem:[%s17512_s26 + $0x30] sm:$0xff]   ;;  %v12532_v56 = vld [vmem:[%s17513_s28 + $0x438] ss:$12 sps:$4 sm:$0xff]  }
 0x13f   :  { %3052 = vmatpush1.bf16.msra.mxu1 %v2920_v48  ;;  %v12527_v48 = vld [vmem:[%s17513_s28 + $0x420] ss:$12 sps:$4 sm:$0xff]  }
 0x140   :  { %4095 = vmatprep.subr.bf16.mxu1 %v12495_v49  ;;  %v12492_v49 = vld [vmem:[%s17512_s26 + $0x38] sm:$0xff]  }
 0x141   :  { %11806 = vmatpush3.bf16.msra.mxu0 %v2826_v17  ;;  %v12519_v17 = vld [vmem:[%s17513_s28 + $0x3f4] ss:$12 sps:$4 sm:$0xff]  }
 0x142   :  { %11807 = vmatprep.subr.bf16.mxu0 %v2831_v46  ;;  %10460 = vmatmul.mubr.msk.bf16.vlgmr.msra.gmra.mrb[0].mxu1 %vm2887_vm1, %v14860_v7 }
 0x143   :  { %3083 = vmatprep.mubr.bf16.mxu1 %v17489_v52  ;;  %4096 = vmatpush1.bf16.msra.mxu1 %v12493_v55  ;;  %v12535_v55 = vld [vmem:[%s17513_s28 + $0x440] ss:$12 sps:$4 sm:$0xff]  }
 0x144   :  { %10452 = vmatmul.mubr.msk.bf16.gmra.mrb[4].mxu0 %vm2887_vm1, %v14889_v47  ;;  %4097 = vmatprep.subr.bf16.mxu1 %v12498_v57  ;;  %v12536_v57 = vld [vmem:[%s17513_s28 + $0x380] ss:$12 sps:$4 sm:$0xff]  }
 0x145   :  { %2980 = vmatprep.mubr.bf16.mxu0 %v17489_v52  ;;  %11808 = vmatpush3.bf16.msra.mxu0 %v2831_v46  ;;  %v12529_v46 = vld [vmem:[%s17513_s28 + $0x424] ss:$12 sps:$4 sm:$0xff]  }
 0x146   :  { %11809 = vmatprep.subr.bf16.mxu0 %v2836_v53 }
 0x147   :  { %4098 = vmatpush1.bf16.msra.mxu1 %v12496_v61  ;;  %v12541_v61 = vld [vmem:[%s17513_s28 + $0x398] ss:$12 sps:$4 sm:$0xff]  }
 0x148   :  { %4099 = vmatprep.subr.bf16.mxu1 %v12501_v62  ;;  %v12544_v62 = vld [vmem:[%s17513_s28 + $0x46c] ss:$12 sps:$4 sm:$0xff]  }
 0x149   :  { %11810 = vmatpush3.bf16.msra.mxu0 %v2836_v53  ;;  %v12526_v53 = vld [vmem:[%s17513_s28 + $0x350] ss:$12 sps:$4 sm:$0xff]  }
 0x14a   :  { %11811 = vmatprep.subr.bf16.mxu0 %v2841_v60  ;;  %10461 = vmatmul.mubr.msk.bf16.gmra.mrb[4].mxu1 %vm2887_vm1, %v14889_v47 }
 0x14b   :  { %3093 = vmatprep.mubr.bf16.mxu1 %v17489_v52  ;;  %4100 = vmatpush1.bf16.msra.mxu1 %v12499_v0  ;;  %v12542_v0 = vld [vmem:[%s17513_s28 + $0x468] ss:$12 sps:$4 sm:$0xff]  }
 0x14c   :  { %10453 = vmatmul.mubr.msk.bf16.gmra.mrb[8].mxu0 %vm2887_vm1, %v14926_v59  ;;  %4101 = vmatprep.subr.bf16.mxu1 %v12504_v1  ;;  %v12546_v1 = vld [vmem:[%s17513_s28 + $0x3b0] ss:$12 sps:$4 sm:$0xff]  }
 0x14d   :  { %2990 = vmatprep.mubr.bf16.mxu0 %v17489_v52  ;;  %11812 = vmatpush3.bf16.msra.mxu0 %v2841_v60  ;;  %v12540_v60 = vld [vmem:[%s17513_s28 + $0x458] ss:$12 sps:$4 sm:$0xff]  }
 0x14e   :  { %12479 = vmatprep.subr.msk.bf16.mxu0 %vm2912_vm0, %v2846_v63  ;;  %v12545_v63 = vld [vmem:[%s17513_s28 + $0x470] ss:$12 sps:$4 sm:$0xff]  }
 0x14f   :  { %4102 = vmatpush1.bf16.msra.mxu1 %v12502_v4  ;;  %v12550_v4 = vld [vmem:[%s17513_s28 + $0x488] ss:$12 sps:$4 sm:$0xff]  }
 0x150   :  { %4103 = vmatprep.subr.bf16.mxu1 %v12507_v6  ;;  %v12554_v6 = vld [vmem:[%s17513_s28 + $0x49c] ss:$12 sps:$4 sm:$0xff]  }
 0x151   :  { %11814 = vmatpush3.bf16.msra.mxu0 %v2926_v2  ;;  %v12547_v2 = vld [vmem:[%s17513_s28 + $0x480] ss:$12 sps:$4 sm:$0xff]  }
 0x152   :  { %11364 = vmatprep.subr.bf16.mxu0 %v12520_v5  ;;  %10462 = vmatmul.mubr.msk.bf16.gmra.mrb[8].mxu1 %vm2887_vm1, %v14926_v59  ;;  %v12551_v5 = vld [vmem:[%s17513_s28 + $0x3c8] ss:$12 sps:$4 sm:$0xff]  }
 0x153   :  { %3103 = vmatprep.mubr.bf16.mxu1 %v17489_v52  ;;  %4104 = vmatpush1.bf16.msra.mxu1 %v12505_v8  ;;  %v12555_v8 = vld [vmem:[%s17513_s28 + $0x4a0] ss:$12 sps:$4 sm:$0xff]  }
 0x154   :  { %10454 = vmatmul.mubr.msk.bf16.gmra.mrb[12].mxu0 %vm2887_vm1, %v14949_v3  ;;  %4105 = vmatprep.subr.bf16.mxu1 %v12510_v9  ;;  %v12552_v9 = vld [vmem:[%s17513_s28 + $0x498] ss:$12 sps:$4 sm:$0xff]  }
 0x155   :  { %3000 = vmatprep.mubr.bf16.mxu0 %v17489_v52 }
 0x157   :  { %4106 = vmatpush1.bf16.msra.mxu1 %v12508_v10  ;;  %v12556_v10 = vld [vmem:[%s17513_s28 + $0x3e0] ss:$12 sps:$4 sm:$0xff]  }
 0x158   :  { %4107 = vmatprep.subr.bf16.mxu1 %v12513_v12  ;;  %v12560_v12 = vld [vmem:[%s17513_s28 + $0x578] ss:$12 sps:$4 sm:$0xff]  }
 0x15a   :  { %10463 = vmatmul.mubr.msk.bf16.gmra.mrb[12].mxu1 %vm2887_vm1, %v14949_v3 }
 0x15b   :  { %3113 = vmatprep.mubr.bf16.mxu1 %v17489_v52  ;;  %4108 = vmatpush1.bf16.msra.mxu1 %v12511_v13 }
 0x15c   :  { %10455 = vmatmul.mubr.msk.bf16.gmra.mrb[16].mxu0 %vm2887_vm1, %v12489_v11  ;;  %4109 = vmatprep.subr.bf16.mxu1 %v12516_v14 }
 0x15d   :  { %3010 = vmatprep.mubr.bf16.mxu0 %v17489_v52 }
 0x15f   :  { %4110 = vmatpush1.bf16.msra.mxu1 %v12514_v15 }
 0x160   :  { %4111 = vmatprep.subr.bf16.mxu1 %v12519_v17 }
 0x162   :  { %10464 = vmatmul.mubr.msk.bf16.gmra.mrb[16].mxu1 %vm2887_vm1, %v12489_v11 }
 0x163   :  { %3123 = vmatprep.mubr.bf16.mxu1 %v17489_v52  ;;  %4112 = vmatpush1.bf16.msra.mxu1 %v12517_v18 }
 0x164   :  { %10456 = vmatmul.mubr.msk.bf16.gmra.mrb[20].mxu0 %vm2887_vm1, %v12490_v16  ;;  %4113 = vmatprep.subr.bf16.mxu1 %v12524_v19 }
 0x165   :  { %3020 = vmatprep.mubr.bf16.mxu0 %v17489_v52 }
 0x167   :  { %4114 = vmatpush1.bf16.msra.mxu1 %v12522_v20 }
 0x168   :  { %4115 = vmatprep.subr.bf16.mxu1 %v12529_v46 }
 0x16a   :  { %10465 = vmatmul.mubr.msk.bf16.gmra.mrb[20].mxu1 %vm2887_vm1, %v12490_v16 }
 0x16b   :  { %3133 = vmatprep.mubr.bf16.mxu1 %v17489_v52  ;;  %4116 = vmatpush1.bf16.msra.mxu1 %v12527_v48 }
 0x16c   :  { %10457 = vmatmul.mubr.msk.bf16.gmra.mrb[24].mxu0 %vm2887_vm1, %v12491_v21 }
 0x16d   :  { %3030 = vmatprep.mubr.bf16.mxu0 %v17489_v52 }
 0x172   :  { %10466 = vmatmul.mubr.msk.bf16.gmra.mrb[24].mxu1 %vm2887_vm1, %v12491_v21 }
 0x173   :  { %3143 = vmatprep.mubr.bf16.mxu1 %v17489_v52 }
 0x174   :  { %10458 = vmatmul.mubr.msk.bf16.gmra.mrb[28].mxu0 %vm2887_vm1, %v12492_v49 }
 0x175   :  { %11815 = vmatprep.mubr.msk.bf16.mxu0 %vm2887_vm1, %v14860_v7  ;;  %v12530_v7 = vld [vmem:[%s17513_s28 + $0x428] ss:$12 sps:$4 sm:$0xff]  }
 0x17a   :  { %10467 = vmatmul.mubr.msk.bf16.gmra.mrb[28].mxu1 %vm2887_vm1, %v12492_v49 }
 0x17c   :  { %11816 = vmatmul.mubr.msk.bf16.vlgmr.msra.gmra.mrb[32].mxu0 %vm2887_vm1, %v14889_v47  ;;  %v12534_v47 = vld [vmem:[%s17513_s28 + $0x43c] ss:$12 sps:$4 sm:$0xff]  }
 0x17d   :  { %11819 = vmatprep.mubr.msk.bf16.mxu0 %vm2887_vm1, %v14926_v59  ;;  %11365 = vmatpush3.bf16.msra.mxu0 %v12521_v50  ;;  %v12539_v59 = vld [vmem:[%s17513_s28 + $0x454] ss:$12 sps:$4 sm:$0xff]  }
 0x17e   :  { %11366 = vmatprep.subr.bf16.mxu0 %v12525_v51  ;;  %4117 = vmatprep.subr.bf16.mxu1 %v12534_v47 }
 0x17f   :  { %4118 = vmatpush1.bf16.msra.mxu1 %v12532_v56 }
 0x180   :  { %4119 = vmatprep.subr.bf16.mxu1 %v12539_v59  ;;  %v12557_v59 = vld [vmem:[%s17513_s28 + $0x4b0] ss:$12 sps:$4 sm:$0xff]  }
 0x181   :  { %11367 = vmatpush3.bf16.msra.mxu0 %v12526_v53 }
 0x182   :  { %11368 = vmatprep.subr.bf16.mxu0 %v12530_v7 }
 0x183   :  { %4120 = vmatpush1.bf16.msra.mxu1 %v12537_v58 }
 0x184   :  { %11820 = vmatmul.mubr.msk.bf16.gmra.mrb[36].mxu0 %vm2887_vm1, %v14949_v3  ;;  %4121 = vmatprep.subr.bf16.mxu1 %v12544_v62  ;;  %v12549_v3 = vld [vmem:[%s17513_s28 + $0x484] ss:$12 sps:$4 sm:$0xff]  }
 0x185   :  { %11369 = vmatpush3.bf16.msra.mxu0 %v12531_v54  ;;  %11823 = vmatprep.mubr.msk.bf16.mxu0 %vm2887_vm1, %v12489_v11  ;;  %v12559_v11 = vld [vmem:[%s17513_s28 + $0x4b4] ss:$12 sps:$4 sm:$0xff]  }
 0x186   :  { %11370 = vmatprep.subr.bf16.mxu0 %v12535_v55 }
 0x187   :  { %4122 = vmatpush1.bf16.msra.mxu1 %v12542_v0 }
 0x188   :  { %4123 = vmatprep.subr.bf16.mxu1 %v12549_v3 }
 0x189   :  { %11371 = vmatpush3.bf16.msra.mxu0 %v12536_v57 }
 0x18a   :  { %11372 = vmatprep.subr.bf16.mxu0 %v12540_v60 }
 0x18b   :  { %4124 = vmatpush1.bf16.msra.mxu1 %v12547_v2  ;;  %v12564_v2 = vld [vmem:[%s17513_s28 + $0x4cc] ss:$12 sps:$4 sm:$0xff]  }
 0x18c   :  { %11824 = vmatmul.mubr.msk.bf16.gmra.mrb[40].mxu0 %vm2887_vm1, %v12490_v16  ;;  %4125 = vmatprep.subr.bf16.mxu1 %v12554_v6 }
 0x18d   :  { %11827 = vmatprep.mubr.msk.bf16.mxu0 %vm2887_vm1, %v12491_v21  ;;  %11373 = vmatpush3.bf16.msra.mxu0 %v12541_v61 }
 0x18e   :  { %11374 = vmatprep.subr.bf16.mxu0 %v12545_v63 }
 0x18f   :  { %4126 = vmatpush1.bf16.msra.mxu1 %v12552_v9  ;;  %v12566_v9 = vld [vmem:[%s17513_s28 + $0x4d0] ss:$12 sps:$4 sm:$0xff]  }
 0x190   :  { %4148 = vmatprep.subr.bf16.mxu1 %v12559_v11  ;;  %v12569_v11 = vld [vmem:[%s17513_s28 + $0x4e4] ss:$12 sps:$4 sm:$0xff]  }
 0x191   :  { %11375 = vmatpush3.bf16.msra.mxu0 %v12546_v1  ;;  %v12561_v1 = vld [vmem:[%s17513_s28 + $0x4b8] ss:$12 sps:$4 sm:$0xff]  }
 0x192   :  { %11376 = vmatprep.subr.bf16.mxu0 %v12550_v4 }
 0x194   :  { %11828 = vmatmul.mubr.msk.bf16.gmra.mrb[44].mxu0 %vm2887_vm1, %v12492_v49 }
 0x195   :  { %11377 = vmatpush3.bf16.msra.mxu0 %v12551_v5  ;;  %v12565_v5 = vld [vmem:[%s17513_s28 + $0x590] ss:$12 sps:$4 sm:$0xff]  }
 0x196   :  { %11378 = vmatprep.subr.bf16.mxu0 %v12555_v8  ;;  %v12562_v8 = vld [vmem:[%s17513_s28 + $0x4c8] ss:$12 sps:$4 sm:$0xff]  }
 0x199   :  { %11379 = vmatpush3.bf16.msra.mxu0 %v12556_v10 }
 0x19a   :  { %11392 = vmatprep.subr.bf16.mxu0 %v12560_v12  ;;  %v12570_v12 = vld [vmem:[%s17513_s28 + $0x5a8] ss:$12 sps:$4 sm:$0xff]  }
 0x20f   :  { %v2962_v13 = vpop.f32.mrb[0].mxu0 }
 0x210   :  { %v2964_v14 = vpop.f32.mrb[1].mxu0 }
 0x211   :  { %v2966_v15 = vpop.f32.mrb[2].mxu0 }
 0x212   :  { %v15129_v16 = vpack.c.bf16 %v2966_v15, %v2962_v13  ;;  %v2968_v17 = vpop.f32.mrb[3].mxu0  ;;  %v12567_v15 = vld [vmem:[%s17513_s28 + $0x4e0] ss:$12 sps:$4 sm:$0xff]  }
 0x213   :  { %v15131_v18 = vpack.c.bf16 %v2968_v17, %v2964_v14 }
 0x215   :  { %v3075_v21 = vpop.f32.mrb[0].mxu1 }
 0x216   :  { %v3077_v48 = vpop.f32.mrb[1].mxu1 }
 0x217   :  { %v2972_v19 = vpop.f32.mrb[4].mxu0  ;;  %v3079_v51 = vpop.f32.mrb[2].mxu1 }
 0x218   :  { %v2974_v20 = vpop.f32.mrb[5].mxu0  ;;  %v15137_v7 = vpack.c.bf16 %v3079_v51, %v3075_v21  ;;  %v3081_v54 = vpop.f32.mrb[3].mxu1 }
 0x219   :  { %v2976_v46 = vpop.f32.mrb[6].mxu0  ;;  %v15139_v47 = vpack.c.bf16 %v3081_v54, %v3077_v48  ;;  %v12571_v48 = vld [vmem:[%s17513_s28 + $0x4e8] ss:$12 sps:$4 sm:$0xff]  }
 0x21a   :  { %v15133_v49 = vpack.c.bf16 %v2976_v46, %v2972_v19  ;;  %v2978_v50 = vpop.f32.mrb[7].mxu0 }
 0x21b   :  { %v15135_v53 = vpack.c.bf16 %v2978_v50, %v2974_v20  ;;  %v12574_v50 = vld [vmem:[%s17513_s28 + $0x4fc] ss:$12 sps:$4 sm:$0xff]  }
 0x21d   :  { %v3085_v57 = vpop.f32.mrb[4].mxu1 }
 0x21e   :  { %v3087_v60 = vpop.f32.mrb[5].mxu1 }
 0x21f   :  { %v2982_v55 = vpop.f32.mrb[8].mxu0  ;;  %v3089_v63 = vpop.f32.mrb[6].mxu1 }
 0x220   :  { %v2984_v56 = vpop.f32.mrb[9].mxu0  ;;  %v15150_v3 = vpack.c.bf16 %v3089_v63, %v3085_v57  ;;  %v3091_v4 = vpop.f32.mrb[7].mxu1 }
 0x221   :  { %v2986_v58 = vpop.f32.mrb[10].mxu0  ;;  %v15155_v6 = vpack.c.bf16 %v3091_v4, %v3087_v60 }
 0x222   :  { %v3397_v61 = vpack.c.bf16 %v2986_v58, %v2982_v55  ;;  %v2988_v62 = vpop.f32.mrb[11].mxu0  ;;  %v12572_v58 = vld [vmem:[%s17513_s28 + $0x4f8] ss:$12 sps:$4 sm:$0xff]  }
 0x223   :  { %v3398_v0 = vpack.c.bf16 %v2988_v62, %v2984_v56  ;;  %v12575_v56 = vld [vmem:[%s17513_s28 + $0x5c0] ss:$12 sps:$4 sm:$0xff]   ;;  %v12580_v62 = vld [vmem:[%s17513_s28 + $0x5d8] ss:$12 sps:$4 sm:$0xff]  }
 0x225   :  { %4127 = vmatprep.mubr.bf16.mxu1 %v3398_v0  ;;  %4286 = vmatprep.mubr.bf16.mxu0 %v3398_v0  ;;  %v3095_v14 = vpop.f32.mrb[8].mxu1 }
 0x226   :  { %4128 = vmatmul.mubr.bf16.vlgmr.msra.gmra.mrb[32].mxu1 %v3397_v61  ;;  %4287 = vmatmul.mubr.bf16.vlgmr.msra.gmra.mrb[48].mxu0 %v3397_v61  ;;  %v3097_v19 = vpop.f32.mrb[9].mxu1  ;;  %v12579_v61 = vld [vmem:[%s17513_s28 + $0x514] ss:$12 sps:$4 sm:$0xff]  }
 0x227   :  { %4149 = vmatpush1.bf16.msra.mxu1 %v12557_v59  ;;  %11393 = vmatpush3.bf16.msra.mxu0 %v12561_v1  ;;  %v2992_v10 = vpop.f32.mrb[12].mxu0  ;;  %v3099_v46 = vpop.f32.mrb[10].mxu1  ;;  %v12576_v59 = vld [vmem:[%s17513_s28 + $0x500] ss:$12 sps:$4 sm:$0xff]  }
 0x228   :  { %4150 = vmatprep.subr.bf16.mxu1 %v12564_v2  ;;  %11394 = vmatprep.subr.bf16.mxu0 %v12565_v5  ;;  %v2994_v13 = vpop.f32.mrb[13].mxu0  ;;  %v15178_v54 = vpack.c.bf16 %v3099_v46, %v3095_v14  ;;  %v3101_v55 = vpop.f32.mrb[11].mxu1  ;;  %v12584_v14 = vld [vmem:[%s17513_s28 + $0x52c] ss:$12 sps:$4 sm:$0xff]   ;;  %v12589_v46 = vld [vmem:[%s17513_s28 + $0x544] ss:$12 sps:$4 sm:$0xff]  }
 0x229   :  { %v2996_v17 = vpop.f32.mrb[14].mxu0  ;;  %v3400_v57 = vpack.c.bf16 %v3101_v55, %v3097_v19  ;;  %v12582_v19 = vld [vmem:[%s17513_s28 + $0x528] ss:$12 sps:$4 sm:$0xff]  }
 0x22a   :  { %v3402_v20 = vpack.c.bf16 %v2996_v17, %v2992_v10  ;;  %v2998_v21 = vpop.f32.mrb[15].mxu0  ;;  %v12581_v10 = vld [vmem:[%s17513_s28 + $0x518] ss:$12 sps:$4 sm:$0xff]  }
 0x22b   :  { %4151 = vmatpush1.bf16.msra.mxu1 %v12562_v8  ;;  %11395 = vmatpush3.bf16.msra.mxu0 %v12566_v9  ;;  %v3403_v51 = vpack.c.bf16 %v2998_v21, %v2994_v13  ;;  %v12577_v9 = vld [vmem:[%s17513_s28 + $0x510] ss:$12 sps:$4 sm:$0xff]  }
 0x22c   :  { %4152 = vmatprep.subr.bf16.mxu1 %v12569_v11  ;;  %11396 = vmatprep.subr.bf16.mxu0 %v12570_v12 }
 0x22d   :  { %4294 = vmatprep.mubr.bf16.mxu0 %v3403_v51  ;;  %4137 = vmatprep.mubr.bf16.mxu1 %v3403_v51  ;;  %v3105_v0 = vpop.f32.mrb[12].mxu1 }
 0x22e   :  { %4295 = vmatmul.mubr.bf16.gmra.mrb[52].mxu0 %v3402_v20  ;;  %4138 = vmatmul.mubr.bf16.gmra.mrb[36].mxu1 %v3402_v20  ;;  %v3107_v2 = vpop.f32.mrb[13].mxu1  ;;  %v12586_v20 = vld [vmem:[%s17513_s28 + $0x530] ss:$12 sps:$4 sm:$0xff]  }
 0x22f   :  { %4153 = vmatpush1.bf16.msra.mxu1 %v12567_v15  ;;  %11397 = vmatpush3.bf16.msra.mxu0 %v12571_v48  ;;  %v3002_v60 = vpop.f32.mrb[16].mxu0  ;;  %v3109_v8 = vpop.f32.mrb[14].mxu1  ;;  %v12585_v15 = vld [vmem:[%s17513_s28 + $0x5f0] ss:$12 sps:$4 sm:$0xff]   ;;  %v12590_v48 = vld [vmem:[%s17513_s28 + $0x608] ss:$12 sps:$4 sm:$0xff]  }
 0x230   :  { %4154 = vmatprep.subr.bf16.mxu1 %v12574_v50  ;;  %11398 = vmatprep.subr.bf16.mxu0 %v12575_v56  ;;  %v3004_v63 = vpop.f32.mrb[17].mxu0  ;;  %v15205_v12 = vpack.c.bf16 %v3109_v8, %v3105_v0  ;;  %v3111_v13 = vpop.f32.mrb[15].mxu1 }
 0x231   :  { %4335 = vmatprep.mubr.bf16.mxu0 %v3400_v57  ;;  %v3006_v1 = vpop.f32.mrb[18].mxu0  ;;  %4180 = vmatprep.mubr.bf16.mxu1 %v3400_v57  ;;  %v15213_v17 = vpack.c.bf16 %v3111_v13, %v3107_v2  ;;  %v12587_v57 = vld [vmem:[%s17513_s28 + $0x540] ss:$12 sps:$4 sm:$0xff]   ;;  %v12597_v13 = vld [vmem:[%s17513_s28 + $0x570] ss:$12 sps:$4 sm:$0xff]  }
 0x232   :  { %v15195_v4 = vpack.c.bf16 %v3006_v1, %v3002_v60  ;;  %v3008_v5 = vpop.f32.mrb[19].mxu0  ;;  %v12594_v60 = vld [vmem:[%s17513_s28 + $0x55c] ss:$12 sps:$4 sm:$0xff]   ;;  %v12599_v1 = vld [vmem:[%s17513_s28 + $0x574] ss:$12 sps:$4 sm:$0xff]  }
 0x233   :  { %4155 = vmatpush1.bf16.msra.mxu1 %v12572_v58  ;;  %11399 = vmatpush3.bf16.msra.mxu0 %v12576_v59  ;;  %v15203_v11 = vpack.c.bf16 %v3008_v5, %v3004_v63  ;;  %v12591_v58 = vld [vmem:[%s17513_s28 + $0x548] ss:$12 sps:$4 sm:$0xff]   ;;  %v12596_v63 = vld [vmem:[%s17513_s28 + $0x560] ss:$12 sps:$4 sm:$0xff]   ;;  %v12612_v5 = vld [vmem:[%s17513_s28 + $0x638] ss:$12 sps:$4 sm:$0xff]  }
 0x234   :  { %4156 = vmatprep.subr.bf16.mxu1 %v12579_v61  ;;  %11400 = vmatprep.subr.bf16.mxu0 %v12580_v62  ;;  %v12595_v61 = vld [vmem:[%s17513_s28 + $0x620] ss:$12 sps:$4 sm:$0xff]   ;;  %v12592_v62 = vld [vmem:[%s17513_s28 + $0x558] ss:$12 sps:$4 sm:$0xff]  }
 0x237   :  { %4157 = vmatpush1.bf16.msra.mxu1 %v12577_v9  ;;  %11401 = vmatpush3.bf16.msra.mxu0 %v12581_v10  ;;  %v3012_v21 = vpop.f32.mrb[20].mxu0 }
 0x238   :  { %4158 = vmatprep.subr.bf16.mxu1 %v12584_v14  ;;  %11402 = vmatprep.subr.bf16.mxu0 %v12585_v15  ;;  %v3014_v50 = vpop.f32.mrb[21].mxu0  ;;  %v12602_v15 = vld [vmem:[%s17513_s28 + $0x58c] ss:$12 sps:$4 sm:$0xff]  }
 0x239   :  { %v3016_v51 = vpop.f32.mrb[22].mxu0 }
 0x23a   :  { %v15227_v55 = vpack.c.bf16 %v3016_v51, %v3012_v21  ;;  %v3018_v56 = vpop.f32.mrb[23].mxu0  ;;  %v12620_v51 = vld [vmem:[%s17513_s28 + $0xc8] ss:$12 sps:$4 sm:$0xff]  }
 0x23b   :  { %4159 = vmatpush1.bf16.msra.mxu1 %v12582_v19  ;;  %11403 = vmatpush3.bf16.msra.mxu0 %v12586_v20  ;;  %v15235_v59 = vpack.c.bf16 %v3018_v56, %v3014_v50  ;;  %v12616_v19 = vld [vmem:[%s17513_s28 + $0x650] ss:$12 sps:$4 sm:$0xff]   ;;  %v12600_v20 = vld [vmem:[%s17513_s28 + $0x588] ss:$12 sps:$4 sm:$0xff]  }
 0x23c   :  { %4160 = vmatprep.subr.bf16.mxu1 %v12589_v46  ;;  %11404 = vmatprep.subr.bf16.mxu0 %v12590_v48  ;;  %v12605_v46 = vld [vmem:[%s17513_s28 + $0x5a4] ss:$12 sps:$4 sm:$0xff]  }
 0x23f   :  { %4161 = vmatpush1.bf16.msra.mxu1 %v12587_v57  ;;  %11405 = vmatpush3.bf16.msra.mxu0 %v12591_v58  ;;  %v3022_v0 = vpop.f32.mrb[24].mxu0  ;;  %v12603_v58 = vld [vmem:[%s17513_s28 + $0x5a0] ss:$12 sps:$4 sm:$0xff]  }
 0x240   :  { %4162 = vmatprep.subr.bf16.mxu1 %v12594_v60  ;;  %11406 = vmatprep.subr.bf16.mxu0 %v12595_v61  ;;  %v3024_v2 = vpop.f32.mrb[25].mxu0  ;;  %v12608_v61 = vld [vmem:[%s17513_s28 + $0x5bc] ss:$12 sps:$4 sm:$0xff]  }
 0x241   :  { %v3026_v8 = vpop.f32.mrb[26].mxu0 }
 0x242   :  { %v15255_v9 = vpack.c.bf16 %v3026_v8, %v3022_v0  ;;  %v3028_v10 = vpop.f32.mrb[27].mxu0 }
 0x243   :  { %4163 = vmatpush1.bf16.msra.mxu1 %v12592_v62  ;;  %11407 = vmatpush3.bf16.msra.mxu0 %v12596_v63  ;;  %v15260_v14 = vpack.c.bf16 %v3028_v10, %v3024_v2  ;;  %v12606_v62 = vld [vmem:[%s17513_s28 + $0x5b8] ss:$12 sps:$4 sm:$0xff]   ;;  %v12609_v10 = vld [vmem:[%s17513_s28 + $0x5d0] ss:$12 sps:$4 sm:$0xff]  }
 0x244   :  { %4164 = vmatprep.subr.bf16.mxu1 %v12599_v1  ;;  %11831 = vmatprep.subr.bf16.mxu0 %v12612_v5  ;;  %v12611_v1 = vld [vmem:[%s17513_s28 + $0x5d4] ss:$12 sps:$4 sm:$0xff]  }
 0x246   :  { %4336 = vmatmul.mubr.bf16.vlgmr.msra.gmra.mrb[56].mxu0 %v15178_v54 }
 0x247   :  { %4165 = vmatpush1.bf16.msra.mxu1 %v12597_v13  ;;  %4343 = vmatprep.mubr.bf16.mxu0 %v15213_v17  ;;  %v3032_v21 = vpop.f32.mrb[28].mxu0 }
 0x248   :  { %4166 = vmatprep.subr.bf16.mxu1 %v12602_v15  ;;  %v3034_v48 = vpop.f32.mrb[29].mxu0  ;;  %11832 = vmatpush3.bf16.msra.mxu0 %v12612_v5  ;;  %v12615_v15 = vld [vmem:[%s17513_s28 + $0x5ec] ss:$12 sps:$4 sm:$0xff]  }
 0x249   :  { %v3036_v50 = vpop.f32.mrb[30].mxu0  ;;  %11833 = vmatprep.subr.bf16.mxu0 %v12616_v19 }
 0x24a   :  { %v15279_v56 = vpack.c.bf16 %v3036_v50, %v3032_v21  ;;  %v3038_v57 = vpop.f32.mrb[31].mxu0 }
 0x24b   :  { %4167 = vmatpush1.bf16.msra.mxu1 %v12600_v20  ;;  %v15284_v60 = vpack.c.bf16 %v3038_v57, %v3034_v48  ;;  %v12613_v20 = vld [vmem:[%s17513_s28 + $0x5e8] ss:$12 sps:$4 sm:$0xff]   ;;  %v3115_v48 = vpop.f32.mrb[16].mxu1 }
 0x24c   :  { %4168 = vmatprep.subr.bf16.mxu1 %v12605_v46  ;;  %11834 = vmatpush3.bf16.msra.mxu0 %v12616_v19  ;;  %v12619_v46 = vld [vmem:[%s17513_s28 + $0x604] ss:$12 sps:$4 sm:$0xff]  }
 0x24d   :  { %11424 = vmatprep.subr.bf16.mxu0 %v12620_v51  ;;  %v3117_v51 = vpop.f32.mrb[17].mxu1 }
 0x24e   :  { %4344 = vmatmul.mubr.bf16.gmra.mrb[60].mxu0 %v15205_v12 }
 0x24f   :  { %4169 = vmatpush1.bf16.msra.mxu1 %v12603_v58  ;;  %v11817_v63 = vpop.f32.mrb[32].mxu0 }
 0x250   :  { %4170 = vmatprep.subr.bf16.mxu1 %v12608_v61  ;;  %v3188_v0 = vpop.f32.mrb[33].mxu0  ;;  %v3119_v61 = vpop.f32.mrb[18].mxu1 }
 0x251   :  { %v11818_v2 = vpop.f32.mrb[34].mxu0 }
 0x252   :  { %v15296_v5 = vpack.c.bf16 %v11818_v2, %v11817_v63  ;;  %v3191_v8 = vpop.f32.mrb[35].mxu0  ;;  %v12617_v63 = vld [vmem:[%s17513_s28 + $0x600] ss:$12 sps:$4 sm:$0xff]   ;;  %v3121_v2 = vpop.f32.mrb[19].mxu1 }
 0x253   :  { %4171 = vmatpush1.bf16.msra.mxu1 %v12606_v62  ;;  %v15301_v13 = vpack.c.bf16 %v3191_v8, %v3188_v0  ;;  %v12621_v0 = vld [vmem:[%s17513_s28 + $0x8] ss:$12 sps:$4 sm:$0xff]  }
 0x254   :  { %4172 = vmatprep.subr.bf16.mxu1 %v12611_v1  ;;  %v15322_v1 = vpack.c.bf16 %v3119_v61, %v3115_v48  ;;  %v12624_v8 = vld [vmem:[%s17513_s28 + $0x61c] ss:$12 sps:$4 sm:$0xff]   ;;  %v3125_v48 = vpop.f32.mrb[20].mxu1  ;;  %v12631_v61 = vld [vmem:[%s17513_s28 + $0x38] ss:$12 sps:$4 sm:$0xff]  }
 0x257   :  { %4173 = vmatpush1.bf16.msra.mxu1 %v12609_v10  ;;  %v11821_v19 = vpop.f32.mrb[36].mxu0  ;;  %v15327_v10 = vpack.c.bf16 %v3121_v2, %v3117_v51  ;;  %v12632_v2 = vld [vmem:[%s17513_s28 + $0x110] ss:$12 sps:$4 sm:$0xff]  }
 0x258   :  { %v3204_v21 = vpop.f32.mrb[37].mxu0  ;;  %4174 = vmatprep.subr.bf16.mxu1 %v12615_v15  ;;  %v12625_v15 = vld [vmem:[%s17513_s28 + $0xe0] ss:$12 sps:$4 sm:$0xff]  }
 0x259   :  { %v11822_v50 = vpop.f32.mrb[38].mxu0 }
 0x25a   :  { %v15312_v57 = vpack.c.bf16 %v11822_v50, %v11821_v19  ;;  %v3207_v58 = vpop.f32.mrb[39].mxu0  ;;  %v12622_v19 = vld [vmem:[%s17513_s28 + $0x618] ss:$12 sps:$4 sm:$0xff]   ;;  %v3127_v50 = vpop.f32.mrb[21].mxu1 }
 0x25b   :  { %v15314_v62 = vpack.c.bf16 %v3207_v58, %v3204_v21  ;;  %4175 = vmatpush1.bf16.msra.mxu1 %v12613_v20  ;;  %v12626_v20 = vld [vmem:[%s17513_s28 + $0x20] ss:$12 sps:$4 sm:$0xff]   ;;  %v3129_v51 = vpop.f32.mrb[22].mxu1  ;;  %v12627_v58 = vld [vmem:[%s17513_s28 + $0x630] ss:$12 sps:$4 sm:$0xff]  }
 0x25c   :  { %4176 = vmatprep.subr.bf16.mxu1 %v12619_v46  ;;  %v12629_v21 = vld [vmem:[%s17513_s28 + $0x634] ss:$12 sps:$4 sm:$0xff]   ;;  %v12630_v46 = vld [vmem:[%s17513_s28 + $0xf8] ss:$12 sps:$4 sm:$0xff]  }
 0x25d   :  { %11835 = vmatprep.mubr.msk.bf16.mxu0 %vm4088_vm2, %v15314_v62 }
 0x25e   :  { %11836 = vmatmul.mubr.msk.bf16.vlgmr.msra.gmra.mrb[64].mxu0 %vm4088_vm2, %v15312_v57 }
 0x25f   :  { %4177 = vmatpush1.bf16.msra.mxu1 %v12617_v63  ;;  %11425 = vmatpush3.bf16.msra.mxu0 %v12621_v0  ;;  %v15355_v63 = vpack.c.bf16 %v3129_v51, %v3125_v48  ;;  %v3131_v0 = vpop.f32.mrb[23].mxu1  ;;  %v12638_v51 = vld [vmem:[%s17513_s28 + $0x68] ss:$12 sps:$4 sm:$0xff]  }
 0x260   :  { %5142 = vmatprep.mubr.bf16.mxu0 %v15131_v18  ;;  %4178 = vmatprep.subr.bf16.mxu1 %v12624_v8  ;;  %v15360_v8 = vpack.c.bf16 %v3131_v0, %v3127_v50 }
 0x261   :  { %11426 = vmatprep.subr.bf16.mxu0 %v12625_v15  ;;  %v12636_v15 = vld [vmem:[%s17513_s28 + $0x64c] ss:$12 sps:$4 sm:$0xff]  }
 0x263   :  { %4179 = vmatpush1.bf16.msra.mxu1 %v12622_v19  ;;  %11427 = vmatpush3.bf16.msra.mxu0 %v12626_v20  ;;  %v12633_v19 = vld [vmem:[%s17513_s28 + $0x50] ss:$12 sps:$4 sm:$0xff]   ;;  %v12634_v20 = vld [vmem:[%s17513_s28 + $0x648] ss:$12 sps:$4 sm:$0xff]  }
 0x264   :  { %4201 = vmatprep.subr.bf16.mxu1 %v12629_v21  ;;  %11428 = vmatprep.subr.bf16.mxu0 %v12630_v46  ;;  %v12637_v21 = vld [vmem:[%s17513_s28 + $0x128] ss:$12 sps:$4 sm:$0xff]   ;;  %v3135_v46 = vpop.f32.mrb[24].mxu1 }
 0x265   :  { %v3137_v48 = vpop.f32.mrb[25].mxu1 }
 0x266   :  { %4181 = vmatmul.mubr.bf16.vlgmr.msra.gmra.mrb[32].mxu1 %v15178_v54  ;;  %v12643_v54 = vld [vmem:[%s17513_s28 + $0x4] ss:$12 sps:$4 sm:$0xff]   ;;  %v3139_v50 = vpop.f32.mrb[26].mxu1 }
 0x267   :  { %4202 = vmatpush1.bf16.msra.mxu1 %v12627_v58  ;;  %11429 = vmatpush3.bf16.msra.mxu0 %v12631_v61  ;;  %v3141_v58 = vpop.f32.mrb[27].mxu1  ;;  %v12639_v61 = vld [vmem:[%s17513_s28 + $0x140] ss:$12 sps:$4 sm:$0xff]  }
 0x268   :  { %4190 = vmatprep.mubr.bf16.mxu1 %v15213_v17  ;;  %11430 = vmatprep.subr.bf16.mxu0 %v12632_v2  ;;  %v15382_v17 = vpack.c.bf16 %v3139_v50, %v3135_v46  ;;  %v15387_v0 = vpack.c.bf16 %v3141_v58, %v3137_v48  ;;  %v12640_v2 = vld [vmem:[%s17513_s28 + $0x80] ss:$12 sps:$4 sm:$0xff]   ;;  %v12645_v46 = vld [vmem:[%s17513_s28 + $0x98] ss:$12 sps:$4 sm:$0xff]   ;;  %v12648_v58 = vld [vmem:[%s17513_s28 + $0x1c] ss:$12 sps:$4 sm:$0xff]  }
 0x269   :  { %4203 = vmatprep.subr.bf16.mxu1 %v12636_v15  ;;  %v12644_v15 = vld [vmem:[%s17513_s28 + $0x158] ss:$12 sps:$4 sm:$0xff]  }
 0x26b   :  { %11431 = vmatpush3.bf16.msra.mxu0 %v12633_v19  ;;  %4204 = vmatpush1.bf16.msra.mxu1 %v12634_v20  ;;  %v3145_v19 = vpop.f32.mrb[28].mxu1  ;;  %v11825_v20 = vpop.f32.mrb[40].mxu0 }
 0x26c   :  { %11432 = vmatprep.subr.bf16.mxu0 %v12637_v21  ;;  %4951 = vmatprep.subr.bf16.mxu1 %v12643_v54  ;;  %v3147_v21 = vpop.f32.mrb[29].mxu1 }
 0x26d   :  { %v3149_v54 = vpop.f32.mrb[30].mxu1 }
 0x26e   :  { %4191 = vmatmul.mubr.bf16.gmra.mrb[36].mxu1 %v15205_v12  ;;  %v12641_v12 = vld [vmem:[%s17513_s28] ss:$12 sps:$4 sm:$0xff]   ;;  %v15403_v48 = vpack.c.bf16 %v3149_v54, %v3145_v19  ;;  %v3151_v50 = vpop.f32.mrb[31].mxu1 }
 0x26f   :  { %11433 = vmatpush3.bf16.msra.mxu0 %v12638_v51  ;;  %4233 = vmatprep.mubr.bf16.mxu1 %v17489_v52  ;;  %v3220_v51 = vpop.f32.mrb[41].mxu0 }
 0x270   :  { %11434 = vmatprep.subr.bf16.mxu0 %v12639_v61  ;;  %v12649_v61 = vld [vmem:[%s17513_s28 + $0x170] ss:$12 sps:$4 sm:$0xff]   ;;  %v11826_v52 = vpop.f32.mrb[42].mxu0 }
 0x271   :  { %v15413_v45 = vpack.c.bf16 %v11826_v52, %v11825_v20  ;;  %v3223_v44 = vpop.f32.mrb[43].mxu0  ;;  %v12653_v52 = vld [vmem:[%s17513_s28 + $0x34] ss:$12 sps:$4 sm:$0xff]   ;;  %v17514_v20 = vmov 0  }
 0x272   :  { %v15417_v19 = vpack.c.bf16 %v3223_v44, %v3220_v51  ;;  %v11829_v54 = vpop.f32.mrb[44].mxu0  ;;  %v12654_v44 = vld [vmem:[%s17513_s28 + $0x248] ss:$12 sps:$4 sm:$0xff]   ;;  %v12651_v51 = vld [vmem:[%s17513_s28 + $0x30] ss:$12 sps:$4 sm:$0xff]  }
 0x273   :  { %11435 = vmatpush3.bf16.msra.mxu0 %v12640_v2  ;;  %v15411_v2 = vpack.c.bf16 %v3151_v50, %v3147_v21  ;;  %v12650_v21 = vld [vmem:[%s17513_s28 + $0xb0] ss:$12 sps:$4 sm:$0xff]  }
 0x274   :  { %11436 = vmatprep.subr.bf16.mxu0 %v12644_v15  ;;  %v12646_v15 = vld [vmem:[%s17513_s28 + $0x18] ss:$12 sps:$4 sm:$0xff]  }
 0x276   :  { %10714 = vmatmul.mubr.msk.bf16.vlgmr.msra.gmra.mrb[32].mxu1 %vm4088_vm2, %v15314_v62  ;;  %v3236_v62 = vpop.f32.mrb[45].mxu0 }
 0x277   :  { %4952 = vmatpush1.bf16.msra.mxu1 %v12641_v12  ;;  %11437 = vmatpush3.bf16.msra.mxu0 %v12645_v46  ;;  %v11830_v12 = vpop.f32.mrb[46].mxu0 }
 0x278   :  { %4953 = vmatprep.subr.bf16.mxu1 %v12648_v58  ;;  %11438 = vmatprep.subr.bf16.mxu0 %v12649_v61  ;;  %v15432_v46 = vpack.c.bf16 %v11830_v12, %v11829_v54  ;;  %v3239_v50 = vpop.f32.mrb[47].mxu0  ;;  %v12655_v61 = vld [vmem:[%s17513_s28 + $0x188] ss:$12 sps:$4 sm:$0xff]   ;;  %v12658_v54 = vld [vmem:[%s17513_s28 + $0x4c] ss:$12 sps:$4 sm:$0xff]  }
 0x279   :  { %4243 = vmatprep.mubr.bf16.mxu1 %v17514_v20  ;;  %v15437_v58 = vpack.c.bf16 %v3239_v50, %v3236_v62  ;;  %v12665_v62 = vld [vmem:[%s17513_s28 + $0x1b8] ss:$12 sps:$4 sm:$0xff]   ;;  %v12668_v12 = vld [vmem:[%s17513_s28 + $0x7c] ss:$12 sps:$4 sm:$0xff]  }
 0x27a   :  { %v12669_v50 = vld [vmem:[%s17513_s28 + $0x290] ss:$12 sps:$4 sm:$0xff]  }
 0x27b   :  { %4954 = vmatpush1.bf16.msra.mxu1 %v12646_v15  ;;  %11439 = vmatpush3.bf16.msra.mxu0 %v12650_v21  ;;  %v12659_v15 = vld [vmem:[%s17513_s28 + $0x260] ss:$12 sps:$4 sm:$0xff]   ;;  %v12656_v21 = vld [vmem:[%s17513_s28 + $0x48] ss:$12 sps:$4 sm:$0xff]  }
 0x27c   :  { %4955 = vmatprep.subr.bf16.mxu1 %v12653_v52  ;;  %11452 = vmatprep.subr.bf16.mxu0 %v12654_v44  ;;  %v12660_v52 = vld [vmem:[%s17513_s28 + $0x1a0] ss:$12 sps:$4 sm:$0xff]  }
 0x27d   :  { %v12661_v44 = vld [vmem:[%s17513_s28 + $0x60] ss:$12 sps:$4 sm:$0xff]  }
 0x27e   :  { %10715 = vmatmul.mubr.msk.bf16.gmra.mrb[36].mxu1 %vm4088_vm2, %v15312_v57  ;;  %5143 = vmatmul.mubr.bf16.vlgmr.msra.gmra.mrb[68].mxu0 %v15129_v16  ;;  %v12663_v57 = vld [vmem:[%s17513_s28 + $0x64] ss:$12 sps:$4 sm:$0xff]  }
 0x27f   :  { %4956 = vmatpush1.bf16.msra.mxu1 %v12651_v51  ;;  %4983 = vmatprep.mubr.bf16.mxu1 %v15131_v18  ;;  %v12664_v18 = vld [vmem:[%s17513_s28 + $0x278] ss:$12 sps:$4 sm:$0xff]  }
 0x280   :  { %5150 = vmatprep.mubr.bf16.mxu0 %v15135_v53  ;;  %11453 = vmatpush3.bf16.msra.mxu0 %v12655_v61  ;;  %v12666_v51 = vld [vmem:[%s17513_s28 + $0x78] ss:$12 sps:$4 sm:$0xff]   ;;  %v12670_v61 = vld [vmem:[%s17513_s28 + $0x1d0] ss:$12 sps:$4 sm:$0xff]  }
 0x281   :  { %4957 = vmatprep.subr.bf16.mxu1 %v12658_v54  ;;  %11454 = vmatprep.subr.bf16.mxu0 %v12659_v15  ;;  %v12673_v54 = vld [vmem:[%s17513_s28 + $0x94] ss:$12 sps:$4 sm:$0xff]  }
 0x282   :  { %v12674_v15 = vld [vmem:[%s17513_s28 + $0x2a8] ss:$12 sps:$4 sm:$0xff]  }
 0x283   :  { %4958 = vmatpush1.bf16.msra.mxu1 %v12656_v21  ;;  %v12671_v21 = vld [vmem:[%s17513_s28 + $0x90] ss:$12 sps:$4 sm:$0xff]  }
 0x284   :  { %11455 = vmatpush3.bf16.msra.mxu0 %v12660_v52  ;;  %4959 = vmatprep.subr.bf16.mxu1 %v12663_v57  ;;  %v12675_v52 = vld [vmem:[%s17513_s28 + $0x1e8] ss:$12 sps:$4 sm:$0xff]   ;;  %v12678_v57 = vld [vmem:[%s17513_s28 + $0xac] ss:$12 sps:$4 sm:$0xff]  }
 0x285   :  { %11456 = vmatprep.subr.bf16.mxu0 %v12664_v18  ;;  %v12679_v18 = vld [vmem:[%s17513_s28 + $0x2c0] ss:$12 sps:$4 sm:$0xff]  }
 0x286   :  { %5151 = vmatmul.mubr.bf16.gmra.mrb[72].mxu0 %v15133_v49 }
 0x287   :  { %4960 = vmatpush1.bf16.msra.mxu1 %v12661_v44  ;;  %5191 = vmatprep.mubr.bf16.mxu0 %v15139_v47  ;;  %v12676_v44 = vld [vmem:[%s17513_s28 + $0xa8] ss:$12 sps:$4 sm:$0xff]  }
 0x288   :  { %11457 = vmatpush3.bf16.msra.mxu0 %v12665_v62  ;;  %4961 = vmatprep.subr.bf16.mxu1 %v12668_v12  ;;  %v12680_v62 = vld [vmem:[%s17513_s28 + $0x200] ss:$12 sps:$4 sm:$0xff]   ;;  %v12683_v12 = vld [vmem:[%s17513_s28 + $0xc4] ss:$12 sps:$4 sm:$0xff]  }
 0x289   :  { %11458 = vmatprep.subr.bf16.mxu0 %v12669_v50  ;;  %v12684_v50 = vld [vmem:[%s17513_s28 + $0x2d8] ss:$12 sps:$4 sm:$0xff]  }
 0x28b   :  { %4962 = vmatpush1.bf16.msra.mxu1 %v12666_v51  ;;  %v12681_v51 = vld [vmem:[%s17513_s28 + $0xc0] ss:$12 sps:$4 sm:$0xff]  }
 0x28c   :  { %11459 = vmatpush3.bf16.msra.mxu0 %v12670_v61  ;;  %4963 = vmatprep.subr.bf16.mxu1 %v12673_v54  ;;  %v12685_v61 = vld [vmem:[%s17513_s28 + $0x218] ss:$12 sps:$4 sm:$0xff]   ;;  %v12688_v54 = vld [vmem:[%s17513_s28 + $0xdc] ss:$12 sps:$4 sm:$0xff]  }
 0x28d   :  { %11460 = vmatprep.subr.bf16.mxu0 %v12674_v15  ;;  %v12689_v15 = vld [vmem:[%s17513_s28 + $0x2f0] ss:$12 sps:$4 sm:$0xff]  }
 0x28f   :  { %4964 = vmatpush1.bf16.msra.mxu1 %v12671_v21  ;;  %v12686_v21 = vld [vmem:[%s17513_s28 + $0xd8] ss:$12 sps:$4 sm:$0xff]  }
 0x290   :  { %11461 = vmatpush3.bf16.msra.mxu0 %v12675_v52  ;;  %4965 = vmatprep.subr.bf16.mxu1 %v12678_v57  ;;  %v12690_v52 = vld [vmem:[%s17513_s28 + $0x230] ss:$12 sps:$4 sm:$0xff]   ;;  %v12693_v57 = vld [vmem:[%s17513_s28 + $0xf4] ss:$12 sps:$4 sm:$0xff]  }
 0x291   :  { %11462 = vmatprep.subr.bf16.mxu0 %v12679_v18  ;;  %v12700_v18 = vld [vmem:[%s17513_s28 + $0x308] ss:$12 sps:$4 sm:$0xff]  }
 0x293   :  { %4966 = vmatpush1.bf16.msra.mxu1 %v12676_v44  ;;  %v12691_v44 = vld [vmem:[%s17513_s28 + $0xf0] ss:$12 sps:$4 sm:$0xff]  }
 0x294   :  { %11463 = vmatpush3.bf16.msra.mxu0 %v12680_v62  ;;  %4967 = vmatprep.subr.bf16.mxu1 %v12683_v12  ;;  %v12696_v62 = vld [vmem:[%s17513_s28 + $0x10c] ss:$12 sps:$4 sm:$0xff]  }
 0x295   :  { %11464 = vmatprep.subr.bf16.mxu0 %v12684_v50  ;;  %v12704_v12 = vld [vmem:[%s17513_s28 + $0x320] ss:$12 sps:$4 sm:$0xff]   ;;  %v12694_v50 = vld [vmem:[%s17513_s28 + $0x108] ss:$12 sps:$4 sm:$0xff]  }
 0x297   :  { %4968 = vmatpush1.bf16.msra.mxu1 %v12681_v51  ;;  %v12699_v51 = vld [vmem:[%s17513_s28 + $0x124] ss:$12 sps:$4 sm:$0xff]  }
 0x298   :  { %11465 = vmatpush3.bf16.msra.mxu0 %v12685_v61  ;;  %4969 = vmatprep.subr.bf16.mxu1 %v12688_v54  ;;  %v12708_v61 = vld [vmem:[%s17513_s28 + $0x728] ss:$12 sps:$4 sm:$0xff]   ;;  %v12697_v54 = vld [vmem:[%s17513_s28 + $0x120] ss:$12 sps:$4 sm:$0xff]  }
 0x299   :  { %11466 = vmatprep.subr.bf16.mxu0 %v12689_v15  ;;  %v12703_v15 = vld [vmem:[%s17513_s28 + $0x13c] ss:$12 sps:$4 sm:$0xff]  }
 0x29b   :  { %4970 = vmatpush1.bf16.msra.mxu1 %v12686_v21  ;;  %v12701_v21 = vld [vmem:[%s17513_s28 + $0x138] ss:$12 sps:$4 sm:$0xff]  }
 0x29c   :  { %11467 = vmatpush3.bf16.msra.mxu0 %v12690_v52  ;;  %4971 = vmatprep.subr.bf16.mxu1 %v12693_v57  ;;  %v12707_v52 = vld [vmem:[%s17513_s28 + $0x154] ss:$12 sps:$4 sm:$0xff]   ;;  %v12705_v57 = vld [vmem:[%s17513_s28 + $0x150] ss:$12 sps:$4 sm:$0xff]  }
 0x29d   :  { %11839 = vmatprep.subr.bf16.mxu0 %v12700_v18 }
 0x29f   :  { %4972 = vmatpush1.bf16.msra.mxu1 %v12691_v44  ;;  %5192 = vmatmul.mubr.bf16.vlgmr.msra.gmra.mrb[76].mxu0 %v15137_v7  ;;  %v12712_v44 = vld [vmem:[%s17513_s28 + $0x16c] ss:$12 sps:$4 sm:$0xff]  }
 0x2a0   :  { %5199 = vmatprep.mubr.bf16.mxu0 %v15155_v6  ;;  %4973 = vmatprep.subr.bf16.mxu1 %v12696_v62  ;;  %v12713_v62 = vld [vmem:[%s17513_s28 + $0x740] ss:$12 sps:$4 sm:$0xff]  }
 0x2a1   :  { %11840 = vmatpush3.bf16.msra.mxu0 %v12700_v18  ;;  %v12709_v18 = vld [vmem:[%s17513_s28 + $0x668] ss:$12 sps:$4 sm:$0xff]  }
 0x2a2   :  { %11841 = vmatprep.subr.bf16.mxu0 %v12704_v12 }
 0x2a3   :  { %4974 = vmatpush1.bf16.msra.mxu1 %v12694_v50  ;;  %v12714_v50 = vld [vmem:[%s17513_s28 + $0x680] ss:$12 sps:$4 sm:$0xff]  }
 0x2a4   :  { %4975 = vmatprep.subr.bf16.mxu1 %v12699_v51  ;;  %v12717_v51 = vld [vmem:[%s17513_s28 + $0x184] ss:$12 sps:$4 sm:$0xff]  }
 0x2a5   :  { %11842 = vmatpush3.bf16.msra.mxu0 %v12704_v12  ;;  %v12710_v12 = vld [vmem:[%s17513_s28 + $0x168] ss:$12 sps:$4 sm:$0xff]  }
 0x2a6   :  { %11484 = vmatprep.subr.bf16.mxu0 %v12708_v61  ;;  %v12718_v61 = vld [vmem:[%s17513_s28 + $0x758] ss:$12 sps:$4 sm:$0xff]  }
 0x2a7   :  { %4976 = vmatpush1.bf16.msra.mxu1 %v12697_v54  ;;  %5200 = vmatmul.mubr.bf16.gmra.mrb[80].mxu0 %v15150_v3  ;;  %v12715_v54 = vld [vmem:[%s17513_s28 + $0x180] ss:$12 sps:$4 sm:$0xff]  }
 0x2a8   :  { %11843 = vmatprep.mubr.msk.bf16.mxu0 %vm4088_vm2, %v15301_v13  ;;  %4977 = vmatprep.subr.bf16.mxu1 %v12703_v15  ;;  %v12719_v15 = vld [vmem:[%s17513_s28 + $0x698] ss:$12 sps:$4 sm:$0xff]  }
 0x2ab   :  { %4978 = vmatpush1.bf16.msra.mxu1 %v12701_v21  ;;  %v12722_v21 = vld [vmem:[%s17513_s28 + $0x19c] ss:$12 sps:$4 sm:$0xff]  }
 0x2ac   :  { %4979 = vmatprep.subr.bf16.mxu1 %v12707_v52  ;;  %v12723_v52 = vld [vmem:[%s17513_s28 + $0x770] ss:$12 sps:$4 sm:$0xff]  }
 0x2af   :  { %4980 = vmatpush1.bf16.msra.mxu1 %v12705_v57  ;;  %11844 = vmatmul.mubr.msk.bf16.vlgmr.msra.gmra.mrb[64].mxu0 %vm4088_vm2, %v15296_v5  ;;  %v12720_v57 = vld [vmem:[%s17513_s28 + $0x198] ss:$12 sps:$4 sm:$0xff]  }
 0x2b0   :  { %11485 = vmatpush3.bf16.msra.mxu0 %v12709_v18  ;;  %6145 = vmatprep.mubr.bf16.mxu0 %v15203_v11  ;;  %v12724_v18 = vld [vmem:[%s17513_s28 + $0x6b0] ss:$12 sps:$4 sm:$0xff]  }
 0x2b1   :  { %4981 = vmatprep.subr.bf16.mxu1 %v12712_v44  ;;  %11486 = vmatprep.subr.bf16.mxu0 %v12713_v62  ;;  %v12727_v44 = vld [vmem:[%s17513_s28 + $0x1b4] ss:$12 sps:$4 sm:$0xff]  }
 0x2b2   :  { %v12729_v62 = vld [vmem:[%s17513_s28 + $0x6c8] ss:$12 sps:$4 sm:$0xff]  }
 0x2b3   :  { %4982 = vmatpush1.bf16.msra.mxu1 %v12710_v12  ;;  %v12732_v12 = vld [vmem:[%s17513_s28 + $0x1cc] ss:$12 sps:$4 sm:$0xff]  }
 0x2b4   :  { %11487 = vmatpush3.bf16.msra.mxu0 %v12714_v50  ;;  %5004 = vmatprep.subr.bf16.mxu1 %v12717_v51  ;;  %v12733_v50 = vld [vmem:[%s17513_s28 + $0x7a0] ss:$12 sps:$4 sm:$0xff]   ;;  %v12730_v51 = vld [vmem:[%s17513_s28 + $0x1c8] ss:$12 sps:$4 sm:$0xff]  }
 0x2b5   :  { %11488 = vmatprep.subr.bf16.mxu0 %v12718_v61  ;;  %v12734_v61 = vld [vmem:[%s17513_s28 + $0x6e0] ss:$12 sps:$4 sm:$0xff]  }
 0x2b6   :  { %4984 = vmatmul.mubr.bf16.vlgmr.msra.gmra.mrb[32].mxu1 %v15129_v16  ;;  %v12728_v16 = vld [vmem:[%s17513_s28 + $0x788] ss:$12 sps:$4 sm:$0xff]  }
 0x2b7   :  { %4993 = vmatprep.mubr.bf16.mxu1 %v15135_v53  ;;  %5005 = vmatpush1.bf16.msra.mxu1 %v12715_v54  ;;  %v12725_v53 = vld [vmem:[%s17513_s28 + $0x1b0] ss:$12 sps:$4 sm:$0xff]  }
 0x2b8   :  { %11489 = vmatpush3.bf16.msra.mxu0 %v12719_v15  ;;  %5006 = vmatprep.subr.bf16.mxu1 %v12722_v21  ;;  %v12737_v54 = vld [vmem:[%s17513_s28 + $0x1e4] ss:$12 sps:$4 sm:$0xff]   ;;  %v12742_v21 = vld [vmem:[%s17513_s28 + $0x1fc] ss:$12 sps:$4 sm:$0xff]  }
 0x2b9   :  { %11490 = vmatprep.subr.bf16.mxu0 %v12723_v52  ;;  %v12739_v15 = vld [vmem:[%s17513_s28 + $0x6f8] ss:$12 sps:$4 sm:$0xff]   ;;  %v12743_v52 = vld [vmem:[%s17513_s28 + $0x7d0] ss:$12 sps:$4 sm:$0xff]  }
 0x2bb   :  { %5007 = vmatpush1.bf16.msra.mxu1 %v12720_v57  ;;  %v12740_v57 = vld [vmem:[%s17513_s28 + $0x1f8] ss:$12 sps:$4 sm:$0xff]  }
 0x2bc   :  { %11491 = vmatpush3.bf16.msra.mxu0 %v12724_v18  ;;  %5008 = vmatprep.subr.bf16.mxu1 %v12727_v44  ;;  %v12744_v18 = vld [vmem:[%s17513_s28 + $0x710] ss:$12 sps:$4 sm:$0xff]   ;;  %v12747_v44 = vld [vmem:[%s17513_s28 + $0x214] ss:$12 sps:$4 sm:$0xff]  }
 0x2bd   :  { %11492 = vmatprep.subr.bf16.mxu0 %v12728_v16  ;;  %v12748_v16 = vld [vmem:[%s17513_s28 + $0x8a8] ss:$12 sps:$4 sm:$0xff]  }
 0x2be   :  { %4994 = vmatmul.mubr.bf16.gmra.mrb[36].mxu1 %v15133_v49  ;;  %v12738_v49 = vld [vmem:[%s17513_s28 + $0x7b8] ss:$12 sps:$4 sm:$0xff]  }
 0x2bf   :  { %5009 = vmatpush1.bf16.msra.mxu1 %v12725_v53  ;;  %5036 = vmatprep.mubr.bf16.mxu1 %v15139_v47  ;;  %v12735_v47 = vld [vmem:[%s17513_s28 + $0x1e0] ss:$12 sps:$4 sm:$0xff]   ;;  %v12745_v53 = vld [vmem:[%s17513_s28 + $0x210] ss:$12 sps:$4 sm:$0xff]  }
 0x2c0   :  { %11493 = vmatpush3.bf16.msra.mxu0 %v12729_v62  ;;  %5010 = vmatprep.subr.bf16.mxu1 %v12732_v12  ;;  %v12749_v62 = vld [vmem:[%s17513_s28 + $0x7e8] ss:$12 sps:$4 sm:$0xff]   ;;  %v12752_v12 = vld [vmem:[%s17513_s28 + $0x22c] ss:$12 sps:$4 sm:$0xff]  }
 0x2c1   :  { %11494 = vmatprep.subr.bf16.mxu0 %v12733_v50  ;;  %v12753_v50 = vld [vmem:[%s17513_s28 + $0x8c0] ss:$12 sps:$4 sm:$0xff]  }
 0x2c3   :  { %5011 = vmatpush1.bf16.msra.mxu1 %v12730_v51  ;;  %v12750_v51 = vld [vmem:[%s17513_s28 + $0x228] ss:$12 sps:$4 sm:$0xff]  }
 0x2c4   :  { %11495 = vmatpush3.bf16.msra.mxu0 %v12734_v61  ;;  %5012 = vmatprep.subr.bf16.mxu1 %v12737_v54  ;;  %v12754_v61 = vld [vmem:[%s17513_s28 + $0x800] ss:$12 sps:$4 sm:$0xff]   ;;  %v12757_v54 = vld [vmem:[%s17513_s28 + $0x244] ss:$12 sps:$4 sm:$0xff]  }
 0x2c5   :  { %11496 = vmatprep.subr.bf16.mxu0 %v12738_v49  ;;  %v12758_v49 = vld [vmem:[%s17513_s28 + $0x8d8] ss:$12 sps:$4 sm:$0xff]  }
 0x2c7   :  { %5013 = vmatpush1.bf16.msra.mxu1 %v12735_v47  ;;  %v12755_v47 = vld [vmem:[%s17513_s28 + $0x240] ss:$12 sps:$4 sm:$0xff]  }
 0x2c8   :  { %11497 = vmatpush3.bf16.msra.mxu0 %v12739_v15  ;;  %5014 = vmatprep.subr.bf16.mxu1 %v12742_v21  ;;  %v12759_v15 = vld [vmem:[%s17513_s28 + $0x818] ss:$12 sps:$4 sm:$0xff]   ;;  %v12762_v21 = vld [vmem:[%s17513_s28 + $0x25c] ss:$12 sps:$4 sm:$0xff]  }
 0x2c9   :  { %11498 = vmatprep.subr.bf16.mxu0 %v12743_v52  ;;  %v12763_v52 = vld [vmem:[%s17513_s28 + $0x8f0] ss:$12 sps:$4 sm:$0xff]  }
 0x2cb   :  { %5015 = vmatpush1.bf16.msra.mxu1 %v12740_v57  ;;  %v12760_v57 = vld [vmem:[%s17513_s28 + $0x258] ss:$12 sps:$4 sm:$0xff]  }
 0x2cc   :  { %11499 = vmatpush3.bf16.msra.mxu0 %v12744_v18  ;;  %5016 = vmatprep.subr.bf16.mxu1 %v12747_v44  ;;  %v12764_v18 = vld [vmem:[%s17513_s28 + $0x830] ss:$12 sps:$4 sm:$0xff]   ;;  %v12767_v44 = vld [vmem:[%s17513_s28 + $0x274] ss:$12 sps:$4 sm:$0xff]  }
 0x2cd   :  { %11512 = vmatprep.subr.bf16.mxu0 %v12748_v16  ;;  %v12768_v16 = vld [vmem:[%s17513_s28 + $0x908] ss:$12 sps:$4 sm:$0xff]  }
 0x2cf   :  { %6146 = vmatmul.mubr.bf16.vlgmr.msra.gmra.mrb[84].mxu0 %v15195_v4  ;;  %5017 = vmatpush1.bf16.msra.mxu1 %v12745_v53  ;;  %v12765_v53 = vld [vmem:[%s17513_s28 + $0x270] ss:$12 sps:$4 sm:$0xff]  }
 0x2d0   :  { %6153 = vmatprep.mubr.bf16.mxu0 %v15235_v59  ;;  %11513 = vmatpush3.bf16.msra.mxu0 %v12749_v62  ;;  %v12769_v62 = vld [vmem:[%s17513_s28 + $0x848] ss:$12 sps:$4 sm:$0xff]  }
 0x2d1   :  { %5018 = vmatprep.subr.bf16.mxu1 %v12752_v12  ;;  %11514 = vmatprep.subr.bf16.mxu0 %v12753_v50  ;;  %v12772_v12 = vld [vmem:[%s17513_s28 + $0x28c] ss:$12 sps:$4 sm:$0xff]  }
 0x2d2   :  { %v12773_v50 = vld [vmem:[%s17513_s28 + $0x920] ss:$12 sps:$4 sm:$0xff]  }
 0x2d3   :  { %5019 = vmatpush1.bf16.msra.mxu1 %v12750_v51  ;;  %v12770_v51 = vld [vmem:[%s17513_s28 + $0x288] ss:$12 sps:$4 sm:$0xff]  }
 0x2d4   :  { %11515 = vmatpush3.bf16.msra.mxu0 %v12754_v61  ;;  %5020 = vmatprep.subr.bf16.mxu1 %v12757_v54  ;;  %v12774_v61 = vld [vmem:[%s17513_s28 + $0x860] ss:$12 sps:$4 sm:$0xff]   ;;  %v12777_v54 = vld [vmem:[%s17513_s28 + $0x2a4] ss:$12 sps:$4 sm:$0xff]  }
 0x2d5   :  { %11516 = vmatprep.subr.bf16.mxu0 %v12758_v49  ;;  %v12778_v49 = vld [vmem:[%s17513_s28 + $0x938] ss:$12 sps:$4 sm:$0xff]  }
 0x2d7   :  { %6154 = vmatmul.mubr.bf16.gmra.mrb[88].mxu0 %v15227_v55  ;;  %5021 = vmatpush1.bf16.msra.mxu1 %v12755_v47  ;;  %v12775_v47 = vld [vmem:[%s17513_s28 + $0x2a0] ss:$12 sps:$4 sm:$0xff]  }
 0x2d8   :  { %11517 = vmatpush3.bf16.msra.mxu0 %v12759_v15  ;;  %5022 = vmatprep.subr.bf16.mxu1 %v12762_v21  ;;  %v12779_v15 = vld [vmem:[%s17513_s28 + $0x878] ss:$12 sps:$4 sm:$0xff]   ;;  %v12782_v21 = vld [vmem:[%s17513_s28 + $0x2bc] ss:$12 sps:$4 sm:$0xff]  }
 0x2d9   :  { %11518 = vmatprep.subr.bf16.mxu0 %v12763_v52  ;;  %6194 = vmatprep.mubr.bf16.mxu0 %v15327_v10  ;;  %v12783_v52 = vld [vmem:[%s17513_s28 + $0x950] ss:$12 sps:$4 sm:$0xff]  }
 0x2db   :  { %5023 = vmatpush1.bf16.msra.mxu1 %v12760_v57  ;;  %v12780_v57 = vld [vmem:[%s17513_s28 + $0x2b8] ss:$12 sps:$4 sm:$0xff]  }
 0x2dc   :  { %11519 = vmatpush3.bf16.msra.mxu0 %v12764_v18  ;;  %5024 = vmatprep.subr.bf16.mxu1 %v12767_v44  ;;  %v12784_v18 = vld [vmem:[%s17513_s28 + $0x890] ss:$12 sps:$4 sm:$0xff]   ;;  %v12787_v44 = vld [vmem:[%s17513_s28 + $0x2d4] ss:$12 sps:$4 sm:$0xff]  }
 0x2dd   :  { %11520 = vmatprep.subr.bf16.mxu0 %v12768_v16  ;;  %v12791_v16 = vld [vmem:[%s17513_s28 + $0x968] ss:$12 sps:$4 sm:$0xff]  }
 0x2df   :  { %5025 = vmatpush1.bf16.msra.mxu1 %v12765_v53  ;;  %v12785_v53 = vld [vmem:[%s17513_s28 + $0x2d0] ss:$12 sps:$4 sm:$0xff]  }
 0x2e0   :  { %11521 = vmatpush3.bf16.msra.mxu0 %v12769_v62  ;;  %5026 = vmatprep.subr.bf16.mxu1 %v12772_v12  ;;  %v12790_v62 = vld [vmem:[%s17513_s28 + $0x2ec] ss:$12 sps:$4 sm:$0xff]  }
 0x2e1   :  { %11522 = vmatprep.subr.bf16.mxu0 %v12773_v50  ;;  %v12795_v12 = vld [vmem:[%s17513_s28 + $0x980] ss:$12 sps:$4 sm:$0xff]   ;;  %v12788_v50 = vld [vmem:[%s17513_s28 + $0x2e8] ss:$12 sps:$4 sm:$0xff]  }
 0x2e3   :  { %5027 = vmatpush1.bf16.msra.mxu1 %v12770_v51  ;;  %v12794_v51 = vld [vmem:[%s17513_s28 + $0x304] ss:$12 sps:$4 sm:$0xff]  }
 0x2e4   :  { %11523 = vmatpush3.bf16.msra.mxu0 %v12774_v61  ;;  %5028 = vmatprep.subr.bf16.mxu1 %v12777_v54  ;;  %v12796_v61 = vld [vmem:[%s17513_s28 + $0xa58] ss:$12 sps:$4 sm:$0xff]   ;;  %v12792_v54 = vld [vmem:[%s17513_s28 + $0x300] ss:$12 sps:$4 sm:$0xff]  }
 0x2e5   :  { %11524 = vmatprep.subr.bf16.mxu0 %v12778_v49  ;;  %v12799_v49 = vld [vmem:[%s17513_s28 + $0x31c] ss:$12 sps:$4 sm:$0xff]  }
 0x2e7   :  { %5029 = vmatpush1.bf16.msra.mxu1 %v12775_v47  ;;  %v12797_v47 = vld [vmem:[%s17513_s28 + $0x318] ss:$12 sps:$4 sm:$0xff]  }
 0x2e8   :  { %11525 = vmatpush3.bf16.msra.mxu0 %v12779_v15  ;;  %5030 = vmatprep.subr.bf16.mxu1 %v12782_v21  ;;  %v12805_v21 = vld [vmem:[%s17513_s28 + $0x664] ss:$12 sps:$4 sm:$0xff]  }
 0x2e9   :  { %11526 = vmatprep.subr.bf16.mxu0 %v12783_v52 }
 0x2eb   :  { %5031 = vmatpush1.bf16.msra.mxu1 %v12780_v57 }
 0x2ec   :  { %11527 = vmatpush3.bf16.msra.mxu0 %v12784_v18  ;;  %5032 = vmatprep.subr.bf16.mxu1 %v12787_v44 }
 0x2ed   :  { %11847 = vmatprep.subr.bf16.mxu0 %v12791_v16 }
 0x2ef   :  { %6195 = vmatmul.mubr.bf16.vlgmr.msra.gmra.mrb[92].mxu0 %v15322_v1  ;;  %5033 = vmatpush1.bf16.msra.mxu1 %v12785_v53  ;;  %v12802_v53 = vld [vmem:[%s17513_s28 + $0x9b0] ss:$12 sps:$4 sm:$0xff]  }
 0x2f0   :  { %6202 = vmatprep.mubr.bf16.mxu0 %v15360_v8  ;;  %5034 = vmatprep.subr.bf16.mxu1 %v12790_v62  ;;  %v12806_v62 = vld [vmem:[%s17513_s28 + $0xa88] ss:$12 sps:$4 sm:$0xff]  }
 0x2f1   :  { %11848 = vmatpush3.bf16.msra.mxu0 %v12791_v16  ;;  %v12801_v16 = vld [vmem:[%s17513_s28 + $0xa70] ss:$12 sps:$4 sm:$0xff]  }
 0x2f2   :  { %11849 = vmatprep.subr.bf16.mxu0 %v12795_v12 }
 0x2f3   :  { %5035 = vmatpush1.bf16.msra.mxu1 %v12788_v50 }
 0x2f4   :  { %5057 = vmatprep.subr.bf16.mxu1 %v12794_v51 }
 0x2f5   :  { %11850 = vmatpush3.bf16.msra.mxu0 %v12795_v12 }
 0x2f6   :  { %5037 = vmatmul.mubr.bf16.vlgmr.msra.gmra.mrb[32].mxu1 %v15137_v7  ;;  %11544 = vmatprep.subr.bf16.mxu0 %v12796_v61 }
 0x2f7   :  { %6203 = vmatmul.mubr.bf16.gmra.mrb[96].mxu0 %v15355_v63  ;;  %5046 = vmatprep.mubr.bf16.mxu1 %v15155_v6  ;;  %v12800_v6 = vld [vmem:[%s17513_s28 + $0x998] ss:$12 sps:$4 sm:$0xff]  }
 0x2f8   :  { %5058 = vmatpush1.bf16.msra.mxu1 %v12792_v54  ;;  %11851 = vmatprep.mubr.msk.bf16.mxu0 %vm4088_vm2, %v15417_v19  ;;  %v12807_v54 = vld [vmem:[%s17513_s28 + $0x9c8] ss:$12 sps:$4 sm:$0xff]  }
 0x2f9   :  { %v11380_v15 = vpop.f32.mrb[48].mxu0  ;;  %5059 = vmatprep.subr.bf16.mxu1 %v12799_v49  ;;  %v12810_v49 = vld [vmem:[%s17513_s28 + $0x67c] ss:$12 sps:$4 sm:$0xff]  }
 0x2fa   :  { %v11381_v7 = vpop.f32.mrb[49].mxu0 }
 0x2fb   :  { %v15814_v52 = vadd.f32 %v11381_v7, %v11380_v15  ;;  %v11383_v57 = vpop.f32.mrb[50].mxu0  ;;  %v12811_v15 = vld [vmem:[%s17513_s28 + $0xaa0] ss:$12 sps:$4 sm:$0xff]   ;;  %v12808_v7 = vld [vmem:[%s17513_s28 + $0x678] ss:$12 sps:$4 sm:$0xff]  }
 0x2fc   :  { %v11384_v18 = vpop.f32.mrb[51].mxu0  ;;  %5060 = vmatpush1.bf16.msra.mxu1 %v12797_v47 }
 0x2fd   :  { %v15819_v44 = vadd.f32 %v11384_v18, %v11383_v57  ;;  %5954 = vmatprep.subr.bf16.mxu1 %v12805_v21  ;;  %v12812_v57 = vld [vmem:[%s17513_s28 + $0x9e0] ss:$12 sps:$4 sm:$0xff]  }
 0x2fe   :  { %5047 = vmatmul.mubr.bf16.gmra.mrb[36].mxu1 %v15150_v3  ;;  %v12803_v3 = vld [vmem:[%s17513_s28 + $0x660] ss:$12 sps:$4 sm:$0xff]  }
 0x2ff   :  { %11852 = vmatmul.mubr.msk.bf16.vlgmr.msra.gmra.mrb[64].mxu0 %vm4088_vm2, %v15413_v45  ;;  %5089 = vmatprep.mubr.bf16.mxu1 %v17514_v20  ;;  %v12815_v18 = vld [vmem:[%s17513_s28 + $0x694] ss:$12 sps:$4 sm:$0xff]  }
 0x300   :  { %11545 = vmatpush3.bf16.msra.mxu0 %v12800_v6  ;;  %7160 = vmatprep.mubr.bf16.mxu0 %v15260_v14  ;;  %v12813_v6 = vld [vmem:[%s17513_s28 + $0x690] ss:$12 sps:$4 sm:$0xff]  }
 0x301   :  { %11546 = vmatprep.subr.bf16.mxu0 %v12801_v16  ;;  %v11386_v12 = vpop.f32.mrb[52].mxu0  ;;  %v12817_v16 = vld [vmem:[%s17513_s28 + $0x9f8] ss:$12 sps:$4 sm:$0xff]  }
 0x302   :  { %v11387_v50 = vpop.f32.mrb[53].mxu0 }
 0x303   :  { %v15838_v51 = vadd.f32 %v11387_v50, %v11386_v12  ;;  %v11389_v61 = vpop.f32.mrb[54].mxu0  ;;  %v12818_v12 = vld [vmem:[%s17513_s28 + $0x6a8] ss:$12 sps:$4 sm:$0xff]   ;;  %v12822_v50 = vld [vmem:[%s17513_s28 + $0xa10] ss:$12 sps:$4 sm:$0xff]  }
 0x304   :  { %11547 = vmatpush3.bf16.msra.mxu0 %v12802_v53  ;;  %v11390_v47 = vpop.f32.mrb[55].mxu0  ;;  %v12820_v53 = vld [vmem:[%s17513_s28 + $0x6ac] ss:$12 sps:$4 sm:$0xff]  }
 0x305   :  { %11548 = vmatprep.subr.bf16.mxu0 %v12806_v62  ;;  %v15849_v21 = vadd.f32 %v11390_v47, %v11389_v61  ;;  %v12821_v62 = vld [vmem:[%s17513_s28 + $0xad0] ss:$12 sps:$4 sm:$0xff]   ;;  %v12827_v61 = vld [vmem:[%s17513_s28 + $0xa28] ss:$12 sps:$4 sm:$0xff]   ;;  %v12828_v47 = vld [vmem:[%s17513_s28 + $0x6d8] ss:$12 sps:$4 sm:$0xff]  }
 0x306   :  { %10820 = vmatmul.mubr.msk.bf16.vlgmr.msra.gmra.mrb[32].mxu1 %vm4088_vm2, %v15301_v13  ;;  %v12816_v13 = vld [vmem:[%s17513_s28 + $0xab8] ss:$12 sps:$4 sm:$0xff]  }
 0x307   :  { %5955 = vmatpush1.bf16.msra.mxu1 %v12803_v3  ;;  %5099 = vmatprep.mubr.bf16.mxu1 %v17514_v20  ;;  %v12825_v3 = vld [vmem:[%s17513_s28 + $0x6c4] ss:$12 sps:$4 sm:$0xff]  }
 0x308   :  { %11549 = vmatpush3.bf16.msra.mxu0 %v12807_v54  ;;  %5956 = vmatprep.subr.bf16.mxu1 %v12810_v49  ;;  %v12830_v54 = vld [vmem:[%s17513_s28 + $0x6dc] ss:$12 sps:$4 sm:$0xff]   ;;  %v12831_v49 = vld [vmem:[%s17513_s28 + $0xb00] ss:$12 sps:$4 sm:$0xff]  }
 0x309   :  { %11550 = vmatprep.subr.bf16.mxu0 %v12811_v15  ;;  %v12832_v15 = vld [vmem:[%s17513_s28 + $0xa40] ss:$12 sps:$4 sm:$0xff]  }
 0x30b   :  { %5957 = vmatpush1.bf16.msra.mxu1 %v12808_v7  ;;  %v12835_v7 = vld [vmem:[%s17513_s28 + $0x6f4] ss:$12 sps:$4 sm:$0xff]  }
 0x30c   :  { %11551 = vmatpush3.bf16.msra.mxu0 %v12812_v57  ;;  %5958 = vmatprep.subr.bf16.mxu1 %v12815_v18  ;;  %v12836_v18 = vld [vmem:[%s17513_s28 + $0xbd8] ss:$12 sps:$4 sm:$0xff]  }
 0x30d   :  { %11552 = vmatprep.subr.bf16.mxu0 %v12816_v13 }
 0x30e   :  { %10821 = vmatmul.mubr.msk.bf16.gmra.mrb[36].mxu1 %vm4088_vm2, %v15296_v5  ;;  %v12826_v5 = vld [vmem:[%s17513_s28 + $0xae8] ss:$12 sps:$4 sm:$0xff]  }
 0x30f   :  { %5959 = vmatpush1.bf16.msra.mxu1 %v12813_v6  ;;  %5986 = vmatprep.mubr.bf16.mxu1 %v15203_v11  ;;  %v12823_v11 = vld [vmem:[%s17513_s28 + $0x6c0] ss:$12 sps:$4 sm:$0xff]  }
 0x310   :  { %11553 = vmatpush3.bf16.msra.mxu0 %v12817_v16  ;;  %5960 = vmatprep.subr.bf16.mxu1 %v12820_v53  ;;  %v12833_v53 = vld [vmem:[%s17513_s28 + $0x6f0] ss:$12 sps:$4 sm:$0xff]  }
 0x311   :  { %11554 = vmatprep.subr.bf16.mxu0 %v12821_v62 }
 0x313   :  { %5961 = vmatpush1.bf16.msra.mxu1 %v12818_v12  ;;  %v12837_v12 = vld [vmem:[%s17513_s28 + $0xb18] ss:$12 sps:$4 sm:$0xff]  }
 0x314   :  { %11555 = vmatpush3.bf16.msra.mxu0 %v12822_v50  ;;  %5962 = vmatprep.subr.bf16.mxu1 %v12825_v3 }
 0x315   :  { %11556 = vmatprep.subr.bf16.mxu0 %v12826_v5  ;;  %v12840_v5 = vld [vmem:[%s17513_s28 + $0x70c] ss:$12 sps:$4 sm:$0xff]  }
 0x317   :  { %5963 = vmatpush1.bf16.msra.mxu1 %v12823_v11  ;;  %v12841_v11 = vld [vmem:[%s17513_s28 + $0xbf0] ss:$12 sps:$4 sm:$0xff]  }
 0x318   :  { %11557 = vmatpush3.bf16.msra.mxu0 %v12827_v61  ;;  %5964 = vmatprep.subr.bf16.mxu1 %v12830_v54  ;;  %v12842_v54 = vld [vmem:[%s17513_s28 + $0xb30] ss:$12 sps:$4 sm:$0xff]  }
 0x319   :  { %11558 = vmatprep.subr.bf16.mxu0 %v12831_v49  ;;  %v11408_v57 = vpop.f32.mrb[56].mxu0  ;;  %v12845_v49 = vld [vmem:[%s17513_s28 + $0x724] ss:$12 sps:$4 sm:$0xff]  }
 0x31a   :  { %v11409_v13 = vpop.f32.mrb[57].mxu0 }
 0x31b   :  { %5965 = vmatpush1.bf16.msra.mxu1 %v12828_v47  ;;  %v11410_v6 = vadd.f32 %v11409_v13, %v11408_v57  ;;  %v11411_v16 = vpop.f32.mrb[58].mxu0  ;;  %v12846_v47 = vld [vmem:[%s17513_s28 + $0xc08] ss:$12 sps:$4 sm:$0xff]  }
 0x31c   :  { %11559 = vmatpush3.bf16.msra.mxu0 %v12832_v15  ;;  %v11412_v62 = vpop.f32.mrb[59].mxu0  ;;  %5966 = vmatprep.subr.bf16.mxu1 %v12835_v7 }
 0x31d   :  { %v15924_v50 = vadd.f32 %v11410_v6, %v15814_v52  ;;  %v11413_v3 = vadd.f32 %v11412_v62, %v11411_v16  ;;  %11572 = vmatprep.subr.bf16.mxu0 %v12836_v18  ;;  %v12838_v52 = vld [vmem:[%s17513_s28 + $0x708] ss:$12 sps:$4 sm:$0xff]   ;;  %v12843_v18 = vld [vmem:[%s17513_s28 + $0x720] ss:$12 sps:$4 sm:$0xff]  }
 0x31e   :  { %v12847_v6 = vld [vmem:[%s17513_s28 + $0xb48] ss:$12 sps:$4 sm:$0xff]  }
 0x31f   :  { %v15933_v61 = vadd.f32 %v11413_v3, %v15819_v44  ;;  %7161 = vmatmul.mubr.bf16.vlgmr.msra.gmra.mrb[100].mxu0 %v15255_v9  ;;  %5967 = vmatpush1.bf16.msra.mxu1 %v12833_v53  ;;  %v12850_v62 = vld [vmem:[%s17513_s28 + $0x73c] ss:$12 sps:$4 sm:$0xff]  }
 0x320   :  { %7168 = vmatprep.mubr.bf16.mxu0 %v15284_v60  ;;  %11573 = vmatpush3.bf16.msra.mxu0 %v12837_v12  ;;  %v12851_v12 = vld [vmem:[%s17513_s28 + $0xc20] ss:$12 sps:$4 sm:$0xff]  }
 0x321   :  { %5968 = vmatprep.subr.bf16.mxu1 %v12840_v5  ;;  %11574 = vmatprep.subr.bf16.mxu0 %v12841_v11  ;;  %v11414_v44 = vpop.f32.mrb[60].mxu0  ;;  %v12852_v5 = vld [vmem:[%s17513_s28 + $0xb60] ss:$12 sps:$4 sm:$0xff]  }
 0x322   :  { %v11415_v15 = vpop.f32.mrb[61].mxu0  ;;  %v12855_v11 = vld [vmem:[%s17513_s28 + $0x754] ss:$12 sps:$4 sm:$0xff]  }
 0x323   :  { %5969 = vmatpush1.bf16.msra.mxu1 %v12838_v52  ;;  %v11416_v7 = vadd.f32 %v11415_v15, %v11414_v44  ;;  %v11417_v57 = vpop.f32.mrb[62].mxu0  ;;  %v12853_v52 = vld [vmem:[%s17513_s28 + $0x750] ss:$12 sps:$4 sm:$0xff]  }
 0x324   :  { %11575 = vmatpush3.bf16.msra.mxu0 %v12842_v54  ;;  %v11418_v13 = vpop.f32.mrb[63].mxu0  ;;  %5970 = vmatprep.subr.bf16.mxu1 %v12845_v49  ;;  %v12857_v54 = vld [vmem:[%s17513_s28 + $0xb78] ss:$12 sps:$4 sm:$0xff]   ;;  %v12861_v44 = vld [vmem:[%s17513_s28 + $0xc50] ss:$12 sps:$4 sm:$0xff]  }
 0x325   :  { %v15956_v16 = vadd.f32 %v11416_v7, %v15838_v51  ;;  %v11419_v53 = vadd.f32 %v11418_v13, %v11417_v57  ;;  %11576 = vmatprep.subr.bf16.mxu0 %v12846_v47  ;;  %v12848_v51 = vld [vmem:[%s17513_s28 + $0x738] ss:$12 sps:$4 sm:$0xff]   ;;  %v12858_v47 = vld [vmem:[%s17513_s28 + $0x768] ss:$12 sps:$4 sm:$0xff]   ;;  %v12862_v15 = vld [vmem:[%s17513_s28 + $0xb90] ss:$12 sps:$4 sm:$0xff]  }
 0x326   :  { %v12860_v49 = vld [vmem:[%s17513_s28 + $0x76c] ss:$12 sps:$4 sm:$0xff]   ;;  %v12865_v7 = vld [vmem:[%s17513_s28 + $0x784] ss:$12 sps:$4 sm:$0xff]   ;;  %v12866_v57 = vld [vmem:[%s17513_s28 + $0xc68] ss:$12 sps:$4 sm:$0xff]  }
 0x327   :  { %v15965_v3 = vadd.f32 %v11419_v53, %v15849_v21  ;;  %7169 = vmatmul.mubr.bf16.gmra.mrb[104].mxu0 %v15279_v56  ;;  %5971 = vmatpush1.bf16.msra.mxu1 %v12843_v18  ;;  %v12856_v21 = vld [vmem:[%s17513_s28 + $0xc38] ss:$12 sps:$4 sm:$0xff]   ;;  %v12863_v18 = vld [vmem:[%s17513_s28 + $0x780] ss:$12 sps:$4 sm:$0xff]   ;;  %v12867_v13 = vld [vmem:[%s17513_s28 + $0xba8] ss:$12 sps:$4 sm:$0xff]  }
 0x328   :  { %11577 = vmatpush3.bf16.msra.mxu0 %v12847_v6  ;;  %7209 = vmatprep.mubr.bf16.mxu0 %v15387_v0  ;;  %v12870_v6 = vld [vmem:[%s17513_s28 + $0x79c] ss:$12 sps:$4 sm:$0xff]   ;;  %v12871_v53 = vld [vmem:[%s17513_s28 + $0xc80] ss:$12 sps:$4 sm:$0xff]  }
 0x329   :  { %5972 = vmatprep.subr.bf16.mxu1 %v12850_v62  ;;  %11578 = vmatprep.subr.bf16.mxu0 %v12851_v12  ;;  %v12868_v62 = vld [vmem:[%s17513_s28 + $0x798] ss:$12 sps:$4 sm:$0xff]   ;;  %v12872_v12 = vld [vmem:[%s17513_s28 + $0xbc0] ss:$12 sps:$4 sm:$0xff]  }
 0x32b   :  { %5973 = vmatpush1.bf16.msra.mxu1 %v12848_v51  ;;  %v12875_v51 = vld [vmem:[%s17513_s28 + $0x7b4] ss:$12 sps:$4 sm:$0xff]  }
 0x32c   :  { %11579 = vmatpush3.bf16.msra.mxu0 %v12852_v5  ;;  %5974 = vmatprep.subr.bf16.mxu1 %v12855_v11  ;;  %v12882_v5 = vld [vmem:[%s17513_s28 + $0xc98] ss:$12 sps:$4 sm:$0xff]   ;;  %v12873_v11 = vld [vmem:[%s17513_s28 + $0x7b0] ss:$12 sps:$4 sm:$0xff]  }
 0x32d   :  { %11580 = vmatprep.subr.bf16.mxu0 %v12856_v21  ;;  %v12878_v21 = vld [vmem:[%s17513_s28 + $0x7cc] ss:$12 sps:$4 sm:$0xff]  }
 0x32f   :  { %5975 = vmatpush1.bf16.msra.mxu1 %v12853_v52  ;;  %v12886_v52 = vld [vmem:[%s17513_s28 + $0xcb0] ss:$12 sps:$4 sm:$0xff]  }
 0x330   :  { %11581 = vmatpush3.bf16.msra.mxu0 %v12857_v54  ;;  %5976 = vmatprep.subr.bf16.mxu1 %v12860_v49  ;;  %v12876_v54 = vld [vmem:[%s17513_s28 + $0x7c8] ss:$12 sps:$4 sm:$0xff]   ;;  %v12881_v49 = vld [vmem:[%s17513_s28 + $0x7e4] ss:$12 sps:$4 sm:$0xff]  }
 0x331   :  { %11582 = vmatprep.subr.bf16.mxu0 %v12861_v44  ;;  %v12879_v44 = vld [vmem:[%s17513_s28 + $0x7e0] ss:$12 sps:$4 sm:$0xff]  }
 0x333   :  { %5977 = vmatpush1.bf16.msra.mxu1 %v12858_v47  ;;  %v12885_v47 = vld [vmem:[%s17513_s28 + $0x7fc] ss:$12 sps:$4 sm:$0xff]  }
 0x334   :  { %11583 = vmatpush3.bf16.msra.mxu0 %v12862_v15  ;;  %5978 = vmatprep.subr.bf16.mxu1 %v12865_v7  ;;  %v12883_v15 = vld [vmem:[%s17513_s28 + $0x7f8] ss:$12 sps:$4 sm:$0xff]   ;;  %v12889_v7 = vld [vmem:[%s17513_s28 + $0x814] ss:$12 sps:$4 sm:$0xff]  }
 0x335   :  { %11584 = vmatprep.subr.bf16.mxu0 %v12866_v57  ;;  %v12890_v57 = vld [vmem:[%s17513_s28 + $0x828] ss:$12 sps:$4 sm:$0xff]  }
 0x337   :  { %5979 = vmatpush1.bf16.msra.mxu1 %v12863_v18 }
 0x338   :  { %11585 = vmatpush3.bf16.msra.mxu0 %v12867_v13  ;;  %5980 = vmatprep.subr.bf16.mxu1 %v12870_v6  ;;  %v12895_v13 = vld [vmem:[%s17513_s28 + $0x844] ss:$12 sps:$4 sm:$0xff]  }
 0x339   :  { %11586 = vmatprep.subr.bf16.mxu0 %v12871_v53 }
 0x33b   :  { %5981 = vmatpush1.bf16.msra.mxu1 %v12868_v62 }
 0x33c   :  { %11587 = vmatpush3.bf16.msra.mxu0 %v12872_v12  ;;  %5982 = vmatprep.subr.bf16.mxu1 %v12875_v51 }
 0x33d   :  { %11855 = vmatprep.subr.bf16.mxu0 %v12882_v5 }
 0x33f   :  { %7210 = vmatmul.mubr.bf16.vlgmr.msra.gmra.mrb[108].mxu0 %v15382_v17  ;;  %5983 = vmatpush1.bf16.msra.mxu1 %v12873_v11 }
 0x340   :  { %7217 = vmatprep.mubr.bf16.mxu0 %v15411_v2  ;;  %5984 = vmatprep.subr.bf16.mxu1 %v12878_v21  ;;  %v12896_v21 = vld [vmem:[%s17513_s28 + $0x858] ss:$12 sps:$4 sm:$0xff]  }
 0x341   :  { %11856 = vmatpush3.bf16.msra.mxu0 %v12882_v5  ;;  %v12898_v5 = vld [vmem:[%s17513_s28 + $0x85c] ss:$12 sps:$4 sm:$0xff]  }
 0x342   :  { %11857 = vmatprep.subr.bf16.mxu0 %v12886_v52 }
 0x343   :  { %5985 = vmatpush1.bf16.msra.mxu1 %v12876_v54  ;;  %v12901_v54 = vld [vmem:[%s17513_s28 + $0x874] ss:$12 sps:$4 sm:$0xff]  }
 0x344   :  { %6007 = vmatprep.subr.bf16.mxu1 %v12881_v49 }
 0x345   :  { %11858 = vmatpush3.bf16.msra.mxu0 %v12886_v52 }
 0x346   :  { %5987 = vmatmul.mubr.bf16.vlgmr.msra.gmra.mrb[32].mxu1 %v15195_v4  ;;  %v12887_v4 = vld [vmem:[%s17513_s28 + $0x810] ss:$12 sps:$4 sm:$0xff]  }
 0x347   :  { %7218 = vmatmul.mubr.bf16.gmra.mrb[112].mxu0 %v15403_v48  ;;  %5996 = vmatprep.mubr.bf16.mxu1 %v15235_v59  ;;  %v12892_v59 = vld [vmem:[%s17513_s28 + $0x82c] ss:$12 sps:$4 sm:$0xff]  }
 0x348   :  { %6008 = vmatpush1.bf16.msra.mxu1 %v12879_v44  ;;  %11859 = vmatprep.mubr.msk.bf16.mxu0 %vm4088_vm2, %v15437_v58 }
 0x349   :  { %6009 = vmatprep.subr.bf16.mxu1 %v12885_v47 }
 0x34c   :  { %6010 = vmatpush1.bf16.msra.mxu1 %v12883_v15 }
 0x34d   :  { %6011 = vmatprep.subr.bf16.mxu1 %v12889_v7 }
 0x34e   :  { %5997 = vmatmul.mubr.bf16.gmra.mrb[36].mxu1 %v15227_v55 }
 0x34f   :  { %11860 = vmatmul.mubr.msk.bf16.vlgmr.msra.gmra.mrb[64].mxu0 %vm4088_vm2, %v15432_v46  ;;  %6039 = vmatprep.mubr.bf16.mxu1 %v15327_v10  ;;  %v12893_v10 = vld [vmem:[%s17513_s28 + $0x840] ss:$12 sps:$4 sm:$0xff]  }
 0x350   :  { %6012 = vmatpush1.bf16.msra.mxu1 %v12887_v4  ;;  %v12904_v4 = vld [vmem:[%s17513_s28 + $0x88c] ss:$12 sps:$4 sm:$0xff]  }
 0x351   :  { %6013 = vmatprep.subr.bf16.mxu1 %v12892_v59  ;;  %v11440_v18 = vpop.f32.mrb[68].mxu0 }
 0x352   :  { %v11441_v6 = vpop.f32.mrb[69].mxu0 }
 0x353   :  { %v11442_v53 = vadd.f32 %v11441_v6, %v11440_v18  ;;  %v11443_v62 = vpop.f32.mrb[70].mxu0  ;;  %v12907_v18 = vld [vmem:[%s17513_s28 + $0x8a4] ss:$12 sps:$4 sm:$0xff]   ;;  %v12913_v6 = vld [vmem:[%s17513_s28 + $0x8d4] ss:$12 sps:$4 sm:$0xff]  }
 0x354   :  { %6014 = vmatpush1.bf16.msra.mxu1 %v12890_v57  ;;  %v11444_v55 = vpop.f32.mrb[71].mxu0  ;;  %v12902_v57 = vld [vmem:[%s17513_s28 + $0x888] ss:$12 sps:$4 sm:$0xff]  }
 0x355   :  { %v12319_v12 = vadd.f32 %v11442_v53, %v15924_v50  ;;  %v11445_v51 = vadd.f32 %v11444_v55, %v11443_v62  ;;  %6015 = vmatprep.subr.bf16.mxu1 %v12895_v13  ;;  %v12908_v13 = vld [vmem:[%s17513_s28 + $0x8b8] ss:$12 sps:$4 sm:$0xff]   ;;  %v12911_v53 = vld [vmem:[%s17513_s28 + $0x8d0] ss:$12 sps:$4 sm:$0xff]   ;;  %v12914_v55 = vld [vmem:[%s17513_s28 + $0x8e8] ss:$12 sps:$4 sm:$0xff]  }
 0x356   :  { %v12916_v62 = vld [vmem:[%s17513_s28 + $0x8ec] ss:$12 sps:$4 sm:$0xff]  }
 0x357   :  { %v12329_v11 = vadd.f32 %v11445_v51, %v15933_v61  ;;  %v12899_v61 = vld [vmem:[%s17513_s28 + $0x870] ss:$12 sps:$4 sm:$0xff]  }
 0x358   :  { %6016 = vmatpush1.bf16.msra.mxu1 %v12893_v10  ;;  %v12919_v10 = vld [vmem:[%s17513_s28 + $0x904] ss:$12 sps:$4 sm:$0xff]  }
 0x359   :  { %6017 = vmatprep.subr.bf16.mxu1 %v12898_v5  ;;  %v11446_v52 = vpop.f32.mrb[72].mxu0 }
 0x35a   :  { %v11447_v50 = vpop.f32.mrb[73].mxu0 }
 0x35b   :  { %v11448_v49 = vadd.f32 %v11447_v50, %v11446_v52  ;;  %v11449_v44 = vpop.f32.mrb[74].mxu0 }
 0x35c   :  { %6018 = vmatpush1.bf16.msra.mxu1 %v12896_v21  ;;  %v11450_v47 = vpop.f32.mrb[75].mxu0 }
 0x35d   :  { %v12314_v15 = vadd.f32 %v11448_v49, %v15956_v16  ;;  %v11451_v7 = vadd.f32 %v11450_v47, %v11449_v44  ;;  %6019 = vmatprep.subr.bf16.mxu1 %v12901_v54  ;;  %v12905_v16 = vld [vmem:[%s17513_s28 + $0x8a0] ss:$12 sps:$4 sm:$0xff]   ;;  %v12922_v49 = vld [vmem:[%s17513_s28 + $0x91c] ss:$12 sps:$4 sm:$0xff]  }
 0x35e   :  { %v12917_v54 = vld [vmem:[%s17513_s28 + $0x900] ss:$12 sps:$4 sm:$0xff]  }
 0x35f   :  { %v12324_v59 = vadd.f32 %v11451_v7, %v15965_v3  ;;  %v12910_v3 = vld [vmem:[%s17513_s28 + $0x8bc] ss:$12 sps:$4 sm:$0xff]   ;;  %v12920_v7 = vld [vmem:[%s17513_s28 + $0x918] ss:$12 sps:$4 sm:$0xff]  }
 0x360   :  { %6020 = vmatpush1.bf16.msra.mxu1 %v12899_v61 }
 0x361   :  { %6021 = vmatprep.subr.bf16.mxu1 %v12904_v4  ;;  %v12925_v4 = vld [vmem:[%s17513_s28 + $0x934] ss:$12 sps:$4 sm:$0xff]  }
 0x364   :  { %6022 = vmatpush1.bf16.msra.mxu1 %v12902_v57 }
 0x365   :  { %6023 = vmatprep.subr.bf16.mxu1 %v12907_v18 }
 0x368   :  { %6024 = vmatpush1.bf16.msra.mxu1 %v12905_v16 }
 0x369   :  { %6025 = vmatprep.subr.bf16.mxu1 %v12910_v3 }
 0x36c   :  { %6026 = vmatpush1.bf16.msra.mxu1 %v12908_v13  ;;  %v12928_v13 = vld [vmem:[%s17513_s28 + $0x94c] ss:$12 sps:$4 sm:$0xff]  }
 0x36d   :  { %6027 = vmatprep.subr.bf16.mxu1 %v12913_v6 }
 0x370   :  { %6028 = vmatpush1.bf16.msra.mxu1 %v12911_v53 }
 0x371   :  { %6029 = vmatprep.subr.bf16.mxu1 %v12916_v62 }
 0x372   :  { %v11468_v51 = vpop.f32.mrb[76].mxu0 }
 0x373   :  { %v11469_v5 = vpop.f32.mrb[77].mxu0 }
 0x374   :  { %6030 = vmatpush1.bf16.msra.mxu1 %v12914_v55  ;;  %v11470_v21 = vadd.f32 %v11469_v5, %v11468_v51  ;;  %v11471_v52 = vpop.f32.mrb[78].mxu0  ;;  %v12926_v55 = vld [vmem:[%s17513_s28 + $0x948] ss:$12 sps:$4 sm:$0xff]   ;;  %v12929_v51 = vld [vmem:[%s17513_s28 + $0x960] ss:$12 sps:$4 sm:$0xff]  }
 0x375   :  { %v11472_v50 = vpop.f32.mrb[79].mxu0  ;;  %6031 = vmatprep.subr.bf16.mxu1 %v12919_v10  ;;  %v12931_v10 = vld [vmem:[%s17513_s28 + $0x964] ss:$12 sps:$4 sm:$0xff]   ;;  %v12937_v5 = vld [vmem:[%s17513_s28 + $0x994] ss:$12 sps:$4 sm:$0xff]  }
 0x376   :  { %v16137_v44 = vadd.f32 %v12319_v12, %v11470_v21  ;;  %v11473_v47 = vadd.f32 %v11472_v50, %v11471_v52  ;;  %v12923_v12 = vld [vmem:[%s17513_s28 + $0x930] ss:$12 sps:$4 sm:$0xff]   ;;  %v12938_v21 = vld [vmem:[%s17513_s28 + $0x9a8] ss:$12 sps:$4 sm:$0xff]   ;;  %v12941_v52 = vld [vmem:[%s17513_s28 + $0x9c0] ss:$12 sps:$4 sm:$0xff]  }
 0x377   :  { %v12949_v50 = vld [vmem:[%s17513_s28 + $0x9f4] ss:$12 sps:$4 sm:$0xff]  }
 0x378   :  { %v16139_v61 = vadd.f32 %v12329_v11, %v11473_v47  ;;  %6032 = vmatpush1.bf16.msra.mxu1 %v12917_v54  ;;  %v12944_v54 = vld [vmem:[%s17513_s28 + $0x9d8] ss:$12 sps:$4 sm:$0xff]  }
 0x379   :  { %6033 = vmatprep.subr.bf16.mxu1 %v12922_v49 }
 0x37a   :  { %v11474_v57 = vpop.f32.mrb[80].mxu0 }
 0x37b   :  { %v11475_v18 = vpop.f32.mrb[81].mxu0 }
 0x37c   :  { %6034 = vmatpush1.bf16.msra.mxu1 %v12920_v7  ;;  %v11476_v16 = vadd.f32 %v11475_v18, %v11474_v57  ;;  %v11477_v3 = vpop.f32.mrb[82].mxu0  ;;  %v12952_v57 = vld [vmem:[%s17513_s28 + $0xa0c] ss:$12 sps:$4 sm:$0xff]  }
 0x37d   :  { %v11478_v11 = vpop.f32.mrb[83].mxu0  ;;  %6035 = vmatprep.subr.bf16.mxu1 %v12925_v4 }
 0x37e   :  { %v16153_v6 = vadd.f32 %v12314_v15, %v11476_v16  ;;  %v11479_v53 = vadd.f32 %v11478_v11, %v11477_v3  ;;  %v12934_v15 = vld [vmem:[%s17513_s28 + $0x97c] ss:$12 sps:$4 sm:$0xff]   ;;  %v12955_v3 = vld [vmem:[%s17513_s28 + $0xa24] ss:$12 sps:$4 sm:$0xff]  }
 0x37f   :  { %v12950_v16 = vld [vmem:[%s17513_s28 + $0xa08] ss:$12 sps:$4 sm:$0xff]  }
 0x380   :  { %v16155_v62 = vadd.f32 %v12324_v59, %v11479_v53  ;;  %6036 = vmatpush1.bf16.msra.mxu1 %v12923_v12  ;;  %v12932_v59 = vld [vmem:[%s17513_s28 + $0x978] ss:$12 sps:$4 sm:$0xff]  }
 0x381   :  { %6037 = vmatprep.subr.bf16.mxu1 %v12928_v13 }
 0x384   :  { %6038 = vmatpush1.bf16.msra.mxu1 %v12926_v55  ;;  %v12953_v55 = vld [vmem:[%s17513_s28 + $0xa20] ss:$12 sps:$4 sm:$0xff]  }
 0x385   :  { %6060 = vmatprep.subr.bf16.mxu1 %v12931_v10 }
 0x387   :  { %6040 = vmatmul.mubr.bf16.vlgmr.msra.gmra.mrb[32].mxu1 %v15322_v1  ;;  %v12935_v1 = vld [vmem:[%s17513_s28 + $0x990] ss:$12 sps:$4 sm:$0xff]  }
 0x388   :  { %6049 = vmatprep.mubr.bf16.mxu1 %v15360_v8  ;;  %6061 = vmatpush1.bf16.msra.mxu1 %v12929_v51  ;;  %v12940_v8 = vld [vmem:[%s17513_s28 + $0x9ac] ss:$12 sps:$4 sm:$0xff]   ;;  %v12958_v51 = vld [vmem:[%s17513_s28 + $0xa3c] ss:$12 sps:$4 sm:$0xff]  }
 0x389   :  { %6062 = vmatprep.subr.bf16.mxu1 %v12934_v15 }
 0x38c   :  { %6063 = vmatpush1.bf16.msra.mxu1 %v12932_v59  ;;  %v12956_v59 = vld [vmem:[%s17513_s28 + $0xa38] ss:$12 sps:$4 sm:$0xff]  }
 0x38d   :  { %6969 = vmatprep.subr.bf16.mxu1 %v12937_v5  ;;  %v12961_v5 = vld [vmem:[%s17513_s28 + $0xa54] ss:$12 sps:$4 sm:$0xff]  }
 0x38f   :  { %6050 = vmatmul.mubr.bf16.gmra.mrb[36].mxu1 %v15355_v63  ;;  %v12943_v63 = vld [vmem:[%s17513_s28 + $0x9c4] ss:$12 sps:$4 sm:$0xff]  }
 0x390   :  { %6092 = vmatprep.mubr.bf16.mxu1 %v17514_v20 }
 0x397   :  { %11062 = vmatmul.mubr.msk.bf16.vlgmr.msra.gmra.mrb[32].mxu1 %vm4088_vm2, %v15417_v19  ;;  %v12946_v19 = vld [vmem:[%s17513_s28 + $0x9dc] ss:$12 sps:$4 sm:$0xff]  }
 0x398   :  { %6970 = vmatpush1.bf16.msra.mxu1 %v12935_v1  ;;  %6102 = vmatprep.mubr.bf16.mxu1 %v17514_v20  ;;  %v12959_v1 = vld [vmem:[%s17513_s28 + $0xa50] ss:$12 sps:$4 sm:$0xff]  }
 0x399   :  { %6971 = vmatprep.subr.bf16.mxu1 %v12940_v8  ;;  %v7378_v8 = vld [vmem:[%s17515_s1 + $0x80] sm:$0xff] }
 0x39c   :  { %6972 = vmatpush1.bf16.msra.mxu1 %v12938_v21  ;;  %v7379_v21 = vld [vmem:[%s17515_s1 + $0x88] sm:$0xff] }
 0x39d   :  { %6973 = vmatprep.subr.bf16.mxu1 %v12943_v63  ;;  %v7362_v63 = vld [vmem:[%s17515_s1] sm:$0xff] }
 0x39f   :  { %11063 = vmatmul.mubr.msk.bf16.gmra.mrb[36].mxu1 %vm4088_vm2, %v15413_v45  ;;  %v12947_v45 = vld [vmem:[%s17513_s28 + $0x9f0] ss:$12 sps:$4 sm:$0xff]  }
 0x3a0   :  { %6974 = vmatpush1.bf16.msra.mxu1 %v12941_v52  ;;  %7001 = vmatprep.mubr.bf16.mxu1 %v15260_v14  ;;  %v16251_v52 = vpack.c.bf16 %v7379_v21, %v7378_v8  ;;  %v12976_v21 = vld [vmem:[%s17513_s28 + $0xacc] ss:$12 sps:$4 sm:$0xff]  }
 0x3a1   :  { %6975 = vmatprep.subr.bf16.mxu1 %v12946_v19  ;;  %v7363_v19 = vld [vmem:[%s17515_s1 + $0x8] sm:$0xff] }
 0x3a2   :  { %v11500_v49 = vpop.f32.mrb[84].mxu0  ;;  %11987 = vmatprep.subr.bf16.mxu0 %v16251_v52 }
 0x3a3   :  { %v11501_v47 = vpop.f32.mrb[85].mxu0 }
 0x3a4   :  { %6976 = vmatpush1.bf16.msra.mxu1 %v12944_v54  ;;  %v16209_v7 = vadd.f32 %v11501_v47, %v11500_v49  ;;  %v11503_v4 = vpop.f32.mrb[86].mxu0  ;;  %v7380_v54 = vld [vmem:[%s17515_s1 + $0x90] sm:$0xff]  ;;  %v12964_v49 = vld [vmem:[%s17513_s28 + $0xa6c] ss:$12 sps:$4 sm:$0xff]   ;;  %v16265_v47 = vpack.c.bf16 %v7363_v19, %v7362_v63 }
 0x3a5   :  { %v11504_v14 = vpop.f32.mrb[87].mxu0  ;;  %6977 = vmatprep.subr.bf16.mxu1 %v12949_v50  ;;  %v7381_v50 = vld [vmem:[%s17515_s1 + $0x98] sm:$0xff] }
 0x3a6   :  { %v11505_v18 = vadd.f32 %v11504_v14, %v11503_v4  ;;  %v16267_v4 = vpack.c.bf16 %v7381_v50, %v7380_v54  ;;  %v7365_v14 = vld [vmem:[%s17515_s1 + $0x18] sm:$0xff]  ;;  %11989 = vmatpush3.bf16.msra.mxu0 %v16265_v47  ;;  %v12974_v50 = vld [vmem:[%s17513_s28 + $0xac8] ss:$12 sps:$4 sm:$0xff]  }
 0x3a8   :  { %6978 = vmatpush1.bf16.msra.mxu1 %v12947_v45  ;;  %v7364_v45 = vld [vmem:[%s17515_s1 + $0x10] sm:$0xff]  ;;  %11991 = vmatprep.subr.bf16.mxu0 %v16267_v4 }
 0x3a9   :  { %6979 = vmatprep.subr.bf16.mxu1 %v12952_v57  ;;  %v16277_v57 = vpack.c.bf16 %v7365_v14, %v7364_v45  ;;  %v12979_v45 = vld [vmem:[%s17513_s28 + $0xae4] ss:$12 sps:$4 sm:$0xff]  }
 0x3aa   :  { %v11506_v12 = vpop.f32.mrb[88].mxu0 }
 0x3ab   :  { %v11507_v11 = vpop.f32.mrb[89].mxu0  ;;  %11993 = vmatpush3.bf16.msra.mxu0 %v16277_v57 }
 0x3ac   :  { %6980 = vmatpush1.bf16.msra.mxu1 %v12950_v16  ;;  %v16223_v13 = vadd.f32 %v11507_v11, %v11506_v12  ;;  %v11509_v53 = vpop.f32.mrb[90].mxu0  ;;  %v12962_v16 = vld [vmem:[%s17513_s28 + $0xa68] ss:$12 sps:$4 sm:$0xff]   ;;  %v12965_v12 = vld [vmem:[%s17513_s28 + $0xa80] ss:$12 sps:$4 sm:$0xff]  }
 0x3ad   :  { %v11510_v10 = vpop.f32.mrb[91].mxu0  ;;  %6981 = vmatprep.subr.bf16.mxu1 %v12955_v3  ;;  %v12967_v3 = vld [vmem:[%s17513_s28 + $0xa84] ss:$12 sps:$4 sm:$0xff]   ;;  %v12970_v11 = vld [vmem:[%s17513_s28 + $0xa9c] ss:$12 sps:$4 sm:$0xff]  }
 0x3ae   :  { %v16231_v15 = vadd.f32 %v11510_v10, %v11509_v53  ;;  %v12968_v53 = vld [vmem:[%s17513_s28 + $0xa98] ss:$12 sps:$4 sm:$0xff]  }
 0x3b0   :  { %6982 = vmatpush1.bf16.msra.mxu1 %v12953_v55  ;;  %v12973_v55 = vld [vmem:[%s17513_s28 + $0xab4] ss:$12 sps:$4 sm:$0xff]  }
 0x3b1   :  { %6983 = vmatprep.subr.bf16.mxu1 %v12958_v51 }
 0x3b4   :  { %6984 = vmatpush1.bf16.msra.mxu1 %v12956_v59 }
 0x3b5   :  { %6985 = vmatprep.subr.bf16.mxu1 %v12961_v5 }
 0x3b8   :  { %6986 = vmatpush1.bf16.msra.mxu1 %v12959_v1  ;;  %v12971_v1 = vld [vmem:[%s17513_s28 + $0xab0] ss:$12 sps:$4 sm:$0xff]  }
 0x3b9   :  { %6987 = vmatprep.subr.bf16.mxu1 %v12964_v49 }
 0x3bc   :  { %6988 = vmatpush1.bf16.msra.mxu1 %v12962_v16 }
 0x3bd   :  { %6989 = vmatprep.subr.bf16.mxu1 %v12967_v3 }
 0x3c0   :  { %6990 = vmatpush1.bf16.msra.mxu1 %v12965_v12  ;;  %v12977_v12 = vld [vmem:[%s17513_s28 + $0xae0] ss:$12 sps:$4 sm:$0xff]  }
 0x3c1   :  { %6991 = vmatprep.subr.bf16.mxu1 %v12970_v11 }
 0x3c2   :  { %v11528_v10 = vpop.f32.mrb[92].mxu0 }
 0x3c3   :  { %v11529_v51 = vpop.f32.mrb[93].mxu0 }
 0x3c4   :  { %6992 = vmatpush1.bf16.msra.mxu1 %v12968_v53  ;;  %v11530_v59 = vadd.f32 %v11529_v51, %v11528_v10  ;;  %v11531_v5 = vpop.f32.mrb[94].mxu0  ;;  %v12980_v10 = vld [vmem:[%s17513_s28 + $0xaf8] ss:$12 sps:$4 sm:$0xff]  }
 0x3c5   :  { %v11532_v8 = vpop.f32.mrb[95].mxu0  ;;  %6993 = vmatprep.subr.bf16.mxu1 %v12973_v55 }
 0x3c6   :  { %v6197_v63 = vadd.f32 %v11530_v59, %v16209_v7  ;;  %v11533_v19 = vadd.f32 %v11532_v8, %v11531_v5  ;;  %v12985_v59 = vld [vmem:[%s17513_s28 + $0xb14] ss:$12 sps:$4 sm:$0xff]  }
 0x3c7   :  { %v12997_v8 = vld [vmem:[%s17513_s28 + $0xb74] ss:$12 sps:$4 sm:$0xff]  }
 0x3c8   :  { %v6200_v54 = vadd.f32 %v11533_v19, %v11505_v18  ;;  %6994 = vmatpush1.bf16.msra.mxu1 %v12971_v1  ;;  %v16310_v49 = vadd.f32 %v16137_v44, %v6197_v63  ;;  %v12982_v44 = vld [vmem:[%s17513_s28 + $0xafc] ss:$12 sps:$4 sm:$0xff]   ;;  %v12989_v1 = vld [vmem:[%s17513_s28 + $0xb40] ss:$12 sps:$4 sm:$0xff]   ;;  %v13003_v63 = vld [vmem:[%s17513_s28 + $0xba4] ss:$12 sps:$4 sm:$0xff]  }
 0x3c9   :  { %6995 = vmatprep.subr.bf16.mxu1 %v12976_v21  ;;  %v12995_v21 = vld [vmem:[%s17513_s28 + $0xb70] ss:$12 sps:$4 sm:$0xff]   ;;  %v13001_v19 = vld [vmem:[%s17513_s28 + $0xba0] ss:$12 sps:$4 sm:$0xff]  }
 0x3ca   :  { %v11534_v14 = vpop.f32.mrb[96].mxu0  ;;  %v16316_v16 = vadd.f32 %v16139_v61, %v6200_v54  ;;  %v13006_v54 = vld [vmem:[%s17513_s28 + $0xbbc] ss:$12 sps:$4 sm:$0xff]  }
 0x3cb   :  { %v11535_v7 = vpop.f32.mrb[97].mxu0 }
 0x3cc   :  { %6996 = vmatpush1.bf16.msra.mxu1 %v12974_v50  ;;  %v11536_v18 = vadd.f32 %v11535_v7, %v11534_v14  ;;  %v11537_v3 = vpop.f32.mrb[98].mxu0  ;;  %v13004_v50 = vld [vmem:[%s17513_s28 + $0xbb8] ss:$12 sps:$4 sm:$0xff]  }
 0x3cd   :  { %v11538_v11 = vpop.f32.mrb[99].mxu0  ;;  %6997 = vmatprep.subr.bf16.mxu1 %v12979_v45  ;;  %v13009_v45 = vld [vmem:[%s17513_s28 + $0xbd4] ss:$12 sps:$4 sm:$0xff]  }
 0x3ce   :  { %v6205_v53 = vadd.f32 %v11536_v18, %v16223_v13  ;;  %v11539_v55 = vadd.f32 %v11538_v11, %v11537_v3  ;;  %v12983_v13 = vld [vmem:[%s17513_s28 + $0xb10] ss:$12 sps:$4 sm:$0xff]  }
 0x3d0   :  { %v6208_v61 = vadd.f32 %v11539_v55, %v16231_v15  ;;  %6998 = vmatpush1.bf16.msra.mxu1 %v12977_v12  ;;  %v16330_v51 = vadd.f32 %v16153_v6, %v6205_v53  ;;  %v12988_v15 = vld [vmem:[%s17513_s28 + $0xb2c] ss:$12 sps:$4 sm:$0xff]   ;;  %v12986_v6 = vld [vmem:[%s17513_s28 + $0xb28] ss:$12 sps:$4 sm:$0xff]   ;;  %v13007_v12 = vld [vmem:[%s17513_s28 + $0xbd0] ss:$12 sps:$4 sm:$0xff]  }
 0x3d1   :  { %6999 = vmatprep.subr.bf16.mxu1 %v12982_v44  ;;  %v13012_v44 = vld [vmem:[%s17513_s28 + $0xbec] ss:$12 sps:$4 sm:$0xff]   ;;  %v13010_v55 = vld [vmem:[%s17513_s28 + $0xbe8] ss:$12 sps:$4 sm:$0xff]  }
 0x3d2   :  { %v16336_v5 = vadd.f32 %v16155_v62, %v6208_v61  ;;  %v12991_v62 = vld [vmem:[%s17513_s28 + $0xb44] ss:$12 sps:$4 sm:$0xff]  }
 0x3d3   :  { %v13015_v61 = vld [vmem:[%s17513_s28 + $0xc04] ss:$12 sps:$4 sm:$0xff]  }
 0x3d4   :  { %7000 = vmatpush1.bf16.msra.mxu1 %v12980_v10 }
 0x3d5   :  { %7022 = vmatprep.subr.bf16.mxu1 %v12985_v59 }
 0x3d7   :  { %7002 = vmatmul.mubr.bf16.vlgmr.msra.gmra.mrb[32].mxu1 %v15255_v9  ;;  %v12994_v9 = vld [vmem:[%s17513_s28 + $0xb5c] ss:$12 sps:$4 sm:$0xff]  }
 0x3d8   :  { %7011 = vmatprep.mubr.bf16.mxu1 %v15284_v60  ;;  %7023 = vmatpush1.bf16.msra.mxu1 %v12983_v13  ;;  %v12992_v60 = vld [vmem:[%s17513_s28 + $0xb58] ss:$12 sps:$4 sm:$0xff]  }
 0x3d9   :  { %7024 = vmatprep.subr.bf16.mxu1 %v12988_v15 }
 0x3dc   :  { %7025 = vmatpush1.bf16.msra.mxu1 %v12986_v6  ;;  %v13013_v6 = vld [vmem:[%s17513_s28 + $0xc00] ss:$12 sps:$4 sm:$0xff]  }
 0x3dd   :  { %7026 = vmatprep.subr.bf16.mxu1 %v12991_v62 }
 0x3df   :  { %7012 = vmatmul.mubr.bf16.gmra.mrb[36].mxu1 %v15279_v56  ;;  %v13000_v56 = vld [vmem:[%s17513_s28 + $0xb8c] ss:$12 sps:$4 sm:$0xff]  }
 0x3e0   :  { %7027 = vmatpush1.bf16.msra.mxu1 %v12989_v1  ;;  %7054 = vmatprep.mubr.bf16.mxu1 %v15387_v0  ;;  %v12998_v0 = vld [vmem:[%s17513_s28 + $0xb88] ss:$12 sps:$4 sm:$0xff]  }
 0x3e1   :  { %7028 = vmatprep.subr.bf16.mxu1 %v12994_v9  ;;  %v13018_v1 = vld [vmem:[%s17513_s28 + $0xc1c] ss:$12 sps:$4 sm:$0xff]  }
 0x3e4   :  { %7029 = vmatpush1.bf16.msra.mxu1 %v12992_v60  ;;  %v13016_v60 = vld [vmem:[%s17513_s28 + $0xc18] ss:$12 sps:$4 sm:$0xff]  }
 0x3e5   :  { %7030 = vmatprep.subr.bf16.mxu1 %v12997_v8  ;;  %v13021_v8 = vld [vmem:[%s17513_s28 + $0xc34] ss:$12 sps:$4 sm:$0xff]  }
 0x3e8   :  { %7031 = vmatpush1.bf16.msra.mxu1 %v12995_v21  ;;  %v13019_v21 = vld [vmem:[%s17513_s28 + $0xc30] ss:$12 sps:$4 sm:$0xff]  }
 0x3e9   :  { %7032 = vmatprep.subr.bf16.mxu1 %v13000_v56  ;;  %v13024_v56 = vld [vmem:[%s17513_s28 + $0xc4c] ss:$12 sps:$4 sm:$0xff]  }
 0x3ec   :  { %7033 = vmatpush1.bf16.msra.mxu1 %v12998_v0  ;;  %v13022_v0 = vld [vmem:[%s17513_s28 + $0xc48] ss:$12 sps:$4 sm:$0xff]  }
 0x3ed   :  { %7034 = vmatprep.subr.bf16.mxu1 %v13003_v63  ;;  %v13027_v63 = vld [vmem:[%s17513_s28 + $0xc64] ss:$12 sps:$4 sm:$0xff]  }
 0x3f0   :  { %7035 = vmatpush1.bf16.msra.mxu1 %v13001_v19  ;;  %v13025_v19 = vld [vmem:[%s17513_s28 + $0xc60] ss:$12 sps:$4 sm:$0xff]  }
 0x3f1   :  { %7036 = vmatprep.subr.bf16.mxu1 %v13006_v54  ;;  %v13030_v54 = vld [vmem:[%s17513_s28 + $0xc7c] ss:$12 sps:$4 sm:$0xff]  }
 0x3f2   :  { %v11560_v14 = vpop.f32.mrb[100].mxu0 }
 0x3f3   :  { %v11561_v7 = vpop.f32.mrb[101].mxu0 }
 0x3f4   :  { %7037 = vmatpush1.bf16.msra.mxu1 %v13004_v50  ;;  %v11562_v18 = vadd.f32 %v11561_v7, %v11560_v14  ;;  %v11563_v3 = vpop.f32.mrb[102].mxu0  ;;  %v13028_v50 = vld [vmem:[%s17513_s28 + $0xc78] ss:$12 sps:$4 sm:$0xff]  }
 0x3f5   :  { %v11564_v11 = vpop.f32.mrb[103].mxu0  ;;  %7038 = vmatprep.subr.bf16.mxu1 %v13009_v45  ;;  %v13033_v45 = vld [vmem:[%s17513_s28 + $0xc94] ss:$12 sps:$4 sm:$0xff]  }
 0x3f6   :  { %v11565_v53 = vadd.f32 %v11564_v11, %v11563_v3  ;;  %v13031_v11 = vld [vmem:[%s17513_s28 + $0xc90] ss:$12 sps:$4 sm:$0xff]  }
 0x3f8   :  { %7039 = vmatpush1.bf16.msra.mxu1 %v13007_v12 }
 0x3f9   :  { %7040 = vmatprep.subr.bf16.mxu1 %v13012_v44 }
 0x3fa   :  { %v11566_v10 = vpop.f32.mrb[104].mxu0 }
 0x3fb   :  { %v11567_v59 = vpop.f32.mrb[105].mxu0 }
 0x3fc   :  { %7041 = vmatpush1.bf16.msra.mxu1 %v13010_v55  ;;  %v11568_v13 = vadd.f32 %v11567_v59, %v11566_v10  ;;  %v11569_v15 = vpop.f32.mrb[106].mxu0  ;;  %v13036_v55 = vld [vmem:[%s17513_s28 + $0xcac] ss:$12 sps:$4 sm:$0xff]  }
 0x3fd   :  { %v11570_v62 = vpop.f32.mrb[107].mxu0  ;;  %7042 = vmatprep.subr.bf16.mxu1 %v13015_v61 }
 0x3fe   :  { %v11571_v9 = vadd.f32 %v11570_v62, %v11569_v15  ;;  %v13034_v15 = vld [vmem:[%s17513_s28 + $0xca8] ss:$12 sps:$4 sm:$0xff]  }
 0x400   :  { %7043 = vmatpush1.bf16.msra.mxu1 %v13013_v6 }
 0x401   :  { %7044 = vmatprep.subr.bf16.mxu1 %v13018_v1 }
 0x404   :  { %7045 = vmatpush1.bf16.msra.mxu1 %v13016_v60 }
 0x405   :  { %7046 = vmatprep.subr.bf16.mxu1 %v13021_v8 }
 0x408   :  { %7047 = vmatpush1.bf16.msra.mxu1 %v13019_v21 }
 0x409   :  { %7048 = vmatprep.subr.bf16.mxu1 %v13024_v56 }
 0x40c   :  { %7049 = vmatpush1.bf16.msra.mxu1 %v13022_v0 }
 0x40d   :  { %7050 = vmatprep.subr.bf16.mxu1 %v13027_v63 }
 0x410   :  { %7051 = vmatpush1.bf16.msra.mxu1 %v13025_v19 }
 0x411   :  { %7052 = vmatprep.subr.bf16.mxu1 %v13030_v54 }
 0x412   :  { %v11588_v14 = vpop.f32.mrb[108].mxu0 }
 0x413   :  { %v11589_v7 = vpop.f32.mrb[109].mxu0 }
 0x414   :  { %7053 = vmatpush1.bf16.msra.mxu1 %v13028_v50  ;;  %v11590_v3 = vadd.f32 %v11589_v7, %v11588_v14  ;;  %v11591_v12 = vpop.f32.mrb[110].mxu0  ;;  %v7385_v7 = vld [vmem:[%s17515_s1 + $0xb8] sm:$0xff] }
 0x415   :  { %v11592_v44 = vpop.f32.mrb[111].mxu0  ;;  %7075 = vmatprep.subr.bf16.mxu1 %v13033_v45 }
 0x416   :  { %v7212_v61 = vadd.f32 %v11590_v3, %v11562_v18  ;;  %v11593_v10 = vadd.f32 %v11592_v44, %v11591_v12  ;;  %v7368_v12 = vld [vmem:[%s17515_s1 + $0x30] sm:$0xff] }
 0x417   :  { %7055 = vmatmul.mubr.bf16.vlgmr.msra.gmra.mrb[32].mxu1 %v15382_v17 }
 0x418   :  { %v7215_v59 = vadd.f32 %v11593_v10, %v11565_v53  ;;  %7064 = vmatprep.mubr.bf16.mxu1 %v15411_v2  ;;  %7076 = vmatpush1.bf16.msra.mxu1 %v13031_v11  ;;  %v12322_v6 = vadd.f32 %v16310_v49, %v7212_v61  ;;  %v7369_v11 = vld [vmem:[%s17515_s1 + $0x38] sm:$0xff]  ;;  %v7387_v61 = vld [vmem:[%s17515_s1 + $0xc8] sm:$0xff] }
 0x419   :  { %7077 = vmatprep.subr.bf16.mxu1 %v13036_v55  ;;  %v16500_v44 = vpack.c.bf16 %v7369_v11, %v7368_v12  ;;  %v7386_v55 = vld [vmem:[%s17515_s1 + $0xc0] sm:$0xff] }
 0x41a   :  { %v11594_v62 = vpop.f32.mrb[112].mxu0  ;;  %v12332_v1 = vadd.f32 %v16316_v16, %v7215_v59  ;;  %v16510_v10 = vpack.c.bf16 %v7387_v61, %v7386_v55  ;;  %v7370_v59 = vld [vmem:[%s17515_s1 + $0x40] sm:$0xff] }
 0x41b   :  { %v11595_v60 = vpop.f32.mrb[113].mxu0 }
 0x41c   :  { %v11596_v8 = vadd.f32 %v11595_v60, %v11594_v62  ;;  %v11597_v18 = vpop.f32.mrb[114].mxu0  ;;  %7078 = vmatpush1.bf16.msra.mxu1 %v13034_v15  ;;  %v7371_v15 = vld [vmem:[%s17515_s1 + $0x48] sm:$0xff]  ;;  %v7388_v62 = vld [vmem:[%s17515_s1 + $0xd0] sm:$0xff] }
 0x41d   :  { %v11598_v21 = vpop.f32.mrb[115].mxu0 }
 0x41e   :  { %v7220_v17 = vadd.f32 %v11596_v8, %v11568_v13  ;;  %v11599_v53 = vadd.f32 %v11598_v21, %v11597_v18  ;;  %v7372_v8 = vld [vmem:[%s17515_s1 + $0x50] sm:$0xff]  ;;  %v7373_v18 = vld [vmem:[%s17515_s1 + $0x58] sm:$0xff] }
 0x41f   :  { %7065 = vmatmul.mubr.bf16.gmra.mrb[36].mxu1 %v15403_v48  ;;  %v7382_v48 = vld [vmem:[%s17515_s1 + $0xa0] sm:$0xff]  ;;  %v16536_v21 = vpack.c.bf16 %v7373_v18, %v7372_v8 }
 0x420   :  { %v7223_v2 = vadd.f32 %v11599_v53, %v11571_v9  ;;  %v12317_v56 = vadd.f32 %v16330_v51, %v7220_v17  ;;  %7107 = vmatprep.mubr.bf16.mxu1 %v17514_v20  ;;  %v7383_v51 = vld [vmem:[%s17515_s1 + $0xa8] sm:$0xff]  ;;  %v7366_v9 = vld [vmem:[%s17515_s1 + $0x20] sm:$0xff] }
 0x421   :  { %v7390_v17 = vld [vmem:[%s17515_s1 + $0xe0] sm:$0xff]  ;;  %v7391_v53 = vld [vmem:[%s17515_s1 + $0xe8] sm:$0xff] }
 0x422   :  { %v11861_v0 = vpop.f32.mrb[64].mxu0  ;;  %v12327_v49 = vadd.f32 %v16336_v5, %v7223_v2  ;;  %v16474_v5 = vpack.c.bf16 %v7383_v51, %v7382_v48  ;;  %v16546_v2 = vpack.c.bf16 %v7391_v53, %v7390_v17  ;;  %v7376_v48 = vld [vmem:[%s17515_s1 + $0x70] sm:$0xff]  ;;  %v7377_v51 = vld [vmem:[%s17515_s1 + $0x78] sm:$0xff] }
 0x423   :  { %v16455_v63 = vadd.f32 %v12317_v56, %v11861_v0  ;;  %v7260_v16 = vpop.f32.mrb[65].mxu0  ;;  %v7374_v56 = vld [vmem:[%s17515_s1 + $0x60] sm:$0xff]  ;;  %v7375_v0 = vld [vmem:[%s17515_s1 + $0x68] sm:$0xff] }
 0x424   :  { %v16457_v19 = vadd.f32 %v12322_v6, %v7260_v16  ;;  %v11862_v54 = vpop.f32.mrb[66].mxu0  ;;  %11995 = vmatprep.subr.bf16.mxu0 %v16474_v5  ;;  %v16518_v6 = vpack.c.bf16 %v7371_v15, %v7370_v59  ;;  %v7392_v16 = vld [vmem:[%s17515_s1 + $0xf0] sm:$0xff] }
 0x425   :  { %v16459_v50 = vadd.f32 %v12327_v49, %v11862_v54  ;;  %v7263_v13 = vpop.f32.mrb[67].mxu0  ;;  %v16554_v49 = vpack.c.bf16 %v7375_v0, %v7374_v56  ;;  %v7393_v54 = vld [vmem:[%s17515_s1 + $0xf8] sm:$0xff] }
 0x426   :  { %v16461_v45 = vadd.f32 %v12332_v1, %v7263_v13  ;;  %v7389_v1 = vld [vmem:[%s17515_s1 + $0xd8] sm:$0xff]  ;;  %v16564_v13 = vpack.c.bf16 %v7393_v54, %v7392_v16 }
 0x427   :  { %11304 = vmatmul.mubr.msk.bf16.vlgmr.msra.gmra.mrb[32].mxu1 %vm4088_vm2, %v15437_v58  ;;  %v7367_v58 = vld [vmem:[%s17515_s1 + $0x28] sm:$0xff]  ;;  %v16528_v60 = vpack.c.bf16 %v7389_v1, %v7388_v62 }
 0x428   :  { %7117 = vmatprep.mubr.bf16.mxu1 %v17514_v20  ;;  %v16482_v14 = vpack.c.bf16 %v7367_v58, %v7366_v9  ;;  %v16572_v9 = vpack.c.bf16 %v7377_v51, %v7376_v48  ;;  %v17491_v58 = vmov 0.0|0.0  }
 0x42a   :  { %11997 = vmatpush3.bf16.msra.mxu0 %v16482_v14 }
 0x42f   :  { %11305 = vmatmul.mubr.msk.bf16.gmra.mrb[36].mxu1 %vm4088_vm2, %v15432_v46  ;;  %v7384_v46 = vld [vmem:[%s17515_s1 + $0xb0] sm:$0xff] }
 0x430   :  { %v16492_v3 = vpack.c.bf16 %v7385_v7, %v7384_v46 }
 0x432   :  { %11999 = vmatprep.subr.bf16.mxu0 %v16492_v3 }
 0x433   :  { %12001 = vmatpush3.bf16.msra.mxu0 %v16500_v44 }
 0x434   :  { %12003 = vmatprep.subr.bf16.mxu0 %v16510_v10 }
 0x437   :  { %12005 = vmatpush3.bf16.msra.mxu0 %v16518_v6 }
 0x438   :  { %12007 = vmatprep.subr.bf16.mxu0 %v16528_v60 }
 0x43b   :  { %12009 = vmatpush3.bf16.msra.mxu0 %v16536_v21 }
 0x43c   :  { %12011 = vmatprep.subr.bf16.mxu0 %v16546_v2 }
 0x43f   :  { %12013 = vmatpush3.bf16.msra.mxu0 %v16554_v49 }
 0x440   :  { %12015 = vmatprep.subr.bf16.mxu0 %v16564_v13 }
 0x443   :  { %12017 = vmatpush3.bf16.msra.mxu0 %v16572_v9 }
 0x444   :  { %12018 = vmatprep.subr.bf16.mxu0 %v17491_v58 }
 0x4fa   :  { %v16577_v46 = vpop.f32.mrb[32].mxu1 }
 0x4fb   :  { %v16579_v7 = vpop.f32.mrb[33].mxu1  ;;  %v7319_v11 = vmul.f32 %v16577_v46, %v16577_v46 }
 0x4fc   :  { %v16581_v12 = vpop.f32.mrb[34].mxu1  ;;  %v7320_v15 = vmul.f32 %v16579_v7, %v16579_v7 }
 0x4fd   :  { %v7287_v55 = vadd.f32 %v16581_v12, %v16577_v46  ;;  %v7322_v61 = vmul.f32 %v16581_v12, %v16581_v12  ;;  %v16589_v59 = vpop.f32.mrb[35].mxu1 }
 0x4fe   :  { %v7296_v62 = vadd.f32 %v16589_v59, %v16579_v7  ;;  %v7323_v1 = vmul.f32 %v16589_v59, %v16589_v59 }
 0x4ff   :  { %v7331_v8 = vadd.f32 %v7322_v61, %v7319_v11 }
 0x500   :  { %v7340_v18 = vadd.f32 %v7323_v1, %v7320_v15 }
 0x502   :  { %v16597_v17 = vpop.f32.mrb[36].mxu1 }
 0x503   :  { %v7288_v53 = vadd.f32 %v7287_v55, %v16597_v17  ;;  %v7325_v56 = vmul.f32 %v16597_v17, %v16597_v17  ;;  %v16602_v0 = vpop.f32.mrb[37].mxu1 }
 0x504   :  { %v7297_v16 = vadd.f32 %v7296_v62, %v16602_v0  ;;  %v7326_v54 = vmul.f32 %v16602_v0, %v16602_v0  ;;  %v16607_v48 = vpop.f32.mrb[38].mxu1 }
 0x505   :  { %v7332_v51 = vadd.f32 %v7331_v8, %v7325_v56  ;;  %v7289_v11 = vadd.f32 %v7288_v53, %v16607_v48  ;;  %v7328_v61 = vmul.f32 %v16607_v48, %v16607_v48  ;;  %v16612_v15 = vpop.f32.mrb[39].mxu1  ;;  %v7307_v56 = vsel %vm7305_vm3, %v16461_v45, 0.0 }
 0x506   :  { %v7341_v55 = vadd.f32 %v7340_v18, %v7326_v54  ;;  %v7298_v1 = vadd.f32 %v7297_v16, %v16612_v15  ;;  %v7329_v58 = vmul.f32 %v16612_v15, %v16612_v15  ;;  %v7306_v18 = vsel %vm7305_vm3, %v16457_v19, 0.0 }
 0x507   :  { %v7290_v62 = vrot.slane %v7289_v11, 4  ;;  %v16617_v43 = vadd.f32 %v7332_v51, %v7328_v61  ;;  %v7308_v54 = vadd.f32 %v7307_v56, %v7306_v18  ;;  %v7394_v51 = vld [vmem:[%s17515_s1 + $0x100] sm:$0xff]  ;;  %v17493_v56 = vmov 0.0  }
 0x508   :  { %v7299_v42 = vrot.slane %v7298_v1, 4  ;;  %v7342_v41 = vadd.f32 %v7341_v55, %v7329_v58  ;;  %v7398_v18 = vld [vmem:[%s17515_s1 + $0x120] sm:$0xff] }
 0x509   :  { %v7291_v40 = vadd.f32 %v7290_v62, %v7289_v11  ;;  %v7309_v11 = vsel %vm7305_vm3, %v16455_v63, 0.0  ;;  %v7397_v62 = vld [vmem:[%s17515_s1 + $0x118] sm:$0xff] }
 0x50a   :  { %v7300_v8 = vadd.f32 %v7299_v42, %v7298_v1  ;;  %v7395_v42 = vld [vmem:[%s17515_s1 + $0x108] sm:$0xff]  ;;  %v7310_v55 = vadd.f32 %v7309_v11, %v7308_v54  ;;  %v7343_v11 = vrot.slane %v7342_v41, 4 }
 0x50b   :  { %v7292_v53 = vrot.slane %v7291_v40, 2 }
 0x50c   :  { %v7301_v39 = vrot.slane %v7300_v8, 2 }
 0x50d   :  { %v7293_v38 = vadd.f32 %v7292_v53, %v7291_v40  ;;  %v16631_v40 = vpack.c.bf16 %v7395_v42, %v7394_v51  ;;  %v7400_v42 = vld [vmem:[%s17515_s1 + $0x130] sm:$0xff] }
 0x50e   :  { %v7302_v16 = vadd.f32 %v7301_v39, %v7300_v8  ;;  %v7396_v39 = vld [vmem:[%s17515_s1 + $0x110] sm:$0xff]  ;;  %v7311_v8 = vsel %vm7305_vm3, %v16459_v50, 0.0 }
 0x50f   :  { %v7294_v37 = vrot.slane %v7293_v38, 1  ;;  %v16642_v53 = vpack.c.bf16 %v7397_v62, %v7396_v39  ;;  %v7403_v39 = vld [vmem:[%s17515_s1 + $0x148] sm:$0xff]  ;;  %v7344_v62 = vadd.f32 %v7343_v11, %v7342_v41  ;;  %v7406_v41 = vld [vmem:[%s17515_s1 + $0x160] sm:$0xff] }
 0x510   :  { %v7303_v58 = vrot.slane %v7302_v16, 1 }
 0x511   :  { %v7295_v1 = vadd.f32 %v7294_v37, %v7293_v38  ;;  %v7312_v37 = vadd.f32 %v7311_v8, %v7310_v55  ;;  %v17516_v38 = vmov 0.0|0.0  }
 0x512   :  { %v7304_v61 = vadd.f32 %v7303_v58, %v7302_v16  ;;  %v7399_v16 = vld [vmem:[%s17515_s1 + $0x128] sm:$0xff]  ;;  %v7401_v58 = vld [vmem:[%s17515_s1 + $0x138] sm:$0xff] }
 0x513   :  { %v16654_v54 = vpack.c.bf16 %v7399_v16, %v7398_v18  ;;  %v7313_v51 = vrot.slane %v7312_v37, 4  ;;  %v7405_v16 = vld [vmem:[%s17515_s1 + $0x158] sm:$0xff] }
 0x514   :  { %7475 = vmatprep.mubr.f32.mxu0 %v7304_v61  ;;  %v16664_v61 = vpack.c.bf16 %v7401_v58, %v7400_v42  ;;  %v7407_v58 = vld [vmem:[%s17515_s1 + $0x168] sm:$0xff] }
 0x515   :  { %7476 = vmatmul.mubr.f32.vlgmr.msra.gmra.mrb[116].mxu0 %v7295_v1  ;;  %v7314_v55 = vadd.f32 %v7313_v51, %v7312_v37  ;;  %v7402_v1 = vld [vmem:[%s17515_s1 + $0x140] sm:$0xff]  ;;  %v7404_v37 = vld [vmem:[%s17515_s1 + $0x150] sm:$0xff]  ;;  %v7345_v51 = vrot.slane %v7344_v62, 2 }
 0x516   :  { %12020 = vmatpush3.bf16.msra.mxu0 %v16631_v40  ;;  %11891 = vmatprep.mubr.msk.f32.mxu0 %vm13081_vm4, %v17493_v56  ;;  %v16674_v8 = vpack.c.bf16 %v7403_v39, %v7402_v1  ;;  %v16684_v42 = vpack.c.bf16 %v7405_v16, %v7404_v37  ;;  %v12037_v39 = vpack.c.bf16 %v7407_v58, %v7406_v41 }
 0x517   :  { %12021 = vmatprep.subr.bf16.mxu0 %v17516_v38  ;;  %v7315_v18 = vrot.slane %v7314_v55, 2  ;;  %v7346_v1 = vadd.f32 %v7345_v51, %v7344_v62 }
 0x519   :  { %v7316_v11 = vadd.f32 %v7315_v18, %v7314_v55  ;;  %v7347_v37 = vrot.slane %v7346_v1, 1  ;;  %v7334_v55 = vrot.slane %v16617_v43, 4  ;;  %v7706_v18 = vld [vmem:[%s17518_s4] sm:$0xff] }
 0x51a   :  { %12023 = vmatpush3.bf16.msra.mxu0 %v16642_v53 }
 0x51b   :  { %12024 = vmatprep.subr.bf16.mxu0 %v17516_v38  ;;  %v7317_v56 = vrot.slane %v7316_v11, 1  ;;  %v7348_v36 = vadd.f32 %v7347_v37, %v7346_v1 }
 0x51d   :  { %v7318_v16 = vadd.f32 %v7317_v56, %v7316_v11 }
 0x51e   :  { %12026 = vmatpush3.bf16.msra.mxu0 %v16654_v54 }
 0x51f   :  { %12027 = vmatprep.subr.bf16.mxu0 %v17516_v38 }
 0x522   :  { %12029 = vmatpush3.bf16.msra.mxu0 %v16664_v61 }
 0x523   :  { %12030 = vmatprep.subr.bf16.mxu0 %v17516_v38 }
 0x526   :  { %12032 = vmatpush3.bf16.msra.mxu0 %v16674_v8 }
 0x527   :  { %12033 = vmatprep.subr.bf16.mxu0 %v17516_v38 }
 0x52a   :  { %12035 = vmatpush3.bf16.msra.mxu0 %v16684_v42 }
 0x52b   :  { %12036 = vmatprep.subr.bf16.mxu0 %v17516_v38 }
 0x52e   :  { %12038 = vmatpush3.bf16.msra.mxu0 %v12037_v39 }
 0x52f   :  { %12040 = vmatprep.subr.bf16.mxu0 %v16251_v52  ;;  %v7335_v52 = vadd.f32 %v7334_v55, %v16617_v43 }
 0x531   :  { %11892 = vmatmul.mubr.msk.f32.vlgmr.msra.gmra.mrb[118].mxu0 %vm7305_vm3, %v7318_v16 }
 0x532   :  { %12042 = vmatpush3.bf16.msra.mxu0 %v16265_v47  ;;  %7619 = vmatprep.mubr.f32.mxu0 %v7348_v36  ;;  %v7336_v36 = vrot.slane %v7335_v52, 2  ;;  %v7324_v47 = vmul.f32 %v16461_v45, %v16461_v45 }
 0x533   :  { %12044 = vmatprep.subr.bf16.mxu0 %v16267_v4  ;;  %v7321_v4 = vmul.f32 %v16457_v19, %v16457_v19 }
 0x534   :  { %v7350_v43 = vsel %vm7305_vm3, %v7324_v47, 0.0 }
 0x536   :  { %12046 = vmatpush3.bf16.msra.mxu0 %v16277_v57  ;;  %v7337_v57 = vadd.f32 %v7336_v36, %v7335_v52 }
 0x537   :  { %12048 = vmatprep.subr.bf16.mxu0 %v16474_v5  ;;  %v7327_v5 = vmul.f32 %v16455_v63, %v16455_v63 }
 0x53a   :  { %12050 = vmatpush3.bf16.msra.mxu0 %v16482_v14  ;;  %v7349_v14 = vsel %vm7305_vm3, %v7321_v4, 0.0 }
 0x53b   :  { %12052 = vmatprep.subr.bf16.mxu0 %v16492_v3  ;;  %v7351_v3 = vadd.f32 %v7350_v43, %v7349_v14 }
 0x53e   :  { %12054 = vmatpush3.bf16.msra.mxu0 %v16500_v44  ;;  %v7338_v44 = vrot.slane %v7337_v57, 1 }
 0x53f   :  { %12056 = vmatprep.subr.bf16.mxu0 %v16510_v10  ;;  %v7352_v10 = vsel %vm7305_vm3, %v7327_v5, 0.0 }
 0x542   :  { %12058 = vmatpush3.bf16.msra.mxu0 %v16518_v6  ;;  %v7330_v6 = vmul.f32 %v16459_v50, %v16459_v50 }
 0x543   :  { %12060 = vmatprep.subr.bf16.mxu0 %v16528_v60  ;;  %v7353_v60 = vadd.f32 %v7352_v10, %v7351_v3 }
 0x546   :  { %12062 = vmatpush3.bf16.msra.mxu0 %v16536_v21  ;;  %v7339_v21 = vadd.f32 %v7338_v44, %v7337_v57 }
 0x547   :  { %12064 = vmatprep.subr.bf16.mxu0 %v16546_v2  ;;  %v7354_v2 = vsel %vm7305_vm3, %v7330_v6, 0.0  ;;  %v7708_v6 = vld [vmem:[%s17518_s4 + $0x10] sm:$0xff] }
 0x54a   :  { %12066 = vmatpush3.bf16.msra.mxu0 %v16554_v49  ;;  %v17517_v49 = vmov 0.0  }
 0x54b   :  { %12068 = vmatprep.subr.bf16.mxu0 %v16564_v13  ;;  %v7355_v13 = vadd.f32 %v7354_v2, %v7353_v60  ;;  %v7711_v60 = vld [vmem:[%s17518_s4 + $0x28] sm:$0xff] }
 0x54d   :  { %v7356_v56 = vrot.slane %v7355_v13, 4 }
 0x54e   :  { %12070 = vmatpush3.bf16.msra.mxu0 %v16572_v9 }
 0x54f   :  { %12071 = vmatprep.subr.bf16.mxu0 %v17516_v38  ;;  %v7357_v9 = vadd.f32 %v7356_v56, %v7355_v13  ;;  %v12097_v13 = vpack.c.bf16 %v7711_v60, %v7708_v6 }
 0x551   :  { %7620 = vmatmul.mubr.f32.vlgmr.msra.gmra.mrb[120].mxu0 %v7339_v21  ;;  %v7699_v21 = vld [vmem:[%s17519_s18] sm:$0x1] }
 0x552   :  { %12073 = vmatpush3.bf16.msra.mxu0 %v16631_v40  ;;  %11922 = vmatprep.mubr.msk.f32.mxu0 %vm13081_vm4, %v17517_v49  ;;  %v7358_v40 = vrot.slane %v7357_v9, 2 }
 0x553   :  { %12074 = vmatprep.subr.bf16.mxu0 %v17516_v38 }
 0x554   :  { %v7359_v62 = vadd.f32 %v7358_v40, %v7357_v9  ;;  %v7703_v40 = vld [vmem:[%s17519_s18 + $0x1] sm:$0x1] }
 0x556   :  { %12076 = vmatpush3.bf16.msra.mxu0 %v16642_v53  ;;  %v7360_v53 = vrot.slane %v7359_v62, 1 }
 0x557   :  { %12077 = vmatprep.subr.bf16.mxu0 %v17516_v38 }
 0x55a   :  { %12079 = vmatpush3.bf16.msra.mxu0 %v16654_v54  ;;  %v7361_v54 = vadd.f32 %v7360_v53, %v7359_v62  ;;  %v8001_v53 = vlaneseq }
 0x55b   :  { %12080 = vmatprep.subr.bf16.mxu0 %v17516_v38 }
 0x55e   :  { %12082 = vmatpush3.bf16.msra.mxu0 %v16664_v61  ;;  %v7707_v61 = vld [vmem:[%s17518_s4 + $0x8] sm:$0xff] }
 0x55f   :  { %12083 = vmatprep.subr.bf16.mxu0 %v17516_v38 }
 0x562   :  { %12085 = vmatpush3.bf16.msra.mxu0 %v16674_v8  ;;  %v7710_v8 = vld [vmem:[%s17518_s4 + $0x20] sm:$0xff] }
 0x563   :  { %12086 = vmatprep.subr.bf16.mxu0 %v17516_v38  ;;  %v12092_v51 = vpack.c.bf16 %v7710_v8, %v7707_v61 }
 0x566   :  { %12088 = vmatpush3.bf16.msra.mxu0 %v16684_v42  ;;  %v7709_v42 = vld [vmem:[%s17518_s4 + $0x18] sm:$0xff] }
 0x567   :  { %12089 = vmatprep.subr.bf16.mxu0 %v17516_v38  ;;  %v12094_v41 = vpack.c.bf16 %v7709_v42, %v7706_v18 }
 0x56a   :  { %12091 = vmatpush3.bf16.msra.mxu0 %v12037_v39 }
 0x56b   :  { %12093 = vmatprep.subr.bf16.mxu0 %v12092_v51 }
 0x56d   :  { %11923 = vmatmul.mubr.msk.f32.vlgmr.msra.gmra.mrb[122].mxu0 %vm7305_vm3, %v7361_v54  ;;  %v8002_v54 = vshrl.u32 %v8001_v53, 7 }
 0x56e   :  { %7780 = vmatprep.mubr.f32.mxu0 %v17517_v49  ;;  %12095 = vmatpush1.bf16.msra.mxu0 %v12094_v41 }
 0x56f   :  { %12096 = vmatprep.subr.bf16.mxu0 %v17516_v38  ;;  %v16779_v61 = vsub.s32 0, %v8002_v54 }
 0x5e8   :  { %v11636_v58 = vpop.f32.mrb[116].mxu0 }
 0x5e9   :  { %v11637_v11 = vpop.f32.mrb[117].mxu0 }
 0x5ea   :  { %v11638_v1 = vadd.f32 %v11637_v11, %v11636_v58 }
 0x604   :  { %v7547_v39 = vpop.f32.mrb[118].mxu0 }
 0x605   :  { %v7548_v37 = vadd.f32 %v11638_v1, %v7547_v39  ;;  %v11893_v16 = vpop.f32.mrb[119].mxu0 }
 0x607   :  { %v7551_v47 = vmul.f32 0.0015527951, %v7548_v37 }
 0x609   :  { %v7696_v5 = vmul.f32 %v7551_v47, %v7551_v47 }
 0x624   :  { %v11686_v55 = vpop.f32.mrb[120].mxu0 }
 0x625   :  { %v11687_v52 = vpop.f32.mrb[121].mxu0 }
 0x626   :  { %v11688_v36 = vadd.f32 %v11687_v52, %v11686_v55 }
 0x640   :  { %v7691_v4 = vpop.f32.mrb[122].mxu0 }
 0x641   :  { %v7692_v57 = vadd.f32 %v11688_v36, %v7691_v4  ;;  %v11924_v43 = vpop.f32.mrb[123].mxu0 }
 0x643   :  { %v7695_v14 = vmul.f32 0.0015527951, %v7692_v57 }
 0x645   :  { %v7697_v3 = vsub.f32 %v7695_v14, %v7696_v5 }
 0x647   :  { %v7698_v44 = vmax.f32 %v7697_v3, 0.0 }
 0x649   :  { %v7700_v10 = vadd.f32 1e-05, %v7698_v44 }
 0x64b   :  { %13041 = vrsqrt.f32 %v7700_v10 }
 0x655   :  { %v13042_v2 = vpop.eup %13041 }
 0x656   :  { %v7702_v56 = vmul.f32 %v13042_v2, %v7699_v21 }
 0x658   :  { %11310 = vmatmul.mubr.msk.f32.vlgmr.msra.gmra.mrb[124].mxu0 %vm7712_vm5, %v7702_v56  ;;  %v7704_v9 = vmul.f32 %v7702_v56, %v7551_v47 }
 0x659   :  { %12098 = vmatpush3.bf16.msra.mxu0 %v12097_v13  ;;  %11929 = vmatprep.mubr.msk.f32.mxu0 %vm13081_vm4, %v17517_v49 }
 0x65a   :  { %12100 = vmatprep.subr.bf16.mxu0 %v12092_v51  ;;  %v7705_v62 = vsub.f32 %v7703_v40, %v7704_v9 }
 0x65c   :  { %11930 = vmatmul.mubr.msk.f32.vlgmr.msra.gmra.mrb[126].mxu0 %vm7712_vm5, %v7702_v56 }
 0x65d   :  { %12102 = vmatpush1.bf16.msra.mxu0 %v12094_v41  ;;  %7924 = vmatprep.mubr.f32.mxu0 %v17517_v49 }
 0x65e   :  { %12103 = vmatprep.subr.bf16.mxu0 %v17516_v38 }
 0x660   :  { %11312 = vmatmul.mubr.msk.f32.vlgmr.msra.gmra.mrb[128].mxu0 %vm7712_vm5, %v7705_v62 }
 0x661   :  { %12105 = vmatpush3.bf16.msra.mxu0 %v12097_v13  ;;  %11936 = vmatprep.mubr.msk.f32.mxu0 %vm13081_vm4, %v17517_v49 }
 0x664   :  { %11937 = vmatmul.mubr.msk.f32.vlgmr.msra.gmra.mrb[130].mxu0 %vm7712_vm5, %v7705_v62 }
 0x665   :  { %8139 = vmatprep.mubr.bf16.mxu0 %v17514_v20 }
 0x72b   :  { %v7782_v8 = vpop.f32.mrb[124].mxu0 }
 0x72c   :  { %v8004_v18 = vrot.slane %v7782_v8, %v16779_v61  ;;  %v7784_v51 = vpop.f32.mrb[125].mxu0 }
 0x72d   :  { %v8008_v42 = vrot.slane %v7784_v51, %v16779_v61 }
 0x72e   :  { %v8013_v41 = vmul.f32 %v8004_v18, %v16577_v46  ;;  %v8016_v58 = vmul.f32 %v8004_v18, %v16581_v12  ;;  %v8019_v11 = vmul.f32 %v8004_v18, %v16597_v17  ;;  %v8022_v1 = vmul.f32 %v8004_v18, %v16607_v48 }
 0x72f   :  { %v7853_v39 = vpop.f32.mrb[126].mxu0  ;;  %v8014_v37 = vmul.f32 %v8008_v42, %v16579_v7  ;;  %v8017_v16 = vmul.f32 %v8008_v42, %v16589_v59  ;;  %v8020_v55 = vmul.f32 %v8008_v42, %v16602_v0  ;;  %v8023_v52 = vmul.f32 %v8008_v42, %v16612_v15 }
 0x730   :  { %v11931_v36 = vpop.f32.mrb[127].mxu0  ;;  %v8012_v47 = vrot.slane %v7853_v39, %v16779_v61 }
 0x731   :  { %v13040_v36 = vld [vmem:[%s17467_s6 + $0x18] sm:$0xff]  }
 0x732   :  { %v8015_v48 = vmul.f32 %v16457_v19, %v8012_v47  ;;  %v8018_v57 = vmul.f32 %v16461_v45, %v8012_v47  ;;  %v8021_v7 = vmul.f32 %v16455_v63, %v8012_v47  ;;  %v8024_v53 = vmul.f32 %v16459_v50, %v8012_v47  ;;  %v13038_v50 = vld [vmem:[%s17467_s6 + $0x8] sm:$0xff]  }
 0x733   :  { %v7926_v4 = vpop.f32.mrb[128].mxu0 }
 0x734   :  { %v8028_v46 = vrot.slane %v7926_v4, %v16779_v61  ;;  %v7928_v12 = vpop.f32.mrb[129].mxu0 }
 0x735   :  { %v8032_v17 = vrot.slane %v7928_v12, %v16779_v61 }
 0x736   :  { %v8037_v59 = vadd.f32 %v8028_v46, %v8013_v41  ;;  %v8040_v43 = vadd.f32 %v8028_v46, %v8016_v58  ;;  %v8043_v0 = vadd.f32 %v8028_v46, %v8019_v11  ;;  %v8046_v5 = vadd.f32 %v8028_v46, %v8022_v1 }
 0x737   :  { %v7997_v15 = vpop.f32.mrb[130].mxu0  ;;  %v8038_v14 = vadd.f32 %v8032_v17, %v8014_v37  ;;  %v8041_v3 = vadd.f32 %v8032_v17, %v8017_v16  ;;  %v8044_v44 = vadd.f32 %v8032_v17, %v8020_v55  ;;  %v8047_v10 = vadd.f32 %v8032_v17, %v8023_v52  ;;  %v13037_v55 = vld [vmem:[%s17467_s6] sm:$0xff]   ;;  %v13039_v52 = vld [vmem:[%s17467_s6 + $0x10] sm:$0xff]  }
 0x738   :  { %v8049_v6 = vmax.f32 %v8037_v59, 0.0  ;;  %v8052_v60 = vmax.f32 %v8040_v43, 0.0  ;;  %v8055_v21 = vmax.f32 %v8043_v0, 0.0  ;;  %v8058_v2 = vmax.f32 %v8046_v5, 0.0  ;;  %v11938_v13 = vpop.f32.mrb[131].mxu0 }
 0x739   :  { %v8036_v19 = vrot.slane %v7997_v15, %v16779_v61  ;;  %v8050_v56 = vmax.f32 %v8038_v14, 0.0  ;;  %v8053_v45 = vmax.f32 %v8041_v3, 0.0  ;;  %v8056_v9 = vmax.f32 %v8044_v44, 0.0 }
 0x73a   :  { %v8069_v63 = vpack.c.bf16 %v8052_v60, %v8049_v6  ;;  %v8059_v40 = vmax.f32 %v8047_v10, 0.0  ;;  %v8072_v62 = vpack.c.bf16 %v8058_v2, %v8055_v21 }
 0x73b   :  { %v8070_v54 = vpack.c.bf16 %v8053_v45, %v8050_v56  ;;  %v8039_v8 = vadd.f32 %v8036_v19, %v8015_v48  ;;  %v8042_v18 = vadd.f32 %v8036_v19, %v8018_v57  ;;  %v8045_v51 = vadd.f32 %v8036_v19, %v8021_v7 }
 0x73c   :  { %v8073_v42 = vpack.c.bf16 %v8059_v40, %v8056_v9  ;;  %v8048_v41 = vadd.f32 %v8036_v19, %v8024_v53 }
 0x73d   :  { %8107 = vmatprep.subr.bf16.mxu0 %v8070_v54  ;;  %v8051_v58 = vmax.f32 %v8039_v8, 0.0  ;;  %v8054_v11 = vmax.f32 %v8042_v18, 0.0  ;;  %v8057_v1 = vmax.f32 %v8045_v51, 0.0 }
 0x73e   :  { %8108 = vmatpush1.bf16.msra.mxu0 %v8069_v63  ;;  %v8060_v39 = vmax.f32 %v8048_v41, 0.0 }
 0x73f   :  { %8109 = vmatprep.subr.bf16.mxu0 %v8073_v42  ;;  %v8071_v37 = vpack.c.bf16 %v8054_v11, %v8051_v58 }
 0x740   :  { %v8074_v16 = vpack.c.bf16 %v8060_v39, %v8057_v1 }
 0x742   :  { %8110 = vmatpush1.bf16.msra.mxu0 %v8072_v62 }
 0x743   :  { %11939 = vmatprep.subr.bf16.mxu0 %v8071_v37 }
 0x745   :  { %11318 = vmatmul.mubr.msk.bf16.vlgmr.msra.gmra.mrb[132].mxu0 %vm4088_vm2, %v13037_v55 }
 0x746   :  { %11940 = vmatpush3.bf16.msra.mxu0 %v8071_v37  ;;  %8149 = vmatprep.mubr.bf16.mxu0 %v17514_v20 }
 0x747   :  { %11941 = vmatprep.subr.bf16.mxu0 %v8074_v16 }
 0x74a   :  { %11942 = vmatpush3.bf16.msra.mxu0 %v8074_v16 }
 0x74d   :  { %11319 = vmatmul.mubr.msk.bf16.gmra.mrb[136].mxu0 %vm4088_vm2, %v13038_v50 }
 0x74e   :  { %8159 = vmatprep.mubr.bf16.mxu0 %v17514_v20 }
 0x755   :  { %11320 = vmatmul.mubr.msk.bf16.gmra.mrb[140].mxu0 %vm4088_vm2, %v13039_v52 }
 0x756   :  { %8169 = vmatprep.mubr.bf16.mxu0 %v17514_v20 }
 0x75d   :  { %11321 = vmatmul.mubr.msk.bf16.gmra.mrb[144].mxu0 %vm4088_vm2, %v13040_v36 }
 0x75e   :  { %11943 = vmatprep.mubr.msk.bf16.mxu0 %vm4088_vm2, %v13037_v55 }
 0x765   :  { %11944 = vmatmul.mubr.msk.bf16.vlgmr.msra.gmra.mrb[148].mxu0 %vm4088_vm2, %v13038_v50 }
 0x766   :  { %11947 = vmatprep.mubr.msk.bf16.mxu0 %vm4088_vm2, %v13039_v52 }
 0x76d   :  { %11948 = vmatmul.mubr.msk.bf16.gmra.mrb[152].mxu0 %vm4088_vm2, %v13040_v36 }
 0x818   :  { %v16822_v47 = vpop.f32.mrb[132].mxu0 }
 0x819   :  { %v16824_v4 = vpop.f32.mrb[133].mxu0 }
 0x81a   :  { %v16826_v46 = vpop.f32.mrb[134].mxu0 }
 0x81b   :  { %v16828_v12 = vpop.f32.mrb[135].mxu0 }
 0x820   :  { %v16830_v17 = vpop.f32.mrb[136].mxu0 }
 0x821   :  { %v8153_v48 = vpop.f32.mrb[137].mxu0 }
 0x822   :  { %v16832_v57 = vpop.f32.mrb[138].mxu0 }
 0x823   :  { %v8157_v7 = vpop.f32.mrb[139].mxu0 }
 0x828   :  { %v16834_v59 = vpop.f32.mrb[140].mxu0 }
 0x829   :  { %v16836_v43 = vpop.f32.mrb[141].mxu0 }
 0x82a   :  { %v16838_v0 = vpop.f32.mrb[142].mxu0 }
 0x82b   :  { %v16840_v5 = vpop.f32.mrb[143].mxu0 }
 0x830   :  { %v16842_v15 = vpop.f32.mrb[144].mxu0 }
 0x831   :  { %v16844_v14 = vpop.f32.mrb[145].mxu0 }
 0x832   :  { %v16846_v3 = vpop.f32.mrb[146].mxu0 }
 0x833   :  { %v16848_v44 = vpop.f32.mrb[147].mxu0 }
 0x838   :  { %v16850_v10 = vpop.f32.mrb[148].mxu0 }
 0x839   :  { %v16852_v6 = vpop.f32.mrb[149].mxu0 }
 0x83a   :  { %v16854_v60 = vpop.f32.mrb[150].mxu0 }
 0x83b   :  { %v16856_v21 = vpop.f32.mrb[151].mxu0 }
 0x840   :  { %v16858_v2 = vpop.f32.mrb[152].mxu0 }
 0x841   :  { %v16860_v13 = vpop.f32.mrb[153].mxu0 }
 0x842   :  { %v16862_v19 = vpop.f32.mrb[154].mxu0 }
 0x843   :  { %v16864_v56 = vpop.f32.mrb[155].mxu0 }
 0x844   :  { %13071 = dma.done.wait [#allocation5], 23552 }
 0x845   :  { %13072 = vsyncadd [#allocation5], 4294943744  ;;  %v8300_v45 = vpack.c.bf16 %v8157_v7, %v8153_v48  ;;  %v8304_v9 = vld [vmem:[#allocation2 + $0x178] sm:$0xff]  ;;  %v8303_v63 = vld [vmem:[#allocation2 + $0x170] sm:$0xff] }
 0x846   :  { %v8306_v40 = vld [vmem:[#allocation2 + $0x188] sm:$0xff]  ;;  %8352 = vmatprep.subr.bf16.mxu0 %v8304_v9  ;;  %v8305_v62 = vld [vmem:[#allocation2 + $0x180] sm:$0xff]  ;;  %v8308_v53 = vld [vmem:[#allocation2 + $0x198] sm:$0xff] }
 0x847   :  { %8384 = vmatprep.mubr.bf16.mxu0 %v8300_v45  ;;  %8353 = vmatpush1.bf16.msra.mxu0 %v8303_v63  ;;  %v8307_v54 = vld [vmem:[#allocation2 + $0x190] sm:$0xff]  ;;  %v8310_v8 = vld [vmem:[#allocation2 + $0x1a8] sm:$0xff]  ;;  %v8309_v18 = vld [vmem:[#allocation2 + $0x1a0] sm:$0xff] }
 0x848   :  { %8354 = vmatprep.subr.bf16.mxu0 %v8306_v40  ;;  %v8312_v51 = vld [vmem:[#allocation2 + $0x1b8] sm:$0xff]  ;;  %v8311_v42 = vld [vmem:[#allocation2 + $0x1b0] sm:$0xff]  ;;  %v8314_v41 = vld [vmem:[#allocation2 + $0x1c8] sm:$0xff] }
 0x849   :  { %v8313_v58 = vld [vmem:[#allocation2 + $0x1c0] sm:$0xff]  ;;  %v8316_v11 = vld [vmem:[#allocation2 + $0x1d8] sm:$0xff]  ;;  %v8315_v1 = vld [vmem:[#allocation2 + $0x1d0] sm:$0xff] }
 0x84a   :  { %v8318_v39 = vld [vmem:[#allocation2 + $0x1e8] sm:$0xff]  ;;  %v8317_v37 = vld [vmem:[#allocation2 + $0x1e0] sm:$0xff]  ;;  %v8320_v16 = vld [vmem:[#allocation2 + $0x1f8] sm:$0xff] }
 0x84b   :  { %8355 = vmatpush1.bf16.msra.mxu0 %v8305_v62  ;;  %v8319_v55 = vld [vmem:[#allocation2 + $0x1f0] sm:$0xff]  ;;  %v8322_v50 = vld [vmem:[#allocation2 + $0x208] sm:$0xff]  ;;  %v8321_v52 = vld [vmem:[#allocation2 + $0x200] sm:$0xff] }
 0x84c   :  { %8356 = vmatprep.subr.bf16.mxu0 %v8308_v53  ;;  %v8324_v36 = vld [vmem:[#allocation2 + $0x218] sm:$0xff]  ;;  %v8323_v48 = vld [vmem:[#allocation2 + $0x210] sm:$0xff]  ;;  %v8326_v7 = vld [vmem:[#allocation2 + $0x228] sm:$0xff] }
 0x84d   :  { %v8325_v45 = vld [vmem:[#allocation2 + $0x220] sm:$0xff]  ;;  %v8328_v9 = vld [vmem:[#allocation2 + $0x238] sm:$0xff]  ;;  %v8327_v63 = vld [vmem:[#allocation2 + $0x230] sm:$0xff] }
 0x84e   :  { %v8330_v40 = vld [vmem:[#allocation2 + $0x248] sm:$0xff]  ;;  %v8329_v62 = vld [vmem:[#allocation2 + $0x240] sm:$0xff]  ;;  %v8332_v53 = vld [vmem:[#allocation2 + $0x258] sm:$0xff] }
 0x84f   :  { %8357 = vmatpush1.bf16.msra.mxu0 %v8307_v54  ;;  %v8331_v54 = vld [vmem:[#allocation2 + $0x250] sm:$0xff] }
 0x850   :  { %8358 = vmatprep.subr.bf16.mxu0 %v8310_v8  ;;  %v8334_v8 = vld [vmem:[#allocation2 + $0x268] sm:$0xff] }
 0x853   :  { %8359 = vmatpush1.bf16.msra.mxu0 %v8309_v18  ;;  %v8333_v18 = vld [vmem:[#allocation2 + $0x260] sm:$0xff] }
 0x854   :  { %8360 = vmatprep.subr.bf16.mxu0 %v8312_v51  ;;  %v8336_v51 = vld [vmem:[#allocation2 + $0x278] sm:$0xff] }
 0x857   :  { %8361 = vmatpush1.bf16.msra.mxu0 %v8311_v42  ;;  %v8299_v42 = vpack.c.bf16 %v16832_v57, %v16830_v17  ;;  %v8343_v17 = vld [vmem:[#allocation2 + $0x2b0] sm:$0xff]  ;;  %v8346_v57 = vld [vmem:[#allocation2 + $0x2c8] sm:$0xff] }
 0x858   :  { %8362 = vmatprep.subr.bf16.mxu0 %v8314_v41  ;;  %v8335_v41 = vld [vmem:[#allocation2 + $0x270] sm:$0xff] }
 0x85b   :  { %8363 = vmatpush1.bf16.msra.mxu0 %v8313_v58  ;;  %v8338_v58 = vld [vmem:[#allocation2 + $0x288] sm:$0xff] }
 0x85c   :  { %8364 = vmatprep.subr.bf16.mxu0 %v8316_v11  ;;  %v8337_v11 = vld [vmem:[#allocation2 + $0x280] sm:$0xff] }
 0x85f   :  { %8365 = vmatpush1.bf16.msra.mxu0 %v8315_v1  ;;  %v8340_v1 = vld [vmem:[#allocation2 + $0x298] sm:$0xff] }
 0x860   :  { %8366 = vmatprep.subr.bf16.mxu0 %v8318_v39  ;;  %v8339_v39 = vld [vmem:[#allocation2 + $0x290] sm:$0xff] }
 0x863   :  { %8367 = vmatpush1.bf16.msra.mxu0 %v8317_v37  ;;  %v8342_v37 = vld [vmem:[#allocation2 + $0x2a8] sm:$0xff] }
 0x864   :  { %8368 = vmatprep.subr.bf16.mxu0 %v8320_v16  ;;  %v8341_v16 = vld [vmem:[#allocation2 + $0x2a0] sm:$0xff] }
 0x867   :  { %8369 = vmatpush1.bf16.msra.mxu0 %v8319_v55  ;;  %v8344_v55 = vld [vmem:[#allocation2 + $0x2b8] sm:$0xff] }
 0x868   :  { %8370 = vmatprep.subr.bf16.mxu0 %v8322_v50  ;;  %v8345_v50 = vld [vmem:[#allocation2 + $0x2c0] sm:$0xff] }
 0x86b   :  { %8371 = vmatpush1.bf16.msra.mxu0 %v8321_v52  ;;  %v8348_v52 = vld [vmem:[#allocation2 + $0x2d8] sm:$0xff] }
 0x86c   :  { %8372 = vmatprep.subr.bf16.mxu0 %v8324_v36  ;;  %v8347_v36 = vld [vmem:[#allocation2 + $0x2d0] sm:$0xff] }
 0x86f   :  { %8373 = vmatpush1.bf16.msra.mxu0 %v8323_v48  ;;  %v8254_v48 = vld [vmem:[#allocation2 + $0x8] sm:$0xff] }
 0x870   :  { %8374 = vmatprep.subr.bf16.mxu0 %v8326_v7  ;;  %v8301_v7 = vpack.c.bf16 %v16854_v60, %v16850_v10  ;;  %v8259_v10 = vld [vmem:[#allocation2 + $0x30] sm:$0xff]  ;;  %v8262_v60 = vld [vmem:[#allocation2 + $0x48] sm:$0xff] }
 0x873   :  { %8375 = vmatpush1.bf16.msra.mxu0 %v8325_v45  ;;  %v8251_v45 = vpack.c.bf16 %v16828_v12, %v16824_v4  ;;  %v8261_v4 = vld [vmem:[#allocation2 + $0x40] sm:$0xff]  ;;  %v8264_v12 = vld [vmem:[#allocation2 + $0x58] sm:$0xff] }
 0x874   :  { %8376 = vmatprep.subr.bf16.mxu0 %v8328_v9  ;;  %v8253_v9 = vld [vmem:[#allocation2] sm:$0xff] }
 0x877   :  { %8377 = vmatpush1.bf16.msra.mxu0 %v8327_v63  ;;  %v8256_v63 = vld [vmem:[#allocation2 + $0x18] sm:$0xff] }
 0x878   :  { %8378 = vmatprep.subr.bf16.mxu0 %v8330_v40  ;;  %v8255_v40 = vld [vmem:[#allocation2 + $0x10] sm:$0xff] }
 0x87b   :  { %8379 = vmatpush1.bf16.msra.mxu0 %v8329_v62  ;;  %v8258_v62 = vld [vmem:[#allocation2 + $0x28] sm:$0xff] }
 0x87c   :  { %8380 = vmatprep.subr.bf16.mxu0 %v8332_v53  ;;  %v8257_v53 = vld [vmem:[#allocation2 + $0x20] sm:$0xff] }
 0x87f   :  { %8381 = vmatpush1.bf16.msra.mxu0 %v8331_v54  ;;  %v8260_v54 = vld [vmem:[#allocation2 + $0x38] sm:$0xff] }
 0x880   :  { %8382 = vmatprep.subr.bf16.mxu0 %v8334_v8  ;;  %v8263_v8 = vld [vmem:[#allocation2 + $0x50] sm:$0xff] }
 0x883   :  { %8383 = vmatpush1.bf16.msra.mxu0 %v8333_v18  ;;  %v8266_v18 = vld [vmem:[#allocation2 + $0x68] sm:$0xff] }
 0x884   :  { %8395 = vmatprep.subr.bf16.mxu0 %v8336_v51  ;;  %v8265_v51 = vld [vmem:[#allocation2 + $0x60] sm:$0xff] }
 0x886   :  { %8385 = vmatmul.mubr.bf16.vlgmr.msra.gmra.mrb[156].mxu0 %v8299_v42  ;;  %v8268_v42 = vld [vmem:[#allocation2 + $0x78] sm:$0xff] }
 0x887   :  { %8396 = vmatpush1.bf16.msra.mxu0 %v8335_v41  ;;  %8427 = vmatprep.mubr.bf16.mxu0 %v17514_v20  ;;  %v8267_v41 = vld [vmem:[#allocation2 + $0x70] sm:$0xff] }
 0x888   :  { %8397 = vmatprep.subr.bf16.mxu0 %v8338_v58  ;;  %v8270_v58 = vld [vmem:[#allocation2 + $0x88] sm:$0xff] }
 0x88b   :  { %8398 = vmatpush1.bf16.msra.mxu0 %v8337_v11  ;;  %v8269_v11 = vld [vmem:[#allocation2 + $0x80] sm:$0xff] }
 0x88c   :  { %8399 = vmatprep.subr.bf16.mxu0 %v8340_v1  ;;  %v8272_v1 = vld [vmem:[#allocation2 + $0x98] sm:$0xff] }
 0x88f   :  { %8400 = vmatpush1.bf16.msra.mxu0 %v8339_v39  ;;  %v8271_v39 = vld [vmem:[#allocation2 + $0x90] sm:$0xff] }
 0x890   :  { %8401 = vmatprep.subr.bf16.mxu0 %v8342_v37  ;;  %v8274_v37 = vld [vmem:[#allocation2 + $0xa8] sm:$0xff] }
 0x893   :  { %8402 = vmatpush1.bf16.msra.mxu0 %v8341_v16  ;;  %v8273_v16 = vld [vmem:[#allocation2 + $0xa0] sm:$0xff] }
 0x894   :  { %8403 = vmatprep.subr.bf16.mxu0 %v8344_v55  ;;  %v8276_v55 = vld [vmem:[#allocation2 + $0xb8] sm:$0xff] }
 0x897   :  { %8404 = vmatpush1.bf16.msra.mxu0 %v8343_v17  ;;  %v8275_v17 = vld [vmem:[#allocation2 + $0xb0] sm:$0xff] }
 0x898   :  { %8405 = vmatprep.subr.bf16.mxu0 %v8346_v57  ;;  %v8278_v57 = vld [vmem:[#allocation2 + $0xc8] sm:$0xff] }
 0x89b   :  { %8406 = vmatpush1.bf16.msra.mxu0 %v8345_v50  ;;  %v8277_v50 = vld [vmem:[#allocation2 + $0xc0] sm:$0xff] }
 0x89c   :  { %8407 = vmatprep.subr.bf16.mxu0 %v8348_v52  ;;  %v8280_v52 = vld [vmem:[#allocation2 + $0xd8] sm:$0xff] }
 0x89f   :  { %8408 = vmatpush1.bf16.msra.mxu0 %v8347_v36  ;;  %v8279_v36 = vld [vmem:[#allocation2 + $0xd0] sm:$0xff] }
 0x8a0   :  { %8441 = vmatprep.subr.bf16.mxu0 %v8254_v48  ;;  %v8282_v48 = vld [vmem:[#allocation2 + $0xe8] sm:$0xff] }
 0x8a2   :  { %11326 = vmatmul.mubr.msk.bf16.vlgmr.msra.gmra.mrb[156].mxu0 %vm7305_vm3, %v8301_v7  ;;  %v8281_v7 = vld [vmem:[#allocation2 + $0xe0] sm:$0xff] }
 0x8a3   :  { %8442 = vmatpush1.bf16.msra.mxu0 %v8253_v9  ;;  %8473 = vmatprep.mubr.bf16.mxu0 %v8251_v45  ;;  %v8284_v45 = vld [vmem:[#allocation2 + $0xf8] sm:$0xff]  ;;  %v8283_v9 = vld [vmem:[#allocation2 + $0xf0] sm:$0xff] }
 0x8a4   :  { %8443 = vmatprep.subr.bf16.mxu0 %v8256_v63  ;;  %v8286_v63 = vld [vmem:[#allocation2 + $0x108] sm:$0xff] }
 0x8a7   :  { %8444 = vmatpush1.bf16.msra.mxu0 %v8255_v40  ;;  %v8250_v40 = vpack.c.bf16 %v16826_v46, %v16822_v47  ;;  %v8293_v47 = vld [vmem:[#allocation2 + $0x140] sm:$0xff]  ;;  %v8296_v46 = vld [vmem:[#allocation2 + $0x158] sm:$0xff] }
 0x8a8   :  { %8445 = vmatprep.subr.bf16.mxu0 %v8258_v62  ;;  %v8285_v62 = vld [vmem:[#allocation2 + $0x100] sm:$0xff] }
 0x8ab   :  { %8446 = vmatpush1.bf16.msra.mxu0 %v8257_v53  ;;  %v8288_v53 = vld [vmem:[#allocation2 + $0x118] sm:$0xff] }
 0x8ac   :  { %8447 = vmatprep.subr.bf16.mxu0 %v8260_v54  ;;  %v8287_v54 = vld [vmem:[#allocation2 + $0x110] sm:$0xff] }
 0x8af   :  { %8448 = vmatpush1.bf16.msra.mxu0 %v8259_v10  ;;  %v8290_v10 = vld [vmem:[#allocation2 + $0x128] sm:$0xff] }
 0x8b0   :  { %8449 = vmatprep.subr.bf16.mxu0 %v8262_v60  ;;  %v8289_v60 = vld [vmem:[#allocation2 + $0x120] sm:$0xff] }
 0x8b3   :  { %8450 = vmatpush1.bf16.msra.mxu0 %v8261_v4  ;;  %v8292_v4 = vld [vmem:[#allocation2 + $0x138] sm:$0xff] }
 0x8b4   :  { %8451 = vmatprep.subr.bf16.mxu0 %v8264_v12  ;;  %v8291_v12 = vld [vmem:[#allocation2 + $0x130] sm:$0xff] }
 0x8b7   :  { %8452 = vmatpush1.bf16.msra.mxu0 %v8263_v8  ;;  %v8294_v8 = vld [vmem:[#allocation2 + $0x148] sm:$0xff] }
 0x8b8   :  { %8453 = vmatprep.subr.bf16.mxu0 %v8266_v18  ;;  %v8295_v18 = vld [vmem:[#allocation2 + $0x150] sm:$0xff] }
 0x8bb   :  { %8454 = vmatpush1.bf16.msra.mxu0 %v8265_v51  ;;  %v8298_v51 = vld [vmem:[#allocation2 + $0x168] sm:$0xff] }
 0x8bc   :  { %8455 = vmatprep.subr.bf16.mxu0 %v8268_v42  ;;  %v8297_v42 = vld [vmem:[#allocation2 + $0x160] sm:$0xff] }
 0x8bf   :  { %8456 = vmatpush1.bf16.msra.mxu0 %v8267_v41  ;;  %v8532_v41 = vld [vmem:[#allocation2 + $0x2e8] sm:$0xff] }
 0x8c0   :  { %8457 = vmatprep.subr.bf16.mxu0 %v8270_v58  ;;  %v8252_v58 = vpack.c.bf16 %v16856_v21, %v16852_v6  ;;  %v8537_v6 = vld [vmem:[#allocation2 + $0x310] sm:$0xff]  ;;  %v8540_v21 = vld [vmem:[#allocation2 + $0x328] sm:$0xff] }
 0x8c3   :  { %8458 = vmatpush1.bf16.msra.mxu0 %v8269_v11  ;;  %v8528_v11 = vpack.c.bf16 %v16840_v5, %v16836_v43  ;;  %v8539_v43 = vld [vmem:[#allocation2 + $0x320] sm:$0xff]  ;;  %v8542_v5 = vld [vmem:[#allocation2 + $0x338] sm:$0xff] }
 0x8c4   :  { %8459 = vmatprep.subr.bf16.mxu0 %v8272_v1  ;;  %v8531_v1 = vld [vmem:[#allocation2 + $0x2e0] sm:$0xff] }
 0x8c7   :  { %8460 = vmatpush1.bf16.msra.mxu0 %v8271_v39  ;;  %v8534_v39 = vld [vmem:[#allocation2 + $0x2f8] sm:$0xff] }
 0x8c8   :  { %8461 = vmatprep.subr.bf16.mxu0 %v8274_v37  ;;  %v8533_v37 = vld [vmem:[#allocation2 + $0x2f0] sm:$0xff] }
 0x8cb   :  { %8462 = vmatpush1.bf16.msra.mxu0 %v8273_v16  ;;  %v8536_v16 = vld [vmem:[#allocation2 + $0x308] sm:$0xff] }
 0x8cc   :  { %8463 = vmatprep.subr.bf16.mxu0 %v8276_v55  ;;  %v8535_v55 = vld [vmem:[#allocation2 + $0x300] sm:$0xff] }
 0x8cf   :  { %8464 = vmatpush1.bf16.msra.mxu0 %v8275_v17  ;;  %v8538_v17 = vld [vmem:[#allocation2 + $0x318] sm:$0xff] }
 0x8d0   :  { %8465 = vmatprep.subr.bf16.mxu0 %v8278_v57  ;;  %v8541_v57 = vld [vmem:[#allocation2 + $0x330] sm:$0xff] }
 0x8d3   :  { %8466 = vmatpush1.bf16.msra.mxu0 %v8277_v50  ;;  %v8544_v50 = vld [vmem:[#allocation2 + $0x348] sm:$0xff] }
 0x8d4   :  { %8467 = vmatprep.subr.bf16.mxu0 %v8280_v52  ;;  %v8543_v52 = vld [vmem:[#allocation2 + $0x340] sm:$0xff] }
 0x8d7   :  { %8468 = vmatpush1.bf16.msra.mxu0 %v8279_v36  ;;  %v8546_v36 = vld [vmem:[#allocation2 + $0x358] sm:$0xff] }
 0x8d8   :  { %8469 = vmatprep.subr.bf16.mxu0 %v8282_v48  ;;  %v8545_v48 = vld [vmem:[#allocation2 + $0x350] sm:$0xff] }
 0x8db   :  { %8470 = vmatpush1.bf16.msra.mxu0 %v8281_v7  ;;  %v8548_v7 = vld [vmem:[#allocation2 + $0x368] sm:$0xff] }
 0x8dc   :  { %8471 = vmatprep.subr.bf16.mxu0 %v8284_v45  ;;  %v8547_v45 = vld [vmem:[#allocation2 + $0x360] sm:$0xff] }
 0x8df   :  { %8472 = vmatpush1.bf16.msra.mxu0 %v8283_v9  ;;  %v8550_v9 = vld [vmem:[#allocation2 + $0x378] sm:$0xff] }
 0x8e0   :  { %8484 = vmatprep.subr.bf16.mxu0 %v8286_v63  ;;  %v8549_v63 = vld [vmem:[#allocation2 + $0x370] sm:$0xff] }
 0x8e2   :  { %8474 = vmatmul.mubr.bf16.vlgmr.msra.gmra.mrb[156].mxu0 %v8250_v40  ;;  %v8552_v40 = vld [vmem:[#allocation2 + $0x388] sm:$0xff] }
 0x8e3   :  { %8485 = vmatpush1.bf16.msra.mxu0 %v8285_v62  ;;  %8516 = vmatprep.mubr.bf16.mxu0 %v17514_v20  ;;  %v8551_v62 = vld [vmem:[#allocation2 + $0x380] sm:$0xff] }
 0x8e4   :  { %8486 = vmatprep.subr.bf16.mxu0 %v8288_v53  ;;  %v8554_v53 = vld [vmem:[#allocation2 + $0x398] sm:$0xff] }
 0x8e7   :  { %8487 = vmatpush1.bf16.msra.mxu0 %v8287_v54  ;;  %v8553_v54 = vld [vmem:[#allocation2 + $0x390] sm:$0xff] }
 0x8e8   :  { %8488 = vmatprep.subr.bf16.mxu0 %v8290_v10  ;;  %v8556_v10 = vld [vmem:[#allocation2 + $0x3a8] sm:$0xff] }
 0x8eb   :  { %8489 = vmatpush1.bf16.msra.mxu0 %v8289_v60  ;;  %v8555_v60 = vld [vmem:[#allocation2 + $0x3a0] sm:$0xff] }
 0x8ec   :  { %8490 = vmatprep.subr.bf16.mxu0 %v8292_v4  ;;  %v8558_v4 = vld [vmem:[#allocation2 + $0x3b8] sm:$0xff] }
 0x8ef   :  { %8491 = vmatpush1.bf16.msra.mxu0 %v8291_v12  ;;  %v8557_v12 = vld [vmem:[#allocation2 + $0x3b0] sm:$0xff] }
 0x8f0   :  { %8492 = vmatprep.subr.bf16.mxu0 %v8294_v8  ;;  %v8560_v8 = vld [vmem:[#allocation2 + $0x3c8] sm:$0xff] }
 0x8f3   :  { %8493 = vmatpush1.bf16.msra.mxu0 %v8293_v47  ;;  %v8559_v47 = vld [vmem:[#allocation2 + $0x3c0] sm:$0xff] }
 0x8f4   :  { %8494 = vmatprep.subr.bf16.mxu0 %v8296_v46  ;;  %v8562_v46 = vld [vmem:[#allocation2 + $0x3d8] sm:$0xff] }
 0x8f7   :  { %8495 = vmatpush1.bf16.msra.mxu0 %v8295_v18  ;;  %v8861_v18 = vld [vmem:[%s17468_s7 + $0x80] sm:$0xff] }
 0x8f8   :  { %8496 = vmatprep.subr.bf16.mxu0 %v8298_v51  ;;  %v8862_v51 = vld [vmem:[%s17468_s7 + $0x88] sm:$0xff] }
 0x8fb   :  { %8497 = vmatpush1.bf16.msra.mxu0 %v8297_v42  ;;  %v8845_v42 = vld [vmem:[%s17468_s7] sm:$0xff] }
 0x8fc   :  { %8580 = vmatprep.subr.bf16.mxu0 %v8532_v41  ;;  %v16891_v41 = vpack.c.bf16 %v8862_v51, %v8861_v18  ;;  %v8529_v18 = vpack.c.bf16 %v16864_v56, %v16860_v13  ;;  %v8671_v51 = vpack.c.bf16 %v16848_v44, %v16844_v14  ;;  %v8680_v13 = vld [vmem:[#allocation2 + $0x480] sm:$0xff]  ;;  %v8683_v56 = vld [vmem:[#allocation2 + $0x498] sm:$0xff]  ;;  %v8682_v14 = vld [vmem:[#allocation2 + $0x490] sm:$0xff] }
 0x8fd   :  { %v8685_v44 = vld [vmem:[#allocation2 + $0x4a8] sm:$0xff] }
 0x8fe   :  { %11327 = vmatmul.mubr.msk.bf16.vlgmr.msra.gmra.mrb[156].mxu0 %vm7305_vm3, %v8252_v58  ;;  %v8846_v58 = vld [vmem:[%s17468_s7 + $0x8] sm:$0xff]  ;;  %12139 = vmatprep.subr.bf16.mxu1 %v16891_v41 }
 0x8ff   :  { %8581 = vmatpush1.bf16.msra.mxu0 %v8531_v1  ;;  %8612 = vmatprep.mubr.bf16.mxu0 %v8528_v11  ;;  %v8863_v11 = vld [vmem:[%s17468_s7 + $0x90] sm:$0xff]  ;;  %v8864_v1 = vld [vmem:[%s17468_s7 + $0x98] sm:$0xff] }
 0x900   :  { %8582 = vmatprep.subr.bf16.mxu0 %v8534_v39  ;;  %v8561_v39 = vld [vmem:[#allocation2 + $0x3d0] sm:$0xff] }
 0x903   :  { %8583 = vmatpush1.bf16.msra.mxu0 %v8533_v37  ;;  %v16902_v37 = vpack.c.bf16 %v8846_v58, %v8845_v42  ;;  %v8674_v42 = vld [vmem:[#allocation2 + $0x450] sm:$0xff]  ;;  %v8677_v58 = vld [vmem:[#allocation2 + $0x468] sm:$0xff] }
 0x904   :  { %8584 = vmatprep.subr.bf16.mxu0 %v8536_v16  ;;  %v8564_v16 = vld [vmem:[#allocation2 + $0x3e8] sm:$0xff] }
 0x905   :  { %12141 = vmatpush3.bf16.msra.mxu1 %v16902_v37 }
 0x907   :  { %8585 = vmatpush1.bf16.msra.mxu0 %v8535_v55  ;;  %v16905_v55 = vpack.c.bf16 %v8864_v1, %v8863_v11  ;;  %v8676_v11 = vld [vmem:[#allocation2 + $0x460] sm:$0xff]  ;;  %v8679_v1 = vld [vmem:[#allocation2 + $0x478] sm:$0xff] }
 0x908   :  { %8586 = vmatprep.subr.bf16.mxu0 %v8538_v17  ;;  %v8847_v17 = vld [vmem:[%s17468_s7 + $0x10] sm:$0xff] }
 0x909   :  { %12143 = vmatprep.subr.bf16.mxu1 %v16905_v55 }
 0x90b   :  { %8587 = vmatpush1.bf16.msra.mxu0 %v8537_v6  ;;  %v8848_v6 = vld [vmem:[%s17468_s7 + $0x18] sm:$0xff] }
 0x90c   :  { %8588 = vmatprep.subr.bf16.mxu0 %v8540_v21  ;;  %v8527_v21 = vpack.c.bf16 %v16838_v0, %v16834_v59  ;;  %v8849_v59 = vld [vmem:[%s17468_s7 + $0x20] sm:$0xff]  ;;  %v8850_v0 = vld [vmem:[%s17468_s7 + $0x28] sm:$0xff] }
 0x90f   :  { %8589 = vmatpush1.bf16.msra.mxu0 %v8539_v43  ;;  %v8865_v43 = vld [vmem:[%s17468_s7 + $0xa0] sm:$0xff] }
 0x910   :  { %8590 = vmatprep.subr.bf16.mxu0 %v8542_v5  ;;  %v8866_v5 = vld [vmem:[%s17468_s7 + $0xa8] sm:$0xff] }
 0x913   :  { %8591 = vmatpush1.bf16.msra.mxu0 %v8541_v57  ;;  %v8563_v57 = vld [vmem:[#allocation2 + $0x3e0] sm:$0xff] }
 0x914   :  { %8592 = vmatprep.subr.bf16.mxu0 %v8544_v50  ;;  %v16923_v50 = vpack.c.bf16 %v8848_v6, %v8847_v17  ;;  %v8684_v17 = vld [vmem:[#allocation2 + $0x4a0] sm:$0xff]  ;;  %v8687_v6 = vld [vmem:[#allocation2 + $0x4b8] sm:$0xff] }
 0x916   :  { %12145 = vmatpush3.bf16.msra.mxu1 %v16923_v50 }
 0x917   :  { %8593 = vmatpush1.bf16.msra.mxu0 %v8543_v52  ;;  %v8566_v52 = vld [vmem:[#allocation2 + $0x3f8] sm:$0xff] }
 0x918   :  { %8594 = vmatprep.subr.bf16.mxu0 %v8546_v36  ;;  %v16932_v36 = vpack.c.bf16 %v8866_v5, %v8865_v43  ;;  %v8689_v43 = vld [vmem:[#allocation2 + $0x4c8] sm:$0xff]  ;;  %v8688_v5 = vld [vmem:[#allocation2 + $0x4c0] sm:$0xff] }
 0x91a   :  { %12147 = vmatprep.subr.bf16.mxu1 %v16932_v36 }
 0x91b   :  { %8595 = vmatpush1.bf16.msra.mxu0 %v8545_v48  ;;  %v8867_v48 = vld [vmem:[%s17468_s7 + $0xb0] sm:$0xff] }
 0x91c   :  { %8596 = vmatprep.subr.bf16.mxu0 %v8548_v7  ;;  %v8868_v7 = vld [vmem:[%s17468_s7 + $0xb8] sm:$0xff] }
 0x91f   :  { %8597 = vmatpush1.bf16.msra.mxu0 %v8547_v45  ;;  %v8565_v45 = vld [vmem:[#allocation2 + $0x3f0] sm:$0xff] }
 0x920   :  { %8598 = vmatprep.subr.bf16.mxu0 %v8550_v9  ;;  %v16941_v9 = vpack.c.bf16 %v8850_v0, %v8849_v59  ;;  %v8693_v59 = vld [vmem:[#allocation2 + $0x4e8] sm:$0xff]  ;;  %v8692_v0 = vld [vmem:[#allocation2 + $0x4e0] sm:$0xff] }
 0x922   :  { %12149 = vmatpush3.bf16.msra.mxu1 %v16941_v9 }
 0x923   :  { %8599 = vmatpush1.bf16.msra.mxu0 %v8549_v63  ;;  %v8568_v63 = vld [vmem:[#allocation2 + $0x408] sm:$0xff] }
 0x924   :  { %8600 = vmatprep.subr.bf16.mxu0 %v8552_v40  ;;  %v16944_v40 = vpack.c.bf16 %v8868_v7, %v8867_v48  ;;  %v8695_v48 = vld [vmem:[#allocation2 + $0x4f8] sm:$0xff]  ;;  %v8694_v7 = vld [vmem:[#allocation2 + $0x4f0] sm:$0xff] }
 0x926   :  { %12151 = vmatprep.subr.bf16.mxu1 %v16944_v40 }
 0x927   :  { %8601 = vmatpush1.bf16.msra.mxu0 %v8551_v62  ;;  %v8567_v62 = vld [vmem:[#allocation2 + $0x400] sm:$0xff] }
 0x928   :  { %8602 = vmatprep.subr.bf16.mxu0 %v8554_v53  ;;  %v8570_v53 = vld [vmem:[#allocation2 + $0x418] sm:$0xff] }
 0x92b   :  { %8603 = vmatpush1.bf16.msra.mxu0 %v8553_v54  ;;  %v8569_v54 = vld [vmem:[#allocation2 + $0x410] sm:$0xff] }
 0x92c   :  { %8604 = vmatprep.subr.bf16.mxu0 %v8556_v10  ;;  %v8572_v10 = vld [vmem:[#allocation2 + $0x428] sm:$0xff] }
 0x92f   :  { %8605 = vmatpush1.bf16.msra.mxu0 %v8555_v60  ;;  %v8571_v60 = vld [vmem:[#allocation2 + $0x420] sm:$0xff] }
 0x930   :  { %8606 = vmatprep.subr.bf16.mxu0 %v8558_v4  ;;  %v8574_v4 = vld [vmem:[#allocation2 + $0x438] sm:$0xff] }
 0x933   :  { %8607 = vmatpush1.bf16.msra.mxu0 %v8557_v12  ;;  %v8573_v12 = vld [vmem:[#allocation2 + $0x430] sm:$0xff] }
 0x934   :  { %8608 = vmatprep.subr.bf16.mxu0 %v8560_v8  ;;  %v8576_v8 = vld [vmem:[#allocation2 + $0x448] sm:$0xff] }
 0x937   :  { %8609 = vmatpush1.bf16.msra.mxu0 %v8559_v47  ;;  %v8575_v47 = vld [vmem:[#allocation2 + $0x440] sm:$0xff] }
 0x938   :  { %8610 = vmatprep.subr.bf16.mxu0 %v8562_v46  ;;  %v8675_v46 = vld [vmem:[#allocation2 + $0x458] sm:$0xff] }
 0x93b   :  { %8611 = vmatpush1.bf16.msra.mxu0 %v8561_v39  ;;  %v8678_v39 = vld [vmem:[#allocation2 + $0x470] sm:$0xff] }
 0x93c   :  { %8623 = vmatprep.subr.bf16.mxu0 %v8564_v16  ;;  %v8681_v16 = vld [vmem:[#allocation2 + $0x488] sm:$0xff] }
 0x93e   :  { %8613 = vmatmul.mubr.bf16.vlgmr.msra.gmra.mrb[156].mxu0 %v8527_v21  ;;  %v8686_v21 = vld [vmem:[#allocation2 + $0x4b0] sm:$0xff] }
 0x93f   :  { %8624 = vmatpush1.bf16.msra.mxu0 %v8563_v57  ;;  %8655 = vmatprep.mubr.bf16.mxu0 %v17514_v20  ;;  %v8691_v57 = vld [vmem:[#allocation2 + $0x4d8] sm:$0xff] }
 0x940   :  { %8625 = vmatprep.subr.bf16.mxu0 %v8566_v52  ;;  %v8690_v52 = vld [vmem:[#allocation2 + $0x4d0] sm:$0xff] }
 0x943   :  { %8626 = vmatpush1.bf16.msra.mxu0 %v8565_v45  ;;  %v8697_v45 = vld [vmem:[#allocation2 + $0x508] sm:$0xff] }
 0x944   :  { %8627 = vmatprep.subr.bf16.mxu0 %v8568_v63  ;;  %v8696_v63 = vld [vmem:[#allocation2 + $0x500] sm:$0xff] }
 0x947   :  { %8628 = vmatpush1.bf16.msra.mxu0 %v8567_v62  ;;  %v8699_v62 = vld [vmem:[#allocation2 + $0x518] sm:$0xff] }
 0x948   :  { %8629 = vmatprep.subr.bf16.mxu0 %v8570_v53  ;;  %v8698_v53 = vld [vmem:[#allocation2 + $0x510] sm:$0xff] }
 0x94b   :  { %8630 = vmatpush1.bf16.msra.mxu0 %v8569_v54  ;;  %v8701_v54 = vld [vmem:[#allocation2 + $0x528] sm:$0xff] }
 0x94c   :  { %8631 = vmatprep.subr.bf16.mxu0 %v8572_v10  ;;  %v8700_v10 = vld [vmem:[#allocation2 + $0x520] sm:$0xff] }
 0x94f   :  { %8632 = vmatpush1.bf16.msra.mxu0 %v8571_v60  ;;  %v8703_v60 = vld [vmem:[#allocation2 + $0x538] sm:$0xff] }
 0x950   :  { %8633 = vmatprep.subr.bf16.mxu0 %v8574_v4  ;;  %v8702_v4 = vld [vmem:[#allocation2 + $0x530] sm:$0xff] }
 0x953   :  { %8634 = vmatpush1.bf16.msra.mxu0 %v8573_v12  ;;  %v8705_v12 = vld [vmem:[#allocation2 + $0x548] sm:$0xff] }
 0x954   :  { %8635 = vmatprep.subr.bf16.mxu0 %v8576_v8  ;;  %v8704_v8 = vld [vmem:[#allocation2 + $0x540] sm:$0xff] }
 0x957   :  { %8636 = vmatpush1.bf16.msra.mxu0 %v8575_v47  ;;  %v8707_v47 = vld [vmem:[#allocation2 + $0x558] sm:$0xff] }
 0x958   :  { %8723 = vmatprep.subr.bf16.mxu0 %v8675_v46  ;;  %v8670_v46 = vpack.c.bf16 %v16846_v3, %v16842_v15  ;;  %v8714_v15 = vld [vmem:[#allocation2 + $0x590] sm:$0xff]  ;;  %v8717_v3 = vld [vmem:[#allocation2 + $0x5a8] sm:$0xff] }
 0x95a   :  { %11328 = vmatmul.mubr.msk.bf16.vlgmr.msra.gmra.mrb[156].mxu0 %vm7305_vm3, %v8529_v18  ;;  %v8706_v18 = vld [vmem:[#allocation2 + $0x550] sm:$0xff] }
 0x95b   :  { %8724 = vmatpush1.bf16.msra.mxu0 %v8674_v42  ;;  %8755 = vmatprep.mubr.bf16.mxu0 %v8671_v51  ;;  %v8709_v51 = vld [vmem:[#allocation2 + $0x568] sm:$0xff]  ;;  %v8708_v42 = vld [vmem:[#allocation2 + $0x560] sm:$0xff] }
 0x95c   :  { %8725 = vmatprep.subr.bf16.mxu0 %v8677_v58  ;;  %v8711_v58 = vld [vmem:[#allocation2 + $0x578] sm:$0xff] }
 0x95f   :  { %8726 = vmatpush1.bf16.msra.mxu0 %v8676_v11  ;;  %v8710_v11 = vld [vmem:[#allocation2 + $0x570] sm:$0xff] }
 0x960   :  { %8727 = vmatprep.subr.bf16.mxu0 %v8679_v1  ;;  %v8713_v1 = vld [vmem:[#allocation2 + $0x588] sm:$0xff] }
 0x963   :  { %8728 = vmatpush1.bf16.msra.mxu0 %v8678_v39  ;;  %v8712_v39 = vld [vmem:[#allocation2 + $0x580] sm:$0xff] }
 0x964   :  { %8729 = vmatprep.subr.bf16.mxu0 %v8681_v16  ;;  %v8715_v16 = vld [vmem:[#allocation2 + $0x598] sm:$0xff] }
 0x967   :  { %8730 = vmatpush1.bf16.msra.mxu0 %v8680_v13  ;;  %v8716_v13 = vld [vmem:[#allocation2 + $0x5a0] sm:$0xff] }
 0x968   :  { %8731 = vmatprep.subr.bf16.mxu0 %v8683_v56  ;;  %v8719_v56 = vld [vmem:[#allocation2 + $0x5b8] sm:$0xff] }
 0x96b   :  { %8732 = vmatpush1.bf16.msra.mxu0 %v8682_v14  ;;  %v8718_v14 = vld [vmem:[#allocation2 + $0x5b0] sm:$0xff] }
 0x96c   :  { %8733 = vmatprep.subr.bf16.mxu0 %v8685_v44  ;;  %v8672_v44 = vpack.c.bf16 %v16862_v19, %v16858_v2  ;;  %v8851_v2 = vld [vmem:[%s17468_s7 + $0x30] sm:$0xff]  ;;  %v8852_v19 = vld [vmem:[%s17468_s7 + $0x38] sm:$0xff] }
 0x96f   :  { %8734 = vmatpush1.bf16.msra.mxu0 %v8684_v17  ;;  %v8871_v17 = vld [vmem:[%s17468_s7 + $0xd0] sm:$0xff] }
 0x970   :  { %8735 = vmatprep.subr.bf16.mxu0 %v8687_v6  ;;  %v8872_v6 = vld [vmem:[%s17468_s7 + $0xd8] sm:$0xff] }
 0x973   :  { %8736 = vmatpush1.bf16.msra.mxu0 %v8686_v21  ;;  %v12126_v21 = vpack.c.bf16 %v8872_v6, %v8871_v17 }
 0x974   :  { %8737 = vmatprep.subr.bf16.mxu0 %v8689_v43  ;;  %v8855_v43 = vld [vmem:[%s17468_s7 + $0x50] sm:$0xff] }
 0x977   :  { %8738 = vmatpush1.bf16.msra.mxu0 %v8688_v5  ;;  %v8856_v5 = vld [vmem:[%s17468_s7 + $0x58] sm:$0xff] }
 0x978   :  { %8739 = vmatprep.subr.bf16.mxu0 %v8691_v57  ;;  %v12128_v57 = vpack.c.bf16 %v8856_v5, %v8855_v43 }
 0x97b   :  { %8740 = vmatpush1.bf16.msra.mxu0 %v8690_v52  ;;  %v8873_v52 = vld [vmem:[%s17468_s7 + $0xe0] sm:$0xff] }
 0x97c   :  { %8741 = vmatprep.subr.bf16.mxu0 %v8693_v59  ;;  %v8874_v59 = vld [vmem:[%s17468_s7 + $0xe8] sm:$0xff] }
 0x97f   :  { %8742 = vmatpush1.bf16.msra.mxu0 %v8692_v0  ;;  %v12130_v0 = vpack.c.bf16 %v8874_v59, %v8873_v52 }
 0x980   :  { %8743 = vmatprep.subr.bf16.mxu0 %v8695_v48  ;;  %v8857_v48 = vld [vmem:[%s17468_s7 + $0x60] sm:$0xff] }
 0x983   :  { %8744 = vmatpush1.bf16.msra.mxu0 %v8694_v7  ;;  %v8858_v7 = vld [vmem:[%s17468_s7 + $0x68] sm:$0xff] }
 0x984   :  { %8745 = vmatprep.subr.bf16.mxu0 %v8697_v45  ;;  %v12132_v45 = vpack.c.bf16 %v8858_v7, %v8857_v48  ;;  %v9032_v48 = vld [vmem:[%s17469_s8 + $0x18] sm:$0xff]  ;;  %v9029_v7 = vld [vmem:[%s17469_s8] sm:$0xff] }
 0x987   :  { %8746 = vmatpush1.bf16.msra.mxu0 %v8696_v63  ;;  %v8875_v63 = vld [vmem:[%s17468_s7 + $0xf0] sm:$0xff] }
 0x988   :  { %8747 = vmatprep.subr.bf16.mxu0 %v8699_v62  ;;  %v8876_v62 = vld [vmem:[%s17468_s7 + $0xf8] sm:$0xff] }
 0x98b   :  { %8748 = vmatpush1.bf16.msra.mxu0 %v8698_v53  ;;  %v8859_v53 = vld [vmem:[%s17468_s7 + $0x70] sm:$0xff] }
 0x98c   :  { %8749 = vmatprep.subr.bf16.mxu0 %v8701_v54  ;;  %v12134_v54 = vpack.c.bf16 %v8876_v62, %v8875_v63  ;;  %v9031_v63 = vld [vmem:[%s17469_s8 + $0x10] sm:$0xff]  ;;  %v9034_v62 = vld [vmem:[%s17469_s8 + $0x28] sm:$0xff] }
 0x98f   :  { %8750 = vmatpush1.bf16.msra.mxu0 %v8700_v10  ;;  %v8860_v10 = vld [vmem:[%s17468_s7 + $0x78] sm:$0xff] }
 0x990   :  { %8751 = vmatprep.subr.bf16.mxu0 %v8703_v60  ;;  %v12136_v60 = vpack.c.bf16 %v8860_v10, %v8859_v53  ;;  %v9036_v53 = vld [vmem:[%s17469_s8 + $0x38] sm:$0xff] }
 0x991   :  { %v12174_v10 = vpack.c.bf16 %v9036_v53, %v9034_v62 }
 0x993   :  { %8752 = vmatpush1.bf16.msra.mxu0 %v8702_v4 }
 0x994   :  { %8753 = vmatprep.subr.bf16.mxu0 %v8705_v12 }
 0x997   :  { %8754 = vmatpush1.bf16.msra.mxu0 %v8704_v8 }
 0x998   :  { %8766 = vmatprep.subr.bf16.mxu0 %v8707_v47 }
 0x99a   :  { %8756 = vmatmul.mubr.bf16.vlgmr.msra.gmra.mrb[156].mxu0 %v8670_v46 }
 0x99b   :  { %8767 = vmatpush1.bf16.msra.mxu0 %v8706_v18  ;;  %8798 = vmatprep.mubr.bf16.mxu0 %v17514_v20 }
 0x99c   :  { %8768 = vmatprep.subr.bf16.mxu0 %v8709_v51 }
 0x99f   :  { %8769 = vmatpush1.bf16.msra.mxu0 %v8708_v42 }
 0x9a0   :  { %8770 = vmatprep.subr.bf16.mxu0 %v8711_v58 }
 0x9a3   :  { %8771 = vmatpush1.bf16.msra.mxu0 %v8710_v11 }
 0x9a4   :  { %8772 = vmatprep.subr.bf16.mxu0 %v8713_v1 }
 0x9a7   :  { %8773 = vmatpush1.bf16.msra.mxu0 %v8712_v39 }
 0x9a8   :  { %8774 = vmatprep.subr.bf16.mxu0 %v8715_v16 }
 0x9ab   :  { %8775 = vmatpush1.bf16.msra.mxu0 %v8714_v15 }
 0x9ac   :  { %8776 = vmatprep.subr.bf16.mxu0 %v8717_v3 }
 0x9af   :  { %8777 = vmatpush1.bf16.msra.mxu0 %v8716_v13 }
 0x9b0   :  { %8778 = vmatprep.subr.bf16.mxu0 %v8719_v56 }
 0x9b3   :  { %8779 = vmatpush1.bf16.msra.mxu0 %v8718_v14 }
 0x9b4   :  { %12107 = vmatprep.subr.bf16.mxu0 %v16891_v41  ;;  %v12120_v41 = vpack.c.bf16 %v8852_v19, %v8851_v2 }
 0x9b6   :  { %11329 = vmatmul.mubr.msk.bf16.vlgmr.msra.gmra.mrb[156].mxu0 %vm7305_vm3, %v8672_v44  ;;  %12153 = vmatpush3.bf16.msra.mxu1 %v12120_v41 }
 0x9b7   :  { %12109 = vmatpush3.bf16.msra.mxu0 %v16902_v37  ;;  %v8869_v37 = vld [vmem:[%s17468_s7 + $0xc0] sm:$0xff] }
 0x9b8   :  { %12111 = vmatprep.subr.bf16.mxu0 %v16905_v55  ;;  %v8870_v55 = vld [vmem:[%s17468_s7 + $0xc8] sm:$0xff] }
 0x9bb   :  { %12113 = vmatpush3.bf16.msra.mxu0 %v16923_v50  ;;  %v12122_v50 = vpack.c.bf16 %v8870_v55, %v8869_v37 }
 0x9bc   :  { %12115 = vmatprep.subr.bf16.mxu0 %v16932_v36  ;;  %v8853_v36 = vld [vmem:[%s17468_s7 + $0x40] sm:$0xff] }
 0x9bd   :  { %12155 = vmatprep.subr.bf16.mxu1 %v12122_v50 }
 0x9bf   :  { %12117 = vmatpush3.bf16.msra.mxu0 %v16941_v9  ;;  %v8854_v9 = vld [vmem:[%s17468_s7 + $0x48] sm:$0xff] }
 0x9c0   :  { %12119 = vmatprep.subr.bf16.mxu0 %v16944_v40  ;;  %v12124_v40 = vpack.c.bf16 %v8854_v9, %v8853_v36 }
 0x9c2   :  { %12157 = vmatpush3.bf16.msra.mxu1 %v12124_v40 }
 0x9c3   :  { %12121 = vmatpush3.bf16.msra.mxu0 %v12120_v41  ;;  %12159 = vmatprep.subr.bf16.mxu1 %v12126_v21 }
 0x9c4   :  { %12123 = vmatprep.subr.bf16.mxu0 %v12122_v50 }
 0x9c6   :  { %12161 = vmatpush3.bf16.msra.mxu1 %v12128_v57 }
 0x9c7   :  { %12125 = vmatpush3.bf16.msra.mxu0 %v12124_v40  ;;  %12163 = vmatprep.subr.bf16.mxu1 %v12130_v0 }
 0x9c8   :  { %12127 = vmatprep.subr.bf16.mxu0 %v12126_v21 }
 0x9ca   :  { %12165 = vmatpush3.bf16.msra.mxu1 %v12132_v45 }
 0x9cb   :  { %12129 = vmatpush3.bf16.msra.mxu0 %v12128_v57  ;;  %12167 = vmatprep.subr.bf16.mxu1 %v12134_v54 }
 0x9cc   :  { %12131 = vmatprep.subr.bf16.mxu0 %v12130_v0  ;;  %v9030_v0 = vld [vmem:[%s17469_s8 + $0x8] sm:$0xff] }
 0x9ce   :  { %12169 = vmatpush3.bf16.msra.mxu1 %v12136_v60 }
 0x9cf   :  { %12133 = vmatpush3.bf16.msra.mxu0 %v12132_v45  ;;  %v12170_v45 = vpack.c.bf16 %v9032_v48, %v9030_v0 }
 0x9d0   :  { %12135 = vmatprep.subr.bf16.mxu0 %v12134_v54  ;;  %v12172_v54 = vpack.c.bf16 %v9031_v63, %v9029_v7 }
 0x9d1   :  { %12171 = vmatprep.subr.bf16.mxu1 %v12170_v45 }
 0x9d3   :  { %12137 = vmatpush3.bf16.msra.mxu0 %v12136_v60  ;;  %v9033_v60 = vld [vmem:[%s17469_s8 + $0x20] sm:$0xff] }
 0xa89   :  { %v17020_v4 = vpop.f32.mrb[156].mxu0 }
 0xa8a   :  { %v17022_v12 = vpop.f32.mrb[157].mxu0  ;;  %v8827_v47 = vmul.f32 %v17020_v4, %v17020_v4 }
 0xa8b   :  { %v17024_v8 = vpop.f32.mrb[158].mxu0  ;;  %v8828_v42 = vmul.f32 %v17022_v12, %v17022_v12 }
 0xa8c   :  { %v8813_v46 = vadd.f32 %v17024_v8, %v17020_v4  ;;  %v8829_v18 = vmul.f32 %v17024_v8, %v17024_v8  ;;  %v17032_v51 = vpop.f32.mrb[159].mxu0 }
 0xa8d   :  { %v8820_v58 = vadd.f32 %v17032_v51, %v17022_v12  ;;  %v8830_v11 = vmul.f32 %v17032_v51, %v17032_v51 }
 0xa8e   :  { %v8814_v1 = vrot.slane %v8813_v46, 4  ;;  %v8831_v39 = vadd.f32 %v8829_v18, %v8827_v47  ;;  %v9035_v47 = vld [vmem:[%s17469_s8 + $0x30] sm:$0xff] }
 0xa8f   :  { %v8821_v16 = vrot.slane %v8820_v58, 4  ;;  %v8838_v15 = vadd.f32 %v8830_v11, %v8828_v42 }
 0xa90   :  { %v8815_v3 = vadd.f32 %v8814_v1, %v8813_v46  ;;  %v8832_v13 = vrot.slane %v8831_v39, 4  ;;  %v12176_v46 = vpack.c.bf16 %v9035_v47, %v9033_v60 }
 0xa91   :  { %v8822_v56 = vadd.f32 %v8821_v16, %v8820_v58  ;;  %v8839_v14 = vrot.slane %v8838_v15, 4 }
 0xa92   :  { %v8816_v44 = vrot.slane %v8815_v3, 2  ;;  %v8833_v2 = vadd.f32 %v8832_v13, %v8831_v39 }
 0xa93   :  { %v8823_v19 = vrot.slane %v8822_v56, 2  ;;  %v8840_v41 = vadd.f32 %v8839_v14, %v8838_v15 }
 0xa94   :  { %v8817_v37 = vadd.f32 %v8816_v44, %v8815_v3  ;;  %v8834_v55 = vrot.slane %v8833_v2, 2  ;;  %v9022_v44 = vld [vmem:[%s17470_s9] sm:$0x1] }
 0xa95   :  { %v8824_v50 = vadd.f32 %v8823_v19, %v8822_v56  ;;  %v8841_v36 = vrot.slane %v8840_v41, 2 }
 0xa96   :  { %v8818_v9 = vrot.slane %v8817_v37, 1  ;;  %v8835_v40 = vadd.f32 %v8834_v55, %v8833_v2 }
 0xa97   :  { %v8825_v17 = vrot.slane %v8824_v50, 1  ;;  %v8842_v6 = vadd.f32 %v8841_v36, %v8840_v41 }
 0xa98   :  { %v8836_v21 = vrot.slane %v8835_v40, 1  ;;  %v8819_v57 = vadd.f32 %v8818_v9, %v8817_v37  ;;  %v9026_v37 = vld [vmem:[%s17470_s9 + $0x1] sm:$0x1] }
 0xa99   :  { %v8826_v43 = vadd.f32 %v8825_v17, %v8824_v50  ;;  %v8843_v5 = vrot.slane %v8842_v6, 1 }
 0xa9a   :  { %v8837_v59 = vadd.f32 %v8836_v21, %v8835_v40 }
 0xa9b   :  { %8941 = vmatprep.mubr.f32.mxu0 %v8826_v43  ;;  %v8844_v52 = vadd.f32 %v8843_v5, %v8842_v6 }
 0xa9c   :  { %8942 = vmatmul.mubr.f32.vlgmr.msra.gmra.mrb[160].mxu0 %v8819_v57 }
 0xa9d   :  { %9012 = vmatprep.mubr.f32.mxu1 %v8844_v52 }
 0xa9e   :  { %9013 = vmatmul.mubr.f32.vlgmr.msra.gmra.mrb[40].mxu1 %v8837_v59 }
 0xa9f   :  { %9104 = vmatprep.mubr.f32.mxu1 %v17517_v49  ;;  %12173 = vmatpush1.bf16.msra.mxu1 %v12172_v54 }
 0xaa0   :  { %12175 = vmatprep.subr.bf16.mxu1 %v12174_v10 }
 0xaa3   :  { %12177 = vmatpush1.bf16.msra.mxu1 %v12176_v46 }
 0xaa4   :  { %12179 = vmatprep.subr.bf16.mxu1 %v12170_v45 }
 0xb6f   :  { %v11748_v18 = vpop.f32.mrb[160].mxu0 }
 0xb70   :  { %v11749_v42 = vpop.f32.mrb[161].mxu0 }
 0xb71   :  { %v11750_v58 = vadd.f32 %v11749_v42, %v11748_v18  ;;  %v11783_v11 = vpop.f32.mrb[40].mxu1 }
 0xb72   :  { %v11784_v1 = vpop.f32.mrb[41].mxu1 }
 0xb73   :  { %v8947_v39 = vmul.f32 0.0125, %v11750_v58  ;;  %v11785_v16 = vadd.f32 %v11784_v1, %v11783_v11 }
 0xb75   :  { %v9019_v15 = vmul.f32 %v8947_v39, %v8947_v39  ;;  %v9018_v3 = vmul.f32 0.0125, %v11785_v16 }
 0xb77   :  { %v9020_v13 = vsub.f32 %v9018_v3, %v9019_v15 }
 0xb79   :  { %v9021_v56 = vmax.f32 %v9020_v13, 0.0 }
 0xb7b   :  { %v9023_v14 = vadd.f32 1e-05, %v9021_v56 }
 0xb7d   :  { %13045 = vrsqrt.f32 %v9023_v14 }
 0xb87   :  { %v13046_v2 = vpop.eup %13045 }
 0xb88   :  { %v9025_v19 = vmul.f32 %v13046_v2, %v9022_v44 }
 0xb8a   :  { %11330 = vmatmul.mubr.msk.f32.vlgmr.msra.gmra.mrb[42].mxu1 %vm4088_vm2, %v9025_v19  ;;  %v9027_v41 = vmul.f32 %v9025_v19, %v8947_v39 }
 0xb8b   :  { %12181 = vmatpush1.bf16.msra.mxu1 %v12172_v54  ;;  %9178 = vmatprep.mubr.f32.mxu1 %v17517_v49 }
 0xb8c   :  { %12183 = vmatprep.subr.bf16.mxu1 %v12174_v10  ;;  %v9028_v55 = vsub.f32 %v9026_v37, %v9027_v41 }
 0xb8f   :  { %12185 = vmatpush1.bf16.msra.mxu1 %v12176_v46 }
 0xb92   :  { %11331 = vmatmul.mubr.msk.f32.vlgmr.msra.gmra.mrb[44].mxu1 %vm4088_vm2, %v9028_v55 }
 0xb93   :  { %9267 = vmatprep.mubr.bf16.mxu1 %v17514_v20 }
 0xc5d   :  { %v9106_v50 = vpop.f32.mrb[42].mxu1 }
 0xc5e   :  { %v9188_v36 = vrot.slane %v9106_v50, %v16779_v61  ;;  %v9108_v9 = vpop.f32.mrb[43].mxu1 }
 0xc5f   :  { %v9192_v40 = vrot.slane %v9108_v9, %v16779_v61 }
 0xc60   :  { %v9193_v17 = vmul.f32 %v9188_v36, %v17020_v4  ;;  %v9195_v6 = vmul.f32 %v9188_v36, %v17024_v8 }
 0xc61   :  { %v9194_v21 = vmul.f32 %v9192_v40, %v17022_v12  ;;  %v9196_v43 = vmul.f32 %v9192_v40, %v17032_v51  ;;  %v13043_v12 = vld [vmem:[%s17471_s10] sm:$0xff]   ;;  %v13044_v51 = vld [vmem:[%s17471_s10 + $0x8] sm:$0xff]  }
 0xc65   :  { %v9180_v5 = vpop.f32.mrb[44].mxu1 }
 0xc66   :  { %v9200_v57 = vrot.slane %v9180_v5, %v16779_v61  ;;  %v9182_v52 = vpop.f32.mrb[45].mxu1 }
 0xc67   :  { %v9204_v59 = vrot.slane %v9182_v52, %v16779_v61 }
 0xc68   :  { %v9205_v0 = vadd.f32 %v9200_v57, %v9193_v17  ;;  %v9207_v48 = vadd.f32 %v9200_v57, %v9195_v6 }
 0xc69   :  { %v9206_v7 = vadd.f32 %v9204_v59, %v9194_v21  ;;  %v9208_v45 = vadd.f32 %v9204_v59, %v9196_v43 }
 0xc6a   :  { %v9209_v63 = vmax.f32 %v9205_v0, 0.0  ;;  %v9211_v62 = vmax.f32 %v9207_v48, 0.0 }
 0xc6b   :  { %v9210_v53 = vmax.f32 %v9206_v7, 0.0  ;;  %v9212_v4 = vmax.f32 %v9208_v45, 0.0 }
 0xc6c   :  { %v9217_v54 = vpack.c.bf16 %v9211_v62, %v9209_v63 }
 0xc6d   :  { %v9218_v8 = vpack.c.bf16 %v9212_v4, %v9210_v53 }
 0xc6f   :  { %9235 = vmatprep.subr.bf16.mxu1 %v9218_v8 }
 0xc70   :  { %9236 = vmatpush1.bf16.msra.mxu1 %v9217_v54 }
 0xc73   :  { %11334 = vmatmul.mubr.msk.bf16.vlgmr.msra.gmra.mrb[48].mxu1 %vm7712_vm5, %v13043_v12 }
 0xc74   :  { %9277 = vmatprep.mubr.bf16.mxu1 %v17514_v20 }
 0xc7b   :  { %11335 = vmatmul.mubr.msk.bf16.gmra.mrb[52].mxu1 %vm7712_vm5, %v13044_v51 }
 0xd46   :  { %v17092_v10 = vpop.f32.mrb[48].mxu1 }
 0xd47   :  { %v17094_v60 = vpop.f32.mrb[49].mxu1 }
 0xd48   :  { %v17096_v47 = vpop.f32.mrb[50].mxu1 }
 0xd49   :  { %v9275_v46 = vpop.f32.mrb[51].mxu1 }
 0xd4e   :  { %v17098_v18 = vpop.f32.mrb[52].mxu1 }
 0xd4f   :  { %v17100_v42 = vpop.f32.mrb[53].mxu1 }
 0xd50   :  { %v17102_v58 = vpop.f32.mrb[54].mxu1 }
 0xd51   :  { %v17104_v11 = vpop.f32.mrb[55].mxu1 }
 0xd52   :  { %13073 = dma.done.wait [#allocation5 + $0x1], 16384 }
 0xd53   :  { %13074 = vsyncadd [#allocation5 + $0x1], 4294950912  ;;  %v9327_v1 = vpack.c.bf16 %v9275_v46, %v9275_v46  ;;  %12222 = vmatprep.subr.bf16.mxu0 %v17516_v38  ;;  %v9330_v39 = vld [vmem:[#allocation3 + $0x108] sm:$0xff]  ;;  %v9329_v16 = vld [vmem:[#allocation3 + $0x100] sm:$0xff]  ;;  %v9326_v54 = vpack.c.bf16 %v17096_v47, %v17096_v47  ;;  %v9293_v8 = vpack.c.bf16 %v17094_v60, %v17094_v60  ;;  %vm9605_vm6 = vcmask 523264  }
 0xd54   :  { %v9332_v15 = vld [vmem:[#allocation3 + $0x118] sm:$0xff]  ;;  %9361 = vmatprep.subr.bf16.mxu1 %v9330_v39  ;;  %v9331_v3 = vld [vmem:[#allocation3 + $0x110] sm:$0xff]  ;;  %v9334_v13 = vld [vmem:[#allocation3 + $0x128] sm:$0xff] }
 0xd55   :  { %9393 = vmatprep.mubr.bf16.mxu1 %v9327_v1  ;;  %9362 = vmatpush1.bf16.msra.mxu1 %v9329_v16  ;;  %v9333_v56 = vld [vmem:[#allocation3 + $0x120] sm:$0xff]  ;;  %v9336_v14 = vld [vmem:[#allocation3 + $0x138] sm:$0xff]  ;;  %v9335_v44 = vld [vmem:[#allocation3 + $0x130] sm:$0xff] }
 0xd56   :  { %9363 = vmatprep.subr.bf16.mxu1 %v9332_v15  ;;  %v9338_v2 = vld [vmem:[#allocation3 + $0x148] sm:$0xff]  ;;  %v9337_v19 = vld [vmem:[#allocation3 + $0x140] sm:$0xff]  ;;  %v9340_v41 = vld [vmem:[#allocation3 + $0x158] sm:$0xff] }
 0xd57   :  { %v9339_v37 = vld [vmem:[#allocation3 + $0x150] sm:$0xff]  ;;  %v9342_v55 = vld [vmem:[#allocation3 + $0x168] sm:$0xff]  ;;  %v9341_v50 = vld [vmem:[#allocation3 + $0x160] sm:$0xff] }
 0xd58   :  { %v9344_v36 = vld [vmem:[#allocation3 + $0x178] sm:$0xff]  ;;  %v9343_v9 = vld [vmem:[#allocation3 + $0x170] sm:$0xff]  ;;  %v9346_v40 = vld [vmem:[#allocation3 + $0x188] sm:$0xff] }
 0xd59   :  { %9364 = vmatpush1.bf16.msra.mxu1 %v9331_v3  ;;  %v9345_v17 = vld [vmem:[#allocation3 + $0x180] sm:$0xff]  ;;  %v9348_v6 = vld [vmem:[#allocation3 + $0x198] sm:$0xff]  ;;  %v9347_v21 = vld [vmem:[#allocation3 + $0x190] sm:$0xff] }
 0xd5a   :  { %9365 = vmatprep.subr.bf16.mxu1 %v9334_v13  ;;  %v9350_v43 = vld [vmem:[#allocation3 + $0x1a8] sm:$0xff]  ;;  %v9349_v5 = vld [vmem:[#allocation3 + $0x1a0] sm:$0xff]  ;;  %v9352_v57 = vld [vmem:[#allocation3 + $0x1b8] sm:$0xff] }
 0xd5b   :  { %v9351_v52 = vld [vmem:[#allocation3 + $0x1b0] sm:$0xff]  ;;  %v9354_v59 = vld [vmem:[#allocation3 + $0x1c8] sm:$0xff]  ;;  %v9353_v0 = vld [vmem:[#allocation3 + $0x1c0] sm:$0xff] }
 0xd5c   :  { %v9356_v48 = vld [vmem:[#allocation3 + $0x1d8] sm:$0xff]  ;;  %v9355_v7 = vld [vmem:[#allocation3 + $0x1d0] sm:$0xff]  ;;  %v9358_v45 = vld [vmem:[#allocation3 + $0x1e8] sm:$0xff] }
 0xd5d   :  { %9366 = vmatpush1.bf16.msra.mxu1 %v9333_v56  ;;  %v9357_v63 = vld [vmem:[#allocation3 + $0x1e0] sm:$0xff]  ;;  %v9360_v62 = vld [vmem:[#allocation3 + $0x1f8] sm:$0xff]  ;;  %v9359_v53 = vld [vmem:[#allocation3 + $0x1f0] sm:$0xff] }
 0xd5e   :  { %9367 = vmatprep.subr.bf16.mxu1 %v9336_v14  ;;  %v9295_v4 = vld [vmem:[#allocation3 + $0x8] sm:$0xff]  ;;  %v9294_v12 = vld [vmem:[#allocation3] sm:$0xff]  ;;  %v9297_v51 = vld [vmem:[#allocation3 + $0x18] sm:$0xff] }
 0xd5f   :  { %v9296_v46 = vld [vmem:[#allocation3 + $0x10] sm:$0xff]  ;;  %v9299_v1 = vld [vmem:[#allocation3 + $0x28] sm:$0xff]  ;;  %v9298_v39 = vld [vmem:[#allocation3 + $0x20] sm:$0xff] }
 0xd60   :  { %v9301_v16 = vld [vmem:[#allocation3 + $0x38] sm:$0xff]  ;;  %v9300_v47 = vld [vmem:[#allocation3 + $0x30] sm:$0xff]  ;;  %v9303_v15 = vld [vmem:[#allocation3 + $0x48] sm:$0xff] }
 0xd61   :  { %9368 = vmatpush1.bf16.msra.mxu1 %v9335_v44  ;;  %v9302_v60 = vld [vmem:[#allocation3 + $0x40] sm:$0xff]  ;;  %v9305_v3 = vld [vmem:[#allocation3 + $0x58] sm:$0xff]  ;;  %v9304_v13 = vld [vmem:[#allocation3 + $0x50] sm:$0xff] }
 0xd62   :  { %9369 = vmatprep.subr.bf16.mxu1 %v9338_v2  ;;  %v9307_v56 = vld [vmem:[#allocation3 + $0x68] sm:$0xff]  ;;  %v9306_v14 = vld [vmem:[#allocation3 + $0x60] sm:$0xff]  ;;  %v9309_v44 = vld [vmem:[#allocation3 + $0x78] sm:$0xff] }
 0xd63   :  { %v9308_v2 = vld [vmem:[#allocation3 + $0x70] sm:$0xff] }
 0xd65   :  { %9370 = vmatpush1.bf16.msra.mxu1 %v9337_v19  ;;  %v9311_v19 = vld [vmem:[#allocation3 + $0x88] sm:$0xff] }
 0xd66   :  { %9371 = vmatprep.subr.bf16.mxu1 %v9340_v41  ;;  %v9310_v41 = vld [vmem:[#allocation3 + $0x80] sm:$0xff] }
 0xd69   :  { %9372 = vmatpush1.bf16.msra.mxu1 %v9339_v37  ;;  %v9313_v37 = vld [vmem:[#allocation3 + $0x98] sm:$0xff] }
 0xd6a   :  { %9373 = vmatprep.subr.bf16.mxu1 %v9342_v55  ;;  %v9312_v55 = vld [vmem:[#allocation3 + $0x90] sm:$0xff] }
 0xd6d   :  { %9374 = vmatpush1.bf16.msra.mxu1 %v9341_v50  ;;  %v9315_v50 = vld [vmem:[#allocation3 + $0xa8] sm:$0xff] }
 0xd6e   :  { %9375 = vmatprep.subr.bf16.mxu1 %v9344_v36  ;;  %v9314_v36 = vld [vmem:[#allocation3 + $0xa0] sm:$0xff] }
 0xd71   :  { %9376 = vmatpush1.bf16.msra.mxu1 %v9343_v9  ;;  %v9317_v9 = vld [vmem:[#allocation3 + $0xb8] sm:$0xff] }
 0xd72   :  { %9377 = vmatprep.subr.bf16.mxu1 %v9346_v40  ;;  %v9316_v40 = vld [vmem:[#allocation3 + $0xb0] sm:$0xff] }
 0xd75   :  { %9378 = vmatpush1.bf16.msra.mxu1 %v9345_v17  ;;  %v9319_v17 = vld [vmem:[#allocation3 + $0xc8] sm:$0xff] }
 0xd76   :  { %9379 = vmatprep.subr.bf16.mxu1 %v9348_v6  ;;  %v9318_v6 = vld [vmem:[#allocation3 + $0xc0] sm:$0xff] }
 0xd79   :  { %9380 = vmatpush1.bf16.msra.mxu1 %v9347_v21  ;;  %v9321_v21 = vld [vmem:[#allocation3 + $0xd8] sm:$0xff] }
 0xd7a   :  { %9381 = vmatprep.subr.bf16.mxu1 %v9350_v43  ;;  %v9320_v43 = vld [vmem:[#allocation3 + $0xd0] sm:$0xff] }
 0xd7d   :  { %9382 = vmatpush1.bf16.msra.mxu1 %v9349_v5  ;;  %v9323_v5 = vld [vmem:[#allocation3 + $0xe8] sm:$0xff] }
 0xd7e   :  { %9383 = vmatprep.subr.bf16.mxu1 %v9352_v57  ;;  %v9322_v57 = vld [vmem:[#allocation3 + $0xe0] sm:$0xff] }
 0xd81   :  { %9384 = vmatpush1.bf16.msra.mxu1 %v9351_v52  ;;  %v9325_v52 = vld [vmem:[#allocation3 + $0xf8] sm:$0xff] }
 0xd82   :  { %9385 = vmatprep.subr.bf16.mxu1 %v9354_v59  ;;  %v9324_v59 = vld [vmem:[#allocation3 + $0xf0] sm:$0xff] }
 0xd85   :  { %9386 = vmatpush1.bf16.msra.mxu1 %v9353_v0  ;;  %v9447_v0 = vld [vmem:[#allocation3 + $0x208] sm:$0xff] }
 0xd86   :  { %9387 = vmatprep.subr.bf16.mxu1 %v9356_v48  ;;  %v9292_v48 = vpack.c.bf16 %v17092_v10, %v17092_v10  ;;  %v9448_v10 = vld [vmem:[#allocation3 + $0x210] sm:$0xff] }
 0xd89   :  { %9388 = vmatpush1.bf16.msra.mxu1 %v9355_v7  ;;  %v9444_v7 = vpack.c.bf16 %v17100_v42, %v17100_v42  ;;  %v9630_v42 = vld [vmem:[%s17472_s11 + $0x10] sm:$0xff] }
 0xd8a   :  { %9389 = vmatprep.subr.bf16.mxu1 %v9358_v45  ;;  %v9446_v45 = vld [vmem:[#allocation3 + $0x200] sm:$0xff] }
 0xd8d   :  { %9390 = vmatpush1.bf16.msra.mxu1 %v9357_v63  ;;  %v9449_v63 = vld [vmem:[#allocation3 + $0x218] sm:$0xff] }
 0xd8e   :  { %9391 = vmatprep.subr.bf16.mxu1 %v9360_v62  ;;  %v9628_v62 = vld [vmem:[%s17472_s11] sm:$0xff] }
 0xd91   :  { %9392 = vmatpush1.bf16.msra.mxu1 %v9359_v53  ;;  %v9629_v53 = vld [vmem:[%s17472_s11 + $0x8] sm:$0xff] }
 0xd92   :  { %9402 = vmatprep.subr.bf16.mxu1 %v9295_v4  ;;  %v17121_v4 = vpack.c.bf16 %v9629_v53, %v9628_v62  ;;  %v9469_v62 = vld [vmem:[#allocation3 + $0x2b8] sm:$0xff]  ;;  %v9468_v53 = vld [vmem:[#allocation3 + $0x2b0] sm:$0xff] }
 0xd94   :  { %9394 = vmatmul.mubr.bf16.vlgmr.msra.gmra.mrb[56].mxu1 %v9326_v54  ;;  %v9631_v54 = vld [vmem:[%s17472_s11 + $0x18] sm:$0xff]  ;;  %12224 = vmatpush1.bf16.msra.mxu0 %v17121_v4 }
 0xd95   :  { %9403 = vmatpush1.bf16.msra.mxu1 %v9294_v12  ;;  %9434 = vmatprep.mubr.bf16.mxu1 %v9293_v8  ;;  %v9451_v8 = vld [vmem:[#allocation3 + $0x228] sm:$0xff]  ;;  %v17131_v12 = vpack.c.bf16 %v9631_v54, %v9630_v42  ;;  %v9470_v42 = vld [vmem:[#allocation3 + $0x2c0] sm:$0xff]  ;;  %v9473_v54 = vld [vmem:[#allocation3 + $0x2d8] sm:$0xff] }
 0xd96   :  { %9404 = vmatprep.subr.bf16.mxu1 %v9297_v51  ;;  %12225 = vmatprep.subr.bf16.mxu0 %v17516_v38  ;;  %v9450_v51 = vld [vmem:[#allocation3 + $0x220] sm:$0xff] }
 0xd98   :  { %12227 = vmatpush1.bf16.msra.mxu0 %v17131_v12 }
 0xd99   :  { %9405 = vmatpush1.bf16.msra.mxu1 %v9296_v46  ;;  %v9632_v46 = vld [vmem:[%s17472_s11 + $0x20] sm:$0xff]  ;;  %12228 = vmatprep.subr.bf16.mxu0 %v17516_v38 }
 0xd9a   :  { %9406 = vmatprep.subr.bf16.mxu1 %v9299_v1  ;;  %v9633_v1 = vld [vmem:[%s17472_s11 + $0x28] sm:$0xff] }
 0xd9d   :  { %9407 = vmatpush1.bf16.msra.mxu1 %v9298_v39  ;;  %v9453_v39 = vld [vmem:[#allocation3 + $0x238] sm:$0xff] }
 0xd9e   :  { %9408 = vmatprep.subr.bf16.mxu1 %v9301_v16  ;;  %v17141_v16 = vpack.c.bf16 %v9633_v1, %v9632_v46  ;;  %v9474_v46 = vld [vmem:[#allocation3 + $0x2e0] sm:$0xff]  ;;  %v9477_v1 = vld [vmem:[#allocation3 + $0x2f8] sm:$0xff] }
 0xda0   :  { %12230 = vmatpush1.bf16.msra.mxu0 %v17141_v16 }
 0xda1   :  { %9409 = vmatpush1.bf16.msra.mxu1 %v9300_v47  ;;  %v9452_v47 = vld [vmem:[#allocation3 + $0x230] sm:$0xff]  ;;  %12231 = vmatprep.subr.bf16.mxu0 %v17516_v38 }
 0xda2   :  { %9410 = vmatprep.subr.bf16.mxu1 %v9303_v15  ;;  %v9634_v15 = vld [vmem:[%s17472_s11 + $0x30] sm:$0xff] }
 0xda5   :  { %9411 = vmatpush1.bf16.msra.mxu1 %v9302_v60  ;;  %v9635_v60 = vld [vmem:[%s17472_s11 + $0x38] sm:$0xff] }
 0xda6   :  { %9412 = vmatprep.subr.bf16.mxu1 %v9305_v3  ;;  %v9455_v3 = vld [vmem:[#allocation3 + $0x248] sm:$0xff] }
 0xda9   :  { %9413 = vmatpush1.bf16.msra.mxu1 %v9304_v13  ;;  %v17151_v13 = vpack.c.bf16 %v9635_v60, %v9634_v15  ;;  %v9443_v15 = vpack.c.bf16 %v17098_v18, %v17098_v18  ;;  %v9522_v60 = vpack.c.bf16 %v17104_v11, %v17104_v11  ;;  %v9530_v18 = vld [vmem:[#allocation3 + $0x330] sm:$0xff]  ;;  %v9532_v11 = vld [vmem:[#allocation3 + $0x340] sm:$0xff] }
 0xdaa   :  { %9414 = vmatprep.subr.bf16.mxu1 %v9307_v56  ;;  %v9454_v56 = vld [vmem:[#allocation3 + $0x240] sm:$0xff] }
 0xdab   :  { %12233 = vmatpush1.bf16.msra.mxu0 %v17151_v13 }
 0xdac   :  { %12234 = vmatprep.subr.bf16.mxu0 %v17516_v38 }
 0xdad   :  { %9415 = vmatpush1.bf16.msra.mxu1 %v9306_v14  ;;  %v9636_v14 = vld [vmem:[%s17472_s11 + $0x40] sm:$0xff] }
 0xdae   :  { %9416 = vmatprep.subr.bf16.mxu1 %v9309_v44  ;;  %v9637_v44 = vld [vmem:[%s17472_s11 + $0x48] sm:$0xff] }
 0xdb1   :  { %9417 = vmatpush1.bf16.msra.mxu1 %v9308_v2  ;;  %v9457_v2 = vld [vmem:[#allocation3 + $0x258] sm:$0xff] }
 0xdb2   :  { %9418 = vmatprep.subr.bf16.mxu1 %v9311_v19  ;;  %v17161_v19 = vpack.c.bf16 %v9637_v44, %v9636_v14  ;;  %v9526_v14 = vld [vmem:[#allocation3 + $0x310] sm:$0xff]  ;;  %v9529_v44 = vld [vmem:[#allocation3 + $0x328] sm:$0xff] }
 0xdb4   :  { %12236 = vmatpush1.bf16.msra.mxu0 %v17161_v19 }
 0xdb5   :  { %9419 = vmatpush1.bf16.msra.mxu1 %v9310_v41  ;;  %v9456_v41 = vld [vmem:[#allocation3 + $0x250] sm:$0xff]  ;;  %12237 = vmatprep.subr.bf16.mxu0 %v17516_v38 }
 0xdb6   :  { %9420 = vmatprep.subr.bf16.mxu1 %v9313_v37  ;;  %v9638_v37 = vld [vmem:[%s17472_s11 + $0x50] sm:$0xff] }
 0xdb9   :  { %9421 = vmatpush1.bf16.msra.mxu1 %v9312_v55  ;;  %v9639_v55 = vld [vmem:[%s17472_s11 + $0x58] sm:$0xff] }
 0xdba   :  { %9422 = vmatprep.subr.bf16.mxu1 %v9315_v50  ;;  %v9459_v50 = vld [vmem:[#allocation3 + $0x268] sm:$0xff] }
 0xdbd   :  { %9423 = vmatpush1.bf16.msra.mxu1 %v9314_v36  ;;  %v17171_v36 = vpack.c.bf16 %v9639_v55, %v9638_v37  ;;  %v9533_v37 = vld [vmem:[#allocation3 + $0x348] sm:$0xff]  ;;  %v9535_v55 = vld [vmem:[#allocation3 + $0x358] sm:$0xff] }
 0xdbe   :  { %9424 = vmatprep.subr.bf16.mxu1 %v9317_v9  ;;  %v9458_v9 = vld [vmem:[#allocation3 + $0x260] sm:$0xff] }
 0xdbf   :  { %12239 = vmatpush1.bf16.msra.mxu0 %v17171_v36 }
 0xdc0   :  { %12240 = vmatprep.subr.bf16.mxu0 %v17516_v38 }
 0xdc1   :  { %9425 = vmatpush1.bf16.msra.mxu1 %v9316_v40  ;;  %v9640_v40 = vld [vmem:[%s17472_s11 + $0x60] sm:$0xff] }
 0xdc2   :  { %9426 = vmatprep.subr.bf16.mxu1 %v9319_v17  ;;  %v9641_v17 = vld [vmem:[%s17472_s11 + $0x68] sm:$0xff] }
 0xdc5   :  { %9427 = vmatpush1.bf16.msra.mxu1 %v9318_v6  ;;  %v9461_v6 = vld [vmem:[#allocation3 + $0x278] sm:$0xff] }
 0xdc6   :  { %9428 = vmatprep.subr.bf16.mxu1 %v9321_v21  ;;  %v17181_v21 = vpack.c.bf16 %v9641_v17, %v9640_v40  ;;  %v9536_v40 = vld [vmem:[#allocation3 + $0x360] sm:$0xff]  ;;  %v9539_v17 = vld [vmem:[#allocation3 + $0x378] sm:$0xff] }
 0xdc8   :  { %12242 = vmatpush1.bf16.msra.mxu0 %v17181_v21 }
 0xdc9   :  { %9429 = vmatpush1.bf16.msra.mxu1 %v9320_v43  ;;  %v9460_v43 = vld [vmem:[#allocation3 + $0x270] sm:$0xff]  ;;  %12243 = vmatprep.subr.bf16.mxu0 %v17516_v38 }
 0xdca   :  { %9430 = vmatprep.subr.bf16.mxu1 %v9323_v5  ;;  %v9642_v5 = vld [vmem:[%s17472_s11 + $0x70] sm:$0xff] }
 0xdcd   :  { %9431 = vmatpush1.bf16.msra.mxu1 %v9322_v57  ;;  %v9643_v57 = vld [vmem:[%s17472_s11 + $0x78] sm:$0xff] }
 0xdce   :  { %9432 = vmatprep.subr.bf16.mxu1 %v9325_v52  ;;  %v9463_v52 = vld [vmem:[#allocation3 + $0x288] sm:$0xff] }
 0xdd1   :  { %9433 = vmatpush1.bf16.msra.mxu1 %v9324_v59  ;;  %v17191_v59 = vpack.c.bf16 %v9643_v57, %v9642_v5  ;;  %v9540_v5 = vld [vmem:[#allocation3 + $0x380] sm:$0xff]  ;;  %v9543_v57 = vld [vmem:[#allocation3 + $0x398] sm:$0xff] }
 0xdd2   :  { %9478 = vmatprep.subr.bf16.mxu1 %v9447_v0  ;;  %v9462_v0 = vld [vmem:[#allocation3 + $0x280] sm:$0xff] }
 0xdd3   :  { %12245 = vmatpush1.bf16.msra.mxu0 %v17191_v59 }
 0xdd4   :  { %9435 = vmatmul.mubr.bf16.vlgmr.msra.gmra.mrb[56].mxu1 %v9292_v48  ;;  %v9465_v48 = vld [vmem:[#allocation3 + $0x298] sm:$0xff]  ;;  %12246 = vmatprep.subr.bf16.mxu0 %v17516_v38 }
 0xdd5   :  { %9479 = vmatpush1.bf16.msra.mxu1 %v9446_v45  ;;  %9510 = vmatprep.mubr.bf16.mxu1 %v9444_v7  ;;  %v9464_v7 = vld [vmem:[#allocation3 + $0x290] sm:$0xff]  ;;  %v9467_v45 = vld [vmem:[#allocation3 + $0x2a8] sm:$0xff] }
 0xdd6   :  { %9480 = vmatprep.subr.bf16.mxu1 %v9449_v63  ;;  %v9466_v63 = vld [vmem:[#allocation3 + $0x2a0] sm:$0xff] }
 0xdd9   :  { %9481 = vmatpush1.bf16.msra.mxu1 %v9448_v10  ;;  %v9471_v10 = vld [vmem:[#allocation3 + $0x2c8] sm:$0xff] }
 0xdda   :  { %9482 = vmatprep.subr.bf16.mxu1 %v9451_v8  ;;  %v9472_v8 = vld [vmem:[#allocation3 + $0x2d0] sm:$0xff] }
 0xddd   :  { %9483 = vmatpush1.bf16.msra.mxu1 %v9450_v51  ;;  %v9475_v51 = vld [vmem:[#allocation3 + $0x2e8] sm:$0xff] }
 0xdde   :  { %9484 = vmatprep.subr.bf16.mxu1 %v9453_v39  ;;  %v9476_v39 = vld [vmem:[#allocation3 + $0x2f0] sm:$0xff] }
 0xde1   :  { %9485 = vmatpush1.bf16.msra.mxu1 %v9452_v47  ;;  %v9525_v47 = vld [vmem:[#allocation3 + $0x308] sm:$0xff] }
 0xde2   :  { %9486 = vmatprep.subr.bf16.mxu1 %v9455_v3  ;;  %v9524_v3 = vld [vmem:[#allocation3 + $0x300] sm:$0xff] }
 0xde5   :  { %9487 = vmatpush1.bf16.msra.mxu1 %v9454_v56  ;;  %v9527_v56 = vld [vmem:[#allocation3 + $0x318] sm:$0xff] }
 0xde6   :  { %9488 = vmatprep.subr.bf16.mxu1 %v9457_v2  ;;  %v9528_v2 = vld [vmem:[#allocation3 + $0x320] sm:$0xff] }
 0xde9   :  { %9489 = vmatpush1.bf16.msra.mxu1 %v9456_v41  ;;  %v9531_v41 = vld [vmem:[#allocation3 + $0x338] sm:$0xff] }
 0xdea   :  { %9490 = vmatprep.subr.bf16.mxu1 %v9459_v50  ;;  %v9534_v50 = vld [vmem:[#allocation3 + $0x350] sm:$0xff] }
 0xded   :  { %9491 = vmatpush1.bf16.msra.mxu1 %v9458_v9  ;;  %v9537_v9 = vld [vmem:[#allocation3 + $0x368] sm:$0xff] }
 0xdee   :  { %9492 = vmatprep.subr.bf16.mxu1 %v9461_v6  ;;  %v9538_v6 = vld [vmem:[#allocation3 + $0x370] sm:$0xff] }
 0xdf1   :  { %9493 = vmatpush1.bf16.msra.mxu1 %v9460_v43  ;;  %v9541_v43 = vld [vmem:[#allocation3 + $0x388] sm:$0xff] }
 0xdf2   :  { %9494 = vmatprep.subr.bf16.mxu1 %v9463_v52  ;;  %v9542_v52 = vld [vmem:[#allocation3 + $0x390] sm:$0xff] }
 0xdf5   :  { %9495 = vmatpush1.bf16.msra.mxu1 %v9462_v0  ;;  %v9545_v0 = vld [vmem:[#allocation3 + $0x3a8] sm:$0xff] }
 0xdf6   :  { %9496 = vmatprep.subr.bf16.mxu1 %v9465_v48  ;;  %v9544_v48 = vld [vmem:[#allocation3 + $0x3a0] sm:$0xff] }
 0xdf9   :  { %9497 = vmatpush1.bf16.msra.mxu1 %v9464_v7  ;;  %v9547_v7 = vld [vmem:[#allocation3 + $0x3b8] sm:$0xff] }
 0xdfa   :  { %9498 = vmatprep.subr.bf16.mxu1 %v9467_v45  ;;  %v9546_v45 = vld [vmem:[#allocation3 + $0x3b0] sm:$0xff] }
 0xdfd   :  { %9499 = vmatpush1.bf16.msra.mxu1 %v9466_v63  ;;  %v9549_v63 = vld [vmem:[#allocation3 + $0x3c8] sm:$0xff] }
 0xdfe   :  { %9500 = vmatprep.subr.bf16.mxu1 %v9469_v62  ;;  %v9548_v62 = vld [vmem:[#allocation3 + $0x3c0] sm:$0xff] }
 0xe01   :  { %9501 = vmatpush1.bf16.msra.mxu1 %v9468_v53  ;;  %v9551_v53 = vld [vmem:[#allocation3 + $0x3d8] sm:$0xff] }
 0xe02   :  { %9502 = vmatprep.subr.bf16.mxu1 %v9471_v10  ;;  %v9550_v10 = vld [vmem:[#allocation3 + $0x3d0] sm:$0xff] }
 0xe05   :  { %9503 = vmatpush1.bf16.msra.mxu1 %v9470_v42  ;;  %v9553_v42 = vld [vmem:[#allocation3 + $0x3e8] sm:$0xff] }
 0xe06   :  { %9504 = vmatprep.subr.bf16.mxu1 %v9473_v54  ;;  %v9552_v54 = vld [vmem:[#allocation3 + $0x3e0] sm:$0xff] }
 0xe09   :  { %9505 = vmatpush1.bf16.msra.mxu1 %v9472_v8  ;;  %v9555_v8 = vld [vmem:[#allocation3 + $0x3f8] sm:$0xff] }
 0xe0a   :  { %9506 = vmatprep.subr.bf16.mxu1 %v9475_v51  ;;  %v9554_v51 = vld [vmem:[#allocation3 + $0x3f0] sm:$0xff] }
 0xe0d   :  { %9507 = vmatpush1.bf16.msra.mxu1 %v9474_v46  ;;  %v9521_v46 = vpack.c.bf16 %v17102_v58, %v17102_v58  ;;  %v9644_v58 = vld [vmem:[%s17472_s11 + $0x80] sm:$0xff] }
 0xe0e   :  { %9508 = vmatprep.subr.bf16.mxu1 %v9477_v1  ;;  %v9650_v1 = vld [vmem:[%s17472_s11 + $0xb0] sm:$0xff] }
 0xe11   :  { %9509 = vmatpush1.bf16.msra.mxu1 %v9476_v39  ;;  %v9651_v39 = vld [vmem:[%s17472_s11 + $0xb8] sm:$0xff] }
 0xe12   :  { %9556 = vmatprep.subr.bf16.mxu1 %v9525_v47  ;;  %v12220_v47 = vpack.c.bf16 %v9651_v39, %v9650_v1  ;;  %v9819_v39 = vld [vmem:[%s17473_s12 + $0x48] sm:$0xff] }
 0xe14   :  { %9511 = vmatmul.mubr.bf16.vlgmr.msra.gmra.mrb[56].mxu1 %v9443_v15 }
 0xe15   :  { %9557 = vmatpush1.bf16.msra.mxu1 %v9524_v3  ;;  %9588 = vmatprep.mubr.bf16.mxu1 %v9522_v60 }
 0xe16   :  { %9558 = vmatprep.subr.bf16.mxu1 %v9527_v56 }
 0xe19   :  { %9559 = vmatpush1.bf16.msra.mxu1 %v9526_v14 }
 0xe1a   :  { %9560 = vmatprep.subr.bf16.mxu1 %v9529_v44 }
 0xe1d   :  { %9561 = vmatpush1.bf16.msra.mxu1 %v9528_v2 }
 0xe1e   :  { %9562 = vmatprep.subr.bf16.mxu1 %v9531_v41 }
 0xe21   :  { %9563 = vmatpush1.bf16.msra.mxu1 %v9530_v18 }
 0xe22   :  { %9564 = vmatprep.subr.bf16.mxu1 %v9533_v37 }
 0xe25   :  { %9565 = vmatpush1.bf16.msra.mxu1 %v9532_v11 }
 0xe26   :  { %9566 = vmatprep.subr.bf16.mxu1 %v9535_v55 }
 0xe29   :  { %9567 = vmatpush1.bf16.msra.mxu1 %v9534_v50 }
 0xe2a   :  { %9568 = vmatprep.subr.bf16.mxu1 %v9537_v9 }
 0xe2d   :  { %9569 = vmatpush1.bf16.msra.mxu1 %v9536_v40 }
 0xe2e   :  { %9570 = vmatprep.subr.bf16.mxu1 %v9539_v17 }
 0xe31   :  { %9571 = vmatpush1.bf16.msra.mxu1 %v9538_v6 }
 0xe32   :  { %9572 = vmatprep.subr.bf16.mxu1 %v9541_v43 }
 0xe35   :  { %9573 = vmatpush1.bf16.msra.mxu1 %v9540_v5 }
 0xe36   :  { %9574 = vmatprep.subr.bf16.mxu1 %v9543_v57 }
 0xe39   :  { %9575 = vmatpush1.bf16.msra.mxu1 %v9542_v52 }
 0xe3a   :  { %9576 = vmatprep.subr.bf16.mxu1 %v9545_v0 }
 0xe3d   :  { %9577 = vmatpush1.bf16.msra.mxu1 %v9544_v48 }
 0xe3e   :  { %9578 = vmatprep.subr.bf16.mxu1 %v9547_v7 }
 0xe41   :  { %9579 = vmatpush1.bf16.msra.mxu1 %v9546_v45 }
 0xe42   :  { %9580 = vmatprep.subr.bf16.mxu1 %v9549_v63 }
 0xe45   :  { %9581 = vmatpush1.bf16.msra.mxu1 %v9548_v62 }
 0xe46   :  { %9582 = vmatprep.subr.bf16.mxu1 %v9551_v53 }
 0xe49   :  { %9583 = vmatpush1.bf16.msra.mxu1 %v9550_v10 }
 0xe4a   :  { %9584 = vmatprep.subr.bf16.mxu1 %v9553_v42 }
 0xe4d   :  { %9585 = vmatpush1.bf16.msra.mxu1 %v9552_v54 }
 0xe4e   :  { %9586 = vmatprep.subr.bf16.mxu1 %v9555_v8 }
 0xe51   :  { %9587 = vmatpush1.bf16.msra.mxu1 %v9554_v51  ;;  %v9811_v51 = vld [vmem:[%s17473_s12 + $0x8] sm:$0xff] }
 0xe52   :  { %12186 = vmatprep.subr.bf16.mxu1 %v17516_v38 }
 0xe54   :  { %9589 = vmatmul.mubr.bf16.vlgmr.msra.gmra.mrb[56].mxu1 %v9521_v46  ;;  %v9813_v46 = vld [vmem:[%s17473_s12 + $0x18] sm:$0xff] }
 0xe55   :  { %12188 = vmatpush1.bf16.msra.mxu1 %v17121_v4  ;;  %v9645_v4 = vld [vmem:[%s17472_s11 + $0x88] sm:$0xff] }
 0xe56   :  { %12189 = vmatprep.subr.bf16.mxu1 %v17516_v38 }
 0xe59   :  { %12191 = vmatpush1.bf16.msra.mxu1 %v17131_v12  ;;  %v12211_v12 = vpack.c.bf16 %v9645_v4, %v9644_v58  ;;  %v12258_v58 = vpack.c.bf16 %v9813_v46, %v9811_v51  ;;  %v9810_v4 = vld [vmem:[%s17473_s12] sm:$0xff] }
 0xe5a   :  { %12192 = vmatprep.subr.bf16.mxu1 %v17516_v38 }
 0xe5b   :  { %12248 = vmatpush1.bf16.msra.mxu0 %v12211_v12 }
 0xe5c   :  { %12249 = vmatprep.subr.bf16.mxu0 %v17516_v38 }
 0xe5d   :  { %12194 = vmatpush1.bf16.msra.mxu1 %v17141_v16  ;;  %v9646_v16 = vld [vmem:[%s17472_s11 + $0x90] sm:$0xff] }
 0xe5e   :  { %12195 = vmatprep.subr.bf16.mxu1 %v17516_v38 }
 0xe61   :  { %12197 = vmatpush1.bf16.msra.mxu1 %v17151_v13  ;;  %v9647_v13 = vld [vmem:[%s17472_s11 + $0x98] sm:$0xff] }
 0xe62   :  { %12198 = vmatprep.subr.bf16.mxu1 %v17516_v38 }
 0xe65   :  { %12200 = vmatpush1.bf16.msra.mxu1 %v17161_v19  ;;  %v12214_v19 = vpack.c.bf16 %v9647_v13, %v9646_v16  ;;  %v9815_v13 = vld [vmem:[%s17473_s12 + $0x28] sm:$0xff] }
 0xe66   :  { %12201 = vmatprep.subr.bf16.mxu1 %v17516_v38 }
 0xe67   :  { %12251 = vmatpush1.bf16.msra.mxu0 %v12214_v19 }
 0xe68   :  { %12252 = vmatprep.subr.bf16.mxu0 %v17516_v38 }
 0xe69   :  { %12203 = vmatpush1.bf16.msra.mxu1 %v17171_v36  ;;  %v9648_v36 = vld [vmem:[%s17472_s11 + $0xa0] sm:$0xff] }
 0xe6a   :  { %12204 = vmatprep.subr.bf16.mxu1 %v17516_v38 }
 0xe6d   :  { %12206 = vmatpush1.bf16.msra.mxu1 %v17181_v21  ;;  %v9649_v21 = vld [vmem:[%s17472_s11 + $0xa8] sm:$0xff] }
 0xe6e   :  { %12207 = vmatprep.subr.bf16.mxu1 %v17516_v38 }
 0xe71   :  { %12209 = vmatpush1.bf16.msra.mxu1 %v17191_v59  ;;  %v12217_v59 = vpack.c.bf16 %v9649_v21, %v9648_v36  ;;  %v9814_v21 = vld [vmem:[%s17473_s12 + $0x20] sm:$0xff] }
 0xe72   :  { %12210 = vmatprep.subr.bf16.mxu1 %v17516_v38 }
 0xe73   :  { %12254 = vmatpush1.bf16.msra.mxu0 %v12217_v59 }
 0xe74   :  { %12255 = vmatprep.subr.bf16.mxu0 %v17516_v38 }
 0xe75   :  { %12212 = vmatpush1.bf16.msra.mxu1 %v12211_v12  ;;  %v9812_v12 = vld [vmem:[%s17473_s12 + $0x10] sm:$0xff] }
 0xe76   :  { %12213 = vmatprep.subr.bf16.mxu1 %v17516_v38  ;;  %v12260_v16 = vpack.c.bf16 %v9812_v12, %v9810_v4 }
 0xe77   :  { %12257 = vmatpush1.bf16.msra.mxu0 %v12220_v47 }
 0xe78   :  { %12275 = vmatprep.subr.bf16.mxu0 %v12258_v58 }
 0xe79   :  { %12215 = vmatpush1.bf16.msra.mxu1 %v12214_v19  ;;  %v9817_v19 = vld [vmem:[%s17473_s12 + $0x38] sm:$0xff] }
 0xe7a   :  { %12216 = vmatprep.subr.bf16.mxu1 %v17516_v38  ;;  %v12262_v36 = vpack.c.bf16 %v9817_v19, %v9815_v13 }
 0xe7d   :  { %12218 = vmatpush1.bf16.msra.mxu1 %v12217_v59  ;;  %v9816_v59 = vld [vmem:[%s17473_s12 + $0x30] sm:$0xff] }
 0xe7e   :  { %12219 = vmatprep.subr.bf16.mxu1 %v17516_v38  ;;  %v12264_v1 = vpack.c.bf16 %v9816_v59, %v9814_v21 }
 0xe81   :  { %12221 = vmatpush1.bf16.msra.mxu1 %v12220_v47  ;;  %v9821_v47 = vld [vmem:[%s17473_s12 + $0x58] sm:$0xff] }
 0xe82   :  { %12259 = vmatprep.subr.bf16.mxu1 %v12258_v58 }
 0xf27   :  { %v17248_v15 = vpop.f32.mrb[56].mxu1 }
 0xf28   :  { %v9599_v60 = vrot.slane %v17248_v15, 4  ;;  %v9613_v3 = vmul.f32 %v17248_v15, %v17248_v15  ;;  %v17253_v56 = vpop.f32.mrb[57].mxu1 }
 0xf29   :  { %v9606_v14 = vsel %vm9605_vm6, %v17253_v56, 0.0  ;;  %v9614_v44 = vmul.f32 %v17253_v56, %v17253_v56  ;;  %v9594_v2 = vpop.f32.mrb[58].mxu1 }
 0xf2a   :  { %v9600_v41 = vadd.f32 %v9599_v60, %v17248_v15  ;;  %v9615_v18 = vrot.slane %v9613_v3, 4  ;;  %v9607_v37 = vrot.slane %v9606_v14, 4  ;;  %v9595_v11 = vpop.f32.mrb[59].mxu1  ;;  %v9818_v60 = vld [vmem:[%s17473_s12 + $0x40] sm:$0xff]  ;;  %v9825_v2 = vld [vmem:[%s17473_s12 + $0x78] sm:$0xff] }
 0xf2b   :  { %v9621_v55 = vsel %vm9605_vm6, %v9614_v44, 0.0  ;;  %v9823_v44 = vld [vmem:[%s17473_s12 + $0x68] sm:$0xff]  ;;  %v9824_v11 = vld [vmem:[%s17473_s12 + $0x70] sm:$0xff] }
 0xf2c   :  { %v9601_v50 = vrot.slane %v9600_v41, 2  ;;  %v9616_v9 = vadd.f32 %v9615_v18, %v9613_v3  ;;  %v9608_v40 = vadd.f32 %v9607_v37, %v9606_v14  ;;  %v9622_v17 = vrot.slane %v9621_v55, 4  ;;  %v9820_v14 = vld [vmem:[%s17473_s12 + $0x50] sm:$0xff]  ;;  %v9822_v37 = vld [vmem:[%s17473_s12 + $0x60] sm:$0xff] }
 0xf2d   :  { %v12266_v3 = vpack.c.bf16 %v9821_v47, %v9819_v39  ;;  %v12270_v18 = vpack.c.bf16 %v9825_v2, %v9823_v44 }
 0xf2e   :  { %v9602_v6 = vadd.f32 %v9601_v50, %v9600_v41  ;;  %v9609_v43 = vrot.slane %v9608_v40, 2  ;;  %v9623_v5 = vadd.f32 %v9622_v17, %v9621_v55  ;;  %v9617_v57 = vrot.slane %v9616_v9, 2 }
 0xf2f   :  { %v12268_v41 = vpack.c.bf16 %v9820_v14, %v9818_v60  ;;  %v12272_v55 = vpack.c.bf16 %v9824_v11, %v9822_v37 }
 0xf30   :  { %v9610_v52 = vadd.f32 %v9609_v43, %v9608_v40  ;;  %v9624_v0 = vrot.slane %v9623_v5, 2  ;;  %v9618_v48 = vadd.f32 %v9617_v57, %v9616_v9  ;;  %v9603_v7 = vrot.slane %v9602_v6, 1 }
 0xf32   :  { %v9611_v45 = vrot.slane %v9610_v52, 1  ;;  %v9625_v63 = vadd.f32 %v9624_v0, %v9623_v5  ;;  %v9619_v62 = vrot.slane %v9618_v48, 1  ;;  %v9604_v42 = vadd.f32 %v9603_v7, %v9602_v6 }
 0xf34   :  { %v9612_v53 = vadd.f32 %v9611_v45, %v9610_v52  ;;  %v9626_v10 = vrot.slane %v9625_v63, 1  ;;  %v9620_v8 = vadd.f32 %v9619_v62, %v9618_v48  ;;  %v9803_v48 = vld [vmem:[%s17474_s13] sm:$0x1] }
 0xf36   :  { %11336 = vmatprep.mubr.msk.f32.mxu1 %vm9605_vm6, %v9612_v53  ;;  %v9627_v54 = vadd.f32 %v9626_v10, %v9625_v63  ;;  %v9807_v63 = vld [vmem:[%s17474_s13 + $0x1] sm:$0x1] }
 0xf37   :  { %9720 = vmatmul.mubr.f32.vlgmr.msra.gmra.mrb[46].mxu1 %v9604_v42 }
 0xf38   :  { %11337 = vmatprep.mubr.msk.f32.mxu0 %vm9605_vm6, %v9627_v54  ;;  %9893 = vmatprep.mubr.f32.mxu1 %v17517_v49 }
 0xf39   :  { %9794 = vmatmul.mubr.f32.vlgmr.msra.gmra.mrb[162].mxu0 %v9620_v8  ;;  %12261 = vmatpush1.bf16.msra.mxu1 %v12260_v16 }
 0xf3a   :  { %9967 = vmatprep.mubr.f32.mxu0 %v17517_v49  ;;  %12277 = vmatpush1.bf16.msra.mxu0 %v12260_v16 }
 0xf3b   :  { %12263 = vmatprep.subr.bf16.mxu1 %v12262_v36  ;;  %12279 = vmatprep.subr.bf16.mxu0 %v12262_v36 }
 0xf3d   :  { %12265 = vmatpush1.bf16.msra.mxu1 %v12264_v1 }
 0xf3e   :  { %12281 = vmatpush1.bf16.msra.mxu0 %v12264_v1  ;;  %12267 = vmatprep.subr.bf16.mxu1 %v12266_v3 }
 0xf3f   :  { %12283 = vmatprep.subr.bf16.mxu0 %v12266_v3 }
 0xf41   :  { %12269 = vmatpush1.bf16.msra.mxu1 %v12268_v41 }
 0xf42   :  { %12285 = vmatpush1.bf16.msra.mxu0 %v12268_v41  ;;  %12271 = vmatprep.subr.bf16.mxu1 %v12270_v18 }
 0xf43   :  { %12287 = vmatprep.subr.bf16.mxu0 %v12270_v18 }
 0xf45   :  { %12273 = vmatpush1.bf16.msra.mxu1 %v12272_v55 }
 0xf46   :  { %12289 = vmatpush1.bf16.msra.mxu0 %v12272_v55 }
0x100a   :  { %v9721_v50 = vpop.f32.mrb[46].mxu1 }
0x100b   :  { %v9725_v9 = vmul.f32 0.083333336, %v9721_v50  ;;  %v9723_v40 = vpop.f32.mrb[47].mxu1 }
0x100c   :  { %v9795_v17 = vpop.f32.mrb[162].mxu0 }
0x100d   :  { %v9800_v6 = vmul.f32 %v9725_v9, %v9725_v9  ;;  %v9799_v43 = vmul.f32 0.083333336, %v9795_v17  ;;  %v9797_v5 = vpop.f32.mrb[163].mxu0 }
0x100f   :  { %v9801_v57 = vsub.f32 %v9799_v43, %v9800_v6 }
0x1011   :  { %v9802_v52 = vmax.f32 %v9801_v57, 0.0 }
0x1013   :  { %v9804_v0 = vadd.f32 1e-05, %v9802_v52 }
0x1015   :  { %13047 = vrsqrt.f32 %v9804_v0 }
0x101f   :  { %v13048_v7 = vpop.eup %13047 }
0x1020   :  { %v9806_v45 = vmul.f32 %v13048_v7, %v9803_v48 }
0x1022   :  { %11338 = vmatmul.mubr.msk.f32.vlgmr.msra.gmra.mrb[60].mxu1 %vm9605_vm6, %v9806_v45  ;;  %v9808_v62 = vmul.f32 %v9806_v45, %v9725_v9 }
0x1024   :  { %v9809_v53 = vsub.f32 %v9807_v63, %v9808_v62 }
0x1026   :  { %11339 = vmatmul.mubr.msk.f32.vlgmr.msra.gmra.mrb[164].mxu0 %vm9605_vm6, %v9809_v53 }
0x10f5   :  { %v9895_v10 = vpop.f32.mrb[60].mxu1 }
0x10f6   :  { %v9977_v42 = vrot.slane %v9895_v10, %v16779_v61  ;;  %v9897_v54 = vpop.f32.mrb[61].mxu1 }
0x10f7   :  { %v9981_v8 = vrot.slane %v9897_v54, %v16779_v61 }
0x10f8   :  { %v9982_v51 = vmul.f32 %v9977_v42, %v17248_v15 }
0x10f9   :  { %v9983_v46 = vmul.f32 %v9981_v8, %v17253_v56  ;;  %v9969_v58 = vpop.f32.mrb[164].mxu0 }
0x10fa   :  { %v9987_v4 = vrot.slane %v9969_v58, %v16779_v61  ;;  %v9971_v12 = vpop.f32.mrb[165].mxu0 }
0x10fb   :  { %v9991_v16 = vrot.slane %v9971_v12, %v16779_v61 }
0x10fc   :  { %v9992_v13 = vadd.f32 %v9987_v4, %v9982_v51 }
0x10fd   :  { %v9993_v19 = vadd.f32 %v9991_v16, %v9983_v46 }
0x10fe   :  { %v9994_v36 = vmax.f32 %v9992_v13, 0.0 }
0x10ff   :  { %v9995_v21 = vmax.f32 %v9993_v19, 0.0 }
0x1100   :  { %13075 = dma.done.wait [#allocation5 + $0x2], 3072 }
0x1101   :  { %13076 = vsyncadd [#allocation5 + $0x2], 4294964224  ;;  %10007 = vmatprep.subr.mxu1 %v9995_v21  ;;  %10071 = vmatprep.mubr.f32.mxu1 %v17517_v49  ;;  %vm10003_vm7 = vcmask 64512   ;;  %v10002_v61 = vld [vmem:[%s17475_s14] sm:$0x3]  ;;  %v10286_v56 = vld [vmem:[%s17477_s16 + $0x48] sm:$0xff] }
0x1102   :  { %10008 = vmatpush1.msra.mxu1 %v9994_v36  ;;  %10147 = vmatprep.subr.mxu0 %v9995_v21  ;;  %v11343_v15 = vld [vmem:[%s17475_s14 + $0x2] sm:$0x3]  ;;  %v10287_v1 = vld [vmem:[%s17477_s16 + $0x50] sm:$0xff]  ;;  %v10288_v39 = vld [vmem:[%s17477_s16 + $0x58] sm:$0xff]  ;;  %s13083_s10 = smov [#allocation6]   ;;  %vm10370_vm8 = vcmask 17408  }
0x1103   :  { %10148 = vmatpush1.msra.mxu0 %v9994_v36  ;;  %10211 = vmatprep.mubr.f32.mxu0 %v17517_v49  ;;  %v12306_v47 = vpack.c.bf16 %v10288_v39, %v10287_v1  ;;  %v10289_v60 = vld [vmem:[%s17477_s16 + $0x60] sm:$0xff]  ;;  %v10290_v3 = vld [vmem:[%s17477_s16 + $0x68] sm:$0xff]  ;;  %v17522_v9 = vld [vmem:[#allocation17_spill] sm:$0xff]  ;;  %s10378_s18 = sshll.u32 %s13083_s10, 4  ;;  %s10379_s18 = int_to_ptr.vmem [resolvable:$true] %s10378_s18 }
0x1104   :  { %10095 = vmatprep.subr.bf16.mxu1 %v17514_v20  ;;  %12290 = vmatprep.subr.bf16.mxu0 %v17516_v38  ;;  %v12309_v14 = vpack.c.bf16 %v10290_v3, %v10289_v60  ;;  %v17521_v50 = vld [vmem:[#allocation16_spill] sm:$0xff]  ;;  %v17524_v40 = vld [vmem:[#allocation19_spill] sm:$0xff]  ;;  %v17526_v17 = vld [vmem:[#allocation21_spill] sm:$0xff]  ;;  %p13054_p1 = scmp.lt.s32.totalorder %s10379_s18, %s10379_s18 }
0x1105   :  { %11340 = vmatmul.mubr.msk.f32.vlgmr.msra.gmra.mrb[62].mxu1 %vm10003_vm7, %v10002_v61  ;;  %11344 = vmatmul.mubr.msk.f32.vlgmr.msra.gmra.mrb[166].mxu0 %vm10003_vm7, %v11343_v15  ;;  %v17527_v6 = vld [vmem:[#allocation22_spill] sm:$0xff]  ;;  %v17528_v43 = vld [vmem:[#allocation23_spill] sm:$0xff]  ;;  %v17529_v5 = vld [vmem:[#allocation24_spill] sm:$0xff] }
0x1106   :  { %10096 = vmatpush1.bf16.msra.mxu1 %v14607_v22  ;;  %11983 = vmatprep.mubr.msk.f32.mxu0 %vm13081_vm4, %v17517_v49  ;;  %v10277_v22 = vld [vmem:[%s17477_s16] sm:$0xff]  ;;  %v10291_v52 = vld [vmem:[%s17477_s16 + $0x70] sm:$0xff]  ;;  %v10292_v0 = vld [vmem:[%s17477_s16 + $0x78] sm:$0xff] }
0x1107   :  { %10097 = vmatprep.subr.bf16.mxu1 %v17514_v20  ;;  %v10285_v49 = vld [vmem:[%s17477_s16 + $0x40] sm:$0xff]  ;;  %v12312_v48 = vpack.c.bf16 %v10292_v0, %v10291_v52 }
0x1108   :  { %v12303_v59 = vpack.c.bf16 %v10286_v56, %v10285_v49  ;;  %v11342_v7 = vld [vmem:[%s17476_s15] ss:$0 sm:$0xff] }
0x1109   :  { %v11346_v10 = vld [vmem:[%s17478_s17] ss:$0 sm:$0xff] }
0x110a   :  { %10098 = vmatpush1.bf16.msra.mxu1 %v14612_v23  ;;  %v10278_v23 = vld [vmem:[%s17477_s16 + $0x8] sm:$0xff] }
0x110b   :  { %10099 = vmatprep.subr.bf16.mxu1 %v17514_v20 }
0x110e   :  { %10100 = vmatpush1.bf16.msra.mxu1 %v14617_v24  ;;  %v10279_v24 = vld [vmem:[%s17477_s16 + $0x10] sm:$0xff] }
0x110f   :  { %10101 = vmatprep.subr.bf16.mxu1 %v17514_v20 }
0x1112   :  { %10102 = vmatpush1.bf16.msra.mxu1 %v14622_v25  ;;  %v12291_v25 = vpack.c.bf16 %v10278_v23, %v10277_v22 }
0x1113   :  { %10103 = vmatprep.subr.bf16.mxu1 %v17514_v20 }
0x1114   :  { %12292 = vmatpush3.bf16.msra.mxu0 %v12291_v25 }
0x1115   :  { %12293 = vmatprep.subr.bf16.mxu0 %v17516_v38 }
0x1116   :  { %10104 = vmatpush1.bf16.msra.mxu1 %v14627_v26  ;;  %v10280_v26 = vld [vmem:[%s17477_s16 + $0x18] sm:$0xff] }
0x1117   :  { %10105 = vmatprep.subr.bf16.mxu1 %v17514_v20 }
0x111a   :  { %10106 = vmatpush1.bf16.msra.mxu1 %v14632_v27  ;;  %v12294_v27 = vpack.c.bf16 %v10280_v26, %v10279_v24 }
0x111b   :  { %10107 = vmatprep.subr.bf16.mxu1 %v17514_v20 }
0x111c   :  { %12295 = vmatpush3.bf16.msra.mxu0 %v12294_v27 }
0x111d   :  { %12296 = vmatprep.subr.bf16.mxu0 %v17516_v38 }
0x111e   :  { %10108 = vmatpush1.bf16.msra.mxu1 %v14637_v28  ;;  %v10281_v28 = vld [vmem:[%s17477_s16 + $0x20] sm:$0xff] }
0x111f   :  { %10109 = vmatprep.subr.bf16.mxu1 %v17514_v20 }
0x1122   :  { %10110 = vmatpush1.bf16.msra.mxu1 %v14642_v29  ;;  %v10282_v29 = vld [vmem:[%s17477_s16 + $0x28] sm:$0xff] }
0x1123   :  { %10111 = vmatprep.subr.bf16.mxu1 %v17514_v20 }
0x1126   :  { %10112 = vmatpush1.bf16.msra.mxu1 %v14647_v30  ;;  %v12297_v30 = vpack.c.bf16 %v10282_v29, %v10281_v28 }
0x1127   :  { %10113 = vmatprep.subr.bf16.mxu1 %v17514_v20 }
0x1128   :  { %12298 = vmatpush3.bf16.msra.mxu0 %v12297_v30 }
0x1129   :  { %12299 = vmatprep.subr.bf16.mxu0 %v17516_v38 }
0x112a   :  { %10114 = vmatpush1.bf16.msra.mxu1 %v14652_v31  ;;  %v10283_v31 = vld [vmem:[%s17477_s16 + $0x30] sm:$0xff] }
0x112b   :  { %10115 = vmatprep.subr.bf16.mxu1 %v17514_v20 }
0x112e   :  { %10116 = vmatpush1.bf16.msra.mxu1 %v14657_v32  ;;  %v10284_v32 = vld [vmem:[%s17477_s16 + $0x38] sm:$0xff]  ;;  %s13049_s16 = scalar_lea.vmem %s10379_s18, 32 }
0x112f   :  { %10117 = vmatprep.subr.bf16.mxu1 %v17514_v20  ;;  %p13050_p0 = scmp.ne.s32.totalorder %s10379_s18, %s13049_s16  ;;  %p13055_p2 = scmp.lt.s32.totalorder %s13049_s16, %s13049_s16 }
0x1131   :  { %p13056_p3 = por %p13055_p2, %p13054_p1 }
0x1132   :  { %10118 = vmatpush1.bf16.msra.mxu1 %v14662_v33  ;;  %v12300_v33 = vpack.c.bf16 %v10284_v32, %v10283_v31 }
0x1133   :  { %10236 = vmatprep.subr.bf16.mxu1 %v17514_v20  ;;  %p13057_p4 = pnand %p13056_p3, %p13050_p0 }
0x1134   :  { %12301 = vmatpush3.bf16.msra.mxu0 %v12300_v33 }
0x1135   :  { %12302 = vmatprep.subr.bf16.mxu0 %v17516_v38 }
0x1138   :  { %12304 = vmatpush3.bf16.msra.mxu0 %v12303_v59 }
0x1139   :  { %12305 = vmatprep.subr.bf16.mxu0 %v17516_v38 }
0x113c   :  { %12307 = vmatpush3.bf16.msra.mxu0 %v12306_v47 }
0x113d   :  { %12308 = vmatprep.subr.bf16.mxu0 %v17516_v38 }
0x1140   :  { %12310 = vmatpush3.bf16.msra.mxu0 %v12309_v14 }
0x1141   :  { %12311 = vmatprep.subr.bf16.mxu0 %v17516_v38  ;;  %v17520_v38 = vld [vmem:[#allocation15_spill] sm:$0xff] }
0x1144   :  { %12313 = vmatpush3.bf16.msra.mxu0 %v12312_v48 }
0x11d8   :  { %v10073_v44 = vpop.f32.mrb[62].mxu1  ;;  %v10213_v2 = vpop.f32.mrb[166].mxu0 }
0x11d9   :  { %v10075_v41 = vpop.f32.mrb[63].mxu1  ;;  %v10215_v18 = vpop.f32.mrb[167].mxu0  ;;  %v10078_v55 = vpack.c.bf16 %v10073_v44, %v10073_v44  ;;  %v10218_v57 = vpack.c.bf16 %v10213_v2, %v10213_v2 }
0x11da   :  { %v10079_v37 = vpack.c.bf16 %v10075_v41, %v10075_v41  ;;  %v10219_v11 = vpack.c.bf16 %v10215_v18, %v10215_v18 }
0x11dc   :  { %11341 = vmatprep.mubr.msk.bf16.mxu1 %vm9605_vm6, %v10079_v37 }
0x11dd   :  { %10128 = vmatmul.mubr.bf16.vlgmr.msra.gmra.mrb[64].mxu1 %v10078_v55 }
0x11de   :  { %10237 = vmatpush1.bf16.msra.mxu1 %v14667_v34  ;;  %11345 = vmatprep.mubr.msk.bf16.mxu1 %vm9605_vm6, %v10219_v11  ;;  %v17523_v34 = vld [vmem:[#allocation18_spill] sm:$0xff] }
0x11df   :  { %10238 = vmatprep.subr.bf16.mxu1 %v17514_v20 }
0x11e2   :  { %10239 = vmatpush1.bf16.msra.mxu1 %v14672_v35  ;;  %v17525_v35 = vld [vmem:[#allocation20_spill] sm:$0xff] }
0x11e3   :  { %10240 = vmatprep.subr.bf16.mxu1 %v17514_v20 }
0x11e6   :  { %10241 = vmatpush1.bf16.msra.mxu1 %v17520_v38 }
0x11e7   :  { %10242 = vmatprep.subr.bf16.mxu1 %v17514_v20 }
0x11ea   :  { %10243 = vmatpush1.bf16.msra.mxu1 %v17521_v50 }
0x11eb   :  { %10244 = vmatprep.subr.bf16.mxu1 %v17514_v20 }
0x11ee   :  { %10245 = vmatpush1.bf16.msra.mxu1 %v17522_v9 }
0x11ef   :  { %10246 = vmatprep.subr.bf16.mxu1 %v17514_v20 }
0x11f2   :  { %10247 = vmatpush1.bf16.msra.mxu1 %v17523_v34 }
0x11f3   :  { %10248 = vmatprep.subr.bf16.mxu1 %v17514_v20 }
0x11f6   :  { %10249 = vmatpush1.bf16.msra.mxu1 %v17524_v40 }
0x11f7   :  { %10250 = vmatprep.subr.bf16.mxu1 %v17514_v20 }
0x11fa   :  { %10251 = vmatpush1.bf16.msra.mxu1 %v17525_v35 }
0x11fb   :  { %10252 = vmatprep.subr.bf16.mxu1 %v17514_v20 }
0x11fe   :  { %10253 = vmatpush1.bf16.msra.mxu1 %v17526_v17 }
0x11ff   :  { %10254 = vmatprep.subr.bf16.mxu1 %v17514_v20 }
0x1202   :  { %10255 = vmatpush1.bf16.msra.mxu1 %v17527_v6 }
0x1203   :  { %10256 = vmatprep.subr.bf16.mxu1 %v17514_v20 }
0x1206   :  { %10257 = vmatpush1.bf16.msra.mxu1 %v17528_v43 }
0x1207   :  { %10258 = vmatprep.subr.bf16.mxu1 %v17514_v20 }
0x120a   :  { %10259 = vmatpush1.bf16.msra.mxu1 %v17529_v5 }
0x120d   :  { %10269 = vmatmul.mubr.bf16.vlgmr.msra.gmra.mrb[64].mxu1 %v10218_v57 }
0x12e0   :  { %v10270_v45 = vpop.f32.mrb[64].mxu1 }
0x12e1   :  { %v12334_v20 = vadd.f32 %v11342_v7, %v10270_v45  ;;  %v10272_v63 = vpop.f32.mrb[65].mxu1 }
0x12e2   :  { %v10273_v62 = vpop.f32.mrb[66].mxu1 }
0x12e3   :  { %v10274_v53 = vpop.f32.mrb[67].mxu1  ;;  %11984 = vmatmul.mubr.f32.vlgmr.msra.gmra.mrb[168].mxu0 %v12334_v20 }
0x13b6   :  { %v10366_v42 = vpop.f32.mrb[168].mxu0 }
0x13b7   :  { %v10367_v54 = vadd.f32 %v11346_v10, %v10366_v42  ;;  %v11985_v8 = vpop.f32.mrb[169].mxu0 }
0x13b9   :  { %10371 = vst.msk [vmem:[#allocation6] sm:$0x3] %vm10370_vm8, %v10367_v54 }
0x13ba   :  { %13060 = shalt.err (!%p13057_p4)
}
0x13bb   :  { %s13061_s19 = scalar_lea.hbm %s17482_s21, 32 }
0x13bc   :  { %p13062_p5 = scmp.ne.s32.totalorder %s17482_s21, %s13061_s19  ;;  %p13065_p6 = scmp.lt.u32.totalorder %s13061_s19, %s17482_s21 }
0x13be   :  { %p13067_p7 = pnand %p13065_p6, %p13062_p5 }
0x13c0   :  { %13070 = shalt.err (!%p13067_p7)
}
0x13c1   :  { %10381 = dma.vmem_to_hbm [thread:$0]  %s10379_s18, 32, %s17482_s21, [#allocation7]  }
0x13c2   :  { %13077 = dma.done.wait [#allocation7], 32  }
0x13c3   :  { %13078 = vsyncadd [#allocation7], 4294967264 }
0x13c4   :  { %10385 = vsyncpa [#allocation7], 1 }
0x13c5   :  { %10386 = vsyncmov [#allocation5] }
0x13c8   :  { %s10387_s30 = vpop.sfrf %10386 }
0x13c9   :  { %p11347_p8 = scmp.ne.s32.totalorder %s10387_s30, 0 }
0x13cb   :  { %10391 = shalt.err (%p11347_p8)  }
0x13cc   :  { %10393 = vsyncmov [#allocation5 + $0x1] }
0x13cf   :  { %s10394_s5 = vpop.sfrf %10393 }
0x13d0   :  { %p11348_p9 = scmp.ne.s32.totalorder %s10394_s5, 0 }
0x13d2   :  { %10398 = shalt.err (%p11348_p9)  }
0x13d3   :  { %10400 = vsyncmov [#allocation5 + $0x2] }
0x13d6   :  { %s10401_s12 = vpop.sfrf %10400 }
0x13d7   :  { %p11349_p10 = scmp.ne.s32.totalorder %s10401_s12, 0 }
0x13d9   :  { %10405 = shalt.err (%p11349_p10)  }

</bundles_post_ra>
